<compile_context>
chip_gen: v6e
topology: v6e:2x2x1
jax: 0.10.0
libtpu: 0.0.40
codegen_flags: <defaults>
</compile_context>

<pallas_src>
import jax
import jax.numpy as jnp
from jax import lax
from jax.experimental import pallas as pl
from jax.experimental.pallas import tpu as pltpu


# ---------------- geometry fixed by the PyTorch module ----------------
CIN, C1, C2 = 3, 20, 10          # conv channel counts
KS, STRIDE = 5, 2                # kernel size / stride of both convs
H_IN, W_IN = 77, 57              # smallest input giving the 10*17*12 flatten
H1, W1 = 37, 27                  # conv1 output spatial dims
H2, W2 = 17, 12                  # conv2 output spatial dims
D_HID = 128                      # affine1 width

RPB = 40                         # rows per batch element in the stacked H-phase layout
K1 = 176                         # conv1 GEMM K = CIN*W_IN = 171, padded to mult of 8
N1 = 544                         # conv1 GEMM N = C1*W1   = 540, padded to mult of 8
N2 = 128                         # conv2 GEMM N = C2*W2   = 120, padded to 128 lanes
K_AFF = H2 * N2                  # affine1 long-K GEMM K = 2176


# ------------------------------ Pallas kernel ------------------------------

def _policy_conv_kernel(xh2_ref, t_ref, b1_ref, u_ref, b2_ref,
                        w1f_ref, ba_ref, whv_ref, bhv_ref,
                        probs_ref, value_ref,
                        acc1_ref, o1_ref, o2_ref, hin_ref):
    """Fused conv1 -> conv2 -> affine1(+ReLU) -> action-softmax / value (batch fused in M)."""
    n = probs_ref.shape[0]
    m1 = acc1_ref.shape[0]                      # n * RPB fused GEMM rows

    # conv2's shifted tap windows read a few rows past the conv1 output: make them defined.
    o1_ref[m1:, :] = jnp.zeros((o1_ref.shape[0] - m1, N1), o1_ref.dtype)
    # rows >= n of the flat affine1 LHS are never written: keep them finite (zeros).
    hin_ref[...] = jnp.zeros_like(hin_ref)

    # ---- conv1: 5 banded GEMMs; batch + both output H-phases fused into M, so each
    #      t[i] is pushed into the MXU exactly once.  f32 VMEM accumulator (too big for vregs).
    for i in range(KS):
        d = jnp.dot(xh2_ref[i % 2, i // 2:i // 2 + m1, :], t_ref[i],
                    preferred_element_type=jnp.float32)
        if i == 0:
            acc1_ref[...] = d
        else:
            acc1_ref[...] += d
    o1_ref[0:m1, :] = (acc1_ref[...] + b1_ref[...]).astype(o1_ref.dtype)

    # ---- conv2 evaluated at H-stride 1 over the natural-order conv1 output (odd rows
    #      discarded later).  Pure dot-accumulate chain (MRB-friendly on v7x); each u[j]
    #      is pushed exactly once; every LHS window is a contiguous slice.
    acc2 = jnp.dot(o1_ref[0:m1, :], u_ref[0], preferred_element_type=jnp.float32)
    for j in range(1, KS):
        acc2 = acc2 + jnp.dot(o1_ref[j:j + m1, :], u_ref[j],
                              preferred_element_type=jnp.float32)
    o2_ref[...] = (acc2 + b2_ref[...]).astype(o2_ref.dtype)

    # ---- gather the stride-2 conv2 output rows of each batch element into ONE flat,
    #      lane-major (1, 2176) activation row (34 tiny copies; store slot has slack).
    for b in range(n):
        for oy in range(H2):
            hin_ref[b:b + 1, oy * N2:(oy + 1) * N2] = \
                o2_ref[b * RPB + 2 * oy:b * RPB + 2 * oy + 1, :]

    # ---- affine1 (+ReLU) as ONE long-K GEMM, then fused action/value heads + softmax.
    h = jnp.dot(hin_ref[...], w1f_ref[...], preferred_element_type=jnp.float32)
    h = jnp.maximum(h + ba_ref[...], 0.0)
    av = jnp.dot(h, whv_ref[...], preferred_element_type=jnp.float32) + bhv_ref[...]
    logits = av[:, 0:2]
    e = jnp.exp(logits - jnp.max(logits, axis=-1, keepdims=True))
    probs = e / jnp.sum(e, axis=-1, keepdims=True)
    probs_ref[...] = probs[0:n, :]
    value_ref[...] = av[0:n, 2:3]


# ------------------------ host-side weight preparation ------------------------

def _band_selector(kw, w_in, w_out, stride):
    """S[j, w, ox] = 1.0 iff w == stride*ox + j  (folds W-axis taps + stride)."""
    w = jnp.arange(w_in).reshape(1, w_in, 1)
    ox = jnp.arange(w_out).reshape(1, 1, w_out)
    j = jnp.arange(kw).reshape(kw, 1, 1)
    return (w == stride * ox + j).astype(jnp.float32)


def prepare_policy_conv(params):
    """One-time layout prep of the PyTorch-style parameters for the fused kernel."""
    bf16, f32 = jnp.bfloat16, jnp.float32

    # conv1 -> banded matrices T[i]: (K1, N1); rows ordered (ci, w), cols (co, ox).
    s1 = _band_selector(KS, W_IN, W1, STRIDE)                       # (5, 57, 27)
    t = jnp.einsum("ocij,jwx->icwox", params["conv1_w"], s1)
    t = t.reshape(KS, CIN * W_IN, C1 * W1)
    t = jnp.pad(t, ((0, 0), (0, K1 - CIN * W_IN), (0, N1 - C1 * W1)))
    b1 = jnp.pad(jnp.repeat(params["conv1_b"], W1), (0, N1 - C1 * W1)).reshape(1, N1)

    # conv2 -> banded matrices U[j]: (N1, N2); rows ordered (ci, w), cols (co, ox).
    s2 = _band_selector(KS, W1, W2, STRIDE)                         # (5, 27, 12)
    u = jnp.einsum("ocij,jwx->icwox", params["conv2_w"], s2)
    u = u.reshape(KS, C1 * W1, C2 * W2)
    u = jnp.pad(u, ((0, 0), (0, N1 - C1 * W1), (0, N2 - C2 * W2)))
    b2 = jnp.pad(jnp.repeat(params["conv2_b"], W2), (0, N2 - C2 * W2)).reshape(1, N2)

    # affine1 weight flattened to ONE long-K (2176, 128) matrix whose row order matches
    # the kernel's flat activation layout: K index = oy*128 + (c2*W2 + ox2); pad rows zero.
    w1f = params["affine1_w"].reshape(D_HID, C2, H2, W2)
    w1f = w1f.transpose(2, 1, 3, 0).reshape(H2, C2 * W2, D_HID)
    w1f = jnp.pad(w1f, ((0, 0), (0, N2 - C2 * W2), (0, 0))).reshape(K_AFF, D_HID)
    b_aff = params["affine1_b"].reshape(1, D_HID)

    # fused heads: [action(2) | value(1)]
    whv = jnp.concatenate([params["action_w"].T, params["value_w"].T], axis=1)
    bhv = jnp.concatenate([params["action_b"], params["value_b"]]).reshape(1, 3)

    return dict(
        t=t.astype(bf16), b1=b1.astype(f32),
        u=u.astype(bf16), b2=b2.astype(f32),
        w1f=w1f.astype(bf16), b_aff=b_aff.astype(f32),
        whv=whv.astype(f32), bhv=bhv.astype(f32),
    )


# --------------------------------- forward ---------------------------------

def policy_conv_forward(x, prep):
    """PolicyConv.forward for NCHW float32 x of shape (N, 3, 77, 57)."""
    n = x.shape[0]
    assert x.shape[1:] == (CIN, H_IN, W_IN)
    m1 = n * RPB

    # 2-way H-phase split with the batch stacked along rows (pure layout, no im2col):
    #   xh2[r, b*RPB + hh, ci*W_IN + w] = x[b, ci, 2*hh + r, w]
    xp = jnp.pad(x, ((0, 0), (0, 0), (0, 2 * RPB - H_IN), (0, 0)))
    xh2 = xp.reshape(n, CIN, RPB, 2, W_IN).transpose(3, 0, 2, 1, 4)
    xh2 = xh2.reshape(2, m1, CIN * W_IN)
    xh2 = jnp.pad(xh2, ((0, 0), (0, 8), (0, K1 - CIN * W_IN))).astype(jnp.bfloat16)

    hrows = ((n + 7) // 8) * 8
    probs, values = pl.pallas_call(
        _policy_conv_kernel,
        out_shape=(jax.ShapeDtypeStruct((n, 2), jnp.float32),
                   jax.ShapeDtypeStruct((n, 1), jnp.float32)),
        scratch_shapes=[
            pltpu.VMEM((m1, N1), jnp.float32),         # conv1 f32 accumulator (batch-fused M)
            pltpu.VMEM((m1 + 8, N1), jnp.bfloat16),    # conv1 output, natural H order (+pad rows)
            pltpu.VMEM((m1, N2), jnp.bfloat16),        # conv2 output at H-stride 1
            pltpu.VMEM((hrows, K_AFF), jnp.bfloat16),  # flat long-K affine1 LHS
        ],
    )(xh2, prep["t"], prep["b1"], prep["u"], prep["b2"],
      prep["w1f"], prep["b_aff"], prep["whv"], prep["bhv"])
    return probs, values


# --------------------------- params / reference -----------------------------

def init_params(key):
    def uniform(k, shape, fan_in):
        bound = 1.0 / (fan_in ** 0.5)
        return jax.random.uniform(k, shape, jnp.float32, -bound, bound)

    ks = jax.random.split(key, 10)
    return {
        "conv1_w": uniform(ks[0], (20, 3, 5, 5), 3 * 25),
        "conv1_b": uniform(ks[1], (20,), 3 * 25),
        "conv2_w": uniform(ks[2], (10, 20, 5, 5), 20 * 25),
        "conv2_b": uniform(ks[3], (10,), 20 * 25),
        "affine1_w": uniform(ks[4], (128, 10 * 17 * 12), 10 * 17 * 12),
        "affine1_b": uniform(ks[5], (128,), 10 * 17 * 12),
        "action_w": uniform(ks[6], (2, 128), 128),
        "action_b": uniform(ks[7], (2,), 128),
        "value_w": uniform(ks[8], (1, 128), 128),
        "value_b": uniform(ks[9], (1,), 128),
    }


def ref_forward(x, params):
    dn = ("NCHW", "OIHW", "NCHW")
    y = lax.conv_general_dilated(x, params["conv1_w"], (2, 2), "VALID",
                                 dimension_numbers=dn)
    y = y + params["conv1_b"][None, :, None, None]
    y = lax.conv_general_dilated(y, params["conv2_w"], (2, 2), "VALID",
                                 dimension_numbers=dn)
    y = y + params["conv2_b"][None, :, None, None]
    h = y.reshape(y.shape[0], -1)
    h = jax.nn.relu(h @ params["affine1_w"].T + params["affine1_b"])
    logits = h @ params["action_w"].T + params["action_b"]
    values = h @ params["value_w"].T + params["value_b"]
    return jax.nn.softmax(logits, axis=-1), values


# --------------------------------- main --------------------------------------

if __name__ == "__main__":
    key = jax.random.PRNGKey(0)
    pkey, xkey = jax.random.split(key)
    params = init_params(pkey)

    # Smallest NCHW input consistent with affine1's 10*17*12 flatten size:
    # (77, 57) -conv1-> (37, 27) -conv2-> (17, 12).
    x = jax.random.normal(xkey, (2, CIN, H_IN, W_IN), jnp.float32)

    prep = prepare_policy_conv(params)          # one-time weight layout prep
    fwd = jax.jit(policy_conv_forward)
    probs, values = fwd(x, prep)
    jax.block_until_ready((probs, values))

    ref_probs, ref_values = ref_forward(x, params)
    assert probs.shape == (2, 2) and values.shape == (2, 1)
    assert bool(jnp.allclose(jnp.sum(probs, axis=-1), 1.0, atol=1e-5))
    assert bool(jnp.allclose(probs, ref_probs, atol=2e-2, rtol=2e-2))
    assert bool(jnp.allclose(values, ref_values, atol=2e-2, rtol=2e-2))
    print("KERNEL_OK")
</pallas_src>

<mosaic_0001>
module attributes {stable_mosaic.version = 11 : i64} {
  func.func @_policy_conv_kernel(%arg0: memref<2x88x176xbf16, #tpu.memory_space<vmem>>, %arg1: memref<5x176x544xbf16, #tpu.memory_space<vmem>>, %arg2: memref<1x544xf32, #tpu.memory_space<vmem>>, %arg3: memref<5x544x128xbf16, #tpu.memory_space<vmem>>, %arg4: memref<1x128xf32, #tpu.memory_space<vmem>>, %arg5: memref<2176x128xbf16, #tpu.memory_space<vmem>>, %arg6: memref<1x128xf32, #tpu.memory_space<vmem>>, %arg7: memref<128x3xf32, #tpu.memory_space<vmem>>, %arg8: memref<1x3xf32, #tpu.memory_space<vmem>>, %arg9: memref<2x2xf32, #tpu.memory_space<vmem>>, %arg10: memref<2x1xf32, #tpu.memory_space<vmem>>, %arg11: memref<80x544xf32, #tpu.memory_space<vmem>>, %arg12: memref<88x544xbf16, #tpu.memory_space<vmem>>, %arg13: memref<80x128xbf16, #tpu.memory_space<vmem>>, %arg14: memref<8x2176xbf16, #tpu.memory_space<vmem>>) attributes {dimension_semantics = [], scalar_prefetch = 0 : i64, scratch_operands = 4 : i64, tpu.core_type = #tpu.core_type<tc>} {
    %cst = arith.constant 0.000000e+00 : bf16
    %0 = vector.broadcast %cst : bf16 to vector<8x544xbf16>
    %c80 = arith.constant 80 : index
    %c0 = arith.constant 0 : index
    %1 = vector.load %arg12[%c80, %c0] : memref<88x544xbf16, #tpu.memory_space<vmem>>, vector<8x544xbf16>
    tpu.vector_store %arg12[%c80, %c0], %0 {strides = array<i32>} : memref<88x544xbf16, #tpu.memory_space<vmem>>, vector<8x544xbf16>,
    %cst_0 = arith.constant 0.000000e+00 : bf16
    %2 = vector.broadcast %cst_0 : bf16 to vector<8x2176xbf16>
    %c0_1 = arith.constant 0 : index
    %c0_2 = arith.constant 0 : index
    %3 = vector.load %arg14[%c0_1, %c0_2] : memref<8x2176xbf16, #tpu.memory_space<vmem>>, vector<8x2176xbf16>
    tpu.vector_store %arg14[%c0_1, %c0_2], %2 {strides = array<i32>} : memref<8x2176xbf16, #tpu.memory_space<vmem>>, vector<8x2176xbf16>,
    %c0_3 = arith.constant 0 : index
    %c0_4 = arith.constant 0 : index
    %c0_5 = arith.constant 0 : index
    %4 = vector.load %arg0[%c0_3, %c0_4, %c0_5] : memref<2x88x176xbf16, #tpu.memory_space<vmem>>, vector<1x80x176xbf16>
    %5 = vector.shape_cast %4 : vector<1x80x176xbf16> to vector<80x176xbf16>
    %c0_6 = arith.constant 0 : index
    %c0_7 = arith.constant 0 : index
    %c0_8 = arith.constant 0 : index
    %6 = vector.load %arg1[%c0_6, %c0_7, %c0_8] : memref<5x176x544xbf16, #tpu.memory_space<vmem>>, vector<1x176x544xbf16>
    %7 = vector.shape_cast %6 : vector<1x176x544xbf16> to vector<176x544xbf16>
    %cst_9 = arith.constant dense<0.000000e+00> : vector<80x544xf32>
    %8 = tpu.matmul %5, %7, %cst_9 {dimension_numbers = #tpu.dot_dimension_numbers<[1], [0], [0], [1], [0, 0, 1, 1], [], []>} : vector<80x176xbf16>, vector<176x544xbf16>, vector<80x544xf32> -> vector<80x544xf32>
    %c0_10 = arith.constant 0 : index
    %c0_11 = arith.constant 0 : index
    %9 = vector.load %arg11[%c0_10, %c0_11] : memref<80x544xf32, #tpu.memory_space<vmem>>, vector<80x544xf32>
    tpu.vector_store %arg11[%c0_10, %c0_11], %8 {strides = array<i32>} : memref<80x544xf32, #tpu.memory_space<vmem>>, vector<80x544xf32>,
    %c1 = arith.constant 1 : index
    %c0_12 = arith.constant 0 : index
    %c0_13 = arith.constant 0 : index
    %10 = vector.load %arg0[%c1, %c0_12, %c0_13] : memref<2x88x176xbf16, #tpu.memory_space<vmem>>, vector<1x80x176xbf16>
    %11 = vector.shape_cast %10 : vector<1x80x176xbf16> to vector<80x176xbf16>
    %c1_14 = arith.constant 1 : index
    %c0_15 = arith.constant 0 : index
    %c0_16 = arith.constant 0 : index
    %12 = vector.load %arg1[%c1_14, %c0_15, %c0_16] : memref<5x176x544xbf16, #tpu.memory_space<vmem>>, vector<1x176x544xbf16>
    %13 = vector.shape_cast %12 : vector<1x176x544xbf16> to vector<176x544xbf16>
    %cst_17 = arith.constant dense<0.000000e+00> : vector<80x544xf32>
    %14 = tpu.matmul %11, %13, %cst_17 {dimension_numbers = #tpu.dot_dimension_numbers<[1], [0], [0], [1], [0, 0, 1, 1], [], []>} : vector<80x176xbf16>, vector<176x544xbf16>, vector<80x544xf32> -> vector<80x544xf32>
    %c0_18 = arith.constant 0 : index
    %c0_19 = arith.constant 0 : index
    %15 = vector.load %arg11[%c0_18, %c0_19] : memref<80x544xf32, #tpu.memory_space<vmem>>, vector<80x544xf32>
    %16 = arith.addf %15, %14 : vector<80x544xf32>
    %c0_20 = arith.constant 0 : index
    %c0_21 = arith.constant 0 : index
    %17 = vector.load %arg11[%c0_20, %c0_21] : memref<80x544xf32, #tpu.memory_space<vmem>>, vector<80x544xf32>
    tpu.vector_store %arg11[%c0_20, %c0_21], %16 {strides = array<i32>} : memref<80x544xf32, #tpu.memory_space<vmem>>, vector<80x544xf32>,
    %c0_22 = arith.constant 0 : index
    %c1_23 = arith.constant 1 : index
    %c0_24 = arith.constant 0 : index
    %18 = vector.load %arg0[%c0_22, %c1_23, %c0_24] : memref<2x88x176xbf16, #tpu.memory_space<vmem>>, vector<1x80x176xbf16>
    %19 = vector.shape_cast %18 : vector<1x80x176xbf16> to vector<80x176xbf16>
    %c2 = arith.constant 2 : index
    %c0_25 = arith.constant 0 : index
    %c0_26 = arith.constant 0 : index
    %20 = vector.load %arg1[%c2, %c0_25, %c0_26] : memref<5x176x544xbf16, #tpu.memory_space<vmem>>, vector<1x176x544xbf16>
    %21 = vector.shape_cast %20 : vector<1x176x544xbf16> to vector<176x544xbf16>
    %cst_27 = arith.constant dense<0.000000e+00> : vector<80x544xf32>
    %22 = tpu.matmul %19, %21, %cst_27 {dimension_numbers = #tpu.dot_dimension_numbers<[1], [0], [0], [1], [0, 0, 1, 1], [], []>} : vector<80x176xbf16>, vector<176x544xbf16>, vector<80x544xf32> -> vector<80x544xf32>
    %c0_28 = arith.constant 0 : index
    %c0_29 = arith.constant 0 : index
    %23 = vector.load %arg11[%c0_28, %c0_29] : memref<80x544xf32, #tpu.memory_space<vmem>>, vector<80x544xf32>
    %24 = arith.addf %23, %22 : vector<80x544xf32>
    %c0_30 = arith.constant 0 : index
    %c0_31 = arith.constant 0 : index
    %25 = vector.load %arg11[%c0_30, %c0_31] : memref<80x544xf32, #tpu.memory_space<vmem>>, vector<80x544xf32>
    tpu.vector_store %arg11[%c0_30, %c0_31], %24 {strides = array<i32>} : memref<80x544xf32, #tpu.memory_space<vmem>>, vector<80x544xf32>,
    %c1_32 = arith.constant 1 : index
    %c1_33 = arith.constant 1 : index
    %c0_34 = arith.constant 0 : index
    %26 = vector.load %arg0[%c1_32, %c1_33, %c0_34] : memref<2x88x176xbf16, #tpu.memory_space<vmem>>, vector<1x80x176xbf16>
    %27 = vector.shape_cast %26 : vector<1x80x176xbf16> to vector<80x176xbf16>
    %c3 = arith.constant 3 : index
    %c0_35 = arith.constant 0 : index
    %c0_36 = arith.constant 0 : index
    %28 = vector.load %arg1[%c3, %c0_35, %c0_36] : memref<5x176x544xbf16, #tpu.memory_space<vmem>>, vector<1x176x544xbf16>
    %29 = vector.shape_cast %28 : vector<1x176x544xbf16> to vector<176x544xbf16>
    %cst_37 = arith.constant dense<0.000000e+00> : vector<80x544xf32>
    %30 = tpu.matmul %27, %29, %cst_37 {dimension_numbers = #tpu.dot_dimension_numbers<[1], [0], [0], [1], [0, 0, 1, 1], [], []>} : vector<80x176xbf16>, vector<176x544xbf16>, vector<80x544xf32> -> vector<80x544xf32>
    %c0_38 = arith.constant 0 : index
    %c0_39 = arith.constant 0 : index
    %31 = vector.load %arg11[%c0_38, %c0_39] : memref<80x544xf32, #tpu.memory_space<vmem>>, vector<80x544xf32>
    %32 = arith.addf %31, %30 : vector<80x544xf32>
    %c0_40 = arith.constant 0 : index
    %c0_41 = arith.constant 0 : index
    %33 = vector.load %arg11[%c0_40, %c0_41] : memref<80x544xf32, #tpu.memory_space<vmem>>, vector<80x544xf32>
    tpu.vector_store %arg11[%c0_40, %c0_41], %32 {strides = array<i32>} : memref<80x544xf32, #tpu.memory_space<vmem>>, vector<80x544xf32>,
    %c0_42 = arith.constant 0 : index
    %c2_43 = arith.constant 2 : index
    %c0_44 = arith.constant 0 : index
    %34 = vector.load %arg0[%c0_42, %c2_43, %c0_44] : memref<2x88x176xbf16, #tpu.memory_space<vmem>>, vector<1x80x176xbf16>
    %35 = vector.shape_cast %34 : vector<1x80x176xbf16> to vector<80x176xbf16>
    %c4 = arith.constant 4 : index
    %c0_45 = arith.constant 0 : index
    %c0_46 = arith.constant 0 : index
    %36 = vector.load %arg1[%c4, %c0_45, %c0_46] : memref<5x176x544xbf16, #tpu.memory_space<vmem>>, vector<1x176x544xbf16>
    %37 = vector.shape_cast %36 : vector<1x176x544xbf16> to vector<176x544xbf16>
    %cst_47 = arith.constant dense<0.000000e+00> : vector<80x544xf32>
    %38 = tpu.matmul %35, %37, %cst_47 {dimension_numbers = #tpu.dot_dimension_numbers<[1], [0], [0], [1], [0, 0, 1, 1], [], []>} : vector<80x176xbf16>, vector<176x544xbf16>, vector<80x544xf32> -> vector<80x544xf32>
    %c0_48 = arith.constant 0 : index
    %c0_49 = arith.constant 0 : index
    %39 = vector.load %arg11[%c0_48, %c0_49] : memref<80x544xf32, #tpu.memory_space<vmem>>, vector<80x544xf32>
    %40 = arith.addf %39, %38 : vector<80x544xf32>
    %c0_50 = arith.constant 0 : index
    %c0_51 = arith.constant 0 : index
    %41 = vector.load %arg11[%c0_50, %c0_51] : memref<80x544xf32, #tpu.memory_space<vmem>>, vector<80x544xf32>
    tpu.vector_store %arg11[%c0_50, %c0_51], %40 {strides = array<i32>} : memref<80x544xf32, #tpu.memory_space<vmem>>, vector<80x544xf32>,
    %c0_52 = arith.constant 0 : index
    %c0_53 = arith.constant 0 : index
    %42 = vector.load %arg11[%c0_52, %c0_53] : memref<80x544xf32, #tpu.memory_space<vmem>>, vector<80x544xf32>
    %c0_54 = arith.constant 0 : index
    %c0_55 = arith.constant 0 : index
    %43 = vector.load %arg2[%c0_54, %c0_55] : memref<1x544xf32, #tpu.memory_space<vmem>>, vector<1x544xf32>
    %44 = vector.broadcast %43 : vector<1x544xf32> to vector<80x544xf32>
    %45 = arith.addf %42, %44 : vector<80x544xf32>
    %46 = arith.truncf %45 : vector<80x544xf32> to vector<80x544xbf16>
    %c0_56 = arith.constant 0 : index
    %c0_57 = arith.constant 0 : index
    %47 = vector.load %arg12[%c0_56, %c0_57] : memref<88x544xbf16, #tpu.memory_space<vmem>>, vector<80x544xbf16>
    tpu.vector_store %arg12[%c0_56, %c0_57], %46 {strides = array<i32>} : memref<88x544xbf16, #tpu.memory_space<vmem>>, vector<80x544xbf16>,
    %c0_58 = arith.constant 0 : index
    %c0_59 = arith.constant 0 : index
    %48 = vector.load %arg12[%c0_58, %c0_59] : memref<88x544xbf16, #tpu.memory_space<vmem>>, vector<80x544xbf16>
    %c0_60 = arith.constant 0 : index
    %c0_61 = arith.constant 0 : index
    %c0_62 = arith.constant 0 : index
    %49 = vector.load %arg3[%c0_60, %c0_61, %c0_62] : memref<5x544x128xbf16, #tpu.memory_space<vmem>>, vector<1x544x128xbf16>
    %50 = vector.shape_cast %49 : vector<1x544x128xbf16> to vector<544x128xbf16>
    %cst_63 = arith.constant dense<0.000000e+00> : vector<80x128xf32>
    %51 = tpu.matmul %48, %50, %cst_63 {dimension_numbers = #tpu.dot_dimension_numbers<[1], [0], [0], [1], [0, 0, 1, 1], [], []>} : vector<80x544xbf16>, vector<544x128xbf16>, vector<80x128xf32> -> vector<80x128xf32>
    %c1_64 = arith.constant 1 : index
    %c0_65 = arith.constant 0 : index
    %52 = vector.load %arg12[%c1_64, %c0_65] : memref<88x544xbf16, #tpu.memory_space<vmem>>, vector<80x544xbf16>
    %c1_66 = arith.constant 1 : index
    %c0_67 = arith.constant 0 : index
    %c0_68 = arith.constant 0 : index
    %53 = vector.load %arg3[%c1_66, %c0_67, %c0_68] : memref<5x544x128xbf16, #tpu.memory_space<vmem>>, vector<1x544x128xbf16>
    %54 = vector.shape_cast %53 : vector<1x544x128xbf16> to vector<544x128xbf16>
    %cst_69 = arith.constant dense<0.000000e+00> : vector<80x128xf32>
    %55 = tpu.matmul %52, %54, %cst_69 {dimension_numbers = #tpu.dot_dimension_numbers<[1], [0], [0], [1], [0, 0, 1, 1], [], []>} : vector<80x544xbf16>, vector<544x128xbf16>, vector<80x128xf32> -> vector<80x128xf32>
    %56 = arith.addf %51, %55 : vector<80x128xf32>
    %c2_70 = arith.constant 2 : index
    %c0_71 = arith.constant 0 : index
    %57 = vector.load %arg12[%c2_70, %c0_71] : memref<88x544xbf16, #tpu.memory_space<vmem>>, vector<80x544xbf16>
    %c2_72 = arith.constant 2 : index
    %c0_73 = arith.constant 0 : index
    %c0_74 = arith.constant 0 : index
    %58 = vector.load %arg3[%c2_72, %c0_73, %c0_74] : memref<5x544x128xbf16, #tpu.memory_space<vmem>>, vector<1x544x128xbf16>
    %59 = vector.shape_cast %58 : vector<1x544x128xbf16> to vector<544x128xbf16>
    %cst_75 = arith.constant dense<0.000000e+00> : vector<80x128xf32>
    %60 = tpu.matmul %57, %59, %cst_75 {dimension_numbers = #tpu.dot_dimension_numbers<[1], [0], [0], [1], [0, 0, 1, 1], [], []>} : vector<80x544xbf16>, vector<544x128xbf16>, vector<80x128xf32> -> vector<80x128xf32>
    %61 = arith.addf %56, %60 : vector<80x128xf32>
    %c3_76 = arith.constant 3 : index
    %c0_77 = arith.constant 0 : index
    %62 = vector.load %arg12[%c3_76, %c0_77] : memref<88x544xbf16, #tpu.memory_space<vmem>>, vector<80x544xbf16>
    %c3_78 = arith.constant 3 : index
    %c0_79 = arith.constant 0 : index
    %c0_80 = arith.constant 0 : index
    %63 = vector.load %arg3[%c3_78, %c0_79, %c0_80] : memref<5x544x128xbf16, #tpu.memory_space<vmem>>, vector<1x544x128xbf16>
    %64 = vector.shape_cast %63 : vector<1x544x128xbf16> to vector<544x128xbf16>
    %cst_81 = arith.constant dense<0.000000e+00> : vector<80x128xf32>
    %65 = tpu.matmul %62, %64, %cst_81 {dimension_numbers = #tpu.dot_dimension_numbers<[1], [0], [0], [1], [0, 0, 1, 1], [], []>} : vector<80x544xbf16>, vector<544x128xbf16>, vector<80x128xf32> -> vector<80x128xf32>
    %66 = arith.addf %61, %65 : vector<80x128xf32>
    %c4_82 = arith.constant 4 : index
    %c0_83 = arith.constant 0 : index
    %67 = vector.load %arg12[%c4_82, %c0_83] : memref<88x544xbf16, #tpu.memory_space<vmem>>, vector<80x544xbf16>
    %c4_84 = arith.constant 4 : index
    %c0_85 = arith.constant 0 : index
    %c0_86 = arith.constant 0 : index
    %68 = vector.load %arg3[%c4_84, %c0_85, %c0_86] : memref<5x544x128xbf16, #tpu.memory_space<vmem>>, vector<1x544x128xbf16>
    %69 = vector.shape_cast %68 : vector<1x544x128xbf16> to vector<544x128xbf16>
    %cst_87 = arith.constant dense<0.000000e+00> : vector<80x128xf32>
    %70 = tpu.matmul %67, %69, %cst_87 {dimension_numbers = #tpu.dot_dimension_numbers<[1], [0], [0], [1], [0, 0, 1, 1], [], []>} : vector<80x544xbf16>, vector<544x128xbf16>, vector<80x128xf32> -> vector<80x128xf32>
    %71 = arith.addf %66, %70 : vector<80x128xf32>
    %c0_88 = arith.constant 0 : index
    %c0_89 = arith.constant 0 : index
    %72 = vector.load %arg4[%c0_88, %c0_89] : memref<1x128xf32, #tpu.memory_space<vmem>>, vector<1x128xf32>
    %73 = vector.broadcast %72 : vector<1x128xf32> to vector<80x128xf32>
    %74 = arith.addf %71, %73 : vector<80x128xf32>
    %75 = arith.truncf %74 : vector<80x128xf32> to vector<80x128xbf16>
    %c0_90 = arith.constant 0 : index
    %c0_91 = arith.constant 0 : index
    %76 = vector.load %arg13[%c0_90, %c0_91] : memref<80x128xbf16, #tpu.memory_space<vmem>>, vector<80x128xbf16>
    tpu.vector_store %arg13[%c0_90, %c0_91], %75 {strides = array<i32>} : memref<80x128xbf16, #tpu.memory_space<vmem>>, vector<80x128xbf16>,
    %c0_92 = arith.constant 0 : index
    %c0_93 = arith.constant 0 : index
    %77 = vector.load %arg13[%c0_92, %c0_93] : memref<80x128xbf16, #tpu.memory_space<vmem>>, vector<1x128xbf16>
    %c0_94 = arith.constant 0 : index
    %c0_95 = arith.constant 0 : index
    %78 = vector.load %arg14[%c0_94, %c0_95] : memref<8x2176xbf16, #tpu.memory_space<vmem>>, vector<1x128xbf16>
    tpu.vector_store %arg14[%c0_94, %c0_95], %77 {strides = array<i32>} : memref<8x2176xbf16, #tpu.memory_space<vmem>>, vector<1x128xbf16>,
    %c2_96 = arith.constant 2 : index
    %c0_97 = arith.constant 0 : index
    %79 = vector.load %arg13[%c2_96, %c0_97] : memref<80x128xbf16, #tpu.memory_space<vmem>>, vector<1x128xbf16>
    %c0_98 = arith.constant 0 : index
    %c128 = arith.constant 128 : index
    %80 = vector.load %arg14[%c0_98, %c128] : memref<8x2176xbf16, #tpu.memory_space<vmem>>, vector<1x128xbf16>
    tpu.vector_store %arg14[%c0_98, %c128], %79 {strides = array<i32>} : memref<8x2176xbf16, #tpu.memory_space<vmem>>, vector<1x128xbf16>,
    %c4_99 = arith.constant 4 : index
    %c0_100 = arith.constant 0 : index
    %81 = vector.load %arg13[%c4_99, %c0_100] : memref<80x128xbf16, #tpu.memory_space<vmem>>, vector<1x128xbf16>
    %c0_101 = arith.constant 0 : index
    %c256 = arith.constant 256 : index
    %82 = vector.load %arg14[%c0_101, %c256] : memref<8x2176xbf16, #tpu.memory_space<vmem>>, vector<1x128xbf16>
    tpu.vector_store %arg14[%c0_101, %c256], %81 {strides = array<i32>} : memref<8x2176xbf16, #tpu.memory_space<vmem>>, vector<1x128xbf16>,
    %c6 = arith.constant 6 : index
    %c0_102 = arith.constant 0 : index
    %83 = vector.load %arg13[%c6, %c0_102] : memref<80x128xbf16, #tpu.memory_space<vmem>>, vector<1x128xbf16>
    %c0_103 = arith.constant 0 : index
    %c384 = arith.constant 384 : index
    %84 = vector.load %arg14[%c0_103, %c384] : memref<8x2176xbf16, #tpu.memory_space<vmem>>, vector<1x128xbf16>
    tpu.vector_store %arg14[%c0_103, %c384], %83 {strides = array<i32>} : memref<8x2176xbf16, #tpu.memory_space<vmem>>, vector<1x128xbf16>,
    %c8 = arith.constant 8 : index
    %c0_104 = arith.constant 0 : index
    %85 = vector.load %arg13[%c8, %c0_104] : memref<80x128xbf16, #tpu.memory_space<vmem>>, vector<1x128xbf16>
    %c0_105 = arith.constant 0 : index
    %c512 = arith.constant 512 : index
    %86 = vector.load %arg14[%c0_105, %c512] : memref<8x2176xbf16, #tpu.memory_space<vmem>>, vector<1x128xbf16>
    tpu.vector_store %arg14[%c0_105, %c512], %85 {strides = array<i32>} : memref<8x2176xbf16, #tpu.memory_space<vmem>>, vector<1x128xbf16>,
    %c10 = arith.constant 10 : index
    %c0_106 = arith.constant 0 : index
    %87 = vector.load %arg13[%c10, %c0_106] : memref<80x128xbf16, #tpu.memory_space<vmem>>, vector<1x128xbf16>
    %c0_107 = arith.constant 0 : index
    %c640 = arith.constant 640 : index
    %88 = vector.load %arg14[%c0_107, %c640] : memref<8x2176xbf16, #tpu.memory_space<vmem>>, vector<1x128xbf16>
    tpu.vector_store %arg14[%c0_107, %c640], %87 {strides = array<i32>} : memref<8x2176xbf16, #tpu.memory_space<vmem>>, vector<1x128xbf16>,
    %c12 = arith.constant 12 : index
    %c0_108 = arith.constant 0 : index
    %89 = vector.load %arg13[%c12, %c0_108] : memref<80x128xbf16, #tpu.memory_space<vmem>>, vector<1x128xbf16>
    %c0_109 = arith.constant 0 : index
    %c768 = arith.constant 768 : index
    %90 = vector.load %arg14[%c0_109, %c768] : memref<8x2176xbf16, #tpu.memory_space<vmem>>, vector<1x128xbf16>
    tpu.vector_store %arg14[%c0_109, %c768], %89 {strides = array<i32>} : memref<8x2176xbf16, #tpu.memory_space<vmem>>, vector<1x128xbf16>,
    %c14 = arith.constant 14 : index
    %c0_110 = arith.constant 0 : index
    %91 = vector.load %arg13[%c14, %c0_110] : memref<80x128xbf16, #tpu.memory_space<vmem>>, vector<1x128xbf16>
    %c0_111 = arith.constant 0 : index
    %c896 = arith.constant 896 : index
    %92 = vector.load %arg14[%c0_111, %c896] : memref<8x2176xbf16, #tpu.memory_space<vmem>>, vector<1x128xbf16>
    tpu.vector_store %arg14[%c0_111, %c896], %91 {strides = array<i32>} : memref<8x2176xbf16, #tpu.memory_space<vmem>>, vector<1x128xbf16>,
    %c16 = arith.constant 16 : index
    %c0_112 = arith.constant 0 : index
    %93 = vector.load %arg13[%c16, %c0_112] : memref<80x128xbf16, #tpu.memory_space<vmem>>, vector<1x128xbf16>
    %c0_113 = arith.constant 0 : index
    %c1024 = arith.constant 1024 : index
    %94 = vector.load %arg14[%c0_113, %c1024] : memref<8x2176xbf16, #tpu.memory_space<vmem>>, vector<1x128xbf16>
    tpu.vector_store %arg14[%c0_113, %c1024], %93 {strides = array<i32>} : memref<8x2176xbf16, #tpu.memory_space<vmem>>, vector<1x128xbf16>,
    %c18 = arith.constant 18 : index
    %c0_114 = arith.constant 0 : index
    %95 = vector.load %arg13[%c18, %c0_114] : memref<80x128xbf16, #tpu.memory_space<vmem>>, vector<1x128xbf16>
    %c0_115 = arith.constant 0 : index
    %c1152 = arith.constant 1152 : index
    %96 = vector.load %arg14[%c0_115, %c1152] : memref<8x2176xbf16, #tpu.memory_space<vmem>>, vector<1x128xbf16>
    tpu.vector_store %arg14[%c0_115, %c1152], %95 {strides = array<i32>} : memref<8x2176xbf16, #tpu.memory_space<vmem>>, vector<1x128xbf16>,
    %c20 = arith.constant 20 : index
    %c0_116 = arith.constant 0 : index
    %97 = vector.load %arg13[%c20, %c0_116] : memref<80x128xbf16, #tpu.memory_space<vmem>>, vector<1x128xbf16>
    %c0_117 = arith.constant 0 : index
    %c1280 = arith.constant 1280 : index
    %98 = vector.load %arg14[%c0_117, %c1280] : memref<8x2176xbf16, #tpu.memory_space<vmem>>, vector<1x128xbf16>
    tpu.vector_store %arg14[%c0_117, %c1280], %97 {strides = array<i32>} : memref<8x2176xbf16, #tpu.memory_space<vmem>>, vector<1x128xbf16>,
    %c22 = arith.constant 22 : index
    %c0_118 = arith.constant 0 : index
    %99 = vector.load %arg13[%c22, %c0_118] : memref<80x128xbf16, #tpu.memory_space<vmem>>, vector<1x128xbf16>
    %c0_119 = arith.constant 0 : index
    %c1408 = arith.constant 1408 : index
    %100 = vector.load %arg14[%c0_119, %c1408] : memref<8x2176xbf16, #tpu.memory_space<vmem>>, vector<1x128xbf16>
    tpu.vector_store %arg14[%c0_119, %c1408], %99 {strides = array<i32>} : memref<8x2176xbf16, #tpu.memory_space<vmem>>, vector<1x128xbf16>,
    %c24 = arith.constant 24 : index
    %c0_120 = arith.constant 0 : index
    %101 = vector.load %arg13[%c24, %c0_120] : memref<80x128xbf16, #tpu.memory_space<vmem>>, vector<1x128xbf16>
    %c0_121 = arith.constant 0 : index
    %c1536 = arith.constant 1536 : index
    %102 = vector.load %arg14[%c0_121, %c1536] : memref<8x2176xbf16, #tpu.memory_space<vmem>>, vector<1x128xbf16>
    tpu.vector_store %arg14[%c0_121, %c1536], %101 {strides = array<i32>} : memref<8x2176xbf16, #tpu.memory_space<vmem>>, vector<1x128xbf16>,
    %c26 = arith.constant 26 : index
    %c0_122 = arith.constant 0 : index
    %103 = vector.load %arg13[%c26, %c0_122] : memref<80x128xbf16, #tpu.memory_space<vmem>>, vector<1x128xbf16>
    %c0_123 = arith.constant 0 : index
    %c1664 = arith.constant 1664 : index
    %104 = vector.load %arg14[%c0_123, %c1664] : memref<8x2176xbf16, #tpu.memory_space<vmem>>, vector<1x128xbf16>
    tpu.vector_store %arg14[%c0_123, %c1664], %103 {strides = array<i32>} : memref<8x2176xbf16, #tpu.memory_space<vmem>>, vector<1x128xbf16>,
    %c28 = arith.constant 28 : index
    %c0_124 = arith.constant 0 : index
    %105 = vector.load %arg13[%c28, %c0_124] : memref<80x128xbf16, #tpu.memory_space<vmem>>, vector<1x128xbf16>
    %c0_125 = arith.constant 0 : index
    %c1792 = arith.constant 1792 : index
    %106 = vector.load %arg14[%c0_125, %c1792] : memref<8x2176xbf16, #tpu.memory_space<vmem>>, vector<1x128xbf16>
    tpu.vector_store %arg14[%c0_125, %c1792], %105 {strides = array<i32>} : memref<8x2176xbf16, #tpu.memory_space<vmem>>, vector<1x128xbf16>,
    %c30 = arith.constant 30 : index
    %c0_126 = arith.constant 0 : index
    %107 = vector.load %arg13[%c30, %c0_126] : memref<80x128xbf16, #tpu.memory_space<vmem>>, vector<1x128xbf16>
    %c0_127 = arith.constant 0 : index
    %c1920 = arith.constant 1920 : index
    %108 = vector.load %arg14[%c0_127, %c1920] : memref<8x2176xbf16, #tpu.memory_space<vmem>>, vector<1x128xbf16>
    tpu.vector_store %arg14[%c0_127, %c1920], %107 {strides = array<i32>} : memref<8x2176xbf16, #tpu.memory_space<vmem>>, vector<1x128xbf16>,
    %c32 = arith.constant 32 : index
    %c0_128 = arith.constant 0 : index
    %109 = vector.load %arg13[%c32, %c0_128] : memref<80x128xbf16, #tpu.memory_space<vmem>>, vector<1x128xbf16>
    %c0_129 = arith.constant 0 : index
    %c2048 = arith.constant 2048 : index
    %110 = vector.load %arg14[%c0_129, %c2048] : memref<8x2176xbf16, #tpu.memory_space<vmem>>, vector<1x128xbf16>
    tpu.vector_store %arg14[%c0_129, %c2048], %109 {strides = array<i32>} : memref<8x2176xbf16, #tpu.memory_space<vmem>>, vector<1x128xbf16>,
    %c40 = arith.constant 40 : index
    %c0_130 = arith.constant 0 : index
    %111 = vector.load %arg13[%c40, %c0_130] : memref<80x128xbf16, #tpu.memory_space<vmem>>, vector<1x128xbf16>
    %c1_131 = arith.constant 1 : index
    %c0_132 = arith.constant 0 : index
    %112 = vector.load %arg14[%c1_131, %c0_132] : memref<8x2176xbf16, #tpu.memory_space<vmem>>, vector<1x128xbf16>
    tpu.vector_store %arg14[%c1_131, %c0_132], %111 {strides = array<i32>} : memref<8x2176xbf16, #tpu.memory_space<vmem>>, vector<1x128xbf16>,
    %c42 = arith.constant 42 : index
    %c0_133 = arith.constant 0 : index
    %113 = vector.load %arg13[%c42, %c0_133] : memref<80x128xbf16, #tpu.memory_space<vmem>>, vector<1x128xbf16>
    %c1_134 = arith.constant 1 : index
    %c128_135 = arith.constant 128 : index
    %114 = vector.load %arg14[%c1_134, %c128_135] : memref<8x2176xbf16, #tpu.memory_space<vmem>>, vector<1x128xbf16>
    tpu.vector_store %arg14[%c1_134, %c128_135], %113 {strides = array<i32>} : memref<8x2176xbf16, #tpu.memory_space<vmem>>, vector<1x128xbf16>,
    %c44 = arith.constant 44 : index
    %c0_136 = arith.constant 0 : index
    %115 = vector.load %arg13[%c44, %c0_136] : memref<80x128xbf16, #tpu.memory_space<vmem>>, vector<1x128xbf16>
    %c1_137 = arith.constant 1 : index
    %c256_138 = arith.constant 256 : index
    %116 = vector.load %arg14[%c1_137, %c256_138] : memref<8x2176xbf16, #tpu.memory_space<vmem>>, vector<1x128xbf16>
    tpu.vector_store %arg14[%c1_137, %c256_138], %115 {strides = array<i32>} : memref<8x2176xbf16, #tpu.memory_space<vmem>>, vector<1x128xbf16>,
    %c46 = arith.constant 46 : index
    %c0_139 = arith.constant 0 : index
    %117 = vector.load %arg13[%c46, %c0_139] : memref<80x128xbf16, #tpu.memory_space<vmem>>, vector<1x128xbf16>
    %c1_140 = arith.constant 1 : index
    %c384_141 = arith.constant 384 : index
    %118 = vector.load %arg14[%c1_140, %c384_141] : memref<8x2176xbf16, #tpu.memory_space<vmem>>, vector<1x128xbf16>
    tpu.vector_store %arg14[%c1_140, %c384_141], %117 {strides = array<i32>} : memref<8x2176xbf16, #tpu.memory_space<vmem>>, vector<1x128xbf16>,
    %c48 = arith.constant 48 : index
    %c0_142 = arith.constant 0 : index
    %119 = vector.load %arg13[%c48, %c0_142] : memref<80x128xbf16, #tpu.memory_space<vmem>>, vector<1x128xbf16>
    %c1_143 = arith.constant 1 : index
    %c512_144 = arith.constant 512 : index
    %120 = vector.load %arg14[%c1_143, %c512_144] : memref<8x2176xbf16, #tpu.memory_space<vmem>>, vector<1x128xbf16>
    tpu.vector_store %arg14[%c1_143, %c512_144], %119 {strides = array<i32>} : memref<8x2176xbf16, #tpu.memory_space<vmem>>, vector<1x128xbf16>,
    %c50 = arith.constant 50 : index
    %c0_145 = arith.constant 0 : index
    %121 = vector.load %arg13[%c50, %c0_145] : memref<80x128xbf16, #tpu.memory_space<vmem>>, vector<1x128xbf16>
    %c1_146 = arith.constant 1 : index
    %c640_147 = arith.constant 640 : index
    %122 = vector.load %arg14[%c1_146, %c640_147] : memref<8x2176xbf16, #tpu.memory_space<vmem>>, vector<1x128xbf16>
    tpu.vector_store %arg14[%c1_146, %c640_147], %121 {strides = array<i32>} : memref<8x2176xbf16, #tpu.memory_space<vmem>>, vector<1x128xbf16>,
    %c52 = arith.constant 52 : index
    %c0_148 = arith.constant 0 : index
    %123 = vector.load %arg13[%c52, %c0_148] : memref<80x128xbf16, #tpu.memory_space<vmem>>, vector<1x128xbf16>
    %c1_149 = arith.constant 1 : index
    %c768_150 = arith.constant 768 : index
    %124 = vector.load %arg14[%c1_149, %c768_150] : memref<8x2176xbf16, #tpu.memory_space<vmem>>, vector<1x128xbf16>
    tpu.vector_store %arg14[%c1_149, %c768_150], %123 {strides = array<i32>} : memref<8x2176xbf16, #tpu.memory_space<vmem>>, vector<1x128xbf16>,
    %c54 = arith.constant 54 : index
    %c0_151 = arith.constant 0 : index
    %125 = vector.load %arg13[%c54, %c0_151] : memref<80x128xbf16, #tpu.memory_space<vmem>>, vector<1x128xbf16>
    %c1_152 = arith.constant 1 : index
    %c896_153 = arith.constant 896 : index
    %126 = vector.load %arg14[%c1_152, %c896_153] : memref<8x2176xbf16, #tpu.memory_space<vmem>>, vector<1x128xbf16>
    tpu.vector_store %arg14[%c1_152, %c896_153], %125 {strides = array<i32>} : memref<8x2176xbf16, #tpu.memory_space<vmem>>, vector<1x128xbf16>,
    %c56 = arith.constant 56 : index
    %c0_154 = arith.constant 0 : index
    %127 = vector.load %arg13[%c56, %c0_154] : memref<80x128xbf16, #tpu.memory_space<vmem>>, vector<1x128xbf16>
    %c1_155 = arith.constant 1 : index
    %c1024_156 = arith.constant 1024 : index
    %128 = vector.load %arg14[%c1_155, %c1024_156] : memref<8x2176xbf16, #tpu.memory_space<vmem>>, vector<1x128xbf16>
    tpu.vector_store %arg14[%c1_155, %c1024_156], %127 {strides = array<i32>} : memref<8x2176xbf16, #tpu.memory_space<vmem>>, vector<1x128xbf16>,
    %c58 = arith.constant 58 : index
    %c0_157 = arith.constant 0 : index
    %129 = vector.load %arg13[%c58, %c0_157] : memref<80x128xbf16, #tpu.memory_space<vmem>>, vector<1x128xbf16>
    %c1_158 = arith.constant 1 : index
    %c1152_159 = arith.constant 1152 : index
    %130 = vector.load %arg14[%c1_158, %c1152_159] : memref<8x2176xbf16, #tpu.memory_space<vmem>>, vector<1x128xbf16>
    tpu.vector_store %arg14[%c1_158, %c1152_159], %129 {strides = array<i32>} : memref<8x2176xbf16, #tpu.memory_space<vmem>>, vector<1x128xbf16>,
    %c60 = arith.constant 60 : index
    %c0_160 = arith.constant 0 : index
    %131 = vector.load %arg13[%c60, %c0_160] : memref<80x128xbf16, #tpu.memory_space<vmem>>, vector<1x128xbf16>
    %c1_161 = arith.constant 1 : index
    %c1280_162 = arith.constant 1280 : index
    %132 = vector.load %arg14[%c1_161, %c1280_162] : memref<8x2176xbf16, #tpu.memory_space<vmem>>, vector<1x128xbf16>
    tpu.vector_store %arg14[%c1_161, %c1280_162], %131 {strides = array<i32>} : memref<8x2176xbf16, #tpu.memory_space<vmem>>, vector<1x128xbf16>,
    %c62 = arith.constant 62 : index
    %c0_163 = arith.constant 0 : index
    %133 = vector.load %arg13[%c62, %c0_163] : memref<80x128xbf16, #tpu.memory_space<vmem>>, vector<1x128xbf16>
    %c1_164 = arith.constant 1 : index
    %c1408_165 = arith.constant 1408 : index
    %134 = vector.load %arg14[%c1_164, %c1408_165] : memref<8x2176xbf16, #tpu.memory_space<vmem>>, vector<1x128xbf16>
    tpu.vector_store %arg14[%c1_164, %c1408_165], %133 {strides = array<i32>} : memref<8x2176xbf16, #tpu.memory_space<vmem>>, vector<1x128xbf16>,
    %c64 = arith.constant 64 : index
    %c0_166 = arith.constant 0 : index
    %135 = vector.load %arg13[%c64, %c0_166] : memref<80x128xbf16, #tpu.memory_space<vmem>>, vector<1x128xbf16>
    %c1_167 = arith.constant 1 : index
    %c1536_168 = arith.constant 1536 : index
    %136 = vector.load %arg14[%c1_167, %c1536_168] : memref<8x2176xbf16, #tpu.memory_space<vmem>>, vector<1x128xbf16>
    tpu.vector_store %arg14[%c1_167, %c1536_168], %135 {strides = array<i32>} : memref<8x2176xbf16, #tpu.memory_space<vmem>>, vector<1x128xbf16>,
    %c66 = arith.constant 66 : index
    %c0_169 = arith.constant 0 : index
    %137 = vector.load %arg13[%c66, %c0_169] : memref<80x128xbf16, #tpu.memory_space<vmem>>, vector<1x128xbf16>
    %c1_170 = arith.constant 1 : index
    %c1664_171 = arith.constant 1664 : index
    %138 = vector.load %arg14[%c1_170, %c1664_171] : memref<8x2176xbf16, #tpu.memory_space<vmem>>, vector<1x128xbf16>
    tpu.vector_store %arg14[%c1_170, %c1664_171], %137 {strides = array<i32>} : memref<8x2176xbf16, #tpu.memory_space<vmem>>, vector<1x128xbf16>,
    %c68 = arith.constant 68 : index
    %c0_172 = arith.constant 0 : index
    %139 = vector.load %arg13[%c68, %c0_172] : memref<80x128xbf16, #tpu.memory_space<vmem>>, vector<1x128xbf16>
    %c1_173 = arith.constant 1 : index
    %c1792_174 = arith.constant 1792 : index
    %140 = vector.load %arg14[%c1_173, %c1792_174] : memref<8x2176xbf16, #tpu.memory_space<vmem>>, vector<1x128xbf16>
    tpu.vector_store %arg14[%c1_173, %c1792_174], %139 {strides = array<i32>} : memref<8x2176xbf16, #tpu.memory_space<vmem>>, vector<1x128xbf16>,
    %c70 = arith.constant 70 : index
    %c0_175 = arith.constant 0 : index
    %141 = vector.load %arg13[%c70, %c0_175] : memref<80x128xbf16, #tpu.memory_space<vmem>>, vector<1x128xbf16>
    %c1_176 = arith.constant 1 : index
    %c1920_177 = arith.constant 1920 : index
    %142 = vector.load %arg14[%c1_176, %c1920_177] : memref<8x2176xbf16, #tpu.memory_space<vmem>>, vector<1x128xbf16>
    tpu.vector_store %arg14[%c1_176, %c1920_177], %141 {strides = array<i32>} : memref<8x2176xbf16, #tpu.memory_space<vmem>>, vector<1x128xbf16>,
    %c72 = arith.constant 72 : index
    %c0_178 = arith.constant 0 : index
    %143 = vector.load %arg13[%c72, %c0_178] : memref<80x128xbf16, #tpu.memory_space<vmem>>, vector<1x128xbf16>
    %c1_179 = arith.constant 1 : index
    %c2048_180 = arith.constant 2048 : index
    %144 = vector.load %arg14[%c1_179, %c2048_180] : memref<8x2176xbf16, #tpu.memory_space<vmem>>, vector<1x128xbf16>
    tpu.vector_store %arg14[%c1_179, %c2048_180], %143 {strides = array<i32>} : memref<8x2176xbf16, #tpu.memory_space<vmem>>, vector<1x128xbf16>,
    %c0_181 = arith.constant 0 : index
    %c0_182 = arith.constant 0 : index
    %145 = vector.load %arg14[%c0_181, %c0_182] : memref<8x2176xbf16, #tpu.memory_space<vmem>>, vector<8x2176xbf16>
    %c0_183 = arith.constant 0 : index
    %c0_184 = arith.constant 0 : index
    %146 = vector.load %arg5[%c0_183, %c0_184] : memref<2176x128xbf16, #tpu.memory_space<vmem>>, vector<2176x128xbf16>
    %cst_185 = arith.constant dense<0.000000e+00> : vector<8x128xf32>
    %147 = tpu.matmul %145, %146, %cst_185 {dimension_numbers = #tpu.dot_dimension_numbers<[1], [0], [0], [1], [0, 0, 1, 1], [], []>} : vector<8x2176xbf16>, vector<2176x128xbf16>, vector<8x128xf32> -> vector<8x128xf32>
    %c0_186 = arith.constant 0 : index
    %c0_187 = arith.constant 0 : index
    %148 = vector.load %arg6[%c0_186, %c0_187] : memref<1x128xf32, #tpu.memory_space<vmem>>, vector<1x128xf32>
    %149 = vector.broadcast %148 : vector<1x128xf32> to vector<8x128xf32>
    %150 = arith.addf %147, %149 : vector<8x128xf32>
    %cst_188 = arith.constant 0.000000e+00 : f32
    %151 = vector.broadcast %cst_188 : f32 to vector<8x128xf32>
    %152 = arith.maximumf %150, %151 : vector<8x128xf32>
    %c0_189 = arith.constant 0 : index
    %c0_190 = arith.constant 0 : index
    %153 = vector.load %arg7[%c0_189, %c0_190] : memref<128x3xf32, #tpu.memory_space<vmem>>, vector<128x3xf32>
    %cst_191 = arith.constant dense<0.000000e+00> : vector<8x3xf32>
    %154 = tpu.matmul %152, %153, %cst_191 {dimension_numbers = #tpu.dot_dimension_numbers<[1], [0], [0], [1], [0, 0, 1, 1], [], []>} : vector<8x128xf32>, vector<128x3xf32>, vector<8x3xf32> -> vector<8x3xf32>
    %c0_192 = arith.constant 0 : index
    %c0_193 = arith.constant 0 : index
    %155 = vector.load %arg8[%c0_192, %c0_193] : memref<1x3xf32, #tpu.memory_space<vmem>>, vector<1x3xf32>
    %156 = vector.broadcast %155 : vector<1x3xf32> to vector<8x3xf32>
    %157 = arith.addf %154, %156 : vector<8x3xf32>
    %158 = vector.extract_strided_slice %157 {offsets = [0, 0], sizes = [8, 2], strides = [1, 1]} : vector<8x3xf32> to vector<8x2xf32>
    %cst_194 = arith.constant dense<0xFF800000> : vector<8xf32>
    %159 = vector.multi_reduction <maximumf>, %158, %cst_194 [1] : vector<8x2xf32> to vector<8xf32>
    %160 = vector.shape_cast %159 : vector<8xf32> to vector<8x1xf32>
    %161 = vector.broadcast %160 : vector<8x1xf32> to vector<8x2xf32>
    %162 = arith.subf %158, %161 : vector<8x2xf32>
    %163 = math.exp %162 : vector<8x2xf32>
    %cst_195 = arith.constant dense<0.000000e+00> : vector<8xf32>
    %164 = vector.multi_reduction <add>, %163, %cst_195 [1] : vector<8x2xf32> to vector<8xf32>
    %165 = vector.shape_cast %164 : vector<8xf32> to vector<8x1xf32>
    %166 = vector.broadcast %165 : vector<8x1xf32> to vector<8x2xf32>
    %167 = arith.divf %163, %166 : vector<8x2xf32>
    %168 = vector.extract_strided_slice %167 {offsets = [0, 0], sizes = [2, 2], strides = [1, 1]} : vector<8x2xf32> to vector<2x2xf32>
    %c0_196 = arith.constant 0 : index
    %c0_197 = arith.constant 0 : index
    %169 = vector.load %arg9[%c0_196, %c0_197] : memref<2x2xf32, #tpu.memory_space<vmem>>, vector<2x2xf32>
    tpu.vector_store %arg9[%c0_196, %c0_197], %168 {strides = array<i32>} : memref<2x2xf32, #tpu.memory_space<vmem>>, vector<2x2xf32>,
    %170 = vector.extract_strided_slice %157 {offsets = [0, 2], sizes = [2, 1], strides = [1, 1]} : vector<8x3xf32> to vector<2x1xf32>
    %c0_198 = arith.constant 0 : index
    %c0_199 = arith.constant 0 : index
    %171 = vector.load %arg10[%c0_198, %c0_199] : memref<2x1xf32, #tpu.memory_space<vmem>>, vector<2x1xf32>
    tpu.vector_store %arg10[%c0_198, %c0_199], %170 {strides = array<i32>} : memref<2x1xf32, #tpu.memory_space<vmem>>, vector<2x1xf32>,
    return
  }
}

</mosaic_0001>

<bundles_post_ra>
// kernel: policy_conv_forward.1
= control target key start
LH: loop header
LB: loop body
LE: loop exit
PB: predicated region body
PF: predicated region fallthrough
CT: control target
= control target key end

     0   :  { %16 = vsyncpa [#allocation7], 0  ;;  %s16281_s0 = inlined_call_operand.vmem [shape: bf16[2,88,176], index: 0, kind: input, shape index: {}]   ;;  %s16282_s1 = inlined_call_operand.vmem [shape: bf16[5,176,544], index: 1, kind: input, shape index: {}]   ;;  %s16283_s2 = inlined_call_operand.vmem [shape: f32[1,544], index: 2, kind: input, shape index: {}]   ;;  %s16284_s3 = inlined_call_operand.hbm [shape: bf16[5,544,128], index: 3, kind: input, shape index: {}]   ;;  %s16285_s4 = inlined_call_operand.vmem [shape: f32[1,128], index: 4, kind: input, shape index: {}]   ;;  %s16286_s5 = inlined_call_operand.hbm [shape: bf16[2176,128], index: 5, kind: input, shape index: {}]   ;;  %s16287_s6 = inlined_call_operand.vmem [shape: f32[1,128], index: 6, kind: input, shape index: {}]   ;;  %s16288_s7 = inlined_call_operand.vmem [shape: f32[128,3], index: 7, kind: input, shape index: {}]   ;;  %s16289_s8 = inlined_call_operand.vmem [shape: f32[1,3], index: 8, kind: input, shape index: {}]   ;;  %s16290_s9 = inlined_call_operand.hbm [shape: f32[2,2], index: 9, kind: output, shape index: {0}]   ;;  %s16291_s10 = inlined_call_operand.vmem [shape: f32[2,1], index: 10, kind: output, shape index: {1}]  }
   0x1   :  { %17 = vsyncpa [#allocation10], 0 }
   0x2   :  { %18 = vsyncpa [#allocation8], 0  ;;  %s12924_s13 = smov [#allocation6]  }
   0x3   :  { %s30_s14 = sshll.u32 %s12924_s13, 4  ;;  %s31_s14 = int_to_ptr.vmem [resolvable:$true] %s30_s14 }
   0x4   :  { %s12866_s15 = scalar_lea.vmem %s31_s14, 21760  ;;  %p12871_p1 = scmp.lt.s32.totalorder %s31_s14, %s31_s14 }
   0x5   :  { %p12867_p0 = scmp.ne.s32.totalorder %s31_s14, %s12866_s15  ;;  %p12872_p2 = scmp.lt.s32.totalorder %s12866_s15, %s12866_s15 }
   0x7   :  { %p12873_p3 = por %p12872_p2, %p12871_p1 }
   0x9   :  { %p12874_p4 = pnand %p12873_p3, %p12867_p0 }
   0xb   :  { %12877 = shalt.err (!%p12874_p4)
}
   0xc   :  { %s12925_s16 = smov 64   ;;  %s12926_s17 = smov 4  }
   0xd   :  { %36 = dma.hbm_to_vmem [thread:$0]  %s16284_s3, 21760, %s31_s14, [#allocation7], %s12925_s16, %s12925_s16, %s12926_s17  }
   0xe   :  { %s12927_s20 = smov [#allocation9]  }
   0xf   :  { %s44_s21 = sshll.u32 %s12927_s20, 4  ;;  %s45_s21 = int_to_ptr.vmem [resolvable:$true] %s44_s21 }
  0x10   :  { %s12886_s22 = scalar_lea.vmem %s45_s21, 17408  ;;  %p12891_p6 = scmp.lt.s32.totalorder %s45_s21, %s45_s21 }
  0x11   :  { %p12887_p5 = scmp.ne.s32.totalorder %s45_s21, %s12886_s22  ;;  %p12892_p7 = scmp.lt.s32.totalorder %s12886_s22, %s12886_s22 }
  0x13   :  { %p12893_p8 = por %p12892_p7, %p12891_p6 }
  0x15   :  { %p12894_p9 = pnand %p12893_p8, %p12887_p5 }
  0x17   :  { %12897 = shalt.err (!%p12894_p9)
}
  0x18   :  { %50 = dma.hbm_to_vmem [thread:$0]  %s16286_s5, 17408, %s45_s21, [#allocation10], %s12925_s16, %s12925_s16, %s12926_s17  }
  0x19   :  { %12918 = dma.done.wait [#allocation7], 21760  }
  0x1a   :  { %12919 = vsyncadd [#allocation7], 4294945536 }
  0x1b   :  { %12920 = dma.done.wait [#allocation10], 17408  }
  0x1c   :  { %12921 = vsyncadd [#allocation10], 4294949888  ;;  %v12928_v0 = vmov 0   ;;  %v12036_v1 = vld [vmem:[%s16282_s1 + $0x11c] ss:$20 sps:$4 sm:$0xff]   ;;  %vm484_vm0 = vcmask 392192  }
  0x1d   :  { %64 = vst [vmem:[#allocation3 + $0xc8] sm:$0xff] %v12928_v0  ;;  %65 = vst [vmem:[#allocation3 + $0xd0] sm:$0xff] %v12928_v0  ;;  %v12038_v2 = vld [vmem:[%s16282_s1 + $0x124] ss:$20 sps:$4 sm:$0xff]   ;;  %500 = vmatprep.subr.bf16.mxu0 %v12036_v1  ;;  %v12041_v4 = vld [vmem:[%s16282_s1 + $0x120] ss:$20 sps:$4 sm:$0xff]  }
  0x1e   :  { %68 = vst [vmem:[#allocation5] sm:$0xff] %v12928_v0  ;;  %69 = vst [vmem:[#allocation5 + $0x8] sm:$0xff] %v12928_v0  ;;  %v12040_v3 = vld [vmem:[%s16282_s1 + $0x118] ss:$20 sps:$4 sm:$0xff]   ;;  %583 = vmatprep.subr.bf16.mxu1 %v12038_v2  ;;  %v12042_v5 = vld [vmem:[%s16282_s1 + $0xf4] ss:$20 sps:$4 sm:$0xff]  }
  0x1f   :  { %70 = vst [vmem:[#allocation5 + $0x10] sm:$0xff] %v12928_v0  ;;  %71 = vst [vmem:[#allocation5 + $0x18] sm:$0xff] %v12928_v0  ;;  %501 = vmatpush1.bf16.msra.mxu0 %v12040_v3  ;;  %584 = vmatpush1.bf16.msra.mxu1 %v12041_v4  ;;  %v12044_v6 = vld [vmem:[%s16282_s1 + $0xfc] ss:$20 sps:$4 sm:$0xff]   ;;  %v12047_v8 = vld [vmem:[%s16282_s1 + $0xf8] ss:$20 sps:$4 sm:$0xff]  }
  0x20   :  { %72 = vst [vmem:[#allocation5 + $0x20] sm:$0xff] %v12928_v0  ;;  %73 = vst [vmem:[#allocation5 + $0x28] sm:$0xff] %v12928_v0  ;;  %v12046_v7 = vld [vmem:[%s16282_s1 + $0xf0] ss:$20 sps:$4 sm:$0xff]   ;;  %502 = vmatprep.subr.bf16.mxu0 %v12042_v5  ;;  %585 = vmatprep.subr.bf16.mxu1 %v12044_v6  ;;  %v12048_v9 = vld [vmem:[%s16282_s1 + $0xcc] ss:$20 sps:$4 sm:$0xff]  }
  0x21   :  { %74 = vst [vmem:[#allocation5 + $0x30] sm:$0xff] %v12928_v0  ;;  %75 = vst [vmem:[#allocation5 + $0x38] sm:$0xff] %v12928_v0  ;;  %v12050_v10 = vld [vmem:[%s16282_s1 + $0xd4] ss:$20 sps:$4 sm:$0xff]   ;;  %v12053_v12 = vld [vmem:[%s16282_s1 + $0xd0] ss:$20 sps:$4 sm:$0xff]  }
  0x22   :  { %76 = vst [vmem:[#allocation5 + $0x40] sm:$0xf] %v12928_v0  ;;  %v12052_v11 = vld [vmem:[%s16282_s1 + $0xc8] ss:$20 sps:$4 sm:$0xff]   ;;  %v12054_v13 = vld [vmem:[%s16282_s1 + $0xa4] ss:$20 sps:$4 sm:$0xff]  }
  0x23   :  { %503 = vmatpush1.bf16.msra.mxu0 %v12046_v7  ;;  %586 = vmatpush1.bf16.msra.mxu1 %v12047_v8  ;;  %v12056_v14 = vld [vmem:[%s16282_s1 + $0xac] ss:$20 sps:$4 sm:$0xff]   ;;  %v12059_v16 = vld [vmem:[%s16282_s1 + $0xa8] ss:$20 sps:$4 sm:$0xff]   ;;  %v12062_v18 = vld [vmem:[%s16282_s1 + $0x84] ss:$20 sps:$4 sm:$0xff]  }
  0x24   :  { %504 = vmatprep.subr.bf16.mxu0 %v12048_v9  ;;  %587 = vmatprep.subr.bf16.mxu1 %v12050_v10  ;;  %v12058_v15 = vld [vmem:[%s16282_s1 + $0xa0] ss:$20 sps:$4 sm:$0xff]   ;;  %v12060_v17 = vld [vmem:[%s16282_s1 + $0x7c] ss:$20 sps:$4 sm:$0xff]   ;;  %v12064_v19 = vld [vmem:[%s16282_s1 + $0x78] ss:$20 sps:$4 sm:$0xff]  }
  0x25   :  { %v12065_v20 = vld [vmem:[%s16282_s1 + $0x80] ss:$20 sps:$4 sm:$0xff]   ;;  %v12068_v22 = vld [vmem:[%s16282_s1 + $0x5c] ss:$20 sps:$4 sm:$0xff]   ;;  %v12071_v24 = vld [vmem:[%s16282_s1 + $0x58] ss:$20 sps:$4 sm:$0xff]  }
  0x26   :  { %v12066_v21 = vld [vmem:[%s16282_s1 + $0x54] ss:$20 sps:$4 sm:$0xff]   ;;  %v12070_v23 = vld [vmem:[%s16282_s1 + $0x50] ss:$20 sps:$4 sm:$0xff]   ;;  %v12072_v25 = vld [vmem:[%s16282_s1 + $0x2c] ss:$20 sps:$4 sm:$0xff]  }
  0x27   :  { %505 = vmatpush1.bf16.msra.mxu0 %v12052_v11  ;;  %588 = vmatpush1.bf16.msra.mxu1 %v12053_v12  ;;  %v12074_v26 = vld [vmem:[%s16282_s1 + $0x34] ss:$20 sps:$4 sm:$0xff]   ;;  %v12077_v28 = vld [vmem:[%s16282_s1 + $0x30] ss:$20 sps:$4 sm:$0xff]   ;;  %v12080_v30 = vld [vmem:[%s16282_s1 + $0xc] ss:$20 sps:$4 sm:$0xff]  }
  0x28   :  { %506 = vmatprep.subr.bf16.mxu0 %v12054_v13  ;;  %589 = vmatprep.subr.bf16.mxu1 %v12056_v14  ;;  %v12076_v27 = vld [vmem:[%s16282_s1 + $0x28] ss:$20 sps:$4 sm:$0xff]   ;;  %v12078_v29 = vld [vmem:[%s16282_s1 + $0x4] ss:$20 sps:$4 sm:$0xff]   ;;  %v12082_v31 = vld [vmem:[%s16282_s1] ss:$20 sps:$4 sm:$0xff]  }
  0x29   :  { %v12083_v32 = vld [vmem:[%s16282_s1 + $0x8] ss:$20 sps:$4 sm:$0xff]   ;;  %v13110_v35 = vld [vmem:[%s16281_s0 + $0x4] ss:$8 sps:$4 sm:$0xff]   ;;  %v12100_v44 = vld [vmem:[%s16282_s1 + $0x140] ss:$20 sps:$4 sm:$0xff]  }
  0x2a   :  { %v12084_v33 = vld [vmem:[%s16282_s1 + $0x194] ss:$20 sps:$4 sm:$0xff]   ;;  %v12086_v34 = vld [vmem:[%s16282_s1 + $0x19c] ss:$20 sps:$4 sm:$0xff]   ;;  %v12089_v37 = vld [vmem:[%s16282_s1 + $0x198] ss:$20 sps:$4 sm:$0xff]   ;;  %10000 = vmatprep.mubr.msk.bf16.mxu0 %vm484_vm0, %v13110_v35  ;;  %10005 = vmatprep.mubr.msk.bf16.mxu1 %vm484_vm0, %v13110_v35 }
  0x2b   :  { %507 = vmatpush1.bf16.msra.mxu0 %v12058_v15  ;;  %590 = vmatpush1.bf16.msra.mxu1 %v12059_v16  ;;  %v12088_v36 = vld [vmem:[%s16282_s1 + $0x190] ss:$20 sps:$4 sm:$0xff]   ;;  %v12090_v38 = vld [vmem:[%s16282_s1 + $0x16c] ss:$20 sps:$4 sm:$0xff]   ;;  %v12092_v39 = vld [vmem:[%s16282_s1 + $0x174] ss:$20 sps:$4 sm:$0xff]  }
  0x2c   :  { %508 = vmatprep.subr.bf16.mxu0 %v12060_v17  ;;  %591 = vmatprep.subr.bf16.mxu1 %v12062_v18  ;;  %v12094_v40 = vld [vmem:[%s16282_s1 + $0x168] ss:$20 sps:$4 sm:$0xff]   ;;  %v12095_v41 = vld [vmem:[%s16282_s1 + $0x170] ss:$20 sps:$4 sm:$0xff]   ;;  %v12098_v43 = vld [vmem:[%s16282_s1 + $0x14c] ss:$20 sps:$4 sm:$0xff]  }
  0x2d   :  { %v12096_v42 = vld [vmem:[%s16282_s1 + $0x144] ss:$20 sps:$4 sm:$0xff]   ;;  %v12101_v45 = vld [vmem:[%s16282_s1 + $0x148] ss:$20 sps:$4 sm:$0xff]   ;;  %v1742_v50 = vshll.u32 %v13110_v35, 16  ;;  %v1740_v53 = vshrl.u32 %v13110_v35, 16 }
  0x2e   :  { %v12107_v46 = vld [vmem:[%s16282_s1 + $0x2d4] ss:$20 sps:$4 sm:$0xff]   ;;  %v12105_v48 = vld [vmem:[%s16282_s1 + $0x2d0] ss:$20 sps:$4 sm:$0xff]   ;;  %v12111_v51 = vld [vmem:[%s16282_s1 + $0x2ac] ss:$20 sps:$4 sm:$0xff]  }
  0x2f   :  { %509 = vmatpush1.bf16.msra.mxu0 %v12064_v19  ;;  %592 = vmatpush1.bf16.msra.mxu1 %v12065_v20  ;;  %v13152_v47 = vld [vmem:[%s16281_s0] ss:$8 sps:$4 sm:$0xff]   ;;  %v13168_v52 = vld [vmem:[%s16281_s0 + $0x14] ss:$8 sps:$4 sm:$0xff]   ;;  %v1744_v54 = vrot.slane %v1742_v50, 1  ;;  %vm743_vm2 = vcmask 261120  }
  0x30   :  { %510 = vmatprep.subr.bf16.mxu0 %v12066_v21  ;;  %593 = vmatprep.subr.bf16.mxu1 %v12068_v22  ;;  %v12108_v49 = vld [vmem:[%s16282_s1 + $0x128] ss:$20 sps:$4 sm:$0xff]   ;;  %v1747_v55 = vshll.u32 %v13168_v52, 16  ;;  %v12112_v57 = vld [vmem:[%s16282_s1 + $0x100] ss:$20 sps:$4 sm:$0xff]   ;;  %v1730_v62 = vshll.u32 %v13152_v47, 16 }
  0x31   :  { %v12109_v56 = vld [vmem:[%s16282_s1 + $0x2a8] ss:$20 sps:$4 sm:$0xff]   ;;  %v1745_v58 = vor.u32 %v1744_v54, %v1740_v53  ;;  %v13184_v59 = vld [vmem:[%s16281_s0 + $0x10] ss:$8 sps:$4 sm:$0xff]   ;;  %v12116_v63 = vld [vmem:[%s16282_s1 + $0x280] ss:$20 sps:$4 sm:$0xff]  }
  0x32   :  { %v12118_v60 = vld [vmem:[%s16282_s1 + $0x284] ss:$20 sps:$4 sm:$0xff]   ;;  %v1749_v61 = vrot.slane %v1747_v55, 1  ;;  %vm1726_vm1 = vsmask.f32 7424  ;;  %v1728_v1 = vshrl.u32 %v13152_v47, 16 }
  0x33   :  { %511 = vmatpush1.bf16.msra.mxu0 %v12070_v23  ;;  %594 = vmatpush1.bf16.msra.mxu1 %v12071_v24  ;;  %v12119_v2 = vld [vmem:[%s16282_s1 + $0xd8] ss:$20 sps:$4 sm:$0xff]   ;;  %v12122_v4 = vld [vmem:[%s16282_s1 + $0x25c] ss:$20 sps:$4 sm:$0xff]   ;;  %v1732_v5 = vrot.slane %v1730_v62, 1  ;;  %v1735_v6 = vshll.u32 %v13184_v59, 16 }
  0x34   :  { %512 = vmatprep.subr.bf16.mxu0 %v12072_v25  ;;  %595 = vmatprep.subr.bf16.mxu1 %v12074_v26  ;;  %v13202_v3 = vsel %vm1726_vm1, %v1745_v58, %v1749_v61  ;;  %v13212_v7 = vld [vmem:[%s16281_s0 + $0x24] ss:$8 sps:$4 sm:$0xff]   ;;  %v1759_v8 = vshrl.u32 %v13168_v52, 16  ;;  %v13226_v13 = vld [vmem:[%s16281_s0 + $0x20] ss:$8 sps:$4 sm:$0xff]   ;;  %v1751_v18 = vshrl.u32 %v13184_v59, 16 }
  0x35   :  { %v12120_v9 = vld [vmem:[%s16282_s1 + $0x258] ss:$20 sps:$4 sm:$0xff]   ;;  %v12123_v10 = vld [vmem:[%s16282_s1 + $0xb0] ss:$20 sps:$4 sm:$0xff]   ;;  %v1733_v11 = vor.u32 %v1732_v5, %v1728_v1  ;;  %v1737_v12 = vrot.slane %v1735_v6, 1  ;;  %v1763_v17 = vshll.u32 %v13212_v7, 16 }
  0x36   :  { %v12129_v14 = vld [vmem:[%s16282_s1 + $0x234] ss:$20 sps:$4 sm:$0xff]   ;;  %v1761_v16 = vor.u32 %v1759_v8, %v1749_v61  ;;  %v12127_v19 = vld [vmem:[%s16282_s1 + $0x230] ss:$20 sps:$4 sm:$0xff]   ;;  %v1755_v22 = vshll.u32 %v13226_v13, 16  ;;  %vm3539_vm3 = vcmask 1046528  }
  0x37   :  { %513 = vmatpush1.bf16.msra.mxu0 %v12076_v27  ;;  %596 = vmatpush1.bf16.msra.mxu1 %v12077_v28  ;;  %v13233_v15 = vsel %vm1726_vm1, %v1733_v11, %v1737_v12  ;;  %v1765_v20 = vrot.slane %v1763_v17, 1  ;;  %v1753_v21 = vor.u32 %v1751_v18, %v1737_v12  ;;  %v12130_v23 = vld [vmem:[%s16282_s1 + $0x88] ss:$20 sps:$4 sm:$0xff]   ;;  %v12133_v24 = vld [vmem:[%s16282_s1 + $0x20c] ss:$20 sps:$4 sm:$0xff]   ;;  %vm66_vm4 = vcmask 257024  }
  0x38   :  { %514 = vmatprep.subr.bf16.mxu0 %v12078_v29  ;;  %597 = vmatprep.subr.bf16.mxu1 %v12080_v30  ;;  %v13255_v25 = vld [vmem:[%s16281_s0 + $0x34] ss:$8 sps:$4 sm:$0xff]   ;;  %v1757_v27 = vrot.slane %v1755_v22, 1  ;;  %v1775_v29 = vshrl.u32 %v13212_v7, 16  ;;  %v13269_v30 = vld [vmem:[%s16281_s0 + $0x30] ss:$8 sps:$4 sm:$0xff]  }
  0x39   :  { %v13258_v26 = vsel %vm1726_vm1, %v1761_v16, %v1765_v20  ;;  %v12131_v28 = vld [vmem:[%s16282_s1 + $0x208] ss:$20 sps:$4 sm:$0xff]   ;;  %v1783_v55 = vshrl.u32 %v13269_v30, 16  ;;  %v12151_v58 = vld [vmem:[%s16282_s1 + $0x34c] ss:$20 sps:$4 sm:$0xff]   ;;  %vm12930_vm5 = vmmov 0  }
  0x3a   :  { %v13359_v6 = vld [vmem:[%s16281_s0 + $0x5c] ss:$8 sps:$4 sm:$0xff]   ;;  %v12153_v8 = vld [vmem:[%s16282_s1 + $0x320] ss:$20 sps:$4 sm:$0xff]   ;;  %v12157_v11 = vld [vmem:[%s16282_s1 + $0x2f8] ss:$20 sps:$4 sm:$0xff]  }
  0x3b   :  { %515 = vmatpush1.bf16.msra.mxu0 %v12082_v31  ;;  %598 = vmatpush1.bf16.msra.mxu1 %v12083_v32  ;;  %v13272_v31 = vsel %vm1726_vm1, %v1753_v21, %v1757_v27  ;;  %v1779_v32 = vshll.u32 %v13255_v25, 16  ;;  %v12160_v12 = vld [vmem:[%s16282_s1 + $0x150] ss:$20 sps:$4 sm:$0xff]   ;;  %v12164_v16 = vld [vmem:[%s16282_s1 + $0x2d8] ss:$20 sps:$4 sm:$0xff]   ;;  %vm7405_vm7 = vcmask 1045504  }
  0x3c   :  { %526 = vmatprep.subr.bf16.mxu0 %v12084_v33  ;;  %609 = vmatprep.subr.bf16.mxu1 %v12086_v34  ;;  %v1767_v33 = vshrl.u32 %v13226_v13, 16  ;;  %v12134_v34 = vld [vmem:[%s16282_s1 + $0x60] ss:$20 sps:$4 sm:$0xff]   ;;  %v12171_v21 = vld [vmem:[%s16282_s1 + $0x2b8] ss:$20 sps:$4 sm:$0xff]   ;;  %vm7997_vm8 = vcmask 1040384  }
  0x3d   :  { %v12167_v17 = vld [vmem:[%s16282_s1 + $0x2e0] ss:$20 sps:$4 sm:$0xff]   ;;  %vm6686_vm6 = vsmask.f32 6400  ;;  %vm7998_vm9 = vsmask.f32 256 }
  0x3e   :  { %v12170_v18 = vld [vmem:[%s16282_s1 + $0x2b4] ss:$20 sps:$4 sm:$0xff]   ;;  %v12177_v22 = vld [vmem:[%s16282_s1 + $0x28c] ss:$20 sps:$4 sm:$0xff]   ;;  %vm16059_vm10 = vmand %vm7997_vm8, %vm7998_vm9  ;;  %vm8120_vm11 = vsmask.f32 7938 }
  0x3f   :  { %527 = vmatpush2.bf16.msra.mxu0 %v12088_v36  ;;  %610 = vmatpush2.bf16.msra.mxu1 %v12089_v37  ;;  %v1777_v36 = vor.u32 %v1775_v29, %v1765_v20  ;;  %v12140_v37 = vld [vmem:[%s16282_s1 + $0x1e4] ss:$20 sps:$4 sm:$0xff]   ;;  %v12182_v29 = vld [vmem:[%s16282_s1 + $0x268] ss:$20 sps:$4 sm:$0xff]   ;;  %vm16113_vm12 = vmand %vm7997_vm8, %vm8120_vm11  ;;  %vm9895_vm13 = vcmask 15360   ;;  %s12931_s16 = smov 126  }
  0x40   :  { %528 = vmatprep.subr.bf16.mxu0 %v12090_v38  ;;  %611 = vmatprep.subr.bf16.mxu1 %v12092_v39  ;;  %v1781_v38 = vrot.slane %v1779_v32, 1  ;;  %v1769_v39 = vor.u32 %v1767_v33, %v1757_v27  ;;  %v12168_v20 = vld [vmem:[%s16282_s1 + $0x2b0] ss:$20 sps:$4 sm:$0xff]   ;;  %v12186_v33 = vld [vmem:[%s16282_s1 + $0x238] ss:$20 sps:$4 sm:$0xff]   ;;  %vm9913_vm14 = vcmask 1024  }
  0x41   :  { %v13441_v27 = vld [vmem:[%s16281_s0 + $0x7c] ss:$8 sps:$4 sm:$0xff]   ;;  %vm9907_vm15 = vcmask 9216  }
  0x42   :  { %v12188_v32 = vld [vmem:[%s16282_s1 + $0x23c] ss:$20 sps:$4 sm:$0xff]  }
  0x43   :  { %529 = vmatpush2.bf16.msra.mxu0 %v12094_v40  ;;  %612 = vmatpush2.bf16.msra.mxu1 %v12095_v41  ;;  %v1771_v40 = vshll.u32 %v13269_v30, 16  ;;  %v13291_v41 = vld [vmem:[%s16281_s0 + $0x44] ss:$8 sps:$4 sm:$0xff]  }
  0x44   :  { %530 = vmatprep.subr.bf16.mxu0 %v12096_v42  ;;  %613 = vmatprep.subr.bf16.mxu1 %v12098_v43  ;;  %v13294_v42 = vsel %vm1726_vm1, %v1777_v36, %v1781_v38  ;;  %v1795_v50 = vshll.u32 %v13291_v41, 16  ;;  %v13477_v36 = vld [vmem:[%s16281_s0 + $0x8c] ss:$8 sps:$4 sm:$0xff]  }
  0x45   :  { %v1773_v43 = vrot.slane %v1771_v40, 1  ;;  %v12197_v40 = vld [vmem:[%s16282_s1 + $0x1e8] ss:$20 sps:$4 sm:$0xff]  }
  0x46   :  { %v13318_v54 = vrot.slane %v1795_v50, 1  ;;  %v12208_v50 = vld [vmem:[%s16282_s1 + $0x350] ss:$20 sps:$4 sm:$0xff]  }
  0x47   :  { %531 = vmatpush2.bf16.msra.mxu0 %v12100_v44  ;;  %614 = vmatpush2.bf16.msra.mxu1 %v12101_v45  ;;  %v12138_v44 = vld [vmem:[%s16282_s1 + $0x1e0] ss:$20 sps:$4 sm:$0xff]   ;;  %v12141_v45 = vld [vmem:[%s16282_s1 + $0x38] ss:$20 sps:$4 sm:$0xff]   ;;  %v1785_v61 = vor.u32 %v1783_v55, %v1773_v43  ;;  %v12212_v55 = vld [vmem:[%s16282_s1 + $0x328] ss:$20 sps:$4 sm:$0xff]  }
  0x48   :  { %666 = vmatprep.subr.bf16.mxu0 %v12928_v0  ;;  %1214 = vmatprep.subr.bf16.mxu1 %v12107_v46  ;;  %v12144_v46 = vld [vmem:[%s16282_s1 + $0x1bc] ss:$20 sps:$4 sm:$0xff]  }
  0x4a   :  { %533 = vmatmul.mubr.bf16.vlgmr.msra.gmra.mxu0 %v13152_v47  ;;  %616 = vmatmul.mubr.bf16.vlgmr.msra.gmra.mxu1 %v13152_v47 }
  0x4b   :  { %667 = vmatpush1.bf16.msra.mxu0 %v12108_v49  ;;  %1215 = vmatpush1.bf16.msra.mxu1 %v12105_v48  ;;  %v13307_v48 = vsel %vm1726_vm1, %v1769_v39, %v1773_v43  ;;  %v1791_v49 = vshrl.u32 %v13255_v25, 16  ;;  %v12199_v39 = vld [vmem:[%s16282_s1 + $0x1ec] ss:$20 sps:$4 sm:$0xff]   ;;  %v12200_v43 = vld [vmem:[%s16282_s1 + $0x1f0] ss:$20 sps:$4 sm:$0xff]  }
  0x4c   :  { %668 = vmatprep.subr.bf16.mxu0 %v12928_v0  ;;  %1216 = vmatprep.subr.bf16.mxu1 %v12111_v51  ;;  %v13316_v51 = vld [vmem:[%s16281_s0 + $0x40] ss:$8 sps:$4 sm:$0xff]  }
  0x4d   :  { %10001 = vmatprep.mubr.msk.bf16.mxu0 %vm484_vm0, %v13168_v52  ;;  %10006 = vmatprep.mubr.msk.bf16.mxu1 %vm484_vm0, %v13168_v52  ;;  %v1793_v53 = vor.u32 %v1791_v49, %v1781_v38  ;;  %v1787_v62 = vshll.u32 %v13316_v51, 16  ;;  %v12193_v38 = vld [vmem:[%s16282_s1 + $0x218] ss:$20 sps:$4 sm:$0xff]  }
  0x4e   :  { %v13536_v49 = vld [vmem:[%s16281_s0 + $0x98] ss:$8 sps:$4 sm:$0xff]  }
  0x4f   :  { %669 = vmatpush1.bf16.msra.mxu0 %v12112_v57  ;;  %1217 = vmatpush1.bf16.msra.mxu1 %v12109_v56  ;;  %v12142_v56 = vld [vmem:[%s16282_s1 + $0x1b8] ss:$20 sps:$4 sm:$0xff]   ;;  %v12145_v57 = vld [vmem:[%s16282_s1 + $0x10] ss:$20 sps:$4 sm:$0xff]   ;;  %v13343_v1 = vrot.slane %v1787_v62, 1 }
  0x50   :  { %670 = vmatprep.subr.bf16.mxu0 %v12928_v0  ;;  %1218 = vmatprep.subr.bf16.mxu1 %v12118_v60  ;;  %v13333_v60 = vsel %vm1726_vm1, %v1793_v53, %v13318_v54  ;;  %v12211_v53 = vld [vmem:[%s16282_s1 + $0x358] ss:$20 sps:$4 sm:$0xff]   ;;  %v12225_v62 = vld [vmem:[%s16282_s1 + $0x494] ss:$20 sps:$4 sm:$0xff]  }
  0x51   :  { %v13354_v5 = vsel %vm1726_vm1, %v1785_v61, %v13343_v1  ;;  %v12222_v61 = vld [vmem:[%s16282_s1 + $0x48c] ss:$20 sps:$4 sm:$0xff]  }
  0x52   :  { %543 = vmatmul.mubr.bf16.gmra.mxu0 %v13184_v59  ;;  %626 = vmatmul.mubr.bf16.gmra.mxu1 %v13184_v59 }
  0x53   :  { %671 = vmatpush1.bf16.msra.mxu0 %v12119_v2  ;;  %1219 = vmatpush1.bf16.msra.mxu1 %v12116_v63  ;;  %v12149_v63 = vld [vmem:[%s16282_s1 + $0x348] ss:$20 sps:$4 sm:$0xff]   ;;  %v12152_v2 = vld [vmem:[%s16282_s1 + $0x1a0] ss:$20 sps:$4 sm:$0xff]  }
  0x54   :  { %672 = vmatprep.subr.bf16.mxu0 %v12928_v0  ;;  %1220 = vmatprep.subr.bf16.mxu1 %v12122_v4  ;;  %v12155_v4 = vld [vmem:[%s16282_s1 + $0x324] ss:$20 sps:$4 sm:$0xff]  }
  0x55   :  { %10002 = vmatprep.mubr.msk.bf16.mxu0 %vm484_vm0, %v13212_v7  ;;  %10007 = vmatprep.mubr.msk.bf16.mxu1 %vm484_vm0, %v13212_v7 }
  0x57   :  { %673 = vmatpush1.bf16.msra.mxu0 %v12123_v10  ;;  %1221 = vmatpush1.bf16.msra.mxu1 %v12120_v9  ;;  %v12156_v9 = vld [vmem:[%s16282_s1 + $0x178] ss:$20 sps:$4 sm:$0xff]   ;;  %v12159_v10 = vld [vmem:[%s16282_s1 + $0x2fc] ss:$20 sps:$4 sm:$0xff]  }
  0x58   :  { %674 = vmatprep.subr.bf16.mxu0 %v12928_v0  ;;  %1222 = vmatprep.subr.bf16.mxu1 %v12129_v14  ;;  %v13390_v14 = vld [vmem:[%s16281_s0 + $0x58] ss:$8 sps:$4 sm:$0xff]  }
  0x5a   :  { %553 = vmatmul.mubr.bf16.gmra.mxu0 %v13226_v13  ;;  %636 = vmatmul.mubr.bf16.gmra.mxu1 %v13226_v13 }
  0x5b   :  { %675 = vmatpush1.bf16.msra.mxu0 %v12130_v23  ;;  %1223 = vmatpush1.bf16.msra.mxu1 %v12127_v19  ;;  %v13405_v19 = vld [vmem:[%s16281_s0 + $0x6c] ss:$8 sps:$4 sm:$0xff]   ;;  %v12175_v23 = vld [vmem:[%s16282_s1 + $0x288] ss:$20 sps:$4 sm:$0xff]  }
  0x5c   :  { %676 = vmatprep.subr.bf16.mxu0 %v12928_v0  ;;  %1224 = vmatprep.subr.bf16.mxu1 %v12133_v24  ;;  %v12178_v24 = vld [vmem:[%s16282_s1 + $0x290] ss:$20 sps:$4 sm:$0xff]  }
  0x5d   :  { %10003 = vmatprep.mubr.msk.bf16.mxu0 %vm484_vm0, %v13255_v25  ;;  %10008 = vmatprep.mubr.msk.bf16.mxu1 %vm484_vm0, %v13255_v25 }
  0x5f   :  { %677 = vmatpush1.bf16.msra.mxu0 %v12134_v34  ;;  %1225 = vmatpush1.bf16.msra.mxu1 %v12131_v28  ;;  %v12179_v28 = vld [vmem:[%s16282_s1 + $0x260] ss:$20 sps:$4 sm:$0xff]  }
  0x60   :  { %678 = vmatprep.subr.bf16.mxu0 %v12928_v0  ;;  %1226 = vmatprep.subr.bf16.mxu1 %v12140_v37  ;;  %v12189_v34 = vld [vmem:[%s16282_s1 + $0x240] ss:$20 sps:$4 sm:$0xff]   ;;  %v12190_v37 = vld [vmem:[%s16282_s1 + $0x210] ss:$20 sps:$4 sm:$0xff]  }
  0x62   :  { %563 = vmatmul.mubr.bf16.gmra.mxu0 %v13269_v30  ;;  %646 = vmatmul.mubr.bf16.gmra.mxu1 %v13269_v30 }
  0x63   :  { %679 = vmatpush1.bf16.msra.mxu0 %v12141_v45  ;;  %1227 = vmatpush1.bf16.msra.mxu1 %v12138_v44  ;;  %v13513_v44 = vld [vmem:[%s16281_s0 + $0x9c] ss:$8 sps:$4 sm:$0xff]   ;;  %v12201_v45 = vld [vmem:[%s16282_s1 + $0x1c0] ss:$20 sps:$4 sm:$0xff]  }
  0x64   :  { %680 = vmatprep.subr.bf16.mxu0 %v12928_v0  ;;  %1228 = vmatprep.subr.bf16.mxu1 %v12144_v46  ;;  %v13523_v46 = vld [vmem:[#allocation3 + $0xc8] sm:$0xff] }
  0x65   :  { %10004 = vmatprep.mubr.msk.bf16.mxu0 %vm484_vm0, %v13291_v41  ;;  %10009 = vmatprep.mubr.msk.bf16.mxu1 %vm484_vm0, %v13291_v41 }
  0x67   :  { %681 = vmatpush1.bf16.msra.mxu0 %v12145_v57  ;;  %1229 = vmatpush1.bf16.msra.mxu1 %v12142_v56  ;;  %v12215_v56 = vld [vmem:[%s16282_s1 + $0x330] ss:$20 sps:$4 sm:$0xff]  }
  0x68   :  { %692 = vmatprep.subr.bf16.mxu0 %v12928_v0  ;;  %1240 = vmatprep.subr.bf16.mxu1 %v12151_v58  ;;  %v12218_v57 = vld [vmem:[%s16282_s1 + $0x304] ss:$20 sps:$4 sm:$0xff]   ;;  %v12219_v58 = vld [vmem:[%s16282_s1 + $0x308] ss:$20 sps:$4 sm:$0xff]  }
  0x6a   :  { %573 = vmatmul.mubr.bf16.gmra.mxu0 %v13316_v51  ;;  %656 = vmatmul.mubr.bf16.gmra.mxu1 %v13316_v51 }
  0x6b   :  { %693 = vmatpush2.bf16.msra.mxu0 %v12152_v2  ;;  %1241 = vmatpush2.bf16.msra.mxu1 %v12149_v63  ;;  %v12220_v63 = vld [vmem:[%s16282_s1 + $0x488] ss:$20 sps:$4 sm:$0xff]   ;;  %v12223_v2 = vld [vmem:[%s16282_s1 + $0x490] ss:$20 sps:$4 sm:$0xff]  }
  0x6c   :  { %694 = vmatprep.subr.bf16.mxu0 %v12928_v0  ;;  %1242 = vmatprep.subr.bf16.mxu1 %v12155_v4  ;;  %v12228_v4 = vld [vmem:[%s16282_s1 + $0x464] ss:$20 sps:$4 sm:$0xff]  }
  0x6d   :  { %10010 = vmatprep.mubr.msk.bf16.mxu0 %vm484_vm0, %v13110_v35  ;;  %10156 = vmatprep.mubr.msk.bf16.mxu1 %vm484_vm0, %v13359_v6  ;;  %v12166_v35 = vld [vmem:[%s16282_s1 + $0x2dc] ss:$20 sps:$4 sm:$0xff]  }
  0x6f   :  { %695 = vmatpush2.bf16.msra.mxu0 %v12156_v9  ;;  %1243 = vmatpush2.bf16.msra.mxu1 %v12153_v8  ;;  %v12226_v8 = vld [vmem:[%s16282_s1 + $0x460] ss:$20 sps:$4 sm:$0xff]   ;;  %v12229_v9 = vld [vmem:[%s16282_s1 + $0x468] ss:$20 sps:$4 sm:$0xff]  }
  0x70   :  { %696 = vmatprep.subr.bf16.mxu0 %v12928_v0  ;;  %1244 = vmatprep.subr.bf16.mxu1 %v12159_v10  ;;  %v12234_v10 = vld [vmem:[%s16282_s1 + $0x43c] ss:$20 sps:$4 sm:$0xff]  }
  0x73   :  { %697 = vmatpush2.bf16.msra.mxu0 %v12160_v12  ;;  %1245 = vmatpush2.bf16.msra.mxu1 %v12157_v11  ;;  %v12237_v11 = vld [vmem:[%s16282_s1 + $0x444] ss:$20 sps:$4 sm:$0xff]  }
  0x74   :  { %1297 = vmatprep.subr.bf16.mxu0 %v12166_v35  ;;  %1380 = vmatprep.subr.bf16.mxu1 %v12928_v0  ;;  %v12232_v12 = vld [vmem:[%s16282_s1 + $0x438] ss:$20 sps:$4 sm:$0xff]   ;;  %v12235_v35 = vld [vmem:[%s16282_s1 + $0x440] ss:$20 sps:$4 sm:$0xff]  }
  0x76   :  { %699 = vmatmul.mubr.bf16.vlgmr.msra.gmra.mxu0 %v13152_v47  ;;  %1247 = vmatmul.mubr.bf16.vlgmr.msra.gmra.mxu1 %v13390_v14  ;;  %v13426_v47 = vld [vmem:[%s16281_s0 + $0x68] ss:$8 sps:$4 sm:$0xff]  }
  0x77   :  { %1298 = vmatpush1.bf16.msra.mxu0 %v12164_v16  ;;  %1381 = vmatpush1.bf16.msra.mxu1 %v12167_v17  ;;  %v12243_v16 = vld [vmem:[%s16282_s1 + $0x41c] ss:$20 sps:$4 sm:$0xff]  }
  0x78   :  { %1299 = vmatprep.subr.bf16.mxu0 %v12170_v18  ;;  %1382 = vmatprep.subr.bf16.mxu1 %v12928_v0  ;;  %v12238_v17 = vld [vmem:[%s16282_s1 + $0x410] ss:$20 sps:$4 sm:$0xff]   ;;  %v12241_v18 = vld [vmem:[%s16282_s1 + $0x418] ss:$20 sps:$4 sm:$0xff]  }
  0x79   :  { %10011 = vmatprep.mubr.msk.bf16.mxu0 %vm484_vm0, %v13168_v52  ;;  %10157 = vmatprep.mubr.msk.bf16.mxu1 %vm484_vm0, %v13405_v19  ;;  %v12181_v52 = vld [vmem:[%s16282_s1 + $0x264] ss:$20 sps:$4 sm:$0xff]  }
  0x7b   :  { %1300 = vmatpush1.bf16.msra.mxu0 %v12168_v20  ;;  %1383 = vmatpush1.bf16.msra.mxu1 %v12171_v21  ;;  %v12246_v20 = vld [vmem:[%s16282_s1 + $0x3ec] ss:$20 sps:$4 sm:$0xff]   ;;  %v12249_v21 = vld [vmem:[%s16282_s1 + $0x3f4] ss:$20 sps:$4 sm:$0xff]  }
  0x7c   :  { %1301 = vmatprep.subr.bf16.mxu0 %v12177_v22  ;;  %1384 = vmatprep.subr.bf16.mxu1 %v12928_v0  ;;  %v12244_v22 = vld [vmem:[%s16282_s1 + $0x3e8] ss:$20 sps:$4 sm:$0xff]  }
  0x7e   :  { %707 = vmatmul.mubr.bf16.gmra.mxu0 %v13184_v59  ;;  %1257 = vmatmul.mubr.bf16.gmra.mxu1 %v13426_v47  ;;  %v13462_v59 = vld [vmem:[%s16281_s0 + $0x78] ss:$8 sps:$4 sm:$0xff]  }
  0x7f   :  { %1302 = vmatpush1.bf16.msra.mxu0 %v12175_v23  ;;  %1385 = vmatpush1.bf16.msra.mxu1 %v12178_v24  ;;  %v12247_v23 = vld [vmem:[%s16282_s1 + $0x3f0] ss:$20 sps:$4 sm:$0xff]  }
  0x80   :  { %1303 = vmatprep.subr.bf16.mxu0 %v12181_v52  ;;  %1386 = vmatprep.subr.bf16.mxu1 %v12928_v0  ;;  %v12252_v24 = vld [vmem:[%s16282_s1 + $0x3c4] ss:$20 sps:$4 sm:$0xff]   ;;  %v12255_v52 = vld [vmem:[%s16282_s1 + $0x3cc] ss:$20 sps:$4 sm:$0xff]  }
  0x81   :  { %10012 = vmatprep.mubr.msk.bf16.mxu0 %vm484_vm0, %v13212_v7  ;;  %10158 = vmatprep.mubr.msk.bf16.mxu1 %vm484_vm0, %v13441_v27  ;;  %v12192_v7 = vld [vmem:[%s16282_s1 + $0x214] ss:$20 sps:$4 sm:$0xff]  }
  0x83   :  { %1304 = vmatpush1.bf16.msra.mxu0 %v12179_v28  ;;  %1387 = vmatpush1.bf16.msra.mxu1 %v12182_v29  ;;  %v12253_v28 = vld [vmem:[%s16282_s1 + $0x3c8] ss:$20 sps:$4 sm:$0xff]  }
  0x84   :  { %1305 = vmatprep.subr.bf16.mxu0 %v12188_v32  ;;  %1388 = vmatprep.subr.bf16.mxu1 %v12928_v0  ;;  %v12258_v29 = vld [vmem:[%s16282_s1 + $0x39c] ss:$20 sps:$4 sm:$0xff]   ;;  %v12261_v32 = vld [vmem:[%s16282_s1 + $0x3a4] ss:$20 sps:$4 sm:$0xff]  }
  0x86   :  { %715 = vmatmul.mubr.bf16.gmra.mxu0 %v13226_v13  ;;  %1267 = vmatmul.mubr.bf16.gmra.mxu1 %v13462_v59  ;;  %v13498_v13 = vld [vmem:[%s16281_s0 + $0x88] ss:$8 sps:$4 sm:$0xff]  }
  0x87   :  { %1306 = vmatpush1.bf16.msra.mxu0 %v12186_v33  ;;  %1389 = vmatpush1.bf16.msra.mxu1 %v12189_v34  ;;  %v12259_v33 = vld [vmem:[%s16282_s1 + $0x3a0] ss:$20 sps:$4 sm:$0xff]  }
  0x88   :  { %1307 = vmatprep.subr.bf16.mxu0 %v12192_v7  ;;  %1390 = vmatprep.subr.bf16.mxu1 %v12928_v0  ;;  %v12264_v34 = vld [vmem:[%s16282_s1 + $0x374] ss:$20 sps:$4 sm:$0xff]   ;;  %v12267_v7 = vld [vmem:[%s16282_s1 + $0x37c] ss:$20 sps:$4 sm:$0xff]  }
  0x89   :  { %10013 = vmatprep.mubr.msk.bf16.mxu0 %vm484_vm0, %v13255_v25  ;;  %10159 = vmatprep.mubr.msk.bf16.mxu1 %vm484_vm0, %v13477_v36  ;;  %v12203_v25 = vld [vmem:[%s16282_s1 + $0x1c4] ss:$20 sps:$4 sm:$0xff]  }
  0x8b   :  { %1308 = vmatpush1.bf16.msra.mxu0 %v12190_v37  ;;  %1391 = vmatpush1.bf16.msra.mxu1 %v12193_v38  ;;  %v12265_v37 = vld [vmem:[%s16282_s1 + $0x378] ss:$20 sps:$4 sm:$0xff]  }
  0x8c   :  { %1309 = vmatprep.subr.bf16.mxu0 %v12199_v39  ;;  %1392 = vmatprep.subr.bf16.mxu1 %v12928_v0  ;;  %v12204_v0 = vld [vmem:[%s16282_s1 + $0x1c8] ss:$20 sps:$4 sm:$0xff]   ;;  %v12270_v38 = vld [vmem:[%s16282_s1 + $0x504] ss:$20 sps:$4 sm:$0xff]   ;;  %v12273_v39 = vld [vmem:[%s16282_s1 + $0x50c] ss:$20 sps:$4 sm:$0xff]  }
  0x8e   :  { %723 = vmatmul.mubr.bf16.gmra.mxu0 %v13269_v30  ;;  %1277 = vmatmul.mubr.bf16.gmra.mxu1 %v13498_v13  ;;  %v12210_v30 = vld [vmem:[%s16282_s1 + $0x354] ss:$20 sps:$4 sm:$0xff]  }
  0x8f   :  { %1310 = vmatpush1.bf16.msra.mxu0 %v12197_v40  ;;  %1393 = vmatpush1.bf16.msra.mxu1 %v12200_v43  ;;  %v12271_v40 = vld [vmem:[%s16282_s1 + $0x508] ss:$20 sps:$4 sm:$0xff]  }
  0x90   :  { %1311 = vmatprep.subr.bf16.mxu0 %v12203_v25  ;;  %1394 = vmatprep.subr.bf16.mxu1 %v13523_v46  ;;  %v12276_v43 = vld [vmem:[%s16282_s1 + $0x4dc] ss:$20 sps:$4 sm:$0xff]   ;;  %v12279_v25 = vld [vmem:[%s16282_s1 + $0x4e4] ss:$20 sps:$4 sm:$0xff]  }
  0x91   :  { %10014 = vmatprep.mubr.msk.bf16.mxu0 %vm484_vm0, %v13291_v41  ;;  %10160 = vmatprep.mubr.msk.bf16.mxu1 %vm484_vm0, %v13513_v44  ;;  %v12214_v41 = vld [vmem:[%s16282_s1 + $0x32c] ss:$20 sps:$4 sm:$0xff]  }
  0x93   :  { %1312 = vmatpush1.bf16.msra.mxu0 %v12201_v45  ;;  %1395 = vmatpush1.bf16.msra.mxu1 %v12204_v0  ;;  %v12277_v45 = vld [vmem:[%s16282_s1 + $0x4e0] ss:$20 sps:$4 sm:$0xff]  }
  0x94   :  { %1323 = vmatprep.subr.bf16.mxu0 %v12210_v30  ;;  %1406 = vmatprep.subr.bf16.mxu1 %v13523_v46  ;;  %v12282_v0 = vld [vmem:[%s16282_s1 + $0x4b4] ss:$20 sps:$4 sm:$0xff]   ;;  %v12285_v30 = vld [vmem:[%s16282_s1 + $0x4bc] ss:$20 sps:$4 sm:$0xff]  }
  0x96   :  { %731 = vmatmul.mubr.bf16.gmra.mxu0 %v13316_v51  ;;  %1287 = vmatmul.mubr.bf16.gmra.mxu1 %v13536_v49  ;;  %v12216_v51 = vld [vmem:[%s16282_s1 + $0x300] ss:$20 sps:$4 sm:$0xff]  }
  0x97   :  { %1324 = vmatpush2.bf16.msra.mxu0 %v12208_v50  ;;  %1407 = vmatpush2.bf16.msra.mxu1 %v12211_v53  ;;  %v12283_v50 = vld [vmem:[%s16282_s1 + $0x4b8] ss:$20 sps:$4 sm:$0xff]  }
  0x98   :  { %1325 = vmatprep.subr.bf16.mxu0 %v12214_v41  ;;  %1408 = vmatprep.subr.bf16.mxu1 %v13523_v46  ;;  %v12288_v53 = vld [vmem:[%s16282_s1 + $0x644] ss:$20 sps:$4 sm:$0xff]   ;;  %v12286_v41 = vld [vmem:[%s16282_s1 + $0x640] ss:$20 sps:$4 sm:$0xff]  }
  0x99   :  { %10161 = vmatprep.mubr.msk.bf16.mxu0 %vm484_vm0, %v13359_v6  ;;  %10166 = vmatprep.mubr.msk.bf16.mxu1 %vm484_vm0, %v13359_v6  ;;  %v12231_v6 = vld [vmem:[%s16282_s1 + $0x46c] ss:$20 sps:$4 sm:$0xff]  }
  0x9b   :  { %1326 = vmatpush2.bf16.msra.mxu0 %v12212_v55  ;;  %1409 = vmatpush2.bf16.msra.mxu1 %v12215_v56  ;;  %v12289_v55 = vld [vmem:[%s16282_s1 + $0x498] ss:$20 sps:$4 sm:$0xff]   ;;  %v12292_v56 = vld [vmem:[%s16282_s1 + $0x61c] ss:$20 sps:$4 sm:$0xff]  }
  0x9c   :  { %1327 = vmatprep.subr.bf16.mxu0 %v12218_v57  ;;  %1410 = vmatprep.subr.bf16.mxu1 %v13523_v46  ;;  %v12290_v57 = vld [vmem:[%s16282_s1 + $0x618] ss:$20 sps:$4 sm:$0xff]  }
  0x9f   :  { %1328 = vmatpush2.bf16.msra.mxu0 %v12216_v51  ;;  %1411 = vmatpush2.bf16.msra.mxu1 %v12219_v58  ;;  %v12293_v51 = vld [vmem:[%s16282_s1 + $0x470] ss:$20 sps:$4 sm:$0xff]   ;;  %v12296_v58 = vld [vmem:[%s16282_s1 + $0x5f4] ss:$20 sps:$4 sm:$0xff]  }
  0xa0   :  { %2121 = vmatprep.subr.bf16.mxu0 %v12222_v61  ;;  %2204 = vmatprep.subr.bf16.mxu1 %v12225_v62  ;;  %v12294_v61 = vld [vmem:[%s16282_s1 + $0x5f0] ss:$20 sps:$4 sm:$0xff]   ;;  %v12297_v62 = vld [vmem:[%s16282_s1 + $0x448] ss:$20 sps:$4 sm:$0xff]  }
  0xa2   :  { %1330 = vmatmul.mubr.bf16.vlgmr.msra.gmra.mxu0 %v13390_v14  ;;  %1413 = vmatmul.mubr.bf16.vlgmr.msra.gmra.mxu1 %v13390_v14  ;;  %v12240_v14 = vld [vmem:[%s16282_s1 + $0x414] ss:$20 sps:$4 sm:$0xff]  }
  0xa3   :  { %2122 = vmatpush1.bf16.msra.mxu0 %v12220_v63  ;;  %2205 = vmatpush1.bf16.msra.mxu1 %v12223_v2  ;;  %v12300_v63 = vld [vmem:[%s16282_s1 + $0x5cc] ss:$20 sps:$4 sm:$0xff]   ;;  %v12298_v2 = vld [vmem:[%s16282_s1 + $0x5c8] ss:$20 sps:$4 sm:$0xff]  }
  0xa4   :  { %2123 = vmatprep.subr.bf16.mxu0 %v12228_v4  ;;  %2206 = vmatprep.subr.bf16.mxu1 %v12231_v6  ;;  %v12301_v4 = vld [vmem:[%s16282_s1 + $0x420] ss:$20 sps:$4 sm:$0xff]  }
  0xa5   :  { %10162 = vmatprep.mubr.msk.bf16.mxu0 %vm484_vm0, %v13405_v19  ;;  %10167 = vmatprep.mubr.msk.bf16.mxu1 %vm484_vm0, %v13405_v19  ;;  %v1613_v6 = vld [vmem:[%s16281_s0 + $0x50] sm:$0x11] }
  0xa7   :  { %2124 = vmatpush1.bf16.msra.mxu0 %v12226_v8  ;;  %2207 = vmatpush1.bf16.msra.mxu1 %v12229_v9  ;;  %v12304_v8 = vld [vmem:[%s16282_s1 + $0x5a4] ss:$20 sps:$4 sm:$0xff]   ;;  %v10248_v9 = vcombine.high %v1613_v6, %v1613_v6 }
  0xa8   :  { %2125 = vmatprep.subr.bf16.mxu0 %v12234_v10  ;;  %2208 = vmatprep.subr.bf16.mxu1 %v12237_v11  ;;  %v12302_v10 = vld [vmem:[%s16282_s1 + $0x5a0] ss:$20 sps:$4 sm:$0xff]   ;;  %v12305_v11 = vld [vmem:[%s16282_s1 + $0x3f8] ss:$20 sps:$4 sm:$0xff]  }
  0xaa   :  { %1340 = vmatmul.mubr.bf16.gmra.mxu0 %v13426_v47  ;;  %1421 = vmatmul.mubr.bf16.gmra.mxu1 %v13426_v47 }
  0xab   :  { %2126 = vmatpush1.bf16.msra.mxu0 %v12232_v12  ;;  %2209 = vmatpush1.bf16.msra.mxu1 %v12235_v35  ;;  %v12308_v12 = vld [vmem:[%s16282_s1 + $0x57c] ss:$20 sps:$4 sm:$0xff]   ;;  %v12826_v35 = vld [vmem:[%s16281_s0 + $0x44] ss:$8 sps:$4 sm:$0xff]  }
  0xac   :  { %2127 = vmatprep.subr.bf16.mxu0 %v12240_v14  ;;  %2210 = vmatprep.subr.bf16.mxu1 %v12243_v16  ;;  %v1807_v14 = vshrl.u32 %v12826_v35, 16  ;;  %v1811_v16 = vshll.u32 %v10248_v9, 16  ;;  %v12337_v9 = vld [vmem:[%s16282_s1 + $0x64c] ss:$20 sps:$4 sm:$0xff]   ;;  %v12335_v35 = vld [vmem:[%s16282_s1 + $0x648] ss:$20 sps:$4 sm:$0xff]  }
  0xad   :  { %10163 = vmatprep.mubr.msk.bf16.mxu0 %vm484_vm0, %v13441_v27  ;;  %10168 = vmatprep.mubr.msk.bf16.mxu1 %vm484_vm0, %v13441_v27  ;;  %v12250_v27 = vld [vmem:[%s16282_s1 + $0x3c0] ss:$20 sps:$4 sm:$0xff]  }
  0xaf   :  { %2128 = vmatpush1.bf16.msra.mxu0 %v12238_v17  ;;  %2211 = vmatpush1.bf16.msra.mxu1 %v12241_v18  ;;  %v12334_v17 = vld [vmem:[%s16281_s0 + $0x5c] ss:$8 sps:$4 sm:$0xff]   ;;  %v12306_v18 = vld [vmem:[%s16282_s1 + $0x578] ss:$20 sps:$4 sm:$0xff]  }
  0xb0   :  { %2129 = vmatprep.subr.bf16.mxu0 %v12246_v20  ;;  %2212 = vmatprep.subr.bf16.mxu1 %v12249_v21  ;;  %v12309_v20 = vld [vmem:[%s16282_s1 + $0x3d0] ss:$20 sps:$4 sm:$0xff]   ;;  %v10247_v21 = vcombine.low %v1613_v6, %v1613_v6  ;;  %v12328_v6 = vld [vmem:[%s16282_s1 + $0x668] ss:$20 sps:$4 sm:$0xff]  }
  0xb2   :  { %1350 = vmatmul.mubr.bf16.gmra.mxu0 %v13462_v59  ;;  %1429 = vmatmul.mubr.bf16.gmra.mxu1 %v13462_v59  ;;  %v12256_v59 = vld [vmem:[%s16282_s1 + $0x398] ss:$20 sps:$4 sm:$0xff]  }
  0xb3   :  { %2130 = vmatpush1.bf16.msra.mxu0 %v12244_v22  ;;  %2213 = vmatpush1.bf16.msra.mxu1 %v12247_v23  ;;  %v12312_v22 = vld [vmem:[%s16282_s1 + $0x554] ss:$20 sps:$4 sm:$0xff]   ;;  %v1809_v23 = vor.u32 %v1807_v14, %v13318_v54  ;;  %v12316_v54 = vld [vmem:[%s16282_s1 + $0x52c] ss:$20 sps:$4 sm:$0xff]  }
  0xb4   :  { %2131 = vmatprep.subr.bf16.mxu0 %v12252_v24  ;;  %2214 = vmatprep.subr.bf16.mxu1 %v12255_v52  ;;  %v1813_v24 = vrot.slane %v1811_v16, 1  ;;  %v12827_v52 = vld [vmem:[%s16281_s0 + $0x40] ss:$8 sps:$4 sm:$0xff]  }
  0xb5   :  { %10164 = vmatprep.mubr.msk.bf16.mxu0 %vm484_vm0, %v13477_v36  ;;  %10169 = vmatprep.mubr.msk.bf16.mxu1 %vm484_vm0, %v13477_v36  ;;  %v12262_v36 = vld [vmem:[%s16282_s1 + $0x370] ss:$20 sps:$4 sm:$0xff]   ;;  %v10329_v14 = vld [vmem:[%s16281_s0 + $0xa8] sm:$0x11] }
  0xb7   :  { %2132 = vmatpush1.bf16.msra.mxu0 %v12250_v27  ;;  %2215 = vmatpush1.bf16.msra.mxu1 %v12253_v28  ;;  %v1799_v27 = vshrl.u32 %v12827_v52, 16  ;;  %v2648_v28 = vshll.u32 %v12334_v17, 16  ;;  %v12339_v52 = vld [vmem:[%s16282_s1 + $0x620] ss:$20 sps:$4 sm:$0xff]  }
  0xb8   :  { %2133 = vmatprep.subr.bf16.mxu0 %v12258_v29  ;;  %2216 = vmatprep.subr.bf16.mxu1 %v12261_v32  ;;  %v12310_v29 = vld [vmem:[%s16282_s1 + $0x550] ss:$20 sps:$4 sm:$0xff]   ;;  %v12313_v32 = vld [vmem:[%s16282_s1 + $0x3a8] ss:$20 sps:$4 sm:$0xff]  }
  0xba   :  { %1360 = vmatmul.mubr.bf16.gmra.mxu0 %v13498_v13  ;;  %1437 = vmatmul.mubr.bf16.gmra.mxu1 %v13498_v13  ;;  %v12268_v13 = vld [vmem:[%s16282_s1 + $0x500] ss:$20 sps:$4 sm:$0xff]  }
  0xbb   :  { %2134 = vmatpush1.bf16.msra.mxu0 %v12256_v59  ;;  %2217 = vmatpush1.bf16.msra.mxu1 %v12259_v33  ;;  %v1803_v59 = vshll.u32 %v10247_v21, 16  ;;  %v12314_v33 = vld [vmem:[%s16282_s1 + $0x528] ss:$20 sps:$4 sm:$0xff]   ;;  %v12341_v21 = vld [vmem:[%s16282_s1 + $0x624] ss:$20 sps:$4 sm:$0xff]  }
  0xbc   :  { %2135 = vmatprep.subr.bf16.mxu0 %v12264_v34  ;;  %2218 = vmatprep.subr.bf16.mxu1 %v12267_v7  ;;  %v13843_v34 = vsel %vm1726_vm1, %v1809_v23, %v1813_v24  ;;  %v2646_v7 = vshrl.u32 %v12334_v17, 16  ;;  %v13939_v17 = vld [vmem:[%s16281_s0 + $0x9c] ss:$8 sps:$4 sm:$0xff]   ;;  %v10407_v24 = vcombine.high %v10329_v14, %v10329_v14 }
  0xbd   :  { %10165 = vmatprep.mubr.msk.bf16.mxu0 %vm484_vm0, %v13513_v44  ;;  %10170 = vmatprep.mubr.msk.bf16.mxu1 %vm484_vm0, %v13513_v44  ;;  %v12274_v44 = vld [vmem:[%s16282_s1 + $0x4d8] ss:$20 sps:$4 sm:$0xff]  }
  0xbf   :  { %2136 = vmatpush1.bf16.msra.mxu0 %v12262_v36  ;;  %2219 = vmatpush1.bf16.msra.mxu1 %v12265_v37  ;;  %v2650_v36 = vrot.slane %v2648_v28, 1  ;;  %v2653_v37 = vshll.u32 %v13405_v19, 16  ;;  %v12322_v19 = vld [vmem:[%s16282_s1 + $0x6bc] ss:$20 sps:$4 sm:$0xff]  }
  0xc0   :  { %2147 = vmatprep.subr.bf16.mxu0 %v12270_v38  ;;  %2230 = vmatprep.subr.bf16.mxu1 %v12273_v39  ;;  %v12317_v38 = vld [vmem:[%s16282_s1 + $0x380] ss:$20 sps:$4 sm:$0xff]   ;;  %v1801_v39 = vor.u32 %v1799_v27, %v13343_v1  ;;  %v12320_v1 = vld [vmem:[%s16282_s1 + $0x6b8] ss:$20 sps:$4 sm:$0xff]   ;;  %v12342_v27 = vld [vmem:[%s16282_s1 + $0x628] ss:$20 sps:$4 sm:$0xff]  }
  0xc2   :  { %1370 = vmatmul.mubr.bf16.gmra.mxu0 %v13536_v49  ;;  %1445 = vmatmul.mubr.bf16.gmra.mxu1 %v13536_v49  ;;  %v12280_v49 = vld [vmem:[%s16282_s1 + $0x4b0] ss:$20 sps:$4 sm:$0xff]  }
  0xc3   :  { %2148 = vmatpush2.bf16.msra.mxu0 %v12268_v13  ;;  %2231 = vmatpush2.bf16.msra.mxu1 %v12271_v40  ;;  %v1805_v13 = vrot.slane %v1803_v59, 1  ;;  %v12332_v40 = vld [vmem:[%s16281_s0 + $0x58] ss:$8 sps:$4 sm:$0xff]  }
  0xc4   :  { %2149 = vmatprep.subr.bf16.mxu0 %v12276_v43  ;;  %2232 = vmatprep.subr.bf16.mxu1 %v12279_v25  ;;  %v2651_v43 = vor.u32 %v2650_v36, %v2646_v7  ;;  %v2655_v25 = vrot.slane %v2653_v37, 1  ;;  %v2701_v7 = vshll.u32 %v13939_v17, 16 }
  0xc5   :  { %10304 = vmatprep.mubr.msk.bf16.mxu0 %vm484_vm0, %v13202_v3  ;;  %10309 = vmatprep.mubr.msk.bf16.mxu1 %vm484_vm0, %v13202_v3 }
  0xc7   :  { %2150 = vmatpush2.bf16.msra.mxu0 %v12274_v44  ;;  %2233 = vmatpush2.bf16.msra.mxu1 %v12277_v45  ;;  %v13865_v44 = vsel %vm1726_vm1, %v1801_v39, %v1805_v13  ;;  %v12323_v45 = vld [vmem:[%s16282_s1 + $0x510] ss:$20 sps:$4 sm:$0xff]   ;;  %v13977_v39 = vshll.u32 %v10407_v24, 16  ;;  %v12346_v13 = vld [vmem:[%s16282_s1 + $0x5f8] ss:$20 sps:$4 sm:$0xff]  }
  0xc8   :  { %2151 = vmatprep.subr.bf16.mxu0 %v12282_v0  ;;  %2234 = vmatprep.subr.bf16.mxu1 %v12285_v30  ;;  %v12326_v0 = vld [vmem:[%s16282_s1 + $0x694] ss:$20 sps:$4 sm:$0xff]   ;;  %v2636_v30 = vshll.u32 %v12332_v40, 16 }
  0xcb   :  { %2152 = vmatpush2.bf16.msra.mxu0 %v12280_v49  ;;  %2235 = vmatpush2.bf16.msra.mxu1 %v12283_v50  ;;  %v13877_v49 = vld [vmem:[%s16281_s0 + $0x7c] ss:$8 sps:$4 sm:$0xff]   ;;  %v2641_v50 = vshll.u32 %v13426_v47, 16 }
  0xcc   :  { %2287 = vmatprep.subr.bf16.mxu0 %v13523_v46  ;;  %3027 = vmatprep.subr.bf16.mxu1 %v12288_v53  ;;  %v12324_v53 = vld [vmem:[%s16282_s1 + $0x690] ss:$20 sps:$4 sm:$0xff]  }
  0xce   :  { %2154 = vmatmul.mubr.bf16.vlgmr.msra.gmra.mxu0 %v13233_v15  ;;  %2237 = vmatmul.mubr.bf16.vlgmr.msra.gmra.mxu1 %v13233_v15 }
  0xcf   :  { %2288 = vmatpush1.bf16.msra.mxu0 %v12289_v55  ;;  %3028 = vmatpush1.bf16.msra.mxu1 %v12286_v41  ;;  %v12327_v41 = vld [vmem:[%s16282_s1 + $0x4e8] ss:$20 sps:$4 sm:$0xff]   ;;  %v13889_v55 = vsel %vm1726_vm1, %v2651_v43, %v2655_v25 }
  0xd0   :  { %2289 = vmatprep.subr.bf16.mxu0 %v13523_v46  ;;  %3029 = vmatprep.subr.bf16.mxu1 %v12292_v56  ;;  %v2634_v56 = vshrl.u32 %v12332_v40, 16  ;;  %v12349_v40 = vld [vmem:[%s16282_s1 + $0x600] ss:$20 sps:$4 sm:$0xff]  }
  0xd1   :  { %10305 = vmatprep.mubr.msk.bf16.mxu0 %vm484_vm0, %v13258_v26  ;;  %10310 = vmatprep.mubr.msk.bf16.mxu1 %vm484_vm0, %v13258_v26 }
  0xd3   :  { %2290 = vmatpush1.bf16.msra.mxu0 %v12293_v51  ;;  %3030 = vmatpush1.bf16.msra.mxu1 %v12290_v57  ;;  %v2638_v57 = vrot.slane %v2636_v30, 1  ;;  %v12330_v51 = vld [vmem:[%s16282_s1 + $0x66c] ss:$20 sps:$4 sm:$0xff]  }
  0xd4   :  { %2291 = vmatprep.subr.bf16.mxu0 %v13523_v46  ;;  %3031 = vmatprep.subr.bf16.mxu1 %v12296_v58  ;;  %v2669_v58 = vshll.u32 %v13877_v49, 16 }
  0xd6   :  { %2164 = vmatmul.mubr.bf16.gmra.mxu0 %v13272_v31  ;;  %2247 = vmatmul.mubr.bf16.gmra.mxu1 %v13272_v31 }
  0xd7   :  { %2292 = vmatpush1.bf16.msra.mxu0 %v12297_v62  ;;  %3032 = vmatpush1.bf16.msra.mxu1 %v12294_v61  ;;  %v13899_v61 = vld [vmem:[%s16281_s0 + $0x78] ss:$8 sps:$4 sm:$0xff]   ;;  %v2643_v62 = vrot.slane %v2641_v50, 1 }
  0xd8   :  { %2293 = vmatprep.subr.bf16.mxu0 %v13523_v46  ;;  %3033 = vmatprep.subr.bf16.mxu1 %v12300_v63  ;;  %v12828_v63 = vld [vmem:[%s16281_s0 + $0x6c] ss:$8 sps:$4 sm:$0xff]   ;;  %v2673_v37 = vshrl.u32 %v13899_v61, 16 }
  0xd9   :  { %10306 = vmatprep.mubr.msk.bf16.mxu0 %vm484_vm0, %v13294_v42  ;;  %10311 = vmatprep.mubr.msk.bf16.mxu1 %vm484_vm0, %v13294_v42 }
  0xdb   :  { %2294 = vmatpush1.bf16.msra.mxu0 %v12301_v4  ;;  %3034 = vmatpush1.bf16.msra.mxu1 %v12298_v2  ;;  %v2665_v2 = vshrl.u32 %v12828_v63, 16  ;;  %v2657_v4 = vshrl.u32 %v13426_v47, 16  ;;  %v2661_v47 = vshll.u32 %v13899_v61, 16 }
  0xdc   :  { %2295 = vmatprep.subr.bf16.mxu0 %v13523_v46  ;;  %3035 = vmatprep.subr.bf16.mxu1 %v12304_v8  ;;  %v12331_v8 = vld [vmem:[%s16282_s1 + $0x4c0] ss:$20 sps:$4 sm:$0xff]  }
  0xdd   :  { %v2667_v16 = vor.u32 %v2665_v2, %v2655_v25  ;;  %v2663_v59 = vrot.slane %v2661_v47, 1  ;;  %v2659_v36 = vor.u32 %v2657_v4, %v2643_v62  ;;  %v12352_v25 = vld [vmem:[%s16282_s1 + $0x5d4] ss:$20 sps:$4 sm:$0xff]   ;;  %v14026_v2 = vld [vmem:[#allocation3 + $0xc8] sm:$0xff]  ;;  %v12360_v4 = vld [vmem:[%s16282_s1 + $0x5b0] ss:$20 sps:$4 sm:$0xff]  }
  0xde   :  { %2174 = vmatmul.mubr.bf16.gmra.mxu0 %v13307_v48  ;;  %2257 = vmatmul.mubr.bf16.gmra.mxu1 %v13307_v48 }
  0xdf   :  { %2296 = vmatpush1.bf16.msra.mxu0 %v12305_v11  ;;  %3036 = vmatpush1.bf16.msra.mxu1 %v12302_v10  ;;  %v2671_v10 = vrot.slane %v2669_v58, 1  ;;  %v13923_v11 = vld [vmem:[%s16281_s0 + $0x8c] ss:$8 sps:$4 sm:$0xff]   ;;  %v2675_v63 = vor.u32 %v2673_v37, %v2663_v59 }
  0xe0   :  { %2297 = vmatprep.subr.bf16.mxu0 %v13523_v46  ;;  %3037 = vmatprep.subr.bf16.mxu1 %v12308_v12  ;;  %v13928_v12 = vld [vmem:[%s16281_s0 + $0x88] ss:$8 sps:$4 sm:$0xff]   ;;  %v2685_v23 = vshll.u32 %v13923_v11, 16 }
  0xe1   :  { %10307 = vmatprep.mubr.msk.bf16.mxu0 %vm484_vm0, %v13333_v60  ;;  %10312 = vmatprep.mubr.msk.bf16.mxu1 %vm484_vm0, %v13333_v60  ;;  %v2677_v28 = vshll.u32 %v13928_v12, 16  ;;  %v2689_v30 = vshrl.u32 %v13928_v12, 16  ;;  %v12370_v12 = vld [vmem:[%s16282_s1 + $0x55c] ss:$20 sps:$4 sm:$0xff]  }
  0xe3   :  { %2298 = vmatpush1.bf16.msra.mxu0 %v12309_v20  ;;  %3038 = vmatpush1.bf16.msra.mxu1 %v12306_v18  ;;  %v12338_v20 = vld [vmem:[%s16282_s1 + $0x650] ss:$20 sps:$4 sm:$0xff]  }
  0xe4   :  { %2299 = vmatprep.subr.bf16.mxu0 %v13523_v46  ;;  %3039 = vmatprep.subr.bf16.mxu1 %v12312_v22  ;;  %v13953_v22 = vld [vmem:[%s16281_s0 + $0x98] ss:$8 sps:$4 sm:$0xff]  }
  0xe6   :  { %2184 = vmatmul.mubr.bf16.gmra.mxu0 %v13354_v5  ;;  %2267 = vmatmul.mubr.bf16.gmra.mxu1 %v13354_v5 }
  0xe7   :  { %2300 = vmatpush1.bf16.msra.mxu0 %v12313_v32  ;;  %3040 = vmatpush1.bf16.msra.mxu1 %v12310_v29  ;;  %v10406_v29 = vcombine.low %v10329_v14, %v10329_v14  ;;  %v13967_v32 = vsel %vm1726_vm1, %v2667_v16, %v2671_v10  ;;  %v12368_v16 = vld [vmem:[%s16282_s1 + $0x558] ss:$20 sps:$4 sm:$0xff]  }
  0xe8   :  { %2301 = vmatprep.subr.bf16.mxu0 %v13523_v46  ;;  %3041 = vmatprep.subr.bf16.mxu1 %v12316_v54  ;;  %v12348_v54 = vld [vmem:[%s16282_s1 + $0x5fc] ss:$20 sps:$4 sm:$0xff]  }
  0xe9   :  { %10308 = vmatprep.mubr.msk.bf16.mxu0 %vm484_vm0, %v13843_v34  ;;  %10313 = vmatprep.mubr.msk.bf16.mxu1 %vm484_vm0, %v13843_v34  ;;  %v13990_v43 = vshll.u32 %v10406_v29, 16  ;;  %v12375_v29 = vld [vmem:[%s16282_s1 + $0x538] ss:$20 sps:$4 sm:$0xff]  }
  0xeb   :  { %2302 = vmatpush1.bf16.msra.mxu0 %v12317_v38  ;;  %3042 = vmatpush1.bf16.msra.mxu1 %v12314_v33  ;;  %v2681_v33 = vshrl.u32 %v13877_v49, 16  ;;  %v2687_v38 = vrot.slane %v2685_v23, 1  ;;  %v14002_v49 = vsel %vm1726_vm1, %v2659_v36, %v2663_v59  ;;  %v2711_v58 = vrot.slane %v13990_v43, 1  ;;  %v12374_v23 = vld [vmem:[%s16282_s1 + $0x534] ss:$20 sps:$4 sm:$0xff]  }
  0xec   :  { %2313 = vmatprep.subr.bf16.mxu0 %v13523_v46  ;;  %3053 = vmatprep.subr.bf16.mxu1 %v12322_v19  ;;  %v2679_v19 = vrot.slane %v2677_v28, 1  ;;  %v12372_v28 = vld [vmem:[%s16282_s1 + $0x530] ss:$20 sps:$4 sm:$0xff]  }
  0xee   :  { %2194 = vmatmul.mubr.bf16.gmra.mxu0 %v13865_v44  ;;  %2277 = vmatmul.mubr.bf16.gmra.mxu1 %v13865_v44 }
  0xef   :  { %2314 = vmatpush2.bf16.msra.mxu0 %v12323_v45  ;;  %3054 = vmatpush2.bf16.msra.mxu1 %v12320_v1  ;;  %v2697_v1 = vshrl.u32 %v13923_v11, 16  ;;  %v2683_v45 = vor.u32 %v2681_v33, %v2671_v10 }
  0xf0   :  { %2315 = vmatprep.subr.bf16.mxu0 %v13523_v46  ;;  %3055 = vmatprep.subr.bf16.mxu1 %v12326_v0  ;;  %v2703_v0 = vrot.slane %v2701_v7, 1  ;;  %v12380_v7 = vld [vmem:[%s16282_s1 + $0x6c4] ss:$20 sps:$4 sm:$0xff]  }
  0xf1   :  { %10314 = vmatprep.mubr.msk.bf16.mxu0 %vm484_vm0, %v13202_v3  ;;  %10463 = vmatprep.mubr.msk.bf16.mxu1 %vm484_vm0, %v13889_v55  ;;  %v2639_v3 = vor.u32 %v2638_v57, %v2634_v56  ;;  %v2705_v56 = vshrl.u32 %v13953_v22, 16  ;;  %v12350_v57 = vld [vmem:[%s16282_s1 + $0x5d0] ss:$20 sps:$4 sm:$0xff]  }
  0xf3   :  { %2316 = vmatpush2.bf16.msra.mxu0 %v12327_v41  ;;  %3056 = vmatpush2.bf16.msra.mxu1 %v12324_v53  ;;  %v13942_v18 = vsel %vm1726_vm1, %v2639_v3, %v2643_v62  ;;  %v2713_v53 = vshrl.u32 %v13939_v17, 16  ;;  %v2719_v41 = vrot.slane %v13977_v39, 1  ;;  %v12359_v62 = vld [vmem:[%s16282_s1 + $0x5ac] ss:$20 sps:$4 sm:$0xff]  }
  0xf4   :  { %2317 = vmatprep.subr.bf16.mxu0 %v13523_v46  ;;  %3057 = vmatprep.subr.bf16.mxu1 %v12330_v51  ;;  %v12353_v51 = vld [vmem:[%s16282_s1 + $0x5d8] ss:$20 sps:$4 sm:$0xff]   ;;  %v12361_v3 = vld [vmem:[%s16282_s1 + $0x580] ss:$20 sps:$4 sm:$0xff]  }
  0xf5   :  { %v12371_v17 = vld [vmem:[%s16282_s1 + $0x560] ss:$20 sps:$4 sm:$0xff]  }
  0xf7   :  { %2318 = vmatpush2.bf16.msra.mxu0 %v12331_v8  ;;  %3058 = vmatpush2.bf16.msra.mxu1 %v12328_v6  ;;  %v12363_v6 = vld [vmem:[%s16282_s1 + $0x584] ss:$20 sps:$4 sm:$0xff]   ;;  %v2699_v8 = vor.u32 %v2697_v1, %v2687_v38 }
  0xf8   :  { %3110 = vmatprep.subr.bf16.mxu0 %v12337_v9  ;;  %3193 = vmatprep.subr.bf16.mxu1 %v13523_v46  ;;  %v12364_v9 = vld [vmem:[%s16282_s1 + $0x588] ss:$20 sps:$4 sm:$0xff]   ;;  %v12382_v1 = vld [vmem:[%s16282_s1 + $0x698] ss:$20 sps:$4 sm:$0xff]  }
  0xf9   :  { %v14059_v11 = vsel %vm1726_vm1, %v2699_v8, %v2703_v0  ;;  %v12401_v8 = vld [vmem:[%s16282_s1 + $0x7dc] ss:$20 sps:$4 sm:$0xff]  }
  0xfa   :  { %2320 = vmatmul.mubr.bf16.vlgmr.msra.gmra.mxu0 %v13233_v15  ;;  %3060 = vmatmul.mubr.bf16.vlgmr.msra.gmra.mxu1 %v13942_v18  ;;  %v2693_v15 = vshll.u32 %v13953_v22, 16  ;;  %v12381_v22 = vld [vmem:[%s16282_s1 + $0x6c8] ss:$20 sps:$4 sm:$0xff]  }
  0xfb   :  { %3111 = vmatpush1.bf16.msra.mxu0 %v12335_v35  ;;  %3194 = vmatpush1.bf16.msra.mxu1 %v12338_v20  ;;  %v2691_v35 = vor.u32 %v2689_v30, %v2679_v19 }
  0xfc   :  { %3112 = vmatprep.subr.bf16.mxu0 %v12341_v21  ;;  %3195 = vmatprep.subr.bf16.mxu1 %v13523_v46  ;;  %v14004_v50 = vrot.slane %v2693_v15, 1  ;;  %v12378_v15 = vld [vmem:[%s16282_s1 + $0x6c0] ss:$20 sps:$4 sm:$0xff]  }
  0xfd   :  { %10315 = vmatprep.mubr.msk.bf16.mxu0 %vm484_vm0, %v13258_v26  ;;  %10464 = vmatprep.mubr.msk.bf16.mxu1 %vm484_vm0, %v13967_v32  ;;  %v13995_v26 = vld [vmem:[%s16281_s0] ss:$8 sps:$4 sm:$0xfe]  }
  0xfe   :  { %v14088_v24 = vsel %vm1726_vm1, %v2691_v35, %v14004_v50  ;;  %v2707_v36 = vor.u32 %v2705_v56, %v14004_v50  ;;  %v12399_v35 = vld [vmem:[%s16282_s1 + $0x7d8] ss:$20 sps:$4 sm:$0xff]  }
  0xff   :  { %3113 = vmatpush1.bf16.msra.mxu0 %v12339_v52  ;;  %3196 = vmatpush1.bf16.msra.mxu1 %v12342_v27 }
 0x100   :  { %3114 = vmatprep.subr.bf16.mxu0 %v12348_v54  ;;  %3197 = vmatprep.subr.bf16.mxu1 %v13523_v46  ;;  %v14021_v46 = vsel %vm1726_vm1, %v2683_v45, %v2687_v38 }
 0x102   :  { %2328 = vmatmul.mubr.bf16.gmra.mxu0 %v13272_v31  ;;  %3070 = vmatmul.mubr.bf16.gmra.mxu1 %v14002_v49  ;;  %v12357_v31 = vld [vmem:[%s16282_s1 + $0x5a8] ss:$20 sps:$4 sm:$0xff]  }
 0x103   :  { %3115 = vmatpush1.bf16.msra.mxu0 %v12346_v13  ;;  %3198 = vmatpush1.bf16.msra.mxu1 %v12349_v40  ;;  %v12384_v13 = vld [vmem:[%s16282_s1 + $0x69c] ss:$20 sps:$4 sm:$0xff]  }
 0x104   :  { %3116 = vmatprep.subr.bf16.mxu0 %v12352_v25  ;;  %3199 = vmatprep.subr.bf16.mxu1 %v14026_v2  ;;  %v12385_v25 = vld [vmem:[%s16282_s1 + $0x6a0] ss:$20 sps:$4 sm:$0xff]  }
 0x105   :  { %10316 = vmatprep.mubr.msk.bf16.mxu0 %vm484_vm0, %v13294_v42  ;;  %10465 = vmatprep.mubr.msk.bf16.mxu1 %vm484_vm0, %v14021_v46  ;;  %v14043_v42 = vsel %vm1726_vm1, %v2675_v63, %v2679_v19  ;;  %v12393_v63 = vld [vmem:[%s16282_s1 + $0x800] ss:$20 sps:$4 sm:$0xff]  }
 0x107   :  { %3117 = vmatpush1.bf16.msra.mxu0 %v12350_v57  ;;  %3200 = vmatpush1.bf16.msra.mxu1 %v12353_v51  ;;  %v12392_v57 = vld [vmem:[%s16282_s1 + $0x7fc] ss:$20 sps:$4 sm:$0xff]   ;;  %v12395_v51 = vld [vmem:[%s16282_s1 + $0x804] ss:$20 sps:$4 sm:$0xff]  }
 0x108   :  { %3118 = vmatprep.subr.bf16.mxu0 %v12359_v62  ;;  %3201 = vmatprep.subr.bf16.mxu1 %v14026_v2  ;;  %v12390_v62 = vld [vmem:[%s16282_s1 + $0x7f8] ss:$20 sps:$4 sm:$0xff]  }
 0x10a   :  { %v14052_v10 = vpop.f32.mrf.mxu0  ;;  %2336 = vmatmul.mubr.bf16.gmra.mxu0 %v13307_v48  ;;  %3080 = vmatmul.mubr.bf16.gmra.mxu1 %v14043_v42  ;;  %v14056_v47 = vpop.f32.mrf.mxu1 }
 0x10b   :  { %3119 = vmatpush1.bf16.msra.mxu0 %v12357_v31  ;;  %3202 = vmatpush1.bf16.msra.mxu1 %v12360_v4 }
 0x10c   :  { %v14064_v14 = vpop.f32.mrf.mxu0  ;;  %3120 = vmatprep.subr.bf16.mxu0 %v12363_v6  ;;  %3203 = vmatprep.subr.bf16.mxu1 %v14026_v2  ;;  %v14067_v48 = vpop.f32.mrf.mxu1  ;;  %v12398_v6 = vld [vmem:[%s16282_s1 + $0x7d4] ss:$20 sps:$4 sm:$0xff]  }
 0x10d   :  { %10317 = vmatprep.mubr.msk.bf16.mxu0 %vm484_vm0, %v13333_v60  ;;  %10466 = vmatprep.mubr.msk.bf16.mxu1 %vm484_vm0, %v14059_v11  ;;  %v2715_v60 = vor.u32 %v2713_v53, %v2703_v0  ;;  %v12388_v0 = vld [vmem:[%s16282_s1 + $0x674] ss:$20 sps:$4 sm:$0xff]   ;;  %v12389_v53 = vld [vmem:[%s16282_s1 + $0x678] ss:$20 sps:$4 sm:$0xff]  }
 0x10e   :  { %v14079_v20 = vpop.f32.mrf.mxu0  ;;  %v14081_v21 = vpop.f32.mrf.mxu1 }
 0x10f   :  { %3121 = vmatpush1.bf16.msra.mxu0 %v12361_v3  ;;  %3204 = vmatpush1.bf16.msra.mxu1 %v12364_v9  ;;  %v14110_v33 = vsel %vm1726_vm1, %v2715_v60, %v2719_v41  ;;  %v12407_v60 = vld [vmem:[%s16282_s1 + $0x7b4] ss:$20 sps:$4 sm:$0xff]  }
 0x110   :  { %v14090_v52 = vpop.f32.mrf.mxu0  ;;  %3122 = vmatprep.subr.bf16.mxu0 %v12370_v12  ;;  %3205 = vmatprep.subr.bf16.mxu1 %v14026_v2  ;;  %v14093_v27 = vpop.f32.mrf.mxu1  ;;  %v12396_v12 = vld [vmem:[%s16282_s1 + $0x7d0] ss:$20 sps:$4 sm:$0xff]  }
 0x111   :  { %16329 = vst [vmem:[#allocation15_spill] sm:$0xff] %v14093_v27 }
 0x112   :  { %v14101_v59 = vpop.f32.mrf.mxu0  ;;  %2344 = vmatmul.mubr.bf16.gmra.mxu0 %v13354_v5  ;;  %3090 = vmatmul.mubr.bf16.gmra.mxu1 %v14088_v24  ;;  %v14105_v54 = vpop.f32.mrf.mxu1 }
 0x113   :  { %3123 = vmatpush1.bf16.msra.mxu0 %v12368_v16  ;;  %3206 = vmatpush1.bf16.msra.mxu1 %v12371_v17 }
 0x114   :  { %v14118_v5 = vpop.f32.mrf.mxu0  ;;  %3124 = vmatprep.subr.bf16.mxu0 %v12374_v23  ;;  %3207 = vmatprep.subr.bf16.mxu1 %v14026_v2  ;;  %v14121_v37 = vpop.f32.mrf.mxu1  ;;  %v12404_v23 = vld [vmem:[%s16282_s1 + $0x7ac] ss:$20 sps:$4 sm:$0xff]  }
 0x115   :  { %10318 = vmatprep.mubr.msk.bf16.mxu0 %vm484_vm0, %v13843_v34  ;;  %10467 = vmatprep.mubr.msk.bf16.mxu1 %vm484_vm0, %v14110_v33  ;;  %v14143_v34 = vsel %vm1726_vm1, %v2707_v36, %v2711_v58 }
 0x116   :  { %v14133_v38 = vpop.f32.mrf.mxu0  ;;  %v14135_v39 = vpop.f32.mrf.mxu1 }
 0x117   :  { %3125 = vmatpush1.bf16.msra.mxu0 %v12372_v28  ;;  %3208 = vmatpush1.bf16.msra.mxu1 %v12375_v29 }
 0x118   :  { %v14145_v40 = vpop.f32.mrf.mxu0  ;;  %3136 = vmatprep.subr.bf16.mxu0 %v12380_v7  ;;  %3219 = vmatprep.subr.bf16.mxu1 %v14026_v2  ;;  %v14148_v19 = vpop.f32.mrf.mxu1  ;;  %v12405_v7 = vld [vmem:[%s16282_s1 + $0x7b0] ss:$20 sps:$4 sm:$0xff]  }
 0x119   :  { %16330 = vst [vmem:[#allocation16_spill] sm:$0xff] %v14148_v19  ;;  %v12475_v19 = vld [vmem:[%s16282_s1 + $0x6f0] ss:$20 sps:$4 sm:$0xff]  }
 0x11a   :  { %v14156_v45 = vpop.f32.mrf.mxu0  ;;  %2352 = vmatmul.mubr.bf16.gmra.mxu0 %v13865_v44  ;;  %3100 = vmatmul.mubr.bf16.gmra.mxu1 %v14143_v34  ;;  %v14160_v43 = vpop.f32.mrf.mxu1  ;;  %v12386_v44 = vld [vmem:[%s16282_s1 + $0x670] ss:$20 sps:$4 sm:$0xff]  }
 0x11b   :  { %3137 = vmatpush2.bf16.msra.mxu0 %v12378_v15  ;;  %3220 = vmatpush2.bf16.msra.mxu1 %v12381_v22  ;;  %v12410_v22 = vld [vmem:[%s16282_s1 + $0x784] ss:$20 sps:$4 sm:$0xff]  }
 0x11c   :  { %v14165_v30 = vpop.f32.mrf.mxu0  ;;  %3138 = vmatprep.subr.bf16.mxu0 %v12384_v13  ;;  %3221 = vmatprep.subr.bf16.mxu1 %v14026_v2  ;;  %v14168_v50 = vpop.f32.mrf.mxu1 }
 0x11d   :  { %10468 = vmatprep.mubr.msk.bf16.mxu0 %vm484_vm0, %v13889_v55  ;;  %10473 = vmatprep.mubr.msk.bf16.mxu1 %vm484_vm0, %v13889_v55 }
 0x11e   :  { %v14180_v41 = vpop.f32.mrf.mxu0  ;;  %v14182_v56 = vpop.f32.mrf.mxu1 }
 0x11f   :  { %3139 = vmatpush2.bf16.msra.mxu0 %v12382_v1  ;;  %3222 = vmatpush2.bf16.msra.mxu1 %v12385_v25  ;;  %v12408_v25 = vld [vmem:[%s16282_s1 + $0x780] ss:$20 sps:$4 sm:$0xff]  }
 0x120   :  { %v14190_v58 = vpop.f32.mrf.mxu0  ;;  %3140 = vmatprep.subr.bf16.mxu0 %v12388_v0  ;;  %3223 = vmatprep.subr.bf16.mxu1 %v14026_v2  ;;  %v14193_v55 = vpop.f32.mrf.mxu1  ;;  %v12411_v0 = vld [vmem:[%s16282_s1 + $0x788] ss:$20 sps:$4 sm:$0xff]  }
 0x121   :  { %16331 = vst [vmem:[#allocation17_spill] sm:$0xff] %v14193_v55 }
 0x122   :  { %v14201_v31 = vpop.f32.mrf.mxu0  ;;  %v14203_v4 = vpop.f32.mrf.mxu1 }
 0x123   :  { %3141 = vmatpush2.bf16.msra.mxu0 %v12386_v44  ;;  %3224 = vmatpush2.bf16.msra.mxu1 %v12389_v53  ;;  %v12416_v53 = vld [vmem:[%s16282_s1 + $0x75c] ss:$20 sps:$4 sm:$0xff]  }
 0x124   :  { %v14211_v3 = vpop.f32.mrf.mxu0  ;;  %3868 = vmatprep.subr.bf16.mxu0 %v12392_v57  ;;  %3951 = vmatprep.subr.bf16.mxu1 %v12395_v51  ;;  %v14213_v9 = vpop.f32.mrf.mxu1  ;;  %v12419_v57 = vld [vmem:[%s16282_s1 + $0x764] ss:$20 sps:$4 sm:$0xff]  }
 0x126   :  { %v14221_v16 = vpop.f32.mrf.mxu0  ;;  %3143 = vmatmul.mubr.bf16.vlgmr.msra.gmra.mxu0 %v13942_v18  ;;  %3226 = vmatmul.mubr.bf16.vlgmr.msra.gmra.mxu1 %v13942_v18  ;;  %v14225_v17 = vpop.f32.mrf.mxu1  ;;  %v12402_v18 = vld [vmem:[%s16282_s1 + $0x7a8] ss:$20 sps:$4 sm:$0xff]  }
 0x127   :  { %3869 = vmatpush1.bf16.msra.mxu0 %v12390_v62  ;;  %3952 = vmatpush1.bf16.msra.mxu1 %v12393_v63  ;;  %v12417_v62 = vld [vmem:[%s16282_s1 + $0x760] ss:$20 sps:$4 sm:$0xff]  }
 0x128   :  { %v14233_v28 = vpop.f32.mrf.mxu0  ;;  %3870 = vmatprep.subr.bf16.mxu0 %v12398_v6  ;;  %3953 = vmatprep.subr.bf16.mxu1 %v12401_v8  ;;  %v14235_v29 = vpop.f32.mrf.mxu1  ;;  %v12422_v6 = vld [vmem:[%s16282_s1 + $0x734] ss:$20 sps:$4 sm:$0xff]   ;;  %v12425_v8 = vld [vmem:[%s16282_s1 + $0x73c] ss:$20 sps:$4 sm:$0xff]  }
 0x129   :  { %16332 = vst [vmem:[#allocation18_spill] sm:$0xff] %v14233_v28  ;;  %16333 = vst [vmem:[#allocation19_spill] sm:$0xff] %v14235_v29  ;;  %10469 = vmatprep.mubr.msk.bf16.mxu0 %vm484_vm0, %v13967_v32  ;;  %10474 = vmatprep.mubr.msk.bf16.mxu1 %vm484_vm0, %v13967_v32  ;;  %v12413_v32 = vld [vmem:[%s16282_s1 + $0x78c] ss:$20 sps:$4 sm:$0xff]  }
 0x12a   :  { %v14247_v36 = vpop.f32.mrf.mxu0  ;;  %v14249_v15 = vpop.f32.mrf.mxu1 }
 0x12b   :  { %3871 = vmatpush1.bf16.msra.mxu0 %v12396_v12  ;;  %3954 = vmatpush1.bf16.msra.mxu1 %v12399_v35  ;;  %v12420_v12 = vld [vmem:[%s16282_s1 + $0x730] ss:$20 sps:$4 sm:$0xff]   ;;  %v12423_v35 = vld [vmem:[%s16282_s1 + $0x738] ss:$20 sps:$4 sm:$0xff]  }
 0x12c   :  { %v14257_v13 = vpop.f32.mrf.mxu0  ;;  %3872 = vmatprep.subr.bf16.mxu0 %v12404_v23  ;;  %3955 = vmatprep.subr.bf16.mxu1 %v12407_v60  ;;  %v14259_v1 = vpop.f32.mrf.mxu1 }
 0x12e   :  { %3153 = vmatmul.mubr.bf16.gmra.mxu0 %v14002_v49  ;;  %3234 = vmatmul.mubr.bf16.gmra.mxu1 %v14002_v49  ;;  %v14269_v44 = vpop.f32.mrf.mxu1  ;;  %v14277_v51 = vpop.f32.mrf.mxu0  ;;  %v12414_v49 = vld [vmem:[%s16282_s1 + $0x758] ss:$20 sps:$4 sm:$0xff]  }
 0x12f   :  { %3873 = vmatpush1.bf16.msra.mxu0 %v12402_v18  ;;  %3956 = vmatpush1.bf16.msra.mxu1 %v12405_v7  ;;  %v12428_v18 = vld [vmem:[%s16282_s1 + $0x70c] ss:$20 sps:$4 sm:$0xff]   ;;  %v12431_v7 = vld [vmem:[%s16282_s1 + $0x714] ss:$20 sps:$4 sm:$0xff]  }
 0x130   :  { %3874 = vmatprep.subr.bf16.mxu0 %v12410_v22  ;;  %3957 = vmatprep.subr.bf16.mxu1 %v12413_v32  ;;  %v14289_v63 = vpop.f32.mrf.mxu1 }
 0x131   :  { %10470 = vmatprep.mubr.msk.bf16.mxu0 %vm484_vm0, %v14021_v46  ;;  %10475 = vmatprep.mubr.msk.bf16.mxu1 %vm484_vm0, %v14021_v46  ;;  %16334 = vst [vmem:[#allocation20_spill] sm:$0xff] %v14289_v63  ;;  %v14297_v46 = vpop.f32.mrf.mxu0 }
 0x132   :  { %16335 = vst [vmem:[#allocation21_spill] sm:$0xff] %v14297_v46 }
 0x133   :  { %3875 = vmatpush1.bf16.msra.mxu0 %v12408_v25  ;;  %3958 = vmatpush1.bf16.msra.mxu1 %v12411_v0  ;;  %v14325_v0 = vld [vmem:[%s16281_s0 + $0x10] ss:$8 sps:$4 sm:$0xff]  }
 0x134   :  { %3876 = vmatprep.subr.bf16.mxu0 %v12416_v53  ;;  %3959 = vmatprep.subr.bf16.mxu1 %v12419_v57  ;;  %v12429_v57 = vld [vmem:[%s16282_s1 + $0x710] ss:$20 sps:$4 sm:$0xff]  }
 0x136   :  { %v700_v23 = vpop.f32.mrf.mxu0  ;;  %v1248_v60 = vpop.f32.mrf.mxu1  ;;  %3163 = vmatmul.mubr.bf16.gmra.mxu0 %v14043_v42  ;;  %3242 = vmatmul.mubr.bf16.gmra.mxu1 %v14043_v42  ;;  %v14320_v42 = vld [vmem:[%s16281_s0 + $0x4] ss:$8 sps:$4 sm:$0xfe]  }
 0x137   :  { %744 = vst.msk [vmem:[#allocation2 + $0x20] sm:$0xff] %vm743_vm2, %v700_v23  ;;  %v14315_v22 = vadd.f32 %v1248_v60, %v14052_v10  ;;  %3877 = vmatpush1.bf16.msra.mxu0 %v12414_v49  ;;  %3960 = vmatpush1.bf16.msra.mxu1 %v12417_v62  ;;  %v12426_v10 = vld [vmem:[%s16282_s1 + $0x708] ss:$20 sps:$4 sm:$0xff]  }
 0x138   :  { %v702_v32 = vpop.f32.mrf.mxu0  ;;  %v1250_v25 = vpop.f32.mrf.mxu1  ;;  %3878 = vmatprep.subr.bf16.mxu0 %v12422_v6  ;;  %3961 = vmatprep.subr.bf16.mxu1 %v12425_v8  ;;  %v12437_v6 = vld [vmem:[%s16282_s1 + $0x6ec] ss:$20 sps:$4 sm:$0xff]   ;;  %v14353_v60 = vld [vmem:[%s16281_s0 + $0x14] ss:$8 sps:$4 sm:$0xff]  }
 0x139   :  { %v14328_v53 = vadd.f32 %v1250_v25, %v14064_v14  ;;  %10471 = vmatprep.mubr.msk.bf16.mxu0 %vm484_vm0, %v14059_v11  ;;  %10476 = vmatprep.mubr.msk.bf16.mxu1 %vm484_vm0, %v14059_v11  ;;  %v12434_v14 = vld [vmem:[%s16282_s1 + $0x6e4] ss:$20 sps:$4 sm:$0xff]  }
 0x13a   :  { %v703_v49 = vpop.f32.mrf.mxu0  ;;  %v1252_v62 = vpop.f32.mrf.mxu1 }
 0x13b   :  { %749 = vst.msk [vmem:[#allocation2 + $0x48] sm:$0xff] %vm743_vm2, %v703_v49  ;;  %v14348_v11 = vadd.f32 %v1252_v62, %v14079_v20  ;;  %3879 = vmatpush1.bf16.msra.mxu0 %v12420_v12  ;;  %3962 = vmatpush1.bf16.msra.mxu1 %v12423_v35  ;;  %v12432_v20 = vld [vmem:[%s16282_s1 + $0x6e0] ss:$20 sps:$4 sm:$0xff]   ;;  %v12435_v12 = vld [vmem:[%s16282_s1 + $0x6e8] ss:$20 sps:$4 sm:$0xff]   ;;  %v3543_v49 = vrot.slane %v14320_v42, 1 }
 0x13c   :  { %v705_v8 = vpop.f32.mrf.mxu0  ;;  %v1254_v23 = vpop.f32.mrf.mxu1  ;;  %3880 = vmatprep.subr.bf16.mxu0 %v12428_v18  ;;  %3963 = vmatprep.subr.bf16.mxu1 %v12431_v7  ;;  %v12440_v18 = vld [vmem:[%s16282_s1 + $0x874] ss:$20 sps:$4 sm:$0xff]   ;;  %v12441_v42 = vld [vmem:[%s16282_s1 + $0x878] ss:$20 sps:$4 sm:$0xff]  }
 0x13d   :  { %v14356_v32 = vadd.f32 %v1254_v23, %v14090_v52  ;;  %v12443_v52 = vld [vmem:[%s16282_s1 + $0x87c] ss:$20 sps:$4 sm:$0xff]  }
 0x13e   :  { %v708_v35 = vpop.f32.mrf.mxu0  ;;  %v1258_v25 = vpop.f32.mrf.mxu1  ;;  %3173 = vmatmul.mubr.bf16.gmra.mxu0 %v14088_v24  ;;  %3250 = vmatmul.mubr.bf16.gmra.mxu1 %v14088_v24 }
 0x13f   :  { %16336 = vst [vmem:[#allocation22_spill] sm:$0xff] %v14356_v32  ;;  %754 = vst.msk [vmem:[#allocation2 + $0x70] sm:$0xff] %vm743_vm2, %v708_v35  ;;  %v14376_v62 = vadd.f32 %v1258_v25, %v14101_v59  ;;  %3881 = vmatpush1.bf16.msra.mxu0 %v12426_v10  ;;  %3964 = vmatpush1.bf16.msra.mxu1 %v12429_v57  ;;  %v12438_v59 = vld [vmem:[%s16282_s1 + $0x870] ss:$20 sps:$4 sm:$0xff]   ;;  %v3421_v35 = vld [vmem:[%s16281_s0 + $0x28] sm:$0xff] }
 0x140   :  { %v710_v24 = vpop.f32.mrf.mxu0  ;;  %v1260_v8 = vpop.f32.mrf.mxu1  ;;  %3882 = vmatprep.subr.bf16.mxu0 %v12434_v14  ;;  %3965 = vmatprep.subr.bf16.mxu1 %v12437_v6  ;;  %v3420_v10 = vld [vmem:[%s16281_s0 + $0x20] sm:$0xff]  ;;  %v3544_v6 = vrot.slane %v14353_v60, 1  ;;  %v12444_v60 = vld [vmem:[%s16282_s1 + $0x848] ss:$20 sps:$4 sm:$0xff]  }
 0x141   :  { %v14379_v23 = vadd.f32 %v1260_v8, %v14118_v5  ;;  %10472 = vmatprep.mubr.msk.bf16.mxu0 %vm484_vm0, %v14110_v33  ;;  %10477 = vmatprep.mubr.msk.bf16.mxu1 %vm484_vm0, %v14110_v33  ;;  %v12446_v14 = vld [vmem:[%s16282_s1 + $0x84c] ss:$20 sps:$4 sm:$0xff]   ;;  %v12449_v33 = vld [vmem:[%s16282_s1 + $0x854] ss:$20 sps:$4 sm:$0xff]  }
 0x142   :  { %v711_v5 = vpop.f32.mrf.mxu0  ;;  %v1262_v57 = vpop.f32.mrf.mxu1 }
 0x143   :  { %759 = vst.msk [vmem:[#allocation2 + $0x98] sm:$0xff] %vm743_vm2, %v711_v5  ;;  %v14406_v25 = vadd.f32 %v1262_v57, %v14133_v38  ;;  %3883 = vmatpush1.bf16.msra.mxu0 %v12432_v20  ;;  %3966 = vmatpush1.bf16.msra.mxu1 %v12435_v12  ;;  %v12447_v5 = vld [vmem:[%s16282_s1 + $0x850] ss:$20 sps:$4 sm:$0xff]   ;;  %v14426_v12 = vsel %vm3539_vm3, %v3543_v49, %v3544_v6 }
 0x144   :  { %v713_v24 = vpop.f32.mrf.mxu0  ;;  %v1264_v8 = vpop.f32.mrf.mxu1  ;;  %3894 = vmatprep.subr.bf16.mxu0 %v12440_v18  ;;  %3977 = vmatprep.subr.bf16.mxu1 %v12443_v52  ;;  %v12452_v20 = vld [vmem:[%s16282_s1 + $0x824] ss:$20 sps:$4 sm:$0xff]   ;;  %v10548_v52 = vcombine.low %v3420_v10, %v3421_v35  ;;  %v12462_v35 = vld [vmem:[%s16282_s1 + $0x808] ss:$20 sps:$4 sm:$0xff]  }
 0x145   :  { %v14409_v61 = vadd.f32 %v1264_v8, %v14145_v40  ;;  %v12455_v40 = vld [vmem:[%s16282_s1 + $0x82c] ss:$20 sps:$4 sm:$0xff]  }
 0x146   :  { %v716_v7 = vpop.f32.mrf.mxu0  ;;  %v1268_v38 = vpop.f32.mrf.mxu1  ;;  %3183 = vmatmul.mubr.bf16.gmra.mxu0 %v14143_v34  ;;  %3258 = vmatmul.mubr.bf16.gmra.mxu1 %v14143_v34  ;;  %v14431_v18 = vld [vmem:[%s16281_s0 + $0x24] ss:$8 sps:$4 sm:$0xff]   ;;  %v12450_v8 = vld [vmem:[%s16282_s1 + $0x820] ss:$20 sps:$4 sm:$0xff]  }
 0x147   :  { %16337 = vst [vmem:[#allocation23_spill] sm:$0xff] %v14409_v61  ;;  %764 = vst.msk [vmem:[#allocation2 + $0xc0] sm:$0xff] %vm743_vm2, %v716_v7  ;;  %v14435_v34 = vadd.f32 %v1268_v38, %v14156_v45  ;;  %3895 = vmatpush2.bf16.msra.mxu0 %v12438_v59  ;;  %3978 = vmatpush2.bf16.msra.mxu1 %v12441_v42  ;;  %v12453_v7 = vld [vmem:[%s16282_s1 + $0x828] ss:$20 sps:$4 sm:$0xff]   ;;  %v3548_v42 = vrot.slane %v14431_v18, 1  ;;  %v1467_v55 = vld [vmem:[#allocation2 + $0x70] sm:$0xff] }
 0x148   :  { %v718_v57 = vpop.f32.mrf.mxu0  ;;  %v1270_v24 = vpop.f32.mrf.mxu1  ;;  %3896 = vmatprep.subr.bf16.mxu0 %v12446_v14  ;;  %3979 = vmatprep.subr.bf16.mxu1 %v12449_v33 }
 0x149   :  { %v14438_v49 = vadd.f32 %v1270_v24, %v14165_v30  ;;  %10611 = vmatprep.mubr.msk.bf16.mxu0 %vm484_vm0, %v14426_v12  ;;  %10616 = vmatprep.mubr.msk.bf16.mxu1 %vm484_vm0, %v14426_v12  ;;  %v14451_v30 = vrot.slane %v10548_v52, 1  ;;  %v14465_v52 = vld [vmem:[%s16281_s0 + $0x34] ss:$8 sps:$4 sm:$0xff]   ;;  %v14480_v24 = vsel %vm3539_vm3, %v3544_v6, %v3548_v42 }
 0x14a   :  { %v719_v45 = vpop.f32.mrf.mxu0  ;;  %v1272_v59 = vpop.f32.mrf.mxu1 }
 0x14b   :  { %769 = vst.msk [vmem:[#allocation2 + $0xe8] sm:$0xff] %vm743_vm2, %v719_v45  ;;  %v14455_v10 = vadd.f32 %v1272_v59, %v14180_v41  ;;  %3897 = vmatpush2.bf16.msra.mxu0 %v12444_v60  ;;  %3980 = vmatpush2.bf16.msra.mxu1 %v12447_v5  ;;  %v16339_v60 = vrot.slane %v14325_v0, 1  ;;  %v16340_v5 = vrot.slane %v13995_v26, 1  ;;  %v3422_v26 = vld [vmem:[%s16281_s0 + $0x30] sm:$0xff] }
 0x14c   :  { %v721_v14 = vpop.f32.mrf.mxu0  ;;  %v14457_v33 = vpop.f32.mrf.mxu1  ;;  %3898 = vmatprep.subr.bf16.mxu0 %v12452_v20  ;;  %3981 = vmatprep.subr.bf16.mxu1 %v12455_v40 }
 0x14d   :  { %16338 = vst [vmem:[#allocation24_spill] sm:$0xff] %v14457_v33  ;;  %v14476_v20 = vsel %vm3539_vm3, %v16340_v5, %v16339_v60 }
 0x14e   :  { %v724_v38 = vpop.f32.mrf.mxu0  ;;  %v1278_v18 = vpop.f32.mrf.mxu1  ;;  %v1477_v27 = vld [vmem:[#allocation2 + $0xc0] sm:$0xff] }
 0x14f   :  { %774 = vst.msk [vmem:[#allocation2 + $0x110] sm:$0xff] %vm743_vm2, %v724_v38  ;;  %v14469_v41 = vadd.f32 %v1278_v18, %v14201_v31  ;;  %3899 = vmatpush2.bf16.msra.mxu0 %v12450_v8  ;;  %3982 = vmatpush2.bf16.msra.mxu1 %v12453_v7  ;;  %v12463_v31 = vld [vmem:[%s16282_s1 + $0x7e0] ss:$20 sps:$4 sm:$0xff]   ;;  %v14505_v38 = vld [vmem:[#allocation3 + $0xc8] sm:$0xff]  ;;  %v14513_v18 = vld [vmem:[%s16281_s0 + $0x44] ss:$8 sps:$4 sm:$0xff]  }
 0x150   :  { %v726_v40 = vpop.f32.mrf.mxu0  ;;  %v1280_v57 = vpop.f32.mrf.mxu1  ;;  %4034 = vmatprep.subr.bf16.mxu0 %v14026_v2  ;;  %v3423_v2 = vld [vmem:[%s16281_s0 + $0x38] sm:$0xff] }
 0x151   :  { %v14483_v45 = vadd.f32 %v1280_v57, %v14211_v3  ;;  %v3552_v3 = vrot.slane %v14465_v52, 1  ;;  %v3425_v52 = vld [vmem:[%s16281_s0 + $0x48] sm:$0xff]  ;;  %v10550_v40 = vcombine.low %v3422_v26, %v3423_v2  ;;  %v3426_v57 = vld [vmem:[%s16281_s0 + $0x50] sm:$0x11] }
 0x152   :  { %v727_v8 = vpop.f32.mrf.mxu0  ;;  %v1282_v7 = vpop.f32.mrf.mxu1  ;;  %3901 = vmatmul.mubr.bf16.vlgmr.msra.gmra.mxu0 %v14476_v20  ;;  %3984 = vmatmul.mubr.bf16.vlgmr.msra.gmra.mxu1 %v14476_v20 }
 0x153   :  { %779 = vst.msk [vmem:[#allocation2 + $0x138] sm:$0xff] %vm743_vm2, %v727_v8  ;;  %v14499_v6 = vadd.f32 %v1282_v7, %v14221_v16  ;;  %4035 = vmatpush1.bf16.msra.mxu0 %v12462_v35  ;;  %10612 = vmatprep.mubr.msk.bf16.mxu0 %vm484_vm0, %v14480_v24  ;;  %v12466_v16 = vld [vmem:[%s16282_s1 + $0x7b8] ss:$20 sps:$4 sm:$0xff]   ;;  %v3424_v35 = vld [vmem:[%s16281_s0 + $0x40] sm:$0xff]  ;;  %v16342_v7 = vrot.slane %v14325_v0, 1  ;;  %v14539_v26 = vsel %vm3539_vm3, %v3548_v42, %v3552_v3  ;;  %v3556_v0 = vrot.slane %v14513_v18, 1 }
 0x154   :  { %v729_v59 = vpop.f32.mrf.mxu0  ;;  %v14503_v14 = vpop.f32.mrf.mxu1  ;;  %4036 = vmatprep.subr.bf16.mxu0 %v14505_v38  ;;  %10617 = vmatprep.mubr.msk.bf16.mxu1 %vm484_vm0, %v14480_v24  ;;  %v12470_v42 = vld [vmem:[%s16282_s1 + $0x768] ss:$20 sps:$4 sm:$0xff]  }
 0x155   :  { %16341 = vst [vmem:[#allocation25_spill] sm:$0xff] %v14503_v14  ;;  %v14535_v59 = vsel %vm3539_vm3, %v16342_v7, %v14451_v30  ;;  %v10555_v7 = vcombine.high %v3426_v57, %v3426_v57 }
 0x156   :  { %v732_v60 = vpop.f32.mrf.mxu0  ;;  %v1288_v5 = vpop.f32.mrf.mxu1 }
 0x157   :  { %784 = vst.msk [vmem:[#allocation2 + $0x160] sm:$0xff] %vm743_vm2, %v732_v60  ;;  %v14529_v8 = vadd.f32 %v1288_v5, %v14247_v36  ;;  %4037 = vmatpush1.bf16.msra.mxu0 %v12463_v31  ;;  %v12467_v36 = vld [vmem:[%s16282_s1 + $0x790] ss:$20 sps:$4 sm:$0xff]   ;;  %v10552_v5 = vcombine.low %v3424_v35, %v3425_v52  ;;  %v3560_v35 = vrot.slane %v10555_v7, 1  ;;  %v10554_v52 = vcombine.low %v3426_v57, %v3426_v57 }
 0x158   :  { %v734_v61 = vpop.f32.mrf.mxu0  ;;  %v1290_v32 = vpop.f32.mrf.mxu1  ;;  %4038 = vmatprep.subr.bf16.mxu0 %v14505_v38  ;;  %v1457_v57 = vld [vmem:[#allocation2 + $0x20] sm:$0xff] }
 0x159   :  { %v14542_v2 = vadd.f32 %v1290_v32, %v14257_v13  ;;  %v3550_v61 = vrot.slane %v10550_v40, 1  ;;  %v3554_v18 = vrot.slane %v10552_v5, 1  ;;  %v14570_v40 = vsel %vm3539_vm3, %v3552_v3, %v3556_v0 }
 0x15a   :  { %v735_v31 = vpop.f32.mrf.mxu0  ;;  %v1292_v60 = vpop.f32.mrf.mxu1  ;;  %3911 = vmatmul.mubr.bf16.gmra.mxu0 %v14535_v59  ;;  %3994 = vmatmul.mubr.bf16.gmra.mxu1 %v14535_v59  ;;  %v1492_v33 = vld [vmem:[#allocation2 + $0x138] sm:$0xff] }
 0x15b   :  { %789 = vst.msk [vmem:[#allocation2 + $0x188] sm:$0xff] %vm743_vm2, %v735_v31  ;;  %v14552_v13 = vadd.f32 %v1292_v60, %v14277_v51  ;;  %4039 = vmatpush1.bf16.msra.mxu0 %v12466_v16  ;;  %10613 = vmatprep.mubr.msk.bf16.mxu0 %vm484_vm0, %v14539_v26  ;;  %v14564_v51 = vsel %vm3539_vm3, %v14451_v30, %v3550_v61  ;;  %v12471_v31 = vld [vmem:[%s16282_s1 + $0x740] ss:$20 sps:$4 sm:$0xff]   ;;  %v3558_v30 = vrot.slane %v10554_v52, 1  ;;  %v12474_v52 = vld [vmem:[%s16282_s1 + $0x718] ss:$20 sps:$4 sm:$0xff]  }
 0x15c   :  { %v737_v32 = vpop.f32.mrf.mxu0  ;;  %4040 = vmatprep.subr.bf16.mxu0 %v14505_v38  ;;  %10618 = vmatprep.mubr.msk.bf16.mxu1 %vm484_vm0, %v14539_v26  ;;  %v14566_v16 = vpop.f32.mrf.mxu1  ;;  %v14593_v63 = vsel %vm3539_vm3, %v3550_v61, %v3554_v18 }
 0x15d   :  { %16343 = vst [vmem:[#allocation26_spill] sm:$0xff] %v14566_v16  ;;  %v1462_v32 = vld [vmem:[#allocation2 + $0x48] sm:$0xff] }
 0x15f   :  { %4041 = vmatpush1.bf16.msra.mxu0 %v12467_v36 }
 0x160   :  { %4042 = vmatprep.subr.bf16.mxu0 %v14505_v38 }
 0x162   :  { %v14575_v60 = vpop.f32.mrf.mxu0  ;;  %v1414_v5 = vpop.f32.mrf.mxu1  ;;  %3921 = vmatmul.mubr.bf16.gmra.mxu0 %v14564_v51  ;;  %4004 = vmatmul.mubr.bf16.gmra.mxu1 %v14564_v51 }
 0x163   :  { %v1507_v36 = vadd.f32 %v1457_v57, %v1414_v5  ;;  %4043 = vmatpush1.bf16.msra.mxu0 %v12470_v42  ;;  %10614 = vmatprep.mubr.msk.bf16.mxu0 %vm484_vm0, %v14570_v40 }
 0x164   :  { %v14581_v3 = vpop.f32.mrf.mxu0  ;;  %v1416_v7 = vpop.f32.mrf.mxu1  ;;  %4044 = vmatprep.subr.bf16.mxu0 %v14505_v38  ;;  %10619 = vmatprep.mubr.msk.bf16.mxu1 %vm484_vm0, %v14570_v40 }
 0x165   :  { %1557 = vst.msk [vmem:[#allocation2 + $0x20] sm:$0xff] %vm743_vm2, %v1507_v36  ;;  %v14599_v36 = vsel %vm3539_vm3, %v3556_v0, %v3560_v35  ;;  %v1472_v35 = vld [vmem:[#allocation2 + $0x98] sm:$0xff] }
 0x166   :  { %v14590_v5 = vpop.f32.mrf.mxu0  ;;  %v1417_v42 = vpop.f32.mrf.mxu1 }
 0x167   :  { %v1512_v57 = vadd.f32 %v1462_v32, %v1417_v42  ;;  %4045 = vmatpush1.bf16.msra.mxu0 %v12471_v31  ;;  %v12477_v42 = vld [vmem:[%s16282_s1 + $0x880] ss:$20 sps:$4 sm:$0xff]  }
 0x168   :  { %v14595_v7 = vpop.f32.mrf.mxu0  ;;  %v1419_v29 = vpop.f32.mrf.mxu1  ;;  %4046 = vmatprep.subr.bf16.mxu0 %v14505_v38 }
 0x169   :  { %16344 = vst [vmem:[#allocation27_spill] sm:$0xff] %v14595_v7  ;;  %1562 = vst.msk [vmem:[#allocation2 + $0x48] sm:$0xff] %vm743_vm2, %v1512_v57 }
 0x16a   :  { %v14605_v32 = vpop.f32.mrf.mxu0  ;;  %v1422_v31 = vpop.f32.mrf.mxu1  ;;  %3931 = vmatmul.mubr.bf16.gmra.mxu0 %v14593_v63  ;;  %4014 = vmatmul.mubr.bf16.gmra.mxu1 %v14593_v63 }
 0x16b   :  { %v1517_v29 = vadd.f32 %v1467_v55, %v1422_v31  ;;  %4047 = vmatpush1.bf16.msra.mxu0 %v12474_v52  ;;  %10615 = vmatprep.mubr.msk.bf16.mxu0 %vm484_vm0, %v14599_v36  ;;  %v14623_v31 = vsel %vm3539_vm3, %v3554_v18, %v3558_v30 }
 0x16c   :  { %v14611_v61 = vpop.f32.mrf.mxu0  ;;  %v1424_v0 = vpop.f32.mrf.mxu1  ;;  %4048 = vmatprep.subr.bf16.mxu0 %v14505_v38  ;;  %10620 = vmatprep.mubr.msk.bf16.mxu1 %vm484_vm0, %v14599_v36 }
 0x16d   :  { %1567 = vst.msk [vmem:[#allocation2 + $0x70] sm:$0xff] %vm743_vm2, %v1517_v29  ;;  %v12478_v29 = vld [vmem:[%s16282_s1 + $0x858] ss:$20 sps:$4 sm:$0xff]  }
 0x16e   :  { %v14620_v55 = vpop.f32.mrf.mxu0  ;;  %v1425_v52 = vpop.f32.mrf.mxu1 }
 0x16f   :  { %v1522_v57 = vadd.f32 %v1472_v35, %v1425_v52  ;;  %4049 = vmatpush1.bf16.msra.mxu0 %v12475_v19  ;;  %v12479_v35 = vld [vmem:[%s16282_s1 + $0x830] ss:$20 sps:$4 sm:$0xff]  }
 0x170   :  { %v14625_v0 = vpop.f32.mrf.mxu0  ;;  %v1427_v7 = vpop.f32.mrf.mxu1  ;;  %4060 = vmatprep.subr.bf16.mxu0 %v14505_v38 }
 0x171   :  { %16345 = vst [vmem:[#allocation28_spill] sm:$0xff] %v14625_v0  ;;  %1572 = vst.msk [vmem:[#allocation2 + $0x98] sm:$0xff] %vm743_vm2, %v1522_v57  ;;  %v1482_v7 = vld [vmem:[#allocation2 + $0xe8] sm:$0xff] }
 0x172   :  { %v14632_v16 = vpop.f32.mrf.mxu0  ;;  %v1430_v46 = vpop.f32.mrf.mxu1  ;;  %3941 = vmatmul.mubr.bf16.gmra.mxu0 %v14623_v31  ;;  %4024 = vmatmul.mubr.bf16.gmra.mxu1 %v14623_v31 }
 0x173   :  { %v1527_v19 = vadd.f32 %v1477_v27, %v1430_v46  ;;  %4061 = vmatpush2.bf16.msra.mxu0 %v12477_v42  ;;  %10621 = vmatprep.mubr.msk.bf16.mxu0 %vm484_vm0, %v14426_v12  ;;  %v1487_v42 = vld [vmem:[#allocation2 + $0x110] sm:$0xff] }
 0x174   :  { %v14638_v18 = vpop.f32.mrf.mxu0  ;;  %v1432_v30 = vpop.f32.mrf.mxu1  ;;  %4062 = vmatprep.subr.bf16.mxu0 %v14505_v38 }
 0x175   :  { %1577 = vst.msk [vmem:[#allocation2 + $0xc0] sm:$0xff] %vm743_vm2, %v1527_v19 }
 0x176   :  { %v14645_v52 = vpop.f32.mrf.mxu0  ;;  %v1433_v57 = vpop.f32.mrf.mxu1 }
 0x177   :  { %v1532_v27 = vadd.f32 %v1482_v7, %v1433_v57  ;;  %4063 = vmatpush2.bf16.msra.mxu0 %v12478_v29 }
 0x178   :  { %v14647_v46 = vpop.f32.mrf.mxu0  ;;  %v1435_v12 = vpop.f32.mrf.mxu1  ;;  %4064 = vmatprep.subr.bf16.mxu0 %v14505_v38 }
 0x179   :  { %16346 = vst [vmem:[#allocation29_spill] sm:$0xff] %v14647_v46  ;;  %1582 = vst.msk [vmem:[#allocation2 + $0xe8] sm:$0xff] %vm743_vm2, %v1532_v27  ;;  %v1497_v12 = vld [vmem:[#allocation2 + $0x160] sm:$0xff]  ;;  %v1502_v46 = vld [vmem:[#allocation2 + $0x188] sm:$0xff] }
 0x17a   :  { %v14651_v30 = vpop.f32.mrf.mxu0  ;;  %v1438_v19 = vpop.f32.mrf.mxu1 }
 0x17b   :  { %v1537_v0 = vadd.f32 %v1487_v42, %v1438_v19  ;;  %4065 = vmatpush2.bf16.msra.mxu0 %v12479_v35 }
 0x17c   :  { %v14653_v14 = vpop.f32.mrf.mxu0  ;;  %v1440_v28 = vpop.f32.mrf.mxu1 }
 0x17d   :  { %1587 = vst.msk [vmem:[#allocation2 + $0x110] sm:$0xff] %vm743_vm2, %v1537_v0 }
 0x17e   :  { %v14656_v29 = vpop.f32.mrf.mxu0  ;;  %v1441_v7 = vpop.f32.mrf.mxu1  ;;  %4067 = vmatmul.mubr.bf16.vlgmr.msra.gmra.mxu0 %v14476_v20 }
 0x17f   :  { %v1542_v57 = vadd.f32 %v1492_v33, %v1441_v7  ;;  %10622 = vmatprep.mubr.msk.bf16.mxu0 %vm484_vm0, %v14480_v24 }
 0x180   :  { %v14661_v38 = vpop.f32.mrf.mxu0  ;;  %v1443_v27 = vpop.f32.mrf.mxu1 }
 0x181   :  { %1592 = vst.msk [vmem:[#allocation2 + $0x138] sm:$0xff] %vm743_vm2, %v1542_v57  ;;  %v1505_v27 = vadd.f32 %v14575_v60, %v14056_v47  ;;  %v1510_v60 = vadd.f32 %v14590_v5, %v14081_v21  ;;  %v1515_v21 = vadd.f32 %v14605_v32, %v14105_v54  ;;  %v1520_v32 = vadd.f32 %v14620_v55, %v14135_v39 }
 0x182   :  { %v14664_v35 = vpop.f32.mrf.mxu0  ;;  %v1446_v28 = vpop.f32.mrf.mxu1  ;;  %v1525_v39 = vadd.f32 %v14632_v16, %v14160_v43  ;;  %v1530_v43 = vadd.f32 %v14645_v52, %v14182_v56  ;;  %v1535_v56 = vadd.f32 %v14651_v30, %v14203_v4 }
 0x183   :  { %v1547_v42 = vadd.f32 %v1497_v12, %v1446_v28  ;;  %v12480_v12 = vld [vmem:[#allocation6 + $0x188] sm:$0xff]  }
 0x184   :  { %v14666_v0 = vpop.f32.mrf.mxu0  ;;  %v1448_v19 = vpop.f32.mrf.mxu1  ;;  %11155 = vmatprep.subr.bf16.mxu1 %v12480_v12 }
 0x185   :  { %1597 = vst.msk [vmem:[#allocation2 + $0x160] sm:$0xff] %vm743_vm2, %v1547_v42 }
 0x186   :  { %v1449_v33 = vpop.f32.mrf.mxu1  ;;  %4075 = vmatmul.mubr.bf16.gmra.mxu0 %v14535_v59  ;;  %v14672_v24 = vpop.f32.mrf.mxu0  ;;  %v12481_v59 = vld [vmem:[#allocation6 + $0x148] sm:$0xff]  }
 0x187   :  { %v1552_v20 = vadd.f32 %v1502_v46, %v1449_v33  ;;  %10623 = vmatprep.mubr.msk.bf16.mxu0 %vm484_vm0, %v14539_v26  ;;  %v1506_v46 = vadd.f32 %v14581_v3, %v14067_v48  ;;  %11156 = vmatpush3.bf16.msra.mxu1 %v12481_v59  ;;  %v12482_v3 = vld [vmem:[#allocation6 + $0x180] sm:$0xff]  }
 0x188   :  { %v1451_v7 = vpop.f32.mrf.mxu1  ;;  %v14675_v57 = vpop.f32.mrf.mxu0  ;;  %11157 = vmatprep.subr.bf16.mxu1 %v12482_v3 }
 0x189   :  { %1602 = vst.msk [vmem:[#allocation2 + $0x188] sm:$0xff] %vm743_vm2, %v1552_v20 }
 0x18e   :  { %v2155_v28 = vpop.f32.mrf.mxu0  ;;  %v2238_v42 = vpop.f32.mrf.mxu1  ;;  %4083 = vmatmul.mubr.bf16.gmra.mxu0 %v14564_v51 }
 0x18f   :  { %v14683_v26 = vadd.f32 %v2155_v28, %v14315_v22  ;;  %v14685_v19 = vadd.f32 %v2238_v42, %v1505_v27  ;;  %10624 = vmatprep.mubr.msk.bf16.mxu0 %vm484_vm0, %v14570_v40  ;;  %v12483_v40 = vld [vmem:[#allocation6 + $0x140] sm:$0xff]   ;;  %v12484_v42 = vld [vmem:[#allocation6 + $0x178] sm:$0xff]  }
 0x190   :  { %v2157_v33 = vpop.f32.mrf.mxu0  ;;  %v2240_v47 = vpop.f32.mrf.mxu1  ;;  %11158 = vmatpush3.bf16.msra.mxu1 %v12483_v40 }
 0x191   :  { %v14692_v51 = vadd.f32 %v2157_v33, %v14328_v53  ;;  %v14694_v20 = vadd.f32 %v2240_v47, %v1506_v46  ;;  %v12485_v33 = vld [vmem:[#allocation6 + $0x138] sm:$0xff]   ;;  %11159 = vmatprep.subr.bf16.mxu1 %v12484_v42  ;;  %v12489_v42 = vld [vmem:[#allocation6 + $0x128] sm:$0xff]  }
 0x192   :  { %v2159_v48 = vpop.f32.mrf.mxu0  ;;  %v2242_v22 = vpop.f32.mrf.mxu1 }
 0x193   :  { %v14697_v7 = vadd.f32 %v2159_v48, %v14348_v11  ;;  %v14699_v27 = vadd.f32 %v2242_v22, %v1510_v60  ;;  %v1516_v11 = vadd.f32 %v14611_v61, %v14121_v37  ;;  %v12486_v61 = vld [vmem:[#allocation6 + $0x170] sm:$0xff]  }
 0x194   :  { %v14701_v12 = vpop.f32.mrf.mxu0  ;;  %v14703_v28 = vpop.f32.mrf.mxu1  ;;  %11160 = vmatpush3.bf16.msra.mxu1 %v12485_v33  ;;  %v12487_v22 = vld [vmem:[#allocation6 + $0x130] sm:$0xff]  }
 0x195   :  { %11161 = vmatprep.subr.bf16.mxu1 %v12486_v61  ;;  %v12492_v61 = vld [vmem:[#allocation6 + $0x158] sm:$0xff]  }
 0x196   :  { %v2165_v53 = vpop.f32.mrf.mxu0  ;;  %v2248_v5 = vpop.f32.mrf.mxu1  ;;  %4091 = vmatmul.mubr.bf16.gmra.mxu0 %v14593_v63 }
 0x197   :  { %v14711_v59 = vadd.f32 %v2165_v53, %v14376_v62  ;;  %v14713_v46 = vadd.f32 %v2248_v5, %v1515_v21  ;;  %10625 = vmatprep.mubr.msk.bf16.mxu0 %vm484_vm0, %v14599_v36  ;;  %v12488_v21 = vld [vmem:[#allocation6 + $0x168] sm:$0xff]  }
 0x198   :  { %v2167_v47 = vpop.f32.mrf.mxu0  ;;  %v2250_v54 = vpop.f32.mrf.mxu1  ;;  %11162 = vmatpush3.bf16.msra.mxu1 %v12487_v22  ;;  %v1536_v22 = vadd.f32 %v14653_v14, %v14213_v9  ;;  %v12494_v14 = vld [vmem:[#allocation6 + $0x150] sm:$0xff]  }
 0x199   :  { %v14720_v63 = vadd.f32 %v2167_v47, %v14379_v23  ;;  %v14722_v60 = vadd.f32 %v2250_v54, %v1516_v11  ;;  %11163 = vmatprep.subr.bf16.mxu1 %v12488_v21 }
 0x19a   :  { %v2169_v37 = vpop.f32.mrf.mxu0  ;;  %v2252_v62 = vpop.f32.mrf.mxu1 }
 0x19b   :  { %v14725_v48 = vadd.f32 %v2169_v37, %v14406_v25  ;;  %v14727_v36 = vadd.f32 %v2252_v62, %v1520_v32  ;;  %v1526_v25 = vadd.f32 %v14638_v18, %v14168_v50  ;;  %v12490_v18 = vld [vmem:[#allocation6 + $0x160] sm:$0xff]  }
 0x19c   :  { %v14729_v3 = vpop.f32.mrf.mxu0  ;;  %v14731_v40 = vpop.f32.mrf.mxu1  ;;  %11164 = vmatpush3.bf16.msra.mxu1 %v12489_v42  ;;  %v12491_v32 = vld [vmem:[#allocation6 + $0x120] sm:$0xff]  }
 0x19d   :  { %11165 = vmatprep.subr.bf16.mxu1 %v12490_v18 }
 0x19e   :  { %v2175_v23 = vpop.f32.mrf.mxu0  ;;  %v2258_v55 = vpop.f32.mrf.mxu1  ;;  %4099 = vmatmul.mubr.bf16.gmra.mxu0 %v14623_v31 }
 0x19f   :  { %v14739_v53 = vadd.f32 %v2175_v23, %v14435_v34  ;;  %v14741_v5 = vadd.f32 %v2258_v55, %v1525_v39  ;;  %v12493_v23 = vld [vmem:[#allocation6 + $0x118] sm:$0xff]  }
 0x1a0   :  { %v2177_v11 = vpop.f32.mrf.mxu0  ;;  %v2260_v33 = vpop.f32.mrf.mxu1  ;;  %11166 = vmatpush3.bf16.msra.mxu1 %v12491_v32 }
 0x1a1   :  { %v14746_v16 = vadd.f32 %v2177_v11, %v14438_v49  ;;  %v14748_v31 = vadd.f32 %v2260_v33, %v1526_v25  ;;  %11167 = vmatprep.subr.bf16.mxu1 %v12492_v61  ;;  %v1540_v25 = vadd.f32 %v14656_v29, %v14225_v17  ;;  %v12495_v33 = vld [vmem:[#allocation6 + $0x110] sm:$0xff]   ;;  %v1545_v17 = vadd.f32 %v14664_v35, %v14249_v15 }
 0x1a2   :  { %v2179_v47 = vpop.f32.mrf.mxu0  ;;  %v2262_v50 = vpop.f32.mrf.mxu1 }
 0x1a3   :  { %v14751_v34 = vadd.f32 %v2179_v47, %v14455_v10  ;;  %v14753_v54 = vadd.f32 %v2262_v50, %v1530_v43  ;;  %v1546_v50 = vadd.f32 %v14666_v0, %v14259_v1 }
 0x1a4   :  { %v14755_v37 = vpop.f32.mrf.mxu0  ;;  %v14757_v62 = vpop.f32.mrf.mxu1  ;;  %11168 = vmatpush3.bf16.msra.mxu1 %v12493_v23 }
 0x1a5   :  { %11169 = vmatprep.subr.bf16.mxu1 %v12494_v14 }
 0x1a6   :  { %v2185_v49 = vpop.f32.mrf.mxu0  ;;  %v2268_v52 = vpop.f32.mrf.mxu1 }
 0x1a7   :  { %v14764_v10 = vadd.f32 %v2185_v49, %v14469_v41  ;;  %v14766_v39 = vadd.f32 %v2268_v52, %v1535_v56  ;;  %v1550_v49 = vadd.f32 %v14672_v24, %v14269_v44 }
 0x1a8   :  { %v2187_v55 = vpop.f32.mrf.mxu0  ;;  %v2270_v21 = vpop.f32.mrf.mxu1  ;;  %11170 = vmatpush3.bf16.msra.mxu1 %v12495_v33 }
 0x1a9   :  { %16347 = vst [vmem:[#allocation30_spill] sm:$0xff] %v14766_v39  ;;  %v14771_v4 = vadd.f32 %v2187_v55, %v14483_v45  ;;  %v14773_v30 = vadd.f32 %v2270_v21, %v1536_v22  ;;  %v2364_v55 = vld [vmem:[#allocation2 + $0x20] sm:$0xff] }
 0x1aa   :  { %v2189_v42 = vpop.f32.mrf.mxu0  ;;  %v2272_v9 = vpop.f32.mrf.mxu1  ;;  %v16385_v39 = vld [vmem:[#allocation17_spill] sm:$0xff] }
 0x1ab   :  { %16348 = vst [vmem:[#allocation31_spill] sm:$0xff] %v14773_v30  ;;  %v14776_v41 = vadd.f32 %v2189_v42, %v14499_v6  ;;  %v14778_v11 = vadd.f32 %v2272_v9, %v1540_v25  ;;  %v2369_v9 = vld [vmem:[#allocation2 + $0x48] sm:$0xff] }
 0x1ac   :  { %v14780_v43 = vpop.f32.mrf.mxu0  ;;  %v14782_v47 = vpop.f32.mrf.mxu1 }
 0x1ad   :  { %16349 = vst [vmem:[#allocation32_spill] sm:$0xff] %v14778_v11 }
 0x1ae   :  { %v2195_v45 = vpop.f32.mrf.mxu0  ;;  %v2278_v29 = vpop.f32.mrf.mxu1 }
 0x1af   :  { %v14789_v6 = vadd.f32 %v2195_v45, %v14529_v8  ;;  %v14791_v18 = vadd.f32 %v2278_v29, %v1545_v17  ;;  %v12496_v8 = vld [vmem:[#allocation6 + $0x208] sm:$0xff]  }
 0x1b0   :  { %v2197_v32 = vpop.f32.mrf.mxu0  ;;  %v2280_v56 = vpop.f32.mrf.mxu1  ;;  %11201 = vmatprep.subr.bf16.mxu1 %v12496_v8 }
 0x1b1   :  { %16350 = vst [vmem:[#allocation33_spill] sm:$0xff] %v14791_v18  ;;  %v14796_v52 = vadd.f32 %v2197_v32, %v14542_v2  ;;  %v14798_v15 = vadd.f32 %v2280_v56, %v1546_v50  ;;  %v2374_v32 = vld [vmem:[#allocation2 + $0x70] sm:$0xff] }
 0x1b2   :  { %v2199_v35 = vpop.f32.mrf.mxu0  ;;  %v2282_v61 = vpop.f32.mrf.mxu1 }
 0x1b3   :  { %16351 = vst [vmem:[#allocation34_spill] sm:$0xff] %v14798_v15  ;;  %v14801_v22 = vadd.f32 %v2199_v35, %v14552_v13  ;;  %v14803_v1 = vadd.f32 %v2282_v61, %v1550_v49 }
 0x1b4   :  { %v14805_v0 = vpop.f32.mrf.mxu0  ;;  %v14807_v23 = vpop.f32.mrf.mxu1 }
 0x1b5   :  { %16352 = vst [vmem:[#allocation35_spill] sm:$0xff] %v14803_v1 }
 0x1ba   :  { %v2321_v44 = vpop.f32.mrf.mxu0  ;;  %v3061_v24 = vpop.f32.mrf.mxu1 }
 0x1bb   :  { %v2414_v2 = vadd.f32 %v2364_v55, %v2321_v44  ;;  %v14810_v21 = vadd.f32 %v3061_v24, %v14683_v26  ;;  %v12831_v26 = vld [vmem:[#allocation3 + $0xc8] sm:$0xff] }
 0x1bc   :  { %v2323_v25 = vpop.f32.mrf.mxu0  ;;  %v3063_v42 = vpop.f32.mrf.mxu1  ;;  %67 = vst.msk [vmem:[#allocation3 + $0xd8] sm:$0xf] %vm66_vm4, %v12831_v26  ;;  %v2379_v44 = vld [vmem:[#allocation2 + $0x98] sm:$0xff] }
 0x1bd   :  { %2464 = vst.msk [vmem:[#allocation2 + $0x20] sm:$0xff] %vm743_vm2, %v2414_v2  ;;  %v14814_v13 = vadd.f32 %v3063_v42, %v14692_v51 }
 0x1be   :  { %v2324_v14 = vpop.f32.mrf.mxu0  ;;  %v3065_v33 = vpop.f32.mrf.mxu1 }
 0x1bf   :  { %v2419_v17 = vadd.f32 %v2369_v9, %v2324_v14  ;;  %v14817_v45 = vadd.f32 %v3065_v33, %v14697_v7  ;;  %v2384_v14 = vld [vmem:[#allocation2 + $0xc0] sm:$0xff] }
 0x1c0   :  { %v2326_v29 = vpop.f32.mrf.mxu0  ;;  %v14819_v50 = vpop.f32.mrf.mxu1 }
 0x1c1   :  { %2469 = vst.msk [vmem:[#allocation2 + $0x48] sm:$0xff] %vm743_vm2, %v2419_v17 }
 0x1c2   :  { %v2329_v56 = vpop.f32.mrf.mxu0  ;;  %v3071_v51 = vpop.f32.mrf.mxu1 }
 0x1c3   :  { %v2424_v49 = vadd.f32 %v2374_v32, %v2329_v56  ;;  %v14824_v35 = vadd.f32 %v3071_v51, %v14711_v59  ;;  %v2389_v56 = vld [vmem:[#allocation2 + $0xe8] sm:$0xff] }
 0x1c4   :  { %v2331_v61 = vpop.f32.mrf.mxu0  ;;  %v3073_v8 = vpop.f32.mrf.mxu1 }
 0x1c5   :  { %16353 = vst [vmem:[#allocation36_spill] sm:$0xff] %v14824_v35  ;;  %2474 = vst.msk [vmem:[#allocation2 + $0x70] sm:$0xff] %vm743_vm2, %v2424_v49  ;;  %v14828_v7 = vadd.f32 %v3073_v8, %v14720_v63 }
 0x1c6   :  { %v2332_v55 = vpop.f32.mrf.mxu0  ;;  %v3075_v24 = vpop.f32.mrf.mxu1 }
 0x1c7   :  { %16354 = vst [vmem:[#allocation37_spill] sm:$0xff] %v14828_v7  ;;  %v2429_v2 = vadd.f32 %v2379_v44, %v2332_v55  ;;  %v14831_v25 = vadd.f32 %v3075_v24, %v14725_v48  ;;  %v2394_v24 = vld [vmem:[#allocation2 + $0x110] sm:$0xff] }
 0x1c8   :  { %v2334_v42 = vpop.f32.mrf.mxu0  ;;  %v14833_v9 = vpop.f32.mrf.mxu1  ;;  %v16384_v7 = vld [vmem:[#allocation28_spill] sm:$0xff] }
 0x1c9   :  { %16355 = vst [vmem:[#allocation38_spill] sm:$0xff] %v14831_v25  ;;  %2479 = vst.msk [vmem:[#allocation2 + $0x98] sm:$0xff] %vm743_vm2, %v2429_v2  ;;  %v16292_v42 = vmov 0.0   ;;  %v16383_v25 = vld [vmem:[#allocation16_spill] sm:$0xff] }
 0x1ca   :  { %v2337_v59 = vpop.f32.mrf.mxu0  ;;  %v3081_v33 = vpop.f32.mrf.mxu1  ;;  %11852 = vmatprep.subr.bf16.mxu0 %v16292_v42 }
 0x1cb   :  { %v2434_v17 = vadd.f32 %v2384_v14, %v2337_v59  ;;  %v14837_v29 = vadd.f32 %v3081_v33, %v14739_v53  ;;  %v12500_v53 = vld [vmem:[#allocation6 + $0x218] sm:$0xff]  }
 0x1cc   :  { %v2339_v63 = vpop.f32.mrf.mxu0  ;;  %v3083_v32 = vpop.f32.mrf.mxu1  ;;  %11853 = vmatpush3.bf16.msra.mxu0 %v12500_v53 }
 0x1cd   :  { %16356 = vst [vmem:[#allocation39_spill] sm:$0xff] %v14837_v29  ;;  %2484 = vst.msk [vmem:[#allocation2 + $0xc0] sm:$0xff] %vm743_vm2, %v2434_v17  ;;  %v14841_v26 = vadd.f32 %v3083_v32, %v14746_v16  ;;  %11854 = vmatprep.subr.bf16.mxu0 %v16292_v42  ;;  %v2399_v63 = vld [vmem:[#allocation2 + $0x138] sm:$0xff] }
 0x1ce   :  { %v2340_v48 = vpop.f32.mrf.mxu0  ;;  %v3085_v51 = vpop.f32.mrf.mxu1 }
 0x1cf   :  { %16357 = vst [vmem:[#allocation40_spill] sm:$0xff] %v14841_v26  ;;  %v2439_v49 = vadd.f32 %v2389_v56, %v2340_v48  ;;  %v14844_v61 = vadd.f32 %v3085_v51, %v14751_v34  ;;  %v4309_v26 = vlaneseq }
 0x1d0   :  { %v2342_v8 = vpop.f32.mrf.mxu0  ;;  %v14846_v55 = vpop.f32.mrf.mxu1 }
 0x1d1   :  { %16358 = vst [vmem:[#allocation41_spill] sm:$0xff] %v14844_v61  ;;  %2489 = vst.msk [vmem:[#allocation2 + $0xe8] sm:$0xff] %vm743_vm2, %v2439_v49  ;;  %v2404_v49 = vld [vmem:[#allocation2 + $0x160] sm:$0xff] }
 0x1d2   :  { %v2345_v44 = vpop.f32.mrf.mxu0  ;;  %v3091_v2 = vpop.f32.mrf.mxu1 }
 0x1d3   :  { %v2444_v16 = vadd.f32 %v2394_v24, %v2345_v44  ;;  %v14851_v59 = vadd.f32 %v3091_v2, %v14764_v10 }
 0x1d4   :  { %v2347_v14 = vpop.f32.mrf.mxu0  ;;  %v3093_v34 = vpop.f32.mrf.mxu1 }
 0x1d5   :  { %16359 = vst [vmem:[#allocation42_spill] sm:$0xff] %v14851_v59  ;;  %2494 = vst.msk [vmem:[#allocation2 + $0x110] sm:$0xff] %vm743_vm2, %v2444_v16  ;;  %v14856_v33 = vadd.f32 %v3093_v34, %v14771_v4  ;;  %v2409_v16 = vld [vmem:[#allocation2 + $0x188] sm:$0xff] }
 0x1d6   :  { %v2348_v17 = vpop.f32.mrf.mxu0  ;;  %v3095_v32 = vpop.f32.mrf.mxu1 }
 0x1d7   :  { %16360 = vst [vmem:[#allocation43_spill] sm:$0xff] %v14856_v33  ;;  %v2449_v48 = vadd.f32 %v2399_v63, %v2348_v17  ;;  %v14859_v56 = vadd.f32 %v3095_v32, %v14776_v41 }
 0x1d8   :  { %v2350_v51 = vpop.f32.mrf.mxu0  ;;  %v14861_v10 = vpop.f32.mrf.mxu1 }
 0x1d9   :  { %16361 = vst [vmem:[#allocation44_spill] sm:$0xff] %v14859_v56  ;;  %2499 = vst.msk [vmem:[#allocation2 + $0x138] sm:$0xff] %vm743_vm2, %v2449_v48 }
 0x1da   :  { %v2353_v8 = vpop.f32.mrf.mxu0  ;;  %v3101_v53 = vpop.f32.mrf.mxu1 }
 0x1db   :  { %v2454_v44 = vadd.f32 %v2404_v49, %v2353_v8  ;;  %v14865_v24 = vadd.f32 %v3101_v53, %v14789_v6  ;;  %v12510_v6 = vld [vmem:[#allocation6 + $0x210] sm:$0xff]   ;;  %v3270_v8 = vld [vmem:[#allocation2 + $0x20] sm:$0xff] }
 0x1dc   :  { %v2355_v4 = vpop.f32.mrf.mxu0  ;;  %v3103_v2 = vpop.f32.mrf.mxu1  ;;  %11855 = vmatpush3.bf16.msra.mxu0 %v12510_v6  ;;  %v3300_v33 = vld [vmem:[#allocation2 + $0x110] sm:$0xff] }
 0x1dd   :  { %16362 = vst [vmem:[#allocation45_spill] sm:$0xff] %v14865_v24  ;;  %2504 = vst.msk [vmem:[#allocation2 + $0x160] sm:$0xff] %vm743_vm2, %v2454_v44  ;;  %v14869_v41 = vadd.f32 %v3103_v2, %v14796_v52  ;;  %v3275_v2 = vld [vmem:[#allocation2 + $0x48] sm:$0xff] }
 0x1de   :  { %v2356_v14 = vpop.f32.mrf.mxu0  ;;  %v3105_v34 = vpop.f32.mrf.mxu1 }
 0x1df   :  { %16363 = vst [vmem:[#allocation46_spill] sm:$0xff] %v14869_v41  ;;  %v2459_v17 = vadd.f32 %v2409_v16, %v2356_v14  ;;  %v14872_v63 = vadd.f32 %v3105_v34, %v14801_v22 }
 0x1e0   :  { %v2358_v32 = vpop.f32.mrf.mxu0  ;;  %v14875_v48 = vpop.f32.mrf.mxu1  ;;  %v3305_v61 = vld [vmem:[#allocation2 + $0x138] sm:$0xff] }
 0x1e1   :  { %16364 = vst [vmem:[#allocation47_spill] sm:$0xff] %v14872_v63  ;;  %2509 = vst.msk [vmem:[#allocation2 + $0x188] sm:$0xff] %vm743_vm2, %v2459_v17  ;;  %v3285_v63 = vld [vmem:[#allocation2 + $0x98] sm:$0xff] }
 0x1e6   :  { %v14877_v51 = vpop.f32.mrf.mxu0  ;;  %v3227_v49 = vpop.f32.mrf.mxu1 }
 0x1e7   :  { %v3320_v53 = vadd.f32 %v3270_v8, %v3227_v49  ;;  %v3280_v49 = vld [vmem:[#allocation2 + $0x70] sm:$0xff] }
 0x1e8   :  { %v14879_v52 = vpop.f32.mrf.mxu0  ;;  %v3229_v44 = vpop.f32.mrf.mxu1 }
 0x1e9   :  { %3370 = vst.msk [vmem:[#allocation2 + $0x20] sm:$0xff] %vm743_vm2, %v3320_v53 }
 0x1ea   :  { %v14882_v4 = vpop.f32.mrf.mxu0  ;;  %v3230_v22 = vpop.f32.mrf.mxu1 }
 0x1eb   :  { %v3325_v16 = vadd.f32 %v3275_v2, %v3230_v22  ;;  %v16365_v22 = vmov 0.0   ;;  %v12523_v2 = vld [vmem:[#allocation6 + $0xf8] sm:$0xff]  }
 0x1ec   :  { %v14884_v14 = vpop.f32.mrf.mxu0  ;;  %v3232_v34 = vpop.f32.mrf.mxu1  ;;  %11856 = vmatprep.mubr.msk.bf16.mxu0 %vm12930_vm5, %v16365_v22  ;;  %11300 = vmatprep.subr.bf16.mxu0 %v12523_v2 }
 0x1ed   :  { %3375 = vst.msk [vmem:[#allocation2 + $0x48] sm:$0xff] %vm743_vm2, %v3325_v16 }
 0x1ee   :  { %v14887_v17 = vpop.f32.mrf.mxu0  ;;  %v3235_v32 = vpop.f32.mrf.mxu1 }
 0x1ef   :  { %v3330_v6 = vadd.f32 %v3280_v49, %v3235_v32 }
 0x1f0   :  { %v14889_v8 = vpop.f32.mrf.mxu0  ;;  %v3237_v44 = vpop.f32.mrf.mxu1 }
 0x1f1   :  { %3380 = vst.msk [vmem:[#allocation2 + $0x70] sm:$0xff] %vm743_vm2, %v3330_v6  ;;  %v3290_v6 = vld [vmem:[#allocation2 + $0xc0] sm:$0xff] }
 0x1f2   :  { %v14892_v53 = vpop.f32.mrf.mxu0  ;;  %v3238_v42 = vpop.f32.mrf.mxu1 }
 0x1f3   :  { %v3335_v16 = vadd.f32 %v3285_v63, %v3238_v42  ;;  %v3295_v42 = vld [vmem:[#allocation2 + $0xe8] sm:$0xff] }
 0x1f4   :  { %v14896_v34 = vpop.f32.mrf.mxu0  ;;  %v3240_v41 = vpop.f32.mrf.mxu1 }
 0x1f5   :  { %3385 = vst.msk [vmem:[#allocation2 + $0x98] sm:$0xff] %vm743_vm2, %v3335_v16 }
 0x1f6   :  { %v14899_v32 = vpop.f32.mrf.mxu0  ;;  %v3243_v49 = vpop.f32.mrf.mxu1 }
 0x1f7   :  { %v3340_v44 = vadd.f32 %v3290_v6, %v3243_v49 }
 0x1f8   :  { %v14901_v24 = vpop.f32.mrf.mxu0  ;;  %v3245_v1 = vpop.f32.mrf.mxu1 }
 0x1f9   :  { %3390 = vst.msk [vmem:[#allocation2 + $0xc0] sm:$0xff] %vm743_vm2, %v3340_v44 }
 0x1fa   :  { %v14904_v15 = vpop.f32.mrf.mxu0  ;;  %v3246_v22 = vpop.f32.mrf.mxu1 }
 0x1fb   :  { %16366 = vst [vmem:[#allocation48_spill] sm:$0xff] %v14904_v15  ;;  %v3345_v63 = vadd.f32 %v3295_v42, %v3246_v22  ;;  %v16387_v15 = vld [vmem:[#allocation19_spill] sm:$0xff] }
 0x1fc   :  { %v14906_v56 = vpop.f32.mrf.mxu0  ;;  %v3248_v41 = vpop.f32.mrf.mxu1 }
 0x1fd   :  { %16367 = vst [vmem:[#allocation49_spill] sm:$0xff] %v14906_v56  ;;  %3395 = vst.msk [vmem:[#allocation2 + $0xe8] sm:$0xff] %vm743_vm2, %v3345_v63  ;;  %v16386_v56 = vld [vmem:[#allocation29_spill] sm:$0xff] }
 0x1fe   :  { %v14909_v2 = vpop.f32.mrf.mxu0  ;;  %v3251_v16 = vpop.f32.mrf.mxu1  ;;  %v1531_v35 = vadd.f32 %v16386_v56, %v16385_v39  ;;  %v3318_v39 = vadd.f32 %v14877_v51, %v14685_v19  ;;  %v3319_v19 = vadd.f32 %v14879_v52, %v14694_v20  ;;  %v3323_v20 = vadd.f32 %v14882_v4, %v14699_v27 }
 0x1ff   :  { %16368 = vst [vmem:[#allocation50_spill] sm:$0xff] %v14909_v2  ;;  %v3350_v49 = vadd.f32 %v3300_v33, %v3251_v16  ;;  %v3310_v33 = vld [vmem:[#allocation2 + $0x160] sm:$0xff]  ;;  %v1521_v2 = vadd.f32 %v16384_v7, %v16383_v25 }
 0x200   :  { %v14911_v6 = vpop.f32.mrf.mxu0  ;;  %v3253_v1 = vpop.f32.mrf.mxu1 }
 0x201   :  { %16369 = vst [vmem:[#allocation51_spill] sm:$0xff] %v14911_v6  ;;  %3400 = vst.msk [vmem:[#allocation2 + $0x110] sm:$0xff] %vm743_vm2, %v3350_v49  ;;  %v14923_v49 = vshrl.u32 %v4309_v26, 7  ;;  %v16381_v6 = vld [vmem:[#allocation15_spill] sm:$0xff]  ;;  %v2428_v56 = vadd.f32 %v14731_v40, %v1521_v2 }
 0x202   :  { %v14914_v44 = vpop.f32.mrf.mxu0  ;;  %v3254_v59 = vpop.f32.mrf.mxu1 }
 0x203   :  { %16370 = vst [vmem:[#allocation52_spill] sm:$0xff] %v14914_v44  ;;  %v3355_v22 = vadd.f32 %v3305_v61, %v3254_v59  ;;  %16374 = vst [vmem:[#allocation56_spill] sm:$0xff] %v14923_v49  ;;  %v3315_v61 = vld [vmem:[#allocation2 + $0x188] sm:$0xff]  ;;  %v4315_v26 = vsub.s32 1, %v14923_v49 }
 0x204   :  { %v14916_v42 = vpop.f32.mrf.mxu0  ;;  %v3256_v41 = vpop.f32.mrf.mxu1 }
 0x205   :  { %16371 = vst [vmem:[#allocation53_spill] sm:$0xff] %v14916_v42  ;;  %3405 = vst.msk [vmem:[#allocation2 + $0x138] sm:$0xff] %vm743_vm2, %v3355_v22  ;;  %v4311_v22 = vsub.s32 0, %v14923_v49 }
 0x206   :  { %v14919_v63 = vpop.f32.mrf.mxu0  ;;  %v3259_v29 = vpop.f32.mrf.mxu1 }
 0x207   :  { %16372 = vst [vmem:[#allocation54_spill] sm:$0xff] %v14919_v63  ;;  %v3360_v16 = vadd.f32 %v3310_v33, %v3259_v29  ;;  %v4319_v63 = vsub.s32 2, %v14923_v49  ;;  %v14934_v29 = vld [vmem:[%s16283_s2] sm:$0x1f]  ;;  %v16376_v33 = vld [vmem:[#allocation24_spill] sm:$0xff] }
 0x208   :  { %v14921_v18 = vpop.f32.mrf.mxu0  ;;  %v3261_v1 = vpop.f32.mrf.mxu1 }
 0x209   :  { %16373 = vst [vmem:[#allocation55_spill] sm:$0xff] %v14921_v18  ;;  %3410 = vst.msk [vmem:[#allocation2 + $0x160] sm:$0xff] %vm743_vm2, %v3360_v16  ;;  %v1529_v16 = vadd.f32 %v16376_v33, %v14190_v58  ;;  %v16378_v1 = vld [vmem:[#allocation25_spill] sm:$0xff]  ;;  %v16380_v18 = vld [vmem:[#allocation26_spill] sm:$0xff]  ;;  %v1541_v58 = vadd.f32 %v14661_v38, %v16387_v15  ;;  %v14968_v38 = vrot.slane %v14934_v29, %v4315_v26 }
 0x20a   :  { %v3262_v44 = vpop.f32.mrf.mxu1  ;;  %v14926_v42 = vpop.f32.mrf.mxu0  ;;  %v16388_v33 = vld [vmem:[#allocation20_spill] sm:$0xff] }
 0x20b   :  { %v3365_v59 = vadd.f32 %v3315_v61, %v3262_v44  ;;  %16375 = vst [vmem:[#allocation57_spill] sm:$0xff] %v14926_v42  ;;  %v16377_v44 = vld [vmem:[#allocation18_spill] sm:$0xff]  ;;  %v16379_v42 = vld [vmem:[#allocation21_spill] sm:$0xff] }
 0x20c   :  { %v3264_v41 = vpop.f32.mrf.mxu1  ;;  %v1539_v61 = vadd.f32 %v16378_v1, %v16377_v44  ;;  %v1549_v11 = vadd.f32 %v16380_v18, %v16379_v42  ;;  %v1551_v44 = vadd.f32 %v14675_v57, %v16388_v33  ;;  %v14954_v1 = vpop.f32.mrf.mxu0  ;;  %v14960_v18 = vrot.slane %v14934_v29, %v4319_v63  ;;  %v16390_v57 = vld [vmem:[#allocation23_spill] sm:$0xff] }
 0x20d   :  { %3415 = vst.msk [vmem:[#allocation2 + $0x188] sm:$0xff] %vm743_vm2, %v3365_v59  ;;  %v4323_v41 = vsub.s32 3, %v14923_v49  ;;  %v16382_v59 = vld [vmem:[#allocation27_spill] sm:$0xff]  ;;  %v14957_v49 = vrot.slane %v14934_v29, %v4311_v22  ;;  %v2426_v15 = vadd.f32 %v14729_v3, %v16390_v57  ;;  %v2436_v42 = vadd.f32 %v14755_v37, %v1529_v16 }
 0x20e   :  { %v1511_v30 = vadd.f32 %v16382_v59, %v16381_v6  ;;  %v16389_v6 = vld [vmem:[#allocation22_spill] sm:$0xff]  ;;  %v2446_v51 = vadd.f32 %v14780_v43, %v1539_v61  ;;  %v14983_v3 = vadd.f32 %v14782_v47, %v1541_v58  ;;  %v2456_v40 = vadd.f32 %v14805_v0, %v1549_v11 }
 0x20f   :  { %v2416_v7 = vadd.f32 %v14701_v12, %v16389_v6  ;;  %v14975_v59 = vrot.slane %v14934_v29, %v4323_v41  ;;  %v2438_v12 = vadd.f32 %v14757_v62, %v1531_v35  ;;  %v14987_v37 = vadd.f32 %v14807_v23, %v1551_v44 }
 0x210   :  { %v2418_v25 = vadd.f32 %v14703_v28, %v1511_v30  ;;  %v14994_v43 = vadd.f32 %v14833_v9, %v2426_v15  ;;  %v14997_v47 = vadd.f32 %v14846_v55, %v2436_v42  ;;  %v15005_v4 = vadd.f32 %v14861_v10, %v2446_v51  ;;  %v16393_v42 = vld [vmem:[#allocation49_spill] sm:$0xff] }
 0x211   :  { %v3322_v62 = vadd.f32 %v14819_v50, %v2416_v7  ;;  %v15008_v9 = vadd.f32 %v14875_v48, %v2456_v40  ;;  %v3328_v61 = vadd.f32 %v14887_v17, %v14713_v46  ;;  %v3329_v33 = vadd.f32 %v14889_v8, %v14722_v60  ;;  %v16391_v17 = vld [vmem:[#allocation48_spill] sm:$0xff] }
 0x212   :  { %v3902_v63 = vpop.f32.mrf.mxu0  ;;  %v3985_v22 = vpop.f32.mrf.mxu1  ;;  %v3324_v55 = vadd.f32 %v14884_v14, %v2418_v25  ;;  %v3334_v10 = vadd.f32 %v14896_v34, %v2428_v56  ;;  %v3338_v48 = vadd.f32 %v14899_v32, %v14741_v5  ;;  %v3339_v46 = vadd.f32 %v14901_v24, %v14748_v31  ;;  %v16394_v24 = vld [vmem:[#allocation30_spill] sm:$0xff] }
 0x213   :  { %v4157_v28 = vadd.f32 %v3902_v63, %v14810_v21  ;;  %v4159_v30 = vadd.f32 %v3985_v22, %v3318_v39  ;;  %v3343_v60 = vadd.f32 %v16391_v17, %v14753_v54  ;;  %v3344_v31 = vadd.f32 %v16393_v42, %v2438_v12  ;;  %v16395_v63 = vld [vmem:[#allocation50_spill] sm:$0xff]  ;;  %v16396_v22 = vld [vmem:[#allocation37_spill] sm:$0xff] }
 0x214   :  { %v3904_v2 = vpop.f32.mrf.mxu0  ;;  %v3987_v26 = vpop.f32.mrf.mxu1  ;;  %v15032_v54 = vadd.f32 %v16395_v63, %v16394_v24  ;;  %v16406_v24 = vld [vmem:[#allocation40_spill] sm:$0xff] }
 0x215   :  { %v4158_v21 = vadd.f32 %v3904_v2, %v14814_v13  ;;  %v4160_v35 = vadd.f32 %v3987_v26, %v3319_v19  ;;  %v4334_v11 = vadd.f32 %v14957_v49, %v4157_v28  ;;  %v4336_v0 = vadd.f32 %v14960_v18, %v4159_v30 }
 0x216   :  { %v3906_v23 = vpop.f32.mrf.mxu0  ;;  %v3989_v52 = vpop.f32.mrf.mxu1 }
 0x217   :  { %v4335_v50 = vadd.f32 %v14968_v38, %v4158_v21  ;;  %v4337_v16 = vadd.f32 %v14975_v59, %v4160_v35  ;;  %v4162_v27 = vadd.f32 %v3906_v23, %v14817_v45  ;;  %v4164_v13 = vadd.f32 %v3989_v52, %v3323_v20  ;;  %v16397_v21 = vld [vmem:[#allocation38_spill] sm:$0xff]  ;;  %v16398_v23 = vld [vmem:[#allocation31_spill] sm:$0xff] }
 0x218   :  { %v3908_v41 = vpop.f32.mrf.mxu0  ;;  %v3991_v58 = vpop.f32.mrf.mxu1  ;;  %v3333_v45 = vadd.f32 %v14892_v53, %v14727_v36  ;;  %v16392_v36 = vld [vmem:[#allocation36_spill] sm:$0xff]  ;;  %v16399_v52 = vld [vmem:[#allocation51_spill] sm:$0xff] }
 0x219   :  { %v11086_v44 = vpack.c.bf16 %v4335_v50, %v4334_v11  ;;  %v11087_v6 = vpack.c.bf16 %v4337_v16, %v4336_v0  ;;  %v4163_v7 = vadd.f32 %v3908_v41, %v3322_v62  ;;  %v4165_v14 = vadd.f32 %v3991_v58, %v3324_v55 }
 0x21a   :  { %v3912_v25 = vpop.f32.mrf.mxu0  ;;  %v3995_v39 = vpop.f32.mrf.mxu1  ;;  %v4339_v34 = vadd.f32 %v14957_v49, %v4162_v27  ;;  %v4341_v57 = vadd.f32 %v14960_v18, %v4164_v13  ;;  %v15046_v16 = vadd.f32 %v16399_v52, %v16398_v23  ;;  %v16400_v27 = vld [vmem:[#allocation32_spill] sm:$0xff] }
 0x21b   :  { %4544 = vst [vmem:[#allocation3] sm:$0xff] %v11086_v44  ;;  %4545 = vst [vmem:[#allocation3 + $0x8] sm:$0xff] %v11087_v6  ;;  %v4167_v8 = vadd.f32 %v3912_v25, %v16392_v36  ;;  %v4169_v53 = vadd.f32 %v3995_v39, %v3328_v61  ;;  %v4340_v5 = vadd.f32 %v14968_v38, %v4163_v7  ;;  %v16401_v13 = vld [vmem:[#allocation52_spill] sm:$0xff]  ;;  %v16402_v44 = vld [vmem:[#allocation53_spill] sm:$0xff] }
 0x21c   :  { %v4342_v32 = vadd.f32 %v14975_v59, %v4165_v14  ;;  %v3914_v15 = vpop.f32.mrf.mxu0  ;;  %v3997_v56 = vpop.f32.mrf.mxu1  ;;  %v15050_v55 = vadd.f32 %v16401_v13, %v16400_v27  ;;  %v15052_v58 = vpack.c.bf16 %v4339_v34, %v4334_v11  ;;  %v15058_v6 = vadd.f32 %v16402_v44, %v14983_v3  ;;  %v16404_v7 = vld [vmem:[#allocation54_spill] sm:$0xff] }
 0x21d   :  { %v4168_v19 = vadd.f32 %v3914_v15, %v16396_v22  ;;  %v4170_v28 = vadd.f32 %v3997_v56, %v3329_v33  ;;  %v11089_v30 = vpack.c.bf16 %v4340_v5, %v4339_v34  ;;  %v4344_v40 = vadd.f32 %v14957_v49, %v4167_v8 }
 0x21e   :  { %v11090_v51 = vpack.c.bf16 %v4342_v32, %v4341_v57  ;;  %v15037_v2 = vadd.f32 %v14960_v18, %v4169_v53  ;;  %v3916_v26 = vpop.f32.mrf.mxu0  ;;  %v3999_v62 = vpop.f32.mrf.mxu1  ;;  %v15054_v33 = vpack.c.bf16 %v4340_v5, %v4335_v50  ;;  %v16405_v53 = vld [vmem:[#allocation39_spill] sm:$0xff]  ;;  %v4865_v57 = vshll.u32 %v15052_v58, 16 }
 0x21f   :  { %v4345_v20 = vadd.f32 %v14968_v38, %v4168_v19  ;;  %v15041_v12 = vadd.f32 %v14975_v59, %v4170_v28  ;;  %v4172_v35 = vadd.f32 %v3916_v26, %v16397_v21  ;;  %v4174_v0 = vadd.f32 %v3999_v62, %v3333_v45  ;;  %4547 = vst [vmem:[#allocation3 + $0x14] sm:$0xff] %v11089_v30  ;;  %v16403_v45 = vld [vmem:[#allocation33_spill] sm:$0xff] }
 0x220   :  { %4548 = vst [vmem:[#allocation3 + $0x1c] sm:$0xff] %v11090_v51  ;;  %v3918_v61 = vpop.f32.mrf.mxu0  ;;  %v4001_v41 = vpop.f32.mrf.mxu1  ;;  %v15062_v14 = vadd.f32 %v16404_v7, %v16403_v45  ;;  %v4877_v11 = vshll.u32 %v15054_v33, 16  ;;  %v4863_v19 = vshrl.u32 %v15052_v58, 16  ;;  %v4867_v51 = vrot.slane %v4865_v57, 1  ;;  %v16407_v21 = vld [vmem:[#allocation41_spill] sm:$0xff] }
 0x221   :  { %v4349_v25 = vadd.f32 %v14957_v49, %v4172_v35  ;;  %v4173_v39 = vadd.f32 %v3918_v61, %v14994_v43  ;;  %v4175_v17 = vadd.f32 %v4001_v41, %v3334_v10  ;;  %v15068_v50 = vadd.f32 %v14960_v18, %v4174_v0 }
 0x222   :  { %v3922_v36 = vpop.f32.mrf.mxu0  ;;  %v4005_v8 = vpop.f32.mrf.mxu1  ;;  %v4875_v10 = vshrl.u32 %v15054_v33, 16  ;;  %v4879_v56 = vrot.slane %v4877_v11, 1  ;;  %v4868_v61 = vor.u32 %v4867_v51, %v4863_v19 }
 0x223   :  { %v4177_v34 = vadd.f32 %v3922_v36, %v16405_v53  ;;  %v4179_v3 = vadd.f32 %v4005_v8, %v3338_v48  ;;  %v4350_v5 = vadd.f32 %v14968_v38, %v4173_v39  ;;  %v15074_v32 = vadd.f32 %v14975_v59, %v4175_v17 }
 0x224   :  { %v3924_v15 = vpop.f32.mrf.mxu0  ;;  %v4007_v43 = vpop.f32.mrf.mxu1  ;;  %v15088_v27 = vpack.c.bf16 %v4349_v25, %v4344_v40  ;;  %v4880_v13 = vor.u32 %v4879_v56, %v4875_v10  ;;  %v16408_v40 = vld [vmem:[#allocation42_spill] sm:$0xff] }
 0x225   :  { %v4354_v42 = vadd.f32 %v14957_v49, %v4177_v34  ;;  %v4178_v63 = vadd.f32 %v3924_v15, %v16406_v24  ;;  %v4180_v22 = vadd.f32 %v4007_v43, %v3339_v46  ;;  %v15081_v48 = vadd.f32 %v14960_v18, %v4179_v3  ;;  %v16409_v15 = vld [vmem:[#allocation43_spill] sm:$0xff]  ;;  %v12497_v56 = vld [vmem:[#allocation6 + $0x1c8] sm:$0xff]  }
 0x226   :  { %v3926_v28 = vpop.f32.mrf.mxu0  ;;  %v4009_v30 = vpop.f32.mrf.mxu1  ;;  %v15090_v46 = vpack.c.bf16 %v4350_v5, %v4345_v20  ;;  %v4870_v36 = vshll.u32 %v15088_v27, 16  ;;  %v4922_v11 = vshrl.u32 %v15088_v27, 16 }
 0x227   :  { %v4355_v26 = vadd.f32 %v14968_v38, %v4178_v63  ;;  %v15085_v62 = vadd.f32 %v14975_v59, %v4180_v22  ;;  %v4182_v35 = vadd.f32 %v3926_v28, %v16407_v21  ;;  %v4184_v0 = vadd.f32 %v4009_v30, %v3343_v60  ;;  %v12498_v28 = vld [vmem:[#allocation6 + $0x200] sm:$0xff]  }
 0x228   :  { %v3928_v23 = vpop.f32.mrf.mxu0  ;;  %v4011_v52 = vpop.f32.mrf.mxu1  ;;  %v4882_v60 = vshll.u32 %v15090_v46, 16  ;;  %v4930_v8 = vshrl.u32 %v15090_v46, 16  ;;  %v4872_v57 = vrot.slane %v4870_v36, 1  ;;  %v16410_v21 = vld [vmem:[#allocation44_spill] sm:$0xff] }
 0x229   :  { %v4359_v41 = vadd.f32 %v14957_v49, %v4182_v35  ;;  %v15094_v44 = vadd.f32 %v14960_v18, %v4184_v0  ;;  %v4183_v45 = vadd.f32 %v3928_v23, %v14997_v47  ;;  %v4185_v7 = vadd.f32 %v4011_v52, %v3344_v31  ;;  %v16411_v23 = vld [vmem:[#allocation34_spill] sm:$0xff] }
 0x22a   :  { %v3932_v39 = vpop.f32.mrf.mxu0  ;;  %v4015_v17 = vpop.f32.mrf.mxu1  ;;  %v4884_v3 = vrot.slane %v4882_v60, 1  ;;  %v4873_v19 = vsel %vm1726_vm1, %v4868_v61, %v4872_v57 }
 0x22b   :  { %v4187_v25 = vadd.f32 %v3932_v39, %v16408_v40  ;;  %v4189_v20 = vadd.f32 %v4015_v17, %v15032_v54  ;;  %v4360_v53 = vadd.f32 %v14968_v38, %v4183_v45  ;;  %v15105_v34 = vadd.f32 %v14975_v59, %v4185_v7  ;;  %v16413_v45 = vld [vmem:[#allocation35_spill] sm:$0xff]  ;;  %v16414_v7 = vld [vmem:[#allocation57_spill] sm:$0xff] }
 0x22c   :  { %v3934_v47 = vpop.f32.mrf.mxu0  ;;  %v4017_v31 = vpop.f32.mrf.mxu1  ;;  %v4885_v22 = vsel %vm1726_vm1, %v4880_v13, %v4884_v3  ;;  %v3363_v39 = vadd.f32 %v16414_v7, %v16413_v45  ;;  %v15133_v40 = vpack.c.bf16 %v4359_v41, %v4354_v42  ;;  %v12501_v41 = vld [vmem:[#allocation6 + $0x1f8] sm:$0xff]  }
 0x22d   :  { %v15112_v5 = vadd.f32 %v14957_v49, %v4187_v25  ;;  %v15115_v54 = vadd.f32 %v14960_v18, %v4189_v20  ;;  %v4188_v43 = vadd.f32 %v3934_v47, %v16409_v15  ;;  %v4190_v10 = vadd.f32 %v4017_v31, %v15046_v16  ;;  %5353 = vmatprep.mubr.bf16.mxu1 %v4885_v22  ;;  %v16412_v16 = vld [vmem:[#allocation55_spill] sm:$0xff]  ;;  %v12499_v25 = vld [vmem:[#allocation6 + $0x1c0] sm:$0xff]  }
 0x22e   :  { %v3936_v24 = vpop.f32.mrf.mxu0  ;;  %v4019_v63 = vpop.f32.mrf.mxu1  ;;  %v3359_v52 = vadd.f32 %v16412_v16, %v16411_v23  ;;  %5354 = vmatmul.mubr.bf16.vlgmr.msra.gmra.mxu1 %v4873_v19  ;;  %v15131_v61 = vpack.c.bf16 %v4360_v53, %v4355_v26  ;;  %v4932_v20 = vor.u32 %v4930_v8, %v4884_v3  ;;  %v16310_v42 = vshll.u32 %v15133_v40, 16  ;;  %v16415_v3 = vld [vmem:[#allocation45_spill] sm:$0xff]  ;;  %v12502_v23 = vld [vmem:[#allocation6 + $0x1b8] sm:$0xff]  }
 0x22f   :  { %v4365_v30 = vadd.f32 %v14968_v38, %v4188_v43  ;;  %v15123_v51 = vadd.f32 %v14975_v59, %v4190_v10  ;;  %v4192_v35 = vadd.f32 %v3936_v24, %v16410_v21  ;;  %v4194_v0 = vadd.f32 %v4019_v63, %v15050_v55  ;;  %11202 = vmatpush3.bf16.msra.mxu1 %v12497_v56 }
 0x230   :  { %v3938_v13 = vpop.f32.mrf.mxu0  ;;  %v4021_v17 = vpop.f32.mrf.mxu1  ;;  %v4924_v55 = vor.u32 %v4922_v11, %v4872_v57  ;;  %11203 = vmatprep.subr.bf16.mxu1 %v12498_v28  ;;  %v4934_v26 = vshll.u32 %v15131_v61, 16  ;;  %v4928_v19 = vrot.slane %v16310_v42, 1 }
 0x231   :  { %v4193_v47 = vadd.f32 %v3938_v13, %v15005_v4  ;;  %v4195_v31 = vadd.f32 %v4021_v17, %v15058_v6  ;;  %v4369_v53 = vadd.f32 %v14957_v49, %v4192_v35  ;;  %v15145_v10 = vadd.f32 %v14960_v18, %v4194_v0  ;;  %v16416_v35 = vld [vmem:[#allocation46_spill] sm:$0xff] }
 0x232   :  { %v3942_v15 = vpop.f32.mrf.mxu0  ;;  %v4025_v43 = vpop.f32.mrf.mxu1  ;;  %v4936_v22 = vrot.slane %v4934_v26, 1  ;;  %v4929_v13 = vsel %vm1726_vm1, %v4924_v55, %v4928_v19  ;;  %v12503_v17 = vld [vmem:[#allocation6 + $0x1f0] sm:$0xff]   ;;  %v4970_v55 = vshrl.u32 %v15131_v61, 16 }
 0x233   :  { %v4197_v56 = vadd.f32 %v3942_v15, %v16415_v3  ;;  %v4199_v57 = vadd.f32 %v4025_v43, %v15062_v14  ;;  %v4370_v4 = vadd.f32 %v14968_v38, %v4193_v47  ;;  %v15151_v6 = vadd.f32 %v14975_v59, %v4195_v31  ;;  %11204 = vmatpush3.bf16.msra.mxu1 %v12499_v25  ;;  %v16417_v15 = vld [vmem:[#allocation47_spill] sm:$0xff] }
 0x234   :  { %v3944_v24 = vpop.f32.mrf.mxu0  ;;  %v4027_v63 = vpop.f32.mrf.mxu1  ;;  %v4937_v7 = vsel %vm1726_vm1, %v4932_v20, %v4936_v22  ;;  %11205 = vmatprep.subr.bf16.mxu1 %v12501_v41  ;;  %v15175_v41 = vpack.c.bf16 %v4369_v53, %v15112_v5  ;;  %v16311_v5 = vshrl.u32 %v15133_v40, 16 }
 0x235   :  { %v4374_v28 = vadd.f32 %v14957_v49, %v4197_v56  ;;  %v15159_v21 = vadd.f32 %v14960_v18, %v4199_v57  ;;  %v4198_v14 = vadd.f32 %v3944_v24, %v16416_v35  ;;  %v4200_v0 = vadd.f32 %v4027_v63, %v3359_v52  ;;  %5361 = vmatprep.mubr.bf16.mxu1 %v4937_v7  ;;  %v12504_v57 = vld [vmem:[#allocation6 + $0x1b0] sm:$0xff]   ;;  %v4672_v35 = vld [vmem:[#allocation3 + $0xc8] sm:$0x11]  ;;  %v4111_v7 = vld [vmem:[#allocation2 + $0x20] sm:$0xff] }
 0x236   :  { %v3946_v16 = vpop.f32.mrf.mxu0  ;;  %v4029_v45 = vpop.f32.mrf.mxu1  ;;  %v3364_v52 = vadd.f32 %v14954_v1, %v14987_v37  ;;  %5362 = vmatmul.mubr.bf16.gmra.mxu1 %v4929_v13  ;;  %v15171_v20 = vpack.c.bf16 %v4370_v4, %v4365_v30  ;;  %v12505_v37 = vld [vmem:[#allocation6 + $0x1e8] sm:$0xff]   ;;  %v16299_v53 = vshll.u32 %v15175_v41, 16 }
 0x237   :  { %v4375_v47 = vadd.f32 %v14968_v38, %v4198_v14  ;;  %v15166_v31 = vadd.f32 %v14975_v59, %v4200_v0  ;;  %v4202_v43 = vadd.f32 %v3946_v16, %v16417_v15  ;;  %v4204_v3 = vadd.f32 %v4029_v45, %v3363_v39  ;;  %11206 = vmatpush3.bf16.msra.mxu1 %v12502_v23  ;;  %v4578_v0 = vld [vmem:[#allocation3 + $0x1c] sm:$0xff]  ;;  %v12506_v16 = vld [vmem:[#allocation6 + $0x1a8] sm:$0xff]  }
 0x238   :  { %v3948_v25 = vpop.f32.mrf.mxu0  ;;  %v4031_v56 = vpop.f32.mrf.mxu1  ;;  %11207 = vmatprep.subr.bf16.mxu1 %v12503_v17  ;;  %v4972_v39 = vor.u32 %v4970_v55, %v4936_v22  ;;  %v16303_v1 = vshll.u32 %v15171_v20, 16  ;;  %v15195_v23 = vpack.c.bf16 %v15068_v50, %v15037_v2  ;;  %v12507_v2 = vld [vmem:[#allocation6 + $0x1e0] sm:$0xff]  }
 0x239   :  { %v4203_v24 = vadd.f32 %v3948_v25, %v15008_v9  ;;  %v4205_v63 = vadd.f32 %v4031_v56, %v3364_v52  ;;  %v4379_v30 = vadd.f32 %v14957_v49, %v4202_v43  ;;  %v15183_v4 = vadd.f32 %v14960_v18, %v4204_v3  ;;  %v4575_v50 = vld [vmem:[#allocation3 + $0x8] sm:$0xff] }
 0x23a   :  { %v4976_v22 = vrot.slane %v16303_v1, 1  ;;  %16418 = vst [vmem:[#allocation24_spill] sm:$0xff] %v15195_v23  ;;  %v4964_v49 = vor.u32 %v16311_v5, %v4928_v19  ;;  %v4968_v18 = vrot.slane %v16299_v53, 1  ;;  %v15210_v43 = vcombine.high %v4575_v50, %v4578_v0  ;;  %v12537_v5 = vld [vmem:[#allocation6 + $0xe0] sm:$0xff]  }
 0x23b   :  { %v4380_v9 = vadd.f32 %v14968_v38, %v4203_v24  ;;  %v15189_v14 = vadd.f32 %v14975_v59, %v4205_v63  ;;  %11208 = vmatpush3.bf16.msra.mxu1 %v12504_v57  ;;  %v15201_v38 = vcombine.high %v4672_v35, %v4672_v35  ;;  %v15205_v59 = vpack.c.bf16 %v15074_v32, %v15041_v12  ;;  %v16420_v32 = vld [vmem:[#allocation56_spill] sm:$0xff] }
 0x23c   :  { %v4977_v13 = vsel %vm1726_vm1, %v4972_v39, %v4976_v22  ;;  %11209 = vmatprep.subr.bf16.mxu1 %v12505_v37  ;;  %v4969_v19 = vsel %vm1726_vm1, %v4964_v49, %v4968_v18  ;;  %v15214_v12 = vpack.c.bf16 %v4379_v30, %v4374_v28  ;;  %v4327_v25 = vsub.s32 4, %v16420_v32  ;;  %v12509_v57 = vld [vmem:[#allocation6 + $0x1a0] sm:$0xff]   ;;  %v4116_v39 = vld [vmem:[#allocation2 + $0x48] sm:$0xff]  ;;  %v12511_v30 = vld [vmem:[#allocation6 + $0x1d8] sm:$0xff]  }
 0x23d   :  { %16419 = vst [vmem:[#allocation18_spill] sm:$0xff] %v15205_v59  ;;  %5369 = vmatprep.mubr.bf16.mxu1 %v4977_v13  ;;  %v5054_v15 = vshll.u32 %v15201_v38, 16  ;;  %v15212_v52 = vpack.c.bf16 %v4380_v9, %v4375_v47  ;;  %v16309_v56 = vshrl.u32 %v15171_v20, 16  ;;  %v15221_v24 = vpack.c.bf16 %v15105_v34, %v15085_v62 }
 0x23e   :  { %v4068_v45 = vpop.f32.mrf.mxu0  ;;  %5370 = vmatmul.mubr.bf16.gmra.mxu1 %v4969_v19  ;;  %v16300_v47 = vshrl.u32 %v15175_v41, 16  ;;  %v16295_v28 = vshll.u32 %v15214_v12, 16  ;;  %v15226_v9 = vcombine.low %v4672_v35, %v4672_v35  ;;  %v4901_v62 = vshll.u32 %v15210_v43, 16 }
 0x23f   :  { %v4161_v17 = vadd.f32 %v4111_v7, %v4068_v45  ;;  %11210 = vmatpush3.bf16.msra.mxu1 %v12506_v16  ;;  %16421 = vst [vmem:[#allocation25_spill] sm:$0xff] %v15221_v24  ;;  %v16297_v37 = vshll.u32 %v15212_v52, 16  ;;  %v5012_v16 = vor.u32 %v16309_v56, %v4976_v22  ;;  %v5056_v45 = vrot.slane %v5054_v15, 1  ;;  %v12512_v22 = vld [vmem:[#allocation6 + $0x198] sm:$0xff]  }
 0x240   :  { %v4070_v3 = vpop.f32.mrf.mxu0  ;;  %11211 = vmatprep.subr.bf16.mxu1 %v12507_v2  ;;  %v5004_v13 = vor.u32 %v16300_v47, %v4968_v18  ;;  %v5008_v2 = vrot.slane %v16295_v28, 1  ;;  %v16298_v35 = vshrl.u32 %v15212_v52, 16  ;;  %v5046_v19 = vshll.u32 %v15226_v9, 16  ;;  %v4121_v18 = vld [vmem:[#allocation2 + $0x70] sm:$0xff] }
 0x241   :  { %4211 = vst.msk [vmem:[#allocation2 + $0x20] sm:$0xff] %vm743_vm2, %v4161_v17  ;;  %v5016_v7 = vrot.slane %v16297_v37, 1  ;;  %v15239_v17 = vrot.slane %v14934_v29, %v4327_v25  ;;  %v15245_v15 = vpack.c.bf16 %v15094_v44, %v15081_v48  ;;  %v15251_v25 = vcombine.low %v4575_v50, %v4578_v0  ;;  %v12516_v0 = vld [vmem:[#allocation6 + $0x190] sm:$0xff]  }
 0x242   :  { %v4071_v63 = vpop.f32.mrf.mxu0  ;;  %v4903_v44 = vrot.slane %v4901_v62, 1  ;;  %v15259_v50 = vpack.c.bf16 %v15151_v6, %v15123_v51  ;;  %v12517_v62 = vld [vmem:[#allocation6 + $0x78] sm:$0xff]   ;;  %v15272_v6 = vpack.c.bf16 %v15189_v14, %v15166_v31  ;;  %v15281_v31 = vpack.c.bf16 %v15183_v4, %v15159_v21 }
 0x243   :  { %v4166_v49 = vadd.f32 %v4116_v39, %v4071_v63  ;;  %11212 = vmatpush3.bf16.msra.mxu1 %v12509_v57  ;;  %v5017_v32 = vsel %vm1726_vm1, %v5012_v16, %v5016_v7  ;;  %v5009_v63 = vsel %vm1726_vm1, %v5004_v13, %v5008_v2  ;;  %v5052_v29 = vor.u32 %v16298_v35, %v5016_v7  ;;  %v12515_v57 = vld [vmem:[#allocation6 + $0x1d0] sm:$0xff]   ;;  %v4126_v13 = vld [vmem:[#allocation2 + $0x98] sm:$0xff] }
 0x244   :  { %v4073_v34 = vpop.f32.mrf.mxu0  ;;  %11213 = vmatprep.subr.bf16.mxu1 %v12511_v30  ;;  %5377 = vmatprep.mubr.bf16.mxu1 %v5017_v32  ;;  %v16296_v16 = vshrl.u32 %v15214_v12, 16  ;;  %v5048_v30 = vrot.slane %v5046_v19, 1  ;;  %v4887_v21 = vshrl.u32 %v15251_v25, 16  ;;  %v4894_v4 = vshll.u32 %v15195_v23, 16 }
 0x245   :  { %4216 = vst.msk [vmem:[#allocation2 + $0x48] sm:$0xff] %vm743_vm2, %v4166_v49  ;;  %v5057_v48 = vsel %vm1726_vm1, %v5052_v29, %v5056_v45  ;;  %v4906_v45 = vshll.u32 %v15205_v59, 16 }
 0x246   :  { %v4076_v3 = vpop.f32.mrf.mxu0  ;;  %5378 = vmatmul.mubr.bf16.gmra.mxu1 %v5009_v63  ;;  %v5044_v51 = vor.u32 %v16296_v16, %v5008_v2  ;;  %v12530_v16 = vld [vmem:[#allocation6 + $0x60] sm:$0xff]  }
 0x247   :  { %v4171_v39 = vadd.f32 %v4121_v18, %v4076_v3  ;;  %5385 = vmatprep.mubr.bf16.mxu1 %v5057_v48  ;;  %11214 = vmatpush3.bf16.msra.mxu1 %v12512_v22  ;;  %v4899_v3 = vshrl.u32 %v15210_v43, 16  ;;  %v4889_v18 = vshll.u32 %v15251_v25, 16  ;;  %v15266_v22 = vpack.c.bf16 %v15145_v10, %v15115_v54  ;;  %v4131_v10 = vld [vmem:[#allocation2 + $0xc0] sm:$0xff] }
 0x248   :  { %v4261_v49 = vld [vmem:[#allocation2 + $0x20] sm:$0xff]  ;;  %v4078_v34 = vpop.f32.mrf.mxu0  ;;  %11215 = vmatprep.subr.bf16.mxu1 %v12515_v57 }
 0x249   :  { %v4338_v28 = vadd.f32 %v15239_v17, %v4261_v49  ;;  %4221 = vst.msk [vmem:[#allocation2 + $0x70] sm:$0xff] %vm743_vm2, %v4171_v39  ;;  %v4904_v39 = vor.u32 %v4903_v44, %v4899_v3  ;;  %v5049_v49 = vsel %vm1726_vm1, %v5044_v51, %v5048_v30  ;;  %v4891_v34 = vrot.slane %v4889_v18, 1  ;;  %v4136_v3 = vld [vmem:[#allocation2 + $0xe8] sm:$0xff] }
 0x24a   :  { %v4079_v7 = vpop.f32.mrf.mxu0 }
 0x24b   :  { %v11088_v19 = vpack.c.bf16 %v4338_v28, %v4338_v28  ;;  %v4176_v32 = vadd.f32 %v4126_v13, %v4079_v7  ;;  %11216 = vmatpush3.bf16.msra.mxu1 %v12516_v0  ;;  %v4908_v28 = vrot.slane %v4906_v45, 1  ;;  %v16312_v7 = vshll.u32 %v15221_v24, 16 }
 0x24c   :  { %v4266_v63 = vld [vmem:[#allocation2 + $0x48] sm:$0xff]  ;;  %v4081_v29 = vpop.f32.mrf.mxu0  ;;  %11254 = vmatprep.subr.bf16.mxu1 %v12517_v62 }
 0x24d   :  { %4546 = vst.msk [vmem:[#allocation3 + $0x10] sm:$0xf] %vm66_vm4, %v11088_v19  ;;  %v4343_v57 = vadd.f32 %v15239_v17, %v4266_v63  ;;  %v4909_v0 = vsel %vm1726_vm1, %v4904_v39, %v4908_v28  ;;  %v4892_v19 = vor.u32 %v4891_v34, %v4887_v21  ;;  %v4946_v63 = vshrl.u32 %v15205_v59, 16 }
 0x24e   :  { %4226 = vst.msk [vmem:[#allocation2 + $0x98] sm:$0xff] %vm743_vm2, %v4176_v32  ;;  %v4084_v54 = vpop.f32.mrf.mxu0  ;;  %5386 = vmatmul.mubr.bf16.gmra.mxu1 %v5049_v49  ;;  %v4952_v29 = vrot.slane %v16312_v7, 1  ;;  %v12521_v49 = vld [vmem:[#allocation6 + $0x70] sm:$0xff]  }
 0x24f   :  { %v11091_v14 = vpack.c.bf16 %v4343_v57, %v4343_v57  ;;  %v4181_v2 = vadd.f32 %v4131_v10, %v4084_v54  ;;  %5426 = vmatprep.mubr.bf16.mxu1 %v4909_v0  ;;  %v4896_v57 = vrot.slane %v4894_v4, 1  ;;  %v12518_v54 = vld [vmem:[#allocation6 + $0x38] sm:$0xff]   ;;  %v16302_v0 = vshll.u32 %v15245_v15, 16 }
 0x250   :  { %v4271_v48 = vld [vmem:[#allocation2 + $0x70] sm:$0xff]  ;;  %v4086_v44 = vpop.f32.mrf.mxu0 }
 0x251   :  { %4549 = vst.msk [vmem:[#allocation3 + $0x24] sm:$0xf] %vm66_vm4, %v11091_v14  ;;  %v4348_v13 = vadd.f32 %v15239_v17, %v4271_v48  ;;  %v4141_v14 = vld [vmem:[#allocation2 + $0x110] sm:$0xff]  ;;  %v4897_v44 = vsel %vm1726_vm1, %v4892_v19, %v4896_v57 }
 0x252   :  { %4231 = vst.msk [vmem:[#allocation2 + $0xc0] sm:$0xff] %vm743_vm2, %v4181_v2  ;;  %v4087_v30 = vpop.f32.mrf.mxu0  ;;  %v4948_v2 = vor.u32 %v4946_v63, %v4908_v28 }
 0x253   :  { %v11094_v62 = vpack.c.bf16 %v4348_v13, %v4348_v13  ;;  %v4186_v18 = vadd.f32 %v4136_v3, %v4087_v30 }
 0x254   :  { %v4089_v51 = vpop.f32.mrf.mxu0  ;;  %v4953_v30 = vsel %vm1726_vm1, %v4948_v2, %v4952_v29  ;;  %v4576_v3 = vld [vmem:[#allocation3 + $0x10] sm:$0xf] }
 0x255   :  { %v4276_v32 = vld [vmem:[#allocation2 + $0x98] sm:$0xff]  ;;  %4552 = vst.msk [vmem:[#allocation3 + $0x38] sm:$0xf] %vm66_vm4, %v11094_v62 }
 0x256   :  { %v4353_v39 = vadd.f32 %v15239_v17, %v4276_v32  ;;  %4236 = vst.msk [vmem:[#allocation2 + $0xe8] sm:$0xff] %vm743_vm2, %v4186_v18  ;;  %v4092_v10 = vpop.f32.mrf.mxu0  ;;  %5427 = vmatmul.mubr.bf16.vlgmr.msra.gmra.mxu1 %v4897_v44  ;;  %v16301_v18 = vshll.u32 %v15259_v50, 16  ;;  %v12522_v32 = vld [vmem:[#allocation6 + $0x30] sm:$0xff]   ;;  %v4938_v44 = vshrl.u32 %v15195_v23, 16 }
 0x257   :  { %v4191_v48 = vadd.f32 %v4141_v14, %v4092_v10  ;;  %11255 = vmatpush3.bf16.msra.mxu1 %v12518_v54  ;;  %5434 = vmatprep.mubr.bf16.mxu1 %v4953_v30  ;;  %v12526_v10 = vld [vmem:[#allocation6 + $0x68] sm:$0xff]  }
 0x258   :  { %v11097_v34 = vpack.c.bf16 %v4353_v39, %v4353_v39  ;;  %v4094_v21 = vpop.f32.mrf.mxu0  ;;  %v15304_v62 = vld [vmem:[#allocation3 + $0x24] sm:$0xf]  ;;  %v4146_v39 = vld [vmem:[#allocation2 + $0x138] sm:$0xff]  ;;  %11256 = vmatprep.subr.bf16.mxu1 %v12521_v49  ;;  %v4992_v30 = vrot.slane %v16301_v18, 1  ;;  %v4673_v18 = vld [vmem:[#allocation3 + $0xd0] sm:$0x11] }
 0x259   :  { %v4281_v13 = vld [vmem:[#allocation2 + $0xc0] sm:$0xff]  ;;  %4241 = vst.msk [vmem:[#allocation2 + $0x110] sm:$0xff] %vm743_vm2, %v4191_v48  ;;  %v15311_v19 = vcombine.low %v4576_v3, %v15304_v62  ;;  %v4986_v48 = vshrl.u32 %v15221_v24, 16  ;;  %v4940_v3 = vor.u32 %v4938_v44, %v4896_v57 }
 0x25a   :  { %4555 = vst.msk [vmem:[#allocation3 + $0x4c] sm:$0xf] %vm66_vm4, %v11097_v34  ;;  %v4358_v28 = vadd.f32 %v15239_v17, %v4281_v13  ;;  %v4095_v51 = vpop.f32.mrf.mxu0  ;;  %v4944_v34 = vrot.slane %v16302_v0, 1 }
 0x25b   :  { %v4196_v2 = vadd.f32 %v4146_v39, %v4095_v51  ;;  %v4913_v54 = vshll.u32 %v15311_v19, 16  ;;  %11257 = vmatpush3.bf16.msra.mxu1 %v12522_v32  ;;  %v4151_v39 = vld [vmem:[#allocation2 + $0x160] sm:$0xff] }
 0x25c   :  { %v11100_v14 = vpack.c.bf16 %v4358_v28, %v4358_v28  ;;  %v4097_v21 = vpop.f32.mrf.mxu0  ;;  %v12527_v28 = vld [vmem:[#allocation6 + $0x28] sm:$0xff]   ;;  %11258 = vmatprep.subr.bf16.mxu1 %v12526_v10  ;;  %v12531_v10 = vld [vmem:[#allocation6 + $0x20] sm:$0xff]  }
 0x25d   :  { %v4286_v13 = vld [vmem:[#allocation2 + $0xe8] sm:$0xff]  ;;  %4246 = vst.msk [vmem:[#allocation2 + $0x138] sm:$0xff] %vm743_vm2, %v4196_v2  ;;  %v4988_v21 = vor.u32 %v4986_v48, %v4952_v29  ;;  %v4915_v47 = vrot.slane %v4913_v54, 1 }
 0x25e   :  { %4558 = vst.msk [vmem:[#allocation3 + $0x60] sm:$0xf] %vm66_vm4, %v11100_v14  ;;  %v4363_v49 = vadd.f32 %v15239_v17, %v4286_v13  ;;  %v4100_v51 = vpop.f32.mrf.mxu0  ;;  %v4945_v14 = vsel %vm1726_vm1, %v4940_v3, %v4944_v34  ;;  %v16306_v13 = vshll.u32 %v15266_v22, 16 }
 0x25f   :  { %v4201_v35 = vadd.f32 %v4151_v39, %v4100_v51  ;;  %5435 = vmatmul.mubr.bf16.gmra.mxu1 %v4945_v14  ;;  %v4993_v57 = vsel %vm1726_vm1, %v4988_v21, %v4992_v30  ;;  %v4156_v51 = vld [vmem:[#allocation2 + $0x188] sm:$0xff]  ;;  %v4911_v39 = vshrl.u32 %v15311_v19, 16  ;;  %v12535_v14 = vld [vmem:[#allocation6 + $0x58] sm:$0xff]  }
 0x260   :  { %v11103_v37 = vpack.c.bf16 %v4363_v49, %v4363_v49  ;;  %v4291_v53 = vld [vmem:[#allocation2 + $0x110] sm:$0xff]  ;;  %v4102_v2 = vpop.f32.mrf.mxu0  ;;  %5442 = vmatprep.mubr.bf16.mxu1 %v4993_v57  ;;  %11259 = vmatpush3.bf16.msra.mxu1 %v12527_v28  ;;  %v16305_v49 = vshll.u32 %v15272_v6, 16  ;;  %v16308_v57 = vshrl.u32 %v15245_v15, 16  ;;  %v15343_v1 = vrot.slane %v16306_v13, 1 }
 0x261   :  { %v15329_v32 = vld [vmem:[#allocation3 + $0x38] ss:$20 sps:$4 sm:$0xff]   ;;  %v4368_v29 = vadd.f32 %v15239_v17, %v4291_v53  ;;  %4251 = vst.msk [vmem:[#allocation2 + $0x160] sm:$0xff] %vm743_vm2, %v4201_v35  ;;  %11260 = vmatprep.subr.bf16.mxu1 %v12530_v16  ;;  %v4916_v35 = vor.u32 %v4915_v47, %v4911_v39  ;;  %v12536_v39 = vld [vmem:[#allocation6 + $0x18] sm:$0xff]  }
 0x262   :  { %4561 = vst.msk [vmem:[#allocation3 + $0x74] sm:$0xf] %vm66_vm4, %v11103_v37  ;;  %v4103_v3 = vpop.f32.mrf.mxu0  ;;  %v16304_v54 = vshll.u32 %v15329_v32, 16  ;;  %v12524_v37 = vld [vmem:[#allocation6 + $0xb8] sm:$0xff]   ;;  %v5032_v47 = vrot.slane %v16305_v49, 1  ;;  %v12539_v49 = vld [vmem:[#allocation6 + $0x50] sm:$0xff]  }
 0x263   :  { %v11106_v21 = vpack.c.bf16 %v4368_v29, %v4368_v29  ;;  %v4206_v2 = vadd.f32 %v4156_v51, %v4103_v3  ;;  %v12528_v29 = vld [vmem:[#allocation6 + $0xf0] sm:$0xff]   ;;  %v4980_v51 = vor.u32 %v16308_v57, %v4944_v34  ;;  %v16422_v34 = vmov 0.0  }
 0x264   :  { %v4296_v53 = vld [vmem:[#allocation2 + $0x138] sm:$0xff]  ;;  %v4105_v0 = vpop.f32.mrf.mxu0  ;;  %v4920_v28 = vrot.slane %v16304_v54, 1  ;;  %11261 = vmatpush3.bf16.msra.mxu1 %v12531_v10  ;;  %v12529_v10 = vld [vmem:[#allocation6 + $0xb0] sm:$0xff]   ;;  %v16314_v56 = vshrl.u32 %v15329_v32, 16 }
 0x265   :  { %4564 = vst.msk [vmem:[#allocation3 + $0x88] sm:$0xf] %vm66_vm4, %v11106_v21  ;;  %v4373_v16 = vadd.f32 %v15239_v17, %v4296_v53  ;;  %v16307_v0 = vshrl.u32 %v15259_v50, 16  ;;  %11262 = vmatprep.subr.bf16.mxu1 %v12535_v14  ;;  %v6707_v21 = vrot.slane %v4930_v8, 1  ;;  %v16317_v8 = vshll.u32 %v15281_v31, 16 }
 0x266   :  { %4256 = vst.msk [vmem:[#allocation2 + $0x188] sm:$0xff] %vm743_vm2, %v4206_v2  ;;  %v4921_v3 = vsel %vm1726_vm1, %v4916_v35, %v4920_v28  ;;  %v6708_v2 = vrot.slane %v4882_v60, 2  ;;  %v15361_v35 = vcombine.high %v4673_v18, %v4673_v18  ;;  %v4985_v60 = vsel %vm1726_vm1, %v4980_v51, %v15343_v1 }
 0x267   :  { %v11109_v53 = vpack.c.bf16 %v4373_v16, %v4373_v16  ;;  %11857 = vmatmul.mubr.msk.bf16.vlgmr.msra.gmra.mxu0 %vm743_vm2, %v4921_v3  ;;  %v5028_v54 = vor.u32 %v16307_v0, %v4992_v30  ;;  %v15370_v16 = vcombine.low %v4673_v18, %v4673_v18  ;;  %5443 = vmatmul.mubr.bf16.gmra.mxu1 %v4985_v60  ;;  %v6731_v51 = vrot.slane %v4946_v63, 1 }
 0x268   :  { %v4301_v13 = vld [vmem:[#allocation2 + $0x160] sm:$0xff]  ;;  %11301 = vmatpush3.bf16.msra.mxu0 %v12524_v37  ;;  %11860 = vmatprep.mubr.msk.bf16.mxu0 %vm12930_vm5, %v16422_v34  ;;  %v15372_v3 = vor.u32 %v6708_v2, %v6707_v21  ;;  %v5070_v57 = vshll.u32 %v15361_v35, 16  ;;  %v12542_v21 = vld [vmem:[#allocation6 + $0x10] sm:$0xff]   ;;  %v6732_v60 = vrot.slane %v4906_v45, 2  ;;  %v4956_v63 = vor.u32 %v16314_v56, %v4920_v28 }
 0x269   :  { %v15365_v14 = vld [vmem:[#allocation3 + $0x60] ss:$20 sps:$4 sm:$0xff]   ;;  %4567 = vst.msk [vmem:[#allocation3 + $0x9c] sm:$0xf] %vm66_vm4, %v11109_v53  ;;  %v4378_v30 = vadd.f32 %v15239_v17, %v4301_v13  ;;  %11302 = vmatprep.subr.bf16.mxu0 %v12528_v29  ;;  %v5033_v0 = vsel %vm1726_vm1, %v5028_v54, %v5032_v47  ;;  %11263 = vmatpush3.bf16.msra.mxu1 %v12536_v39  ;;  %v16319_v13 = vshrl.u32 %v15272_v6, 16  ;;  %v5062_v54 = vshll.u32 %v15370_v16, 16 }
 0x26a   :  { %v12532_v37 = vld [vmem:[#allocation6 + $0xe8] sm:$0xff]   ;;  %v16313_v18 = vshll.u32 %v15365_v14, 16  ;;  %5450 = vmatprep.mubr.bf16.mxu1 %v5033_v0  ;;  %11264 = vmatprep.subr.bf16.mxu1 %v12539_v49  ;;  %v5018_v39 = vshrl.u32 %v15266_v22, 16  ;;  %v5024_v49 = vrot.slane %v16317_v8, 1  ;;  %v5072_v7 = vrot.slane %v5070_v57, 1  ;;  %v12552_v57 = vld [vmem:[#allocation6 + $0x40] sm:$0xff]  }
 0x26b   :  { %v11112_v2 = vpack.c.bf16 %v4378_v30, %v4378_v30  ;;  %v12533_v53 = vld [vmem:[#allocation6 + $0xa8] sm:$0xff]   ;;  %v5068_v45 = vor.u32 %v16319_v13, %v5032_v47  ;;  %v15397_v28 = vor.u32 %v6732_v60, %v6731_v51  ;;  %v6752_v47 = vrot.slane %v4934_v26, 2 }
 0x26c   :  { %v12545_v29 = vld [vmem:[#allocation6 + $0x48] sm:$0xff]   ;;  %v4960_v0 = vrot.slane %v16313_v18, 1  ;;  %11303 = vmatpush3.bf16.msra.mxu0 %v12529_v10  ;;  %v5020_v10 = vor.u32 %v5018_v39, %v15343_v1  ;;  %v5064_v51 = vrot.slane %v5062_v54, 1  ;;  %v16316_v60 = vshrl.u32 %v15365_v14, 16 }
 0x26d   :  { %v4306_v42 = vld [vmem:[#allocation2 + $0x188] sm:$0xff]  ;;  %4570 = vst.msk [vmem:[#allocation3 + $0xb0] sm:$0xf] %vm66_vm4, %v11112_v2  ;;  %11304 = vmatprep.subr.bf16.mxu0 %v12532_v37  ;;  %11265 = vmatpush3.bf16.msra.mxu1 %v12542_v21  ;;  %v12547_v56 = vld [vmem:[#allocation6 + $0x8] sm:$0xff]   ;;  %v6751_v2 = vrot.slane %v4970_v55, 1  ;;  %v12538_v37 = vld [vmem:[#allocation6 + $0xa0] sm:$0xff]  }
 0x26e   :  { %v4383_v30 = vadd.f32 %v15239_v17, %v4306_v42  ;;  %v4961_v18 = vsel %vm1726_vm1, %v4956_v63, %v4960_v0  ;;  %v6719_v17 = vrot.slane %v4938_v44, 1  ;;  %11266 = vmatprep.subr.bf16.mxu1 %v12545_v29  ;;  %v5025_v55 = vsel %vm1726_vm1, %v5020_v10, %v5024_v49  ;;  %v12553_v8 = vld [vmem:[#allocation6 + $0x88] sm:$0xff]  }
 0x26f   :  { %11861 = vmatmul.mubr.msk.bf16.gmra.mxu0 %vm743_vm2, %v4961_v18  ;;  %5451 = vmatmul.mubr.bf16.gmra.mxu1 %v5025_v55  ;;  %v5073_v44 = vsel %vm1726_vm1, %v5068_v45, %v5072_v7  ;;  %v12543_v18 = vld [vmem:[#allocation6 + $0xd8] sm:$0xff]   ;;  %v16318_v21 = vshrl.u32 %v15281_v31, 16  ;;  %v6753_v26 = vor.u32 %v6752_v47, %v6751_v2  ;;  %v6720_v29 = vrot.slane %v4894_v4, 2 }
 0x270   :  { %v11115_v42 = vpack.c.bf16 %v4383_v30, %v4383_v30  ;;  %11864 = vmatprep.mubr.msk.bf16.mxu0 %vm12930_vm5, %v16422_v34  ;;  %11305 = vmatpush3.bf16.msra.mxu0 %v12533_v53  ;;  %v15412_v1 = vld [vmem:[#allocation3 + $0x88] ss:$20 sps:$4 sm:$0xff]   ;;  %v6695_v53 = vrot.slane %v4922_v11, 1  ;;  %v6759_v7 = vrot.slane %v4986_v48, 1  ;;  %v6696_v4 = vrot.slane %v4870_v36, 2  ;;  %v12544_v48 = vld [vmem:[#allocation6 + $0x98] sm:$0xff]  }
 0x271   :  { %11306 = vmatprep.subr.bf16.mxu0 %v12537_v5  ;;  %v16315_v54 = vshll.u32 %v15412_v1, 16  ;;  %5458 = vmatprep.mubr.bf16.mxu1 %v5073_v44  ;;  %v12554_v5 = vld [vmem:[#allocation6] sm:$0xff]   ;;  %v5060_v63 = vor.u32 %v16318_v21, %v5024_v49  ;;  %v15432_v11 = vsel %vm6686_vm6, %v15372_v3, %v6753_v26  ;;  %v15434_v30 = vor.u32 %v6720_v29, %v6719_v17 }
 0x272   :  { %4573 = vst.msk [vmem:[#allocation3 + $0xc4] sm:$0xf] %vm66_vm4, %v11115_v42  ;;  %11267 = vmatpush3.bf16.msra.mxu1 %v12547_v56  ;;  %v4996_v56 = vor.u32 %v16316_v60, %v4960_v0  ;;  %v16424_v49 = vshll.u32 %v15221_v24, 16  ;;  %v16425_v2 = vshrl.u32 %v15133_v40, 16  ;;  %v12546_v42 = vld [vmem:[#allocation6 + $0xd0] sm:$0xff]   ;;  %v16427_v47 = vshrl.u32 %v15171_v20, 16 }
 0x273   :  { %11268 = vmatprep.subr.bf16.mxu1 %v12552_v57  ;;  %16423 = vst [vmem:[#allocation21_spill] sm:$0xff] %v15434_v30  ;;  %v5000_v45 = vrot.slane %v16315_v54, 1  ;;  %v16426_v57 = vshll.u32 %v15133_v40, 16  ;;  %v16428_v0 = vshll.u32 %v15171_v20, 16  ;;  %v16438_v21 = vshll.u32 %v15212_v52, 16 }
 0x274   :  { %11307 = vmatpush3.bf16.msra.mxu0 %v12538_v37  ;;  %v6760_v10 = vrot.slane %v16424_v49, 2  ;;  %v6747_v36 = vrot.slane %v16425_v2, 1  ;;  %v6771_v55 = vrot.slane %v16427_v47, 1  ;;  %v16429_v49 = vshrl.u32 %v15245_v15, 16 }
 0x275   :  { %11308 = vmatprep.subr.bf16.mxu0 %v12543_v18  ;;  %v6748_v17 = vrot.slane %v16426_v57, 2  ;;  %v6772_v44 = vrot.slane %v16428_v0, 2  ;;  %v5001_v37 = vsel %vm1726_vm1, %v4996_v56, %v5000_v45  ;;  %v15455_v18 = vor.u32 %v6696_v4, %v6695_v53 }
 0x276   :  { %11269 = vmatpush3.bf16.msra.mxu1 %v12554_v5  ;;  %v6761_v29 = vor.u32 %v6760_v10, %v6759_v7  ;;  %v6755_v54 = vrot.slane %v16429_v49, 1  ;;  %v16430_v47 = vshll.u32 %v15245_v15, 16  ;;  %v12548_v5 = vld [vmem:[#allocation6 + $0x90] sm:$0xff]   ;;  %v5065_v7 = vsel %vm1726_vm1, %v5060_v63, %v5064_v51 }
 0x277   :  { %11865 = vmatmul.mubr.msk.bf16.gmra.mxu0 %vm743_vm2, %v5001_v37  ;;  %11876 = vmatprep.subr.bf16.mxu1 %v16422_v34  ;;  %v6749_v2 = vor.u32 %v6748_v17, %v6747_v36  ;;  %v6773_v57 = vor.u32 %v6772_v44, %v6771_v55  ;;  %v16432_v53 = vshrl.u32 %v15259_v50, 16  ;;  %v12551_v36 = vld [vmem:[#allocation6 + $0xc8] sm:$0xff]   ;;  %v16433_v51 = vshll.u32 %v15259_v50, 16  ;;  %v15481_v37 = vld [vmem:[#allocation3 + $0xd8] ss:$0 sps:$4 sm:$0x11]  }
 0x278   :  { %v6756_v60 = vrot.slane %v16430_v47, 2  ;;  %11868 = vmatprep.mubr.msk.bf16.mxu0 %vm12930_vm5, %v16422_v34  ;;  %11309 = vmatpush3.bf16.msra.mxu0 %v12544_v48  ;;  %v15466_v10 = vsel %vm6686_vm6, %v15397_v28, %v6761_v29  ;;  %v16320_v0 = vshrl.u32 %v15412_v1, 16  ;;  %v6792_v13 = vrot.slane %v16438_v21, 2 }
 0x279   :  { %v15461_v56 = vld [vmem:[#allocation3 + $0xb0] ss:$20 sps:$4 sm:$0xff]   ;;  %16431 = vst [vmem:[#allocation26_spill] sm:$0xff] %v15466_v10  ;;  %v6779_v4 = vrot.slane %v16432_v53, 1  ;;  %11310 = vmatprep.subr.bf16.mxu0 %v12546_v42  ;;  %5459 = vmatmul.mubr.bf16.gmra.mxu1 %v5065_v7  ;;  %v15472_v17 = vsel %vm6686_vm6, %v15455_v18, %v6749_v2  ;;  %v15475_v55 = vsel %vm6686_vm6, %v6753_v26, %v6773_v57  ;;  %v6780_v63 = vrot.slane %v16433_v51, 2 }
 0x27a   :  { %v6757_v48 = vor.u32 %v6756_v60, %v6755_v54  ;;  %v16321_v44 = vshll.u32 %v15461_v56, 16  ;;  %5806 = vmatprep.mubr.bf16.mxu1 %v15054_v33  ;;  %v16434_v42 = vshrl.u32 %v15175_v41, 16  ;;  %v16436_v60 = vshll.u32 %v15175_v41, 16 }
 0x27b   :  { %v6781_v26 = vor.u32 %v6780_v63, %v6779_v4  ;;  %v16437_v7 = vshrl.u32 %v15212_v52, 16  ;;  %v5036_v51 = vor.u32 %v16320_v0, %v5000_v45  ;;  %v12555_v4 = vld [vmem:[#allocation6 + $0xc0] sm:$0xff]   ;;  %v5995_v63 = vld [vmem:[#allocation3 + $0x10] sm:$0xe]  ;;  %v6775_v45 = vrot.slane %v5018_v39, 1 }
 0x27c   :  { %v6767_v49 = vrot.slane %v16434_v42, 1  ;;  %v15488_v47 = vsel %vm6686_vm6, %v15434_v30, %v6757_v48  ;;  %v6768_v54 = vrot.slane %v16436_v60, 2  ;;  %v5040_v33 = vrot.slane %v16321_v44, 1  ;;  %11311 = vmatpush3.bf16.msra.mxu0 %v12548_v5 }
 0x27d   :  { %16435 = vst [vmem:[#allocation15_spill] sm:$0xff] %v15488_v47  ;;  %v6791_v53 = vrot.slane %v16437_v7, 1  ;;  %v5078_v42 = vshll.u32 %v15481_v37, 16  ;;  %11312 = vmatprep.subr.bf16.mxu0 %v12551_v36  ;;  %v15502_v60 = vsel %vm6686_vm6, %v6761_v29, %v6781_v26  ;;  %v16439_v0 = vshll.u32 %v15266_v22, 16  ;;  %v12557_v47 = vld [vmem:[#allocation6 + $0x108] sm:$0xff]  }
 0x27e   :  { %v6769_v7 = vor.u32 %v6768_v54, %v6767_v49  ;;  %v5041_v5 = vsel %vm1726_vm1, %v5036_v51, %v5040_v33  ;;  %v15510_v10 = vcombine.low %v5995_v63, %v15304_v62  ;;  %v16441_v36 = vshrl.u32 %v15272_v6, 16  ;;  %v12558_v63 = vld [vmem:[#allocation6 + $0x298] sm:$0xff]  }
 0x27f   :  { %v6776_v44 = vrot.slane %v16439_v0, 2  ;;  %v15512_v21 = vor.u32 %v6792_v13, %v6791_v53  ;;  %11869 = vmatmul.mubr.msk.bf16.gmra.mxu0 %vm743_vm2, %v5041_v5  ;;  %v16442_v49 = vshll.u32 %v15272_v6, 16  ;;  %v16443_v54 = vshrl.u32 %v15214_v12, 16  ;;  %v12556_v13 = vld [vmem:[#allocation6 + $0x80] sm:$0xff]  }
 0x280   :  { %v6799_v30 = vrot.slane %v16441_v36, 1  ;;  %v15518_v29 = vsel %vm6686_vm6, %v6749_v2, %v6769_v7  ;;  %11872 = vmatprep.mubr.msk.bf16.mxu0 %vm12930_vm5, %v16422_v34  ;;  %v5074_v62 = vshrl.u32 %v15461_v56, 16  ;;  %11313 = vmatpush3.bf16.msra.mxu0 %v12553_v8  ;;  %v16444_v2 = vshll.u32 %v15214_v12, 16 }
 0x281   :  { %16440 = vst [vmem:[#allocation27_spill] sm:$0xff] %v15512_v21  ;;  %v6777_v39 = vor.u32 %v6776_v44, %v6775_v45  ;;  %v6800_v0 = vrot.slane %v16442_v49, 2  ;;  %v6787_v51 = vrot.slane %v16443_v54, 1  ;;  %v15529_v53 = vsel %vm6686_vm6, %v6773_v57, %v15512_v21  ;;  %11314 = vmatprep.subr.bf16.mxu0 %v12555_v4  ;;  %5807 = vmatmul.mubr.bf16.vlgmr.msra.gmra.mxu1 %v15052_v58  ;;  %v12564_v4 = vld [vmem:[#allocation6 + $0x100] sm:$0xff]  }
 0x282   :  { %v6788_v44 = vrot.slane %v16444_v2, 2  ;;  %v16446_v36 = vshrl.u32 %v15281_v31, 16  ;;  %v16447_v49 = vshll.u32 %v15281_v31, 16  ;;  %v5076_v57 = vor.u32 %v5074_v62, %v5040_v33  ;;  %11877 = vmatpush3.bf16.msra.mxu1 %v12557_v47  ;;  %5814 = vmatprep.mubr.bf16.mxu1 %v15090_v46 }
 0x283   :  { %v15535_v45 = vsel %vm6686_vm6, %v6757_v48, %v6777_v39  ;;  %v15537_v5 = vor.u32 %v6800_v0, %v6799_v30  ;;  %v5080_v21 = vrot.slane %v5078_v42, 1  ;;  %v16448_v58 = vshrl.u32 %v15329_v32, 16  ;;  %11878 = vmatprep.subr.bf16.mxu1 %v16422_v34  ;;  %v12575_v30 = vld [vmem:[#allocation6 + $0x318] sm:$0xff]  }
 0x284   :  { %v6795_v8 = vrot.slane %v16446_v36, 1  ;;  %v6796_v54 = vrot.slane %v16447_v49, 2  ;;  %v15544_v2 = vor.u32 %v6788_v44, %v6787_v51  ;;  %v6736_v33 = vshrl.u32 %v15510_v10, 16  ;;  %11315 = vmatpush3.bf16.msra.mxu0 %v12556_v13 }
 0x285   :  { %16445 = vst [vmem:[#allocation16_spill] sm:$0xff] %v15537_v5  ;;  %v6743_v48 = vrot.slane %v16448_v58, 1  ;;  %v15551_v0 = vsel %vm6686_vm6, %v6781_v26, %v15537_v5  ;;  %v6739_v42 = vshll.u32 %v15510_v10, 16  ;;  %11353 = vmatprep.subr.bf16.mxu0 %v12558_v63  ;;  %v16450_v26 = vshll.u32 %v15329_v32, 16 }
 0x286   :  { %v15553_v36 = vor.u32 %v6796_v54, %v6795_v8  ;;  %v15558_v47 = vsel %vm6686_vm6, %v6769_v7, %v15544_v2  ;;  %v6738_v44 = vrot.slane %v6736_v33, 1  ;;  %v5081_v8 = vsel %vm1726_vm1, %v5076_v57, %v5080_v21  ;;  %11879 = vmatpush3.bf16.msra.mxu1 %v12564_v4 }
 0x287   :  { %v6744_v49 = vrot.slane %v16450_v26, 2  ;;  %v6741_v54 = vrot.slane %v6739_v42, 2  ;;  %v16451_v13 = vshrl.u32 %v15365_v14, 16  ;;  %11873 = vmatmul.mubr.msk.bf16.gmra.mxu0 %vm743_vm2, %v5081_v8  ;;  %11399 = vmatprep.subr.bf16.mxu1 %v12575_v30  ;;  %v16452_v63 = vshll.u32 %v15365_v14, 16  ;;  %v12559_v8 = vld [vmem:[#allocation6 + $0x258] sm:$0xff]  }
 0x288   :  { %16449 = vst [vmem:[#allocation28_spill] sm:$0xff] %v15553_v36  ;;  %v15563_v51 = vsel %vm6686_vm6, %v6777_v39, %v15553_v36  ;;  %5879 = vmatprep.mubr.bf16.mxu0 %v15210_v43  ;;  %v16453_v33 = vshrl.u32 %v15412_v1, 16  ;;  %v12664_v36 = vld [vmem:[#allocation3 + $0xd8] ss:$0 sps:$4 sm:$0x33]   ;;  %v16454_v57 = vshll.u32 %v15412_v1, 16 }
 0x289   :  { %v6763_v58 = vrot.slane %v16451_v13, 1  ;;  %v6745_v7 = vor.u32 %v6744_v49, %v6743_v48  ;;  %v6764_v5 = vrot.slane %v16452_v63, 2  ;;  %v6742_v39 = vor.u32 %v6741_v54, %v6738_v44  ;;  %5815 = vmatmul.mubr.bf16.gmra.mxu1 %v15088_v27  ;;  %v12560_v13 = vld [vmem:[#allocation6 + $0x290] sm:$0xff]  }
 0x28a   :  { %v6783_v26 = vrot.slane %v16453_v33, 1  ;;  %v6784_v4 = vrot.slane %v16454_v57, 2  ;;  %5822 = vmatprep.mubr.bf16.mxu1 %v15131_v61  ;;  %v6803_v30 = vrot.slane %v5074_v62, 1  ;;  %v16455_v44 = vshll.u32 %v15461_v56, 16 }
 0x28b   :  { %v6765_v21 = vor.u32 %v6764_v5, %v6763_v58  ;;  %v15581_v48 = vsel %vm6686_vm6, %v6742_v39, %v6745_v7  ;;  %v6844_v54 = vshrl.u32 %v12664_v36, 16  ;;  %v6847_v63 = vshll.u32 %v12664_v36, 16  ;;  %v12561_v39 = vld [vmem:[#allocation6 + $0x250] sm:$0xff]  }
 0x28c   :  { %v6785_v43 = vor.u32 %v6784_v4, %v6783_v26  ;;  %v6804_v49 = vrot.slane %v16455_v44, 2  ;;  %v12562_v26 = vld [vmem:[#allocation6 + $0x288] sm:$0xff]   ;;  %v12566_v4 = vld [vmem:[#allocation6 + $0x240] sm:$0xff]   ;;  %v12569_v44 = vld [vmem:[#allocation6 + $0x270] sm:$0xff]  }
 0x28d   :  { %v15584_v42 = vsel %vm6686_vm6, %v6745_v7, %v6765_v21  ;;  %v6846_v33 = vrot.slane %v6844_v54, 1  ;;  %v6849_v7 = vrot.slane %v6847_v63, 2  ;;  %v12572_v54 = vld [vmem:[#allocation6 + $0x228] sm:$0xff]   ;;  %v12576_v63 = vld [vmem:[#allocation6 + $0x2d8] sm:$0xff]  }
 0x28e   :  { %v15589_v5 = vsel %vm6686_vm6, %v6765_v21, %v6785_v43  ;;  %v6805_v58 = vor.u32 %v6804_v49, %v6803_v30  ;;  %v12565_v21 = vld [vmem:[#allocation6 + $0x280] sm:$0xff]   ;;  %v12567_v30 = vld [vmem:[#allocation6 + $0x278] sm:$0xff]   ;;  %v12570_v49 = vld [vmem:[#allocation6 + $0x230] sm:$0xff]  }
 0x28f   :  { %5880 = vmatmul.mubr.bf16.vlgmr.msra.gmra.mxu0 %v15251_v25  ;;  %v6850_v57 = vor.u32 %v6849_v7, %v6846_v33  ;;  %v12563_v25 = vld [vmem:[#allocation6 + $0x248] sm:$0xff]   ;;  %v12577_v33 = vld [vmem:[#allocation6 + $0x310] sm:$0xff]   ;;  %v12574_v7 = vld [vmem:[#allocation6 + $0x220] sm:$0xff]  }
 0x290   :  { %v15593_v62 = vsel %vm6686_vm6, %v6785_v43, %v6805_v58  ;;  %5887 = vmatprep.mubr.bf16.mxu0 %v15205_v59  ;;  %11354 = vmatpush3.bf16.msra.mxu0 %v12559_v8  ;;  %v12568_v43 = vld [vmem:[#allocation6 + $0x238] sm:$0xff]   ;;  %v12571_v8 = vld [vmem:[#allocation6 + $0x268] sm:$0xff]  }
 0x291   :  { %11355 = vmatprep.subr.bf16.mxu0 %v12560_v13  ;;  %5823 = vmatmul.mubr.bf16.gmra.mxu1 %v15133_v40  ;;  %v15599_v36 = vsel %vm6686_vm6, %v6805_v58, %v6850_v57  ;;  %v12573_v13 = vld [vmem:[#allocation6 + $0x260] sm:$0xff]   ;;  %v5993_v58 = vld [vmem:[#allocation3] sm:$0xee]  ;;  %v12578_v57 = vld [vmem:[#allocation6 + $0x2d0] sm:$0xff]  }
 0x292   :  { %5830 = vmatprep.mubr.bf16.mxu1 %v15171_v20  ;;  %16456 = vst [vmem:[#allocation17_spill] sm:$0xff] %v15599_v36  ;;  %v6113_v36 = vrot.slane %v15214_v12, 1 }
 0x294   :  { %11356 = vmatpush3.bf16.msra.mxu0 %v12561_v39  ;;  %v15612_v39 = vld [vmem:[#allocation3 + $0x14] sm:$0xff] }
 0x295   :  { %11357 = vmatprep.subr.bf16.mxu0 %v12562_v26  ;;  %v15615_v26 = vcombine.high %v5993_v58, %v15612_v39 }
 0x297   :  { %5888 = vmatmul.mubr.bf16.gmra.mxu0 %v15195_v23 }
 0x298   :  { %5895 = vmatprep.mubr.bf16.mxu0 %v15221_v24  ;;  %11358 = vmatpush3.bf16.msra.mxu0 %v12563_v25  ;;  %v6082_v25 = vrot.slane %v15090_v46, 1 }
 0x299   :  { %11359 = vmatprep.subr.bf16.mxu0 %v12565_v21  ;;  %5831 = vmatmul.mubr.bf16.gmra.mxu1 %v15175_v41  ;;  %v12580_v21 = vld [vmem:[#allocation6 + $0x308] sm:$0xff]  }
 0x29a   :  { %5838 = vmatprep.mubr.bf16.mxu1 %v15212_v52 }
 0x29c   :  { %11360 = vmatpush3.bf16.msra.mxu0 %v12566_v4  ;;  %v6081_v4 = vrot.slane %v15615_v26, 1 }
 0x29d   :  { %11361 = vmatprep.subr.bf16.mxu0 %v12567_v30  ;;  %v12581_v30 = vld [vmem:[#allocation6 + $0x2c8] sm:$0xff]  }
 0x29f   :  { %5896 = vmatmul.mubr.bf16.gmra.mxu0 %v15245_v15 }
 0x2a0   :  { %5903 = vmatprep.mubr.bf16.mxu0 %v15259_v50  ;;  %11362 = vmatpush3.bf16.msra.mxu0 %v12568_v43  ;;  %v12582_v43 = vld [vmem:[#allocation6 + $0x300] sm:$0xff]  }
 0x2a1   :  { %11363 = vmatprep.subr.bf16.mxu0 %v12569_v44  ;;  %5839 = vmatmul.mubr.bf16.gmra.mxu1 %v15214_v12  ;;  %v15627_v44 = vcombine.low %v5993_v58, %v15612_v39 }
 0x2a2   :  { %11880 = vmatprep.mubr.msk.bf16.mxu1 %vm12930_vm5, %v16422_v34 }
 0x2a4   :  { %11364 = vmatpush3.bf16.msra.mxu0 %v12570_v49  ;;  %v6079_v49 = vrot.slane %v15088_v27, 1 }
 0x2a5   :  { %11365 = vmatprep.subr.bf16.mxu0 %v12571_v8  ;;  %v12583_v8 = vld [vmem:[#allocation6 + $0x2c0] sm:$0xff]  }
 0x2a7   :  { %5904 = vmatmul.mubr.bf16.gmra.mxu0 %v15266_v22 }
 0x2a8   :  { %5911 = vmatprep.mubr.bf16.mxu0 %v15272_v6  ;;  %11366 = vmatpush3.bf16.msra.mxu0 %v12572_v54  ;;  %v6095_v54 = vrot.slane %v15131_v61, 1 }
 0x2a9   :  { %11367 = vmatprep.subr.bf16.mxu0 %v12573_v13  ;;  %11881 = vmatmul.mubr.msk.bf16.vlgmr.msra.gmra.mxu1 %vm743_vm2, %v15311_v19  ;;  %v6083_v19 = vsel %vm3539_vm3, %v6081_v4, %v6082_v25  ;;  %v12584_v13 = vld [vmem:[#allocation6 + $0x2f8] sm:$0xff]   ;;  %v12588_v4 = vld [vmem:[#allocation6 + $0x320] sm:$0xff]  }
 0x2aa   :  { %11400 = vmatpush3.bf16.msra.mxu1 %v12576_v63  ;;  %11884 = vmatprep.mubr.msk.bf16.mxu1 %vm12930_vm5, %v16422_v34  ;;  %v6078_v63 = vrot.slane %v15627_v44, 1 }
 0x2ab   :  { %11401 = vmatprep.subr.bf16.mxu1 %v12577_v33  ;;  %v12579_v33 = vld [vmem:[#allocation6 + $0x328] sm:$0xff]  }
 0x2ac   :  { %11368 = vmatpush3.bf16.msra.mxu0 %v12574_v7  ;;  %v6080_v58 = vsel %vm3539_vm3, %v6078_v63, %v6079_v49  ;;  %v12585_v7 = vld [vmem:[#allocation6 + $0x2b8] sm:$0xff]   ;;  %v12590_v63 = vld [vmem:[#allocation6 + $0x2a8] sm:$0xff]  }
 0x2ad   :  { %11900 = vmatprep.subr.bf16.mxu0 %v16422_v34 }
 0x2ae   :  { %11402 = vmatpush3.bf16.msra.mxu1 %v12578_v57  ;;  %v6096_v57 = vsel %vm3539_vm3, %v6082_v25, %v6095_v54  ;;  %v6105_v25 = vrot.slane %v15171_v20, 1 }
 0x2af   :  { %5912 = vmatmul.mubr.bf16.gmra.mxu0 %v15281_v31  ;;  %11403 = vmatprep.subr.bf16.mxu1 %v12580_v21  ;;  %v12586_v21 = vld [vmem:[#allocation6 + $0x2f0] sm:$0xff]  }
 0x2b0   :  { %6404 = vmatprep.mubr.bf16.mxu0 %v6083_v19  ;;  %v6093_v19 = vrot.slane %v15133_v40, 1 }
 0x2b1   :  { %11885 = vmatmul.mubr.msk.bf16.gmra.mxu1 %vm743_vm2, %v15329_v32 }
 0x2b2   :  { %11404 = vmatpush3.bf16.msra.mxu1 %v12581_v30  ;;  %11888 = vmatprep.mubr.msk.bf16.mxu1 %vm12930_vm5, %v16422_v34  ;;  %v12598_v30 = vld [vmem:[#allocation6 + $0x428] sm:$0xff]  }
 0x2b3   :  { %11405 = vmatprep.subr.bf16.mxu1 %v12582_v43  ;;  %v12587_v43 = vld [vmem:[#allocation6 + $0x2b0] sm:$0xff]  }
 0x2b6   :  { %11406 = vmatpush3.bf16.msra.mxu1 %v12583_v8  ;;  %v12589_v8 = vld [vmem:[#allocation6 + $0x2e8] sm:$0xff]  }
 0x2b7   :  { %6405 = vmatmul.mubr.bf16.vlgmr.msra.gmra.mxu0 %v6080_v58  ;;  %11407 = vmatprep.subr.bf16.mxu1 %v12584_v13  ;;  %v6094_v13 = vsel %vm3539_vm3, %v6079_v49, %v6093_v19  ;;  %v12591_v58 = vld [vmem:[#allocation6 + $0x2e0] sm:$0xff]  }
 0x2b8   :  { %6412 = vmatprep.mubr.bf16.mxu0 %v6096_v57  ;;  %11901 = vmatpush3.bf16.msra.mxu0 %v12579_v33  ;;  %v6106_v33 = vsel %vm3539_vm3, %v6095_v54, %v6105_v25  ;;  %v15649_v57 = vld [vmem:[#allocation3 + $0x1c] sm:$0xff]  ;;  %v12592_v49 = vld [vmem:[#allocation6 + $0x2a0] sm:$0xff]   ;;  %v6115_v54 = vrot.slane %v15212_v52, 1 }
 0x2b9   :  { %11889 = vmatmul.mubr.msk.bf16.gmra.mxu1 %vm743_vm2, %v15365_v14  ;;  %11902 = vmatprep.subr.bf16.mxu0 %v16422_v34 }
 0x2ba   :  { %11408 = vmatpush3.bf16.msra.mxu1 %v12585_v7  ;;  %11892 = vmatprep.mubr.msk.bf16.mxu1 %vm12930_vm5, %v16422_v34  ;;  %v5994_v7 = vld [vmem:[#allocation3 + $0x8] sm:$0xee] }
 0x2bb   :  { %11409 = vmatprep.subr.bf16.mxu1 %v12586_v21  ;;  %v15652_v21 = vcombine.high %v5994_v7, %v15649_v57 }
 0x2bc   :  { %11903 = vmatpush3.bf16.msra.mxu0 %v12588_v4  ;;  %v6103_v4 = vrot.slane %v15175_v41, 1 }
 0x2bd   :  { %11498 = vmatprep.subr.bf16.mxu0 %v12598_v30  ;;  %v12593_v30 = vld [vmem:[#allocation6 + $0x3a8] sm:$0xff]  }
 0x2be   :  { %11410 = vmatpush3.bf16.msra.mxu1 %v12587_v43  ;;  %v6087_v43 = vrot.slane %v15652_v21, 1 }
 0x2bf   :  { %6413 = vmatmul.mubr.bf16.gmra.mxu0 %v6094_v13  ;;  %11411 = vmatprep.subr.bf16.mxu1 %v12589_v8  ;;  %v6088_v8 = vrot.slane %v15205_v59, 1  ;;  %v6104_v13 = vsel %vm3539_vm3, %v6093_v19, %v6103_v4  ;;  %v6125_v59 = vrot.slane %v15201_v38, 1  ;;  %v6123_v38 = vrot.slane %v15226_v9, 1 }
 0x2c0   :  { %6420 = vmatprep.mubr.bf16.mxu0 %v6106_v33  ;;  %v6116_v33 = vsel %vm3539_vm3, %v6105_v25, %v6115_v54  ;;  %v6099_v25 = vrot.slane %v15221_v24, 1  ;;  %v12600_v24 = vld [vmem:[#allocation6 + $0x398] sm:$0xff]  }
 0x2c1   :  { %11893 = vmatmul.mubr.msk.bf16.gmra.mxu1 %vm743_vm2, %v15412_v1 }
 0x2c2   :  { %11412 = vmatpush3.bf16.msra.mxu1 %v12590_v63  ;;  %11896 = vmatprep.mubr.msk.bf16.mxu1 %vm12930_vm5, %v16422_v34  ;;  %v15663_v63 = vcombine.low %v5994_v7, %v15649_v57  ;;  %v12594_v7 = vld [vmem:[#allocation6 + $0x368] sm:$0xff]  }
 0x2c3   :  { %11413 = vmatprep.subr.bf16.mxu1 %v12591_v58  ;;  %v6089_v58 = vsel %vm3539_vm3, %v6087_v43, %v6088_v8 }
 0x2c4   :  { %v6084_v19 = vrot.slane %v15663_v63, 1 }
 0x2c6   :  { %11414 = vmatpush3.bf16.msra.mxu1 %v12592_v49  ;;  %v6085_v49 = vrot.slane %v15195_v23, 1  ;;  %v12597_v23 = vld [vmem:[#allocation6 + $0x360] sm:$0xff]  }
 0x2c7   :  { %6421 = vmatmul.mubr.bf16.gmra.mxu0 %v6104_v13  ;;  %11452 = vmatprep.subr.bf16.mxu1 %v12593_v30  ;;  %v6114_v30 = vsel %vm3539_vm3, %v6103_v4, %v6113_v36  ;;  %v6126_v13 = vsel %vm3539_vm3, %v6115_v54, %v6125_v59  ;;  %v6097_v4 = vrot.slane %v15245_v15, 1  ;;  %v6124_v59 = vsel %vm3539_vm3, %v6113_v36, %v6123_v38  ;;  %v12601_v54 = vld [vmem:[#allocation6 + $0x358] sm:$0xff]   ;;  %v12608_v36 = vld [vmem:[#allocation6 + $0x388] sm:$0xff]  }
 0x2c8   :  { %6428 = vmatprep.mubr.bf16.mxu0 %v6116_v33  ;;  %v12596_v33 = vld [vmem:[#allocation6 + $0x3a0] sm:$0xff]   ;;  %v6086_v43 = vsel %vm3539_vm3, %v6084_v19, %v6085_v49  ;;  %v12604_v19 = vld [vmem:[#allocation6 + $0x390] sm:$0xff]   ;;  %v12609_v38 = vld [vmem:[#allocation6 + $0x348] sm:$0xff]  }
 0x2c9   :  { %11897 = vmatmul.mubr.msk.bf16.gmra.mxu1 %vm743_vm2, %v15461_v56  ;;  %v6098_v9 = vsel %vm3539_vm3, %v6085_v49, %v6097_v4 }
 0x2ca   :  { %6477 = vmatprep.mubr.bf16.mxu1 %v6089_v58  ;;  %v6100_v58 = vsel %vm3539_vm3, %v6088_v8, %v6099_v25 }
 0x2cf   :  { %6429 = vmatmul.mubr.bf16.gmra.mxu0 %v6114_v30  ;;  %v6109_v30 = vrot.slane %v15259_v50, 1 }
 0x2d0   :  { %6436 = vmatprep.mubr.bf16.mxu0 %v6126_v13  ;;  %v12605_v13 = vld [vmem:[#allocation6 + $0x350] sm:$0xff]  }
 0x2d1   :  { %6478 = vmatmul.mubr.bf16.vlgmr.msra.gmra.mxu1 %v6086_v43  ;;  %v6110_v8 = vsel %vm3539_vm3, %v6099_v25, %v6109_v30  ;;  %v12602_v43 = vld [vmem:[#allocation6 + $0x420] sm:$0xff]  }
 0x2d2   :  { %11453 = vmatpush3.bf16.msra.mxu1 %v12594_v7  ;;  %6485 = vmatprep.mubr.bf16.mxu1 %v6100_v58  ;;  %v6091_v7 = vrot.slane %v15329_v32, 1  ;;  %v6119_v58 = vrot.slane %v15272_v6, 1  ;;  %v12612_v32 = vld [vmem:[#allocation6 + $0x380] sm:$0xff]  }
 0x2d3   :  { %11454 = vmatprep.subr.bf16.mxu1 %v12596_v33  ;;  %v12599_v33 = vld [vmem:[#allocation6 + $0x3e8] sm:$0xff]   ;;  %v12603_v25 = vld [vmem:[#allocation6 + $0x3e0] sm:$0xff]  }
 0x2d6   :  { %11455 = vmatpush3.bf16.msra.mxu1 %v12597_v23  ;;  %v6090_v23 = vrot.slane %v15510_v10, 1 }
 0x2d7   :  { %6437 = vmatmul.mubr.bf16.gmra.mxu0 %v6124_v59  ;;  %11456 = vmatprep.subr.bf16.mxu1 %v12600_v24  ;;  %v6107_v24 = vrot.slane %v15266_v22, 1  ;;  %v12606_v59 = vld [vmem:[#allocation6 + $0x418] sm:$0xff]  }
 0x2d8   :  { %11904 = vmatprep.mubr.msk.bf16.mxu0 %vm12930_vm5, %v16422_v34  ;;  %v6092_v49 = vsel %vm3539_vm3, %v6090_v23, %v6091_v7  ;;  %v12610_v23 = vld [vmem:[#allocation6 + $0x410] sm:$0xff]  }
 0x2d9   :  { %6486 = vmatmul.mubr.bf16.gmra.mxu1 %v6098_v9  ;;  %v6108_v10 = vsel %vm3539_vm3, %v6097_v4, %v6107_v24  ;;  %v12613_v9 = vld [vmem:[#allocation6 + $0x340] sm:$0xff]   ;;  %v6129_v4 = vrot.slane %v15361_v35, 1 }
 0x2da   :  { %6493 = vmatprep.mubr.bf16.mxu1 %v6110_v8  ;;  %11457 = vmatpush3.bf16.msra.mxu1 %v12601_v54  ;;  %v6120_v54 = vsel %vm3539_vm3, %v6109_v30, %v6119_v58  ;;  %v12616_v8 = vld [vmem:[#allocation6 + $0x378] sm:$0xff]   ;;  %v6703_v30 = vshll.u32 %v15615_v26, 16 }
 0x2db   :  { %11458 = vmatprep.subr.bf16.mxu1 %v12604_v19  ;;  %v6101_v19 = vrot.slane %v15365_v14, 1  ;;  %v6700_v14 = vshrl.u32 %v15615_v26, 16  ;;  %v6130_v35 = vsel %vm3539_vm3, %v6119_v58, %v6129_v4  ;;  %v6688_v58 = vshrl.u32 %v15627_v44, 16 }
 0x2dc   :  { %v6705_v26 = vrot.slane %v6703_v30, 2 }
 0x2de   :  { %11459 = vmatpush3.bf16.msra.mxu1 %v12605_v13  ;;  %v12607_v13 = vld [vmem:[#allocation6 + $0x3d8] sm:$0xff]  }
 0x2df   :  { %11905 = vmatmul.mubr.msk.bf16.vlgmr.msra.gmra.mxu0 %vm743_vm2, %v6092_v49  ;;  %11460 = vmatprep.subr.bf16.mxu1 %v12608_v36  ;;  %v6117_v36 = vrot.slane %v15281_v31, 1  ;;  %v12621_v49 = vld [vmem:[#allocation6 + $0x370] sm:$0xff]  }
 0x2e0   :  { %11499 = vmatpush3.bf16.msra.mxu0 %v12599_v33  ;;  %11908 = vmatprep.mubr.msk.bf16.mxu0 %vm12930_vm5, %v16422_v34  ;;  %v6102_v33 = vsel %vm3539_vm3, %v6091_v7, %v6101_v19  ;;  %v12614_v7 = vld [vmem:[#allocation6 + $0x408] sm:$0xff]  }
 0x2e1   :  { %11500 = vmatprep.subr.bf16.mxu0 %v12602_v43  ;;  %6494 = vmatmul.mubr.bf16.gmra.mxu1 %v6108_v10  ;;  %v12618_v43 = vld [vmem:[#allocation6 + $0x338] sm:$0xff]   ;;  %v12623_v10 = vld [vmem:[#allocation6 + $0x330] sm:$0xff]  }
 0x2e2   :  { %6501 = vmatprep.mubr.bf16.mxu1 %v6120_v54  ;;  %11461 = vmatpush3.bf16.msra.mxu1 %v12609_v38  ;;  %v12611_v38 = vld [vmem:[#allocation6 + $0x3d0] sm:$0xff]   ;;  %v12615_v54 = vld [vmem:[#allocation6 + $0x3c8] sm:$0xff]  }
 0x2e3   :  { %11462 = vmatprep.subr.bf16.mxu1 %v12612_v32  ;;  %v6118_v32 = vsel %vm3539_vm3, %v6107_v24, %v6117_v36 }
 0x2e4   :  { %11501 = vmatpush3.bf16.msra.mxu0 %v12603_v25  ;;  %v6111_v25 = vrot.slane %v15412_v1, 1 }
 0x2e5   :  { %11502 = vmatprep.subr.bf16.mxu0 %v12606_v59  ;;  %v6702_v59 = vrot.slane %v6700_v14, 1  ;;  %v6690_v14 = vrot.slane %v6688_v58, 1  ;;  %v6131_v58 = vrot.slane %v15481_v37, 1 }
 0x2e6   :  { %11463 = vmatpush3.bf16.msra.mxu1 %v12613_v9  ;;  %v6127_v9 = vrot.slane %v15370_v16, 1  ;;  %v6112_v24 = vsel %vm3539_vm3, %v6101_v19, %v6111_v25 }
 0x2e7   :  { %11909 = vmatmul.mubr.msk.bf16.gmra.mxu0 %vm743_vm2, %v6102_v33  ;;  %11464 = vmatprep.subr.bf16.mxu1 %v12616_v8  ;;  %v12617_v8 = vld [vmem:[#allocation6 + $0x400] sm:$0xff]   ;;  %v6706_v1 = vor.u32 %v6705_v26, %v6702_v59  ;;  %v12620_v33 = vld [vmem:[#allocation6 + $0x3f8] sm:$0xff]  }
 0x2e8   :  { %11912 = vmatprep.mubr.msk.bf16.mxu0 %vm12930_vm5, %v16422_v34  ;;  %11503 = vmatpush3.bf16.msra.mxu0 %v12607_v13  ;;  %v6691_v13 = vshll.u32 %v15627_v44, 16  ;;  %v6128_v4 = vsel %vm3539_vm3, %v6117_v36, %v6127_v9  ;;  %v6121_v44 = vrot.slane %v15461_v56, 1  ;;  %v12622_v36 = vld [vmem:[#allocation6 + $0x3b8] sm:$0xff]  }
 0x2e9   :  { %11504 = vmatprep.subr.bf16.mxu0 %v12610_v23  ;;  %6502 = vmatmul.mubr.bf16.gmra.mxu1 %v6118_v32  ;;  %v12619_v23 = vld [vmem:[#allocation6 + $0x3c0] sm:$0xff]   ;;  %v6710_v19 = vsel %vm6686_vm6, %v6706_v1, %v15372_v3  ;;  %v6727_v32 = vshll.u32 %v15652_v21, 16  ;;  %v12626_v56 = vld [vmem:[#allocation6 + $0x438] sm:$0xff]   ;;  %v6715_v1 = vshll.u32 %v15663_v63, 16 }
 0x2ea   :  { %6509 = vmatprep.mubr.bf16.mxu1 %v6130_v35  ;;  %11465 = vmatpush3.bf16.msra.mxu1 %v12618_v43  ;;  %v6693_v30 = vrot.slane %v6691_v13, 2  ;;  %v6122_v3 = vsel %vm3539_vm3, %v6111_v25, %v6121_v44  ;;  %v12627_v25 = vld [vmem:[#allocation6 + $0x4b8] sm:$0xff]   ;;  %v6712_v13 = vshrl.u32 %v15663_v63, 16  ;;  %v6132_v37 = vsel %vm3539_vm3, %v6121_v44, %v6131_v58  ;;  %v12631_v58 = vld [vmem:[#allocation6 + $0x4a8] sm:$0xff]  }
 0x2eb   :  { %11466 = vmatprep.subr.bf16.mxu1 %v12621_v49 }
 0x2ec   :  { %11505 = vmatpush3.bf16.msra.mxu0 %v12611_v38  ;;  %v6724_v38 = vshrl.u32 %v15652_v21, 16  ;;  %v6694_v59 = vor.u32 %v6693_v30, %v6690_v14  ;;  %v12625_v21 = vld [vmem:[#allocation6 + $0x3b0] sm:$0xff]   ;;  %v6717_v14 = vrot.slane %v6715_v1, 2  ;;  %v6601_v30 = vld [vmem:[#allocation3 + $0xc8] sm:$0x33] }
 0x2ed   :  { %11506 = vmatprep.subr.bf16.mxu0 %v12614_v7  ;;  %v12624_v7 = vld [vmem:[#allocation6 + $0x3f0] sm:$0xff]  }
 0x2ee   :  { %11467 = vmatpush3.bf16.msra.mxu1 %v12623_v10  ;;  %v11171_v16 = vpop.f32.mrf.mxu1  ;;  %v6726_v26 = vrot.slane %v6724_v38, 1 }
 0x2ef   :  { %11913 = vmatmul.mubr.msk.bf16.gmra.mxu0 %vm743_vm2, %v6112_v24  ;;  %11924 = vmatprep.subr.bf16.mxu1 %v16422_v34  ;;  %v6698_v24 = vsel %vm6686_vm6, %v6694_v59, %v15455_v18  ;;  %v12648_v18 = vld [vmem:[#allocation6 + $0x538] sm:$0xff]   ;;  %v12629_v59 = vld [vmem:[#allocation6 + $0x4b0] sm:$0xff]  }
 0x2f0   :  { %11916 = vmatprep.mubr.msk.bf16.mxu0 %vm12930_vm5, %v16422_v34  ;;  %11507 = vmatpush3.bf16.msra.mxu0 %v12615_v54  ;;  %v11172_v43 = vpop.f32.mrf.mxu1  ;;  %v6729_v54 = vrot.slane %v6727_v32, 2 }
 0x2f1   :  { %11508 = vmatprep.subr.bf16.mxu0 %v12617_v8  ;;  %6510 = vmatmul.mubr.bf16.gmra.mxu1 %v6128_v4  ;;  %v15719_v49 = vadd.f32 %v11172_v43, %v11171_v16  ;;  %v12633_v16 = vld [vmem:[#allocation6 + $0x430] sm:$0xff]   ;;  %v6714_v43 = vrot.slane %v6712_v13, 1 }
 0x2f2   :  { %7123 = vmatprep.mubr.bf16.mxu1 %v6710_v19  ;;  %v11174_v35 = vpop.f32.mrf.mxu1  ;;  %v6730_v4 = vor.u32 %v6729_v54, %v6726_v26  ;;  %v16457_v26 = vld [vmem:[#allocation21_spill] sm:$0xff] }
 0x2f3   :  { %v6718_v44 = vor.u32 %v6717_v14, %v6714_v43  ;;  %v12634_v14 = vld [vmem:[#allocation6 + $0x4a0] sm:$0xff]  }
 0x2f4   :  { %11509 = vmatpush3.bf16.msra.mxu0 %v12619_v23  ;;  %v11175_v10 = vpop.f32.mrf.mxu1  ;;  %v6734_v63 = vsel %vm6686_vm6, %v6730_v4, %v15397_v28  ;;  %v12632_v4 = vld [vmem:[#allocation6 + $0x468] sm:$0xff]  }
 0x2f5   :  { %11510 = vmatprep.subr.bf16.mxu0 %v12620_v33  ;;  %v15725_v9 = vadd.f32 %v11175_v10, %v11174_v35  ;;  %v6722_v54 = vsel %vm6686_vm6, %v6718_v44, %v16457_v26 }
 0x2f6   :  { %v11177_v8 = vpop.f32.mrf.mxu1 }
 0x2f7   :  { %11917 = vmatmul.mubr.msk.bf16.gmra.mxu0 %vm743_vm2, %v6122_v3  ;;  %v12628_v3 = vld [vmem:[#allocation6 + $0x478] sm:$0xff]  }
 0x2f8   :  { %11920 = vmatprep.mubr.msk.bf16.mxu0 %vm12930_vm5, %v16422_v34  ;;  %11511 = vmatpush3.bf16.msra.mxu0 %v12622_v36  ;;  %v11178_v23 = vpop.f32.mrf.mxu1  ;;  %v15745_v36 = vcombine.high %v6601_v30, %v6601_v30 }
 0x2f9   :  { %11512 = vmatprep.subr.bf16.mxu0 %v12624_v7  ;;  %7124 = vmatmul.mubr.bf16.vlgmr.msra.gmra.mxu1 %v6698_v24  ;;  %v15735_v19 = vadd.f32 %v11178_v23, %v11177_v8  ;;  %v16458_v8 = vld [vmem:[#allocation26_spill] sm:$0xff] }
 0x2fa   :  { %11925 = vmatpush3.bf16.msra.mxu1 %v12626_v56  ;;  %7131 = vmatprep.mubr.bf16.mxu1 %v15432_v11  ;;  %v11180_v33 = vpop.f32.mrf.mxu1  ;;  %v6817_v28 = vshrl.u32 %v15745_v36, 16  ;;  %v6820_v56 = vshll.u32 %v15745_v36, 16 }
 0x2fb   :  { %11926 = vmatprep.subr.bf16.mxu1 %v16422_v34 }
 0x2fc   :  { %11513 = vmatpush3.bf16.msra.mxu0 %v12625_v21  ;;  %v11181_v11 = vpop.f32.mrf.mxu1  ;;  %v6819_v13 = vrot.slane %v6817_v28, 1  ;;  %v6822_v1 = vrot.slane %v6820_v56, 2  ;;  %v12637_v28 = vld [vmem:[#allocation6 + $0x498] sm:$0xff]  }
 0x2fd   :  { %11551 = vmatprep.subr.bf16.mxu0 %v12627_v25  ;;  %v15742_v38 = vadd.f32 %v11181_v11, %v11180_v33  ;;  %v15757_v25 = vcombine.low %v6601_v30, %v6601_v30  ;;  %v6602_v33 = vld [vmem:[#allocation3 + $0xd0] sm:$0x33] }
 0x2fe   :  { %11927 = vmatpush3.bf16.msra.mxu1 %v12633_v16  ;;  %v11183_v32 = vpop.f32.mrf.mxu1  ;;  %v6823_v11 = vor.u32 %v6822_v1, %v6819_v13 }
 0x2ff   :  { %11921 = vmatmul.mubr.msk.bf16.gmra.mxu0 %vm743_vm2, %v6132_v37  ;;  %11597 = vmatprep.subr.bf16.mxu1 %v12648_v18  ;;  %v6808_v37 = vshrl.u32 %v15757_v25, 16  ;;  %v6811_v43 = vshll.u32 %v15757_v25, 16 }
 0x300   :  { %7196 = vmatprep.mubr.bf16.mxu0 %v6734_v63  ;;  %v11184_v35 = vpop.f32.mrf.mxu1 }
 0x301   :  { %7132 = vmatmul.mubr.bf16.gmra.mxu1 %v15472_v17  ;;  %v15748_v7 = vadd.f32 %v11184_v35, %v11183_v32  ;;  %v12635_v32 = vld [vmem:[#allocation6 + $0x460] sm:$0xff]   ;;  %v6810_v35 = vrot.slane %v6808_v37, 1 }
 0x302   :  { %7139 = vmatprep.mubr.bf16.mxu1 %v15475_v55  ;;  %v11186_v10 = vpop.f32.mrf.mxu1  ;;  %v12630_v55 = vld [vmem:[#allocation6 + $0x470] sm:$0xff]  }
 0x304   :  { %v11187_v21 = vpop.f32.mrf.mxu1 }
 0x305   :  { %v15754_v17 = vadd.f32 %v11187_v21, %v11186_v10  ;;  %v16460_v10 = vld [vmem:[#allocation27_spill] sm:$0xff] }
 0x306   :  { %v11189_v24 = vpop.f32.mrf.mxu1  ;;  %v12639_v21 = vld [vmem:[#allocation6 + $0x458] sm:$0xff]  }
 0x307   :  { %7197 = vmatmul.mubr.bf16.vlgmr.msra.gmra.mxu0 %v6722_v54 }
 0x308   :  { %7204 = vmatprep.mubr.bf16.mxu0 %v16458_v8  ;;  %11552 = vmatpush3.bf16.msra.mxu0 %v12628_v3  ;;  %v11190_v23 = vpop.f32.mrf.mxu1  ;;  %v6813_v3 = vrot.slane %v6811_v43, 2  ;;  %v12644_v43 = vld [vmem:[#allocation6 + $0x488] sm:$0xff]  }
 0x309   :  { %11553 = vmatprep.subr.bf16.mxu0 %v12629_v59  ;;  %7140 = vmatmul.mubr.bf16.gmra.mxu1 %v15518_v29  ;;  %v15761_v16 = vadd.f32 %v11190_v23, %v11189_v24  ;;  %v16459_v29 = vld [vmem:[#allocation15_spill] sm:$0xff]  ;;  %v6824_v59 = vsel %vm6686_vm6, %v16460_v10, %v6823_v11 }
 0x30a   :  { %7147 = vmatprep.mubr.bf16.mxu1 %v15529_v53  ;;  %v11192_v18 = vpop.f32.mrf.mxu1  ;;  %v15768_v53 = vcombine.high %v6602_v33, %v6602_v33  ;;  %v12640_v24 = vld [vmem:[#allocation6 + $0x490] sm:$0xff]  }
 0x30c   :  { %11554 = vmatpush3.bf16.msra.mxu0 %v12630_v55  ;;  %v11193_v30 = vpop.f32.mrf.mxu1  ;;  %v6835_v54 = vshrl.u32 %v15768_v53, 16  ;;  %v6814_v55 = vor.u32 %v6813_v3, %v6810_v35  ;;  %v7320_v3 = vld [vmem:[#allocation3] sm:$0xcc] }
 0x30d   :  { %11555 = vmatprep.subr.bf16.mxu0 %v12631_v58  ;;  %v15766_v63 = vadd.f32 %v11193_v30, %v11192_v18 }
 0x30e   :  { %v11195_v44 = vpop.f32.mrf.mxu1  ;;  %v6837_v13 = vrot.slane %v6835_v54, 1  ;;  %v6815_v37 = vsel %vm6686_vm6, %v15544_v2, %v6814_v55  ;;  %v12646_v2 = vld [vmem:[#allocation6 + $0x480] sm:$0xff]   ;;  %v10853_v55 = vcombine.high %v7320_v3, %v15612_v39 }
 0x30f   :  { %7205 = vmatmul.mubr.bf16.gmra.mxu0 %v16459_v29 }
 0x310   :  { %7212 = vmatprep.mubr.bf16.mxu0 %v15502_v60  ;;  %11556 = vmatpush3.bf16.msra.mxu0 %v12632_v4  ;;  %v11196_v56 = vpop.f32.mrf.mxu1  ;;  %v6838_v60 = vshll.u32 %v15768_v53, 16  ;;  %v12641_v4 = vld [vmem:[#allocation6 + $0x450] sm:$0xff]  }
 0x311   :  { %11557 = vmatprep.subr.bf16.mxu0 %v12634_v14  ;;  %7148 = vmatmul.mubr.bf16.gmra.mxu1 %v15558_v47  ;;  %v15774_v26 = vadd.f32 %v11196_v56, %v11195_v44  ;;  %v15778_v47 = vcombine.low %v6602_v33, %v6602_v33 }
 0x312   :  { %7155 = vmatprep.mubr.bf16.mxu1 %v6824_v59  ;;  %v11198_v8 = vpop.f32.mrf.mxu1  ;;  %v6840_v1 = vrot.slane %v6838_v60, 2  ;;  %v12649_v59 = vld [vmem:[#allocation6 + $0x4f8] sm:$0xff]   ;;  %v12650_v60 = vld [vmem:[#allocation6 + $0x530] sm:$0xff]  }
 0x313   :  { %v6826_v33 = vshrl.u32 %v15778_v47, 16  ;;  %v6829_v14 = vshll.u32 %v15778_v47, 16 }
 0x314   :  { %11558 = vmatpush3.bf16.msra.mxu0 %v12635_v32  ;;  %v11199_v58 = vpop.f32.mrf.mxu1  ;;  %v6841_v11 = vor.u32 %v6840_v1, %v6837_v13  ;;  %v7410_v13 = vrot.slane %v15090_v46, 2 }
 0x315   :  { %11559 = vmatprep.subr.bf16.mxu0 %v12637_v28  ;;  %v15781_v23 = vadd.f32 %v11199_v58, %v11198_v8  ;;  %v6828_v44 = vrot.slane %v6826_v33, 1  ;;  %v6831_v35 = vrot.slane %v6829_v14, 2  ;;  %v16461_v28 = vld [vmem:[#allocation16_spill] sm:$0xff]  ;;  %v12651_v58 = vld [vmem:[#allocation6 + $0x4f0] sm:$0xff]   ;;  %v12654_v14 = vld [vmem:[#allocation6 + $0x4e8] sm:$0xff]  }
 0x316   :  { %v11217_v18 = vpop.f32.mrf.mxu1  ;;  %v6842_v56 = vsel %vm6686_vm6, %v16461_v28, %v6841_v11 }
 0x317   :  { %7213 = vmatmul.mubr.bf16.gmra.mxu0 %v15535_v45 }
 0x318   :  { %7220 = vmatprep.mubr.bf16.mxu0 %v15551_v0  ;;  %11560 = vmatpush3.bf16.msra.mxu0 %v12639_v21  ;;  %v11218_v45 = vpop.f32.mrf.mxu1  ;;  %v12645_v0 = vld [vmem:[#allocation6 + $0x448] sm:$0xff]   ;;  %v12647_v21 = vld [vmem:[#allocation6 + $0x440] sm:$0xff]  }
 0x319   :  { %11561 = vmatprep.subr.bf16.mxu0 %v12640_v24  ;;  %7156 = vmatmul.mubr.bf16.gmra.mxu1 %v6815_v37  ;;  %v11219_v30 = vadd.f32 %v11218_v45, %v11217_v18  ;;  %v6832_v24 = vor.u32 %v6831_v35, %v6828_v44  ;;  %v7409_v37 = vrot.slane %v10853_v55, 2  ;;  %v7407_v35 = vrot.slane %v15088_v27, 2 }
 0x31a   :  { %11928 = vmatprep.mubr.msk.bf16.mxu1 %vm12930_vm5, %v16422_v34  ;;  %v11220_v29 = vpop.f32.mrf.mxu1 }
 0x31b   :  { %v5429_v32 = vadd.f32 %v11219_v30, %v15719_v49  ;;  %v7411_v46 = vsel %vm7405_vm7, %v7409_v37, %v7410_v13  ;;  %v12655_v30 = vld [vmem:[#allocation6 + $0x520] sm:$0xff]   ;;  %v12660_v37 = vld [vmem:[#allocation6 + $0x4d0] sm:$0xff]  }
 0x31c   :  { %11562 = vmatpush3.bf16.msra.mxu0 %v12641_v4  ;;  %v11221_v10 = vpop.f32.mrf.mxu1  ;;  %v12653_v4 = vld [vmem:[#allocation6 + $0x528] sm:$0xff]  }
 0x31d   :  { %11563 = vmatprep.subr.bf16.mxu0 %v12644_v43  ;;  %v11222_v54 = vadd.f32 %v11221_v10, %v11220_v29  ;;  %v12656_v10 = vld [vmem:[#allocation6 + $0x4e0] sm:$0xff]  }
 0x31f   :  { %7221 = vmatmul.mubr.bf16.gmra.mxu0 %v15563_v51  ;;  %v11223_v8 = vpop.f32.mrf.mxu1  ;;  %v5432_v49 = vadd.f32 %v11222_v54, %v15725_v9 }
 0x320   :  { %7228 = vmatprep.mubr.bf16.mxu0 %v6842_v56  ;;  %11564 = vmatpush3.bf16.msra.mxu0 %v12645_v0  ;;  %v10852_v0 = vcombine.low %v7320_v3, %v15612_v39  ;;  %v7423_v39 = vrot.slane %v15131_v61, 2  ;;  %v12652_v56 = vld [vmem:[#allocation6 + $0x548] sm:$0xff]  }
 0x321   :  { %11565 = vmatprep.subr.bf16.mxu0 %v12646_v2  ;;  %11929 = vmatmul.mubr.msk.bf16.vlgmr.msra.gmra.mxu1 %vm743_vm2, %v15581_v48  ;;  %v11224_v51 = vpop.f32.mrf.mxu1  ;;  %v16462_v48 = vld [vmem:[#allocation28_spill] sm:$0xff] }
 0x322   :  { %11598 = vmatpush3.bf16.msra.mxu1 %v12649_v59  ;;  %11932 = vmatprep.mubr.msk.bf16.mxu1 %vm12930_vm5, %v16422_v34  ;;  %v11225_v1 = vadd.f32 %v11224_v51, %v11223_v8  ;;  %v6833_v43 = vsel %vm6686_vm6, %v16462_v48, %v6832_v24  ;;  %v7406_v28 = vrot.slane %v10852_v0, 2  ;;  %v12658_v8 = vld [vmem:[#allocation6 + $0x4d8] sm:$0xff]   ;;  %v7424_v61 = vsel %vm7405_vm7, %v7410_v13, %v7423_v39  ;;  %v12659_v51 = vld [vmem:[#allocation6 + $0x510] sm:$0xff]  }
 0x323   :  { %11599 = vmatprep.subr.bf16.mxu1 %v12650_v60  ;;  %v11226_v18 = vpop.f32.mrf.mxu1 }
 0x324   :  { %11566 = vmatpush3.bf16.msra.mxu0 %v12647_v21  ;;  %v5437_v9 = vadd.f32 %v11225_v1, %v15735_v19  ;;  %v7408_v27 = vsel %vm7405_vm7, %v7406_v28, %v7407_v35 }
 0x325   :  { %11948 = vmatprep.subr.bf16.mxu0 %v16422_v34  ;;  %v11227_v33 = vpop.f32.mrf.mxu1 }
 0x326   :  { %11600 = vmatpush3.bf16.msra.mxu1 %v12651_v58  ;;  %v11228_v11 = vadd.f32 %v11227_v33, %v11226_v18  ;;  %v12662_v33 = vld [vmem:[#allocation6 + $0x508] sm:$0xff]  }
 0x327   :  { %v5501_v45 = vpop.f32.mrf.mxu0  ;;  %7229 = vmatmul.mubr.bf16.gmra.mxu0 %v6833_v43  ;;  %11601 = vmatprep.subr.bf16.mxu1 %v12653_v4  ;;  %v11229_v44 = vpop.f32.mrf.mxu1 }
 0x328   :  { %7732 = vmatprep.mubr.bf16.mxu0 %v7411_v46  ;;  %v15807_v29 = vadd.f32 %v5501_v45, %v5429_v32  ;;  %v5440_v2 = vadd.f32 %v11228_v11, %v15742_v38  ;;  %v12657_v32 = vld [vmem:[#allocation6 + $0x518] sm:$0xff]   ;;  %v12663_v11 = vld [vmem:[#allocation6 + $0x4c8] sm:$0xff]  }
 0x329   :  { %v11858_v19 = vpop.f32.mrf.mxu0  ;;  %11933 = vmatmul.mubr.msk.bf16.gmra.mxu1 %vm743_vm2, %v15584_v42  ;;  %v11230_v3 = vpop.f32.mrf.mxu1 }
 0x32a   :  { %11602 = vmatpush3.bf16.msra.mxu1 %v12654_v14  ;;  %11936 = vmatprep.mubr.msk.bf16.mxu1 %vm12930_vm5, %v16422_v34  ;;  %v11231_v38 = vadd.f32 %v11230_v3, %v11229_v44  ;;  %v12665_v19 = vld [vmem:[#allocation6 + $0x500] sm:$0xff]  }
 0x32b   :  { %v5504_v59 = vpop.f32.mrf.mxu0  ;;  %11603 = vmatprep.subr.bf16.mxu1 %v12655_v30  ;;  %v11232_v42 = vpop.f32.mrf.mxu1 }
 0x32c   :  { %v15816_v54 = vadd.f32 %v5504_v59, %v5432_v49  ;;  %v5445_v21 = vadd.f32 %v11231_v38, %v15748_v7  ;;  %v12661_v49 = vld [vmem:[#allocation6 + $0x540] sm:$0xff]   ;;  %v7421_v7 = vrot.slane %v15133_v40, 2 }
 0x32d   :  { %v11859_v60 = vpop.f32.mrf.mxu0  ;;  %v11233_v24 = vpop.f32.mrf.mxu1 }
 0x32e   :  { %11604 = vmatpush3.bf16.msra.mxu1 %v12656_v10  ;;  %v11234_v58 = vadd.f32 %v11233_v24, %v11232_v42  ;;  %v7422_v40 = vsel %vm7405_vm7, %v7407_v35, %v7421_v7  ;;  %v7321_v10 = vld [vmem:[#allocation3 + $0x8] sm:$0xcc]  ;;  %v7431_v35 = vrot.slane %v15175_v41, 2 }
 0x32f   :  { %v5509_v55 = vpop.f32.mrf.mxu0  ;;  %7733 = vmatmul.mubr.bf16.vlgmr.msra.gmra.mxu0 %v7408_v27  ;;  %11605 = vmatprep.subr.bf16.mxu1 %v12657_v32  ;;  %v11235_v18 = vpop.f32.mrf.mxu1 }
 0x330   :  { %7740 = vmatprep.mubr.bf16.mxu0 %v7424_v61  ;;  %11949 = vmatpush3.bf16.msra.mxu0 %v12652_v56  ;;  %v15821_v1 = vadd.f32 %v5509_v55, %v5437_v9  ;;  %v5448_v13 = vadd.f32 %v11234_v58, %v15754_v17  ;;  %v7433_v9 = vrot.slane %v15171_v20, 2  ;;  %v7443_v56 = vrot.slane %v15212_v52, 2 }
 0x331   :  { %v11862_v4 = vpop.f32.mrf.mxu0  ;;  %11937 = vmatmul.mubr.msk.bf16.gmra.mxu1 %vm743_vm2, %v15589_v5  ;;  %11950 = vmatprep.subr.bf16.mxu0 %v16422_v34  ;;  %v11236_v43 = vpop.f32.mrf.mxu1  ;;  %v10854_v58 = vcombine.low %v7321_v10, %v15649_v57 }
 0x332   :  { %11606 = vmatpush3.bf16.msra.mxu1 %v12658_v8  ;;  %11940 = vmatprep.mubr.msk.bf16.mxu1 %vm12930_vm5, %v16422_v34  ;;  %v11237_v14 = vadd.f32 %v11236_v43, %v11235_v18  ;;  %v7434_v0 = vsel %vm7405_vm7, %v7423_v39, %v7433_v9  ;;  %v12666_v39 = vld [vmem:[#allocation6 + $0x4c0] sm:$0xff]   ;;  %v16463_v8 = vld [vmem:[#allocation18_spill] sm:$0xff]  ;;  %v7444_v24 = vsel %vm7405_vm7, %v7433_v9, %v7443_v56  ;;  %v7453_v9 = vrot.slane %v15745_v36, 2 }
 0x333   :  { %v5512_v48 = vpop.f32.mrf.mxu0  ;;  %11607 = vmatprep.subr.bf16.mxu1 %v12659_v51  ;;  %v11238_v46 = vpop.f32.mrf.mxu1  ;;  %v7416_v41 = vrot.slane %v16463_v8, 2 }
 0x334   :  { %11951 = vmatpush3.bf16.msra.mxu0 %v12661_v49  ;;  %v15831_v5 = vadd.f32 %v5512_v48, %v5440_v2  ;;  %v5453_v17 = vadd.f32 %v11237_v14, %v15761_v16  ;;  %v10855_v16 = vcombine.high %v7321_v10, %v15649_v57  ;;  %v16465_v14 = vld [vmem:[#allocation24_spill] sm:$0xff] }
 0x335   :  { %v11863_v45 = vpop.f32.mrf.mxu0  ;;  %v11239_v20 = vpop.f32.mrf.mxu1 }
 0x336   :  { %11608 = vmatpush3.bf16.msra.mxu1 %v12660_v37  ;;  %v11240_v44 = vadd.f32 %v11239_v20, %v11238_v46  ;;  %v7413_v45 = vrot.slane %v16465_v14, 2  ;;  %v7454_v20 = vsel %vm7405_vm7, %v7443_v56, %v7453_v9  ;;  %v7425_v56 = vrot.slane %v15245_v15, 2 }
 0x337   :  { %v5517_v30 = vpop.f32.mrf.mxu0  ;;  %7741 = vmatmul.mubr.bf16.gmra.mxu0 %v7422_v40  ;;  %11609 = vmatprep.subr.bf16.mxu1 %v12662_v33  ;;  %v7412_v33 = vrot.slane %v10854_v58, 2  ;;  %v12835_v58 = vld [vmem:[#allocation3 + $0x38] ss:$20 sps:$4 sm:$0xff]  }
 0x338   :  { %7748 = vmatprep.mubr.bf16.mxu0 %v7434_v0  ;;  %v15836_v2 = vadd.f32 %v5517_v30, %v5445_v21  ;;  %v5456_v32 = vadd.f32 %v11240_v44, %v15766_v63  ;;  %v7415_v21 = vrot.slane %v10855_v16, 2  ;;  %v7432_v63 = vsel %vm7405_vm7, %v7421_v7, %v7431_v35 }
 0x339   :  { %v11866_v59 = vpop.f32.mrf.mxu0  ;;  %v11241_v3 = vpop.f32.mrf.mxu1  ;;  %11941 = vmatmul.mubr.msk.bf16.gmra.mxu1 %vm743_vm2, %v15593_v62  ;;  %v7414_v44 = vsel %vm7405_vm7, %v7412_v33, %v7413_v45  ;;  %v7447_v33 = vrot.slane %v15272_v6, 2 }
 0x33a   :  { %11610 = vmatpush3.bf16.msra.mxu1 %v12663_v11  ;;  %11944 = vmatprep.mubr.msk.bf16.mxu1 %vm12930_vm5, %v16422_v34  ;;  %v7417_v7 = vsel %vm7405_vm7, %v7415_v21, %v7416_v41  ;;  %v16466_v11 = vld [vmem:[#allocation25_spill] sm:$0xff] }
 0x33b   :  { %v5520_v28 = vpop.f32.mrf.mxu0  ;;  %v11242_v38 = vpop.f32.mrf.mxu1  ;;  %11611 = vmatprep.subr.bf16.mxu1 %v12665_v19  ;;  %v7427_v30 = vrot.slane %v16466_v11, 2 }
 0x33c   :  { %v11243_v60 = vadd.f32 %v11242_v38, %v11241_v3  ;;  %v15846_v42 = vadd.f32 %v5520_v28, %v5448_v13  ;;  %v16464_v13 = vld [vmem:[#allocation17_spill] sm:$0xff] }
 0x33d   :  { %v11867_v62 = vpop.f32.mrf.mxu0  ;;  %v11244_v27 = vpop.f32.mrf.mxu1  ;;  %v7428_v16 = vsel %vm7405_vm7, %v7416_v41, %v7427_v30 }
 0x33e   :  { %v5461_v55 = vadd.f32 %v11243_v60, %v15774_v26  ;;  %11612 = vmatpush3.bf16.msra.mxu1 %v12666_v39  ;;  %v7441_v26 = vrot.slane %v15214_v12, 2 }
 0x33f   :  { %v5525_v61 = vpop.f32.mrf.mxu0  ;;  %7749 = vmatmul.mubr.bf16.gmra.mxu0 %v7432_v63  ;;  %v11245_v52 = vpop.f32.mrf.mxu1  ;;  %v12834_v63 = vld [vmem:[#allocation3 + $0x24] sm:$0xf] }
 0x340   :  { %7756 = vmatprep.mubr.bf16.mxu0 %v7444_v24  ;;  %v11246_v51 = vadd.f32 %v11245_v52, %v11244_v27  ;;  %v15853_v49 = vadd.f32 %v5525_v61, %v5453_v17  ;;  %v7442_v0 = vsel %vm7405_vm7, %v7431_v35, %v7441_v26  ;;  %v7451_v35 = vrot.slane %v15757_v25, 2  ;;  %v7322_v25 = vld [vmem:[#allocation3 + $0x10] sm:$0xc] }
 0x341   :  { %v11870_v4 = vpop.f32.mrf.mxu0  ;;  %v11270_v18 = vpop.f32.mrf.mxu1  ;;  %11945 = vmatmul.mubr.msk.bf16.gmra.mxu1 %vm743_vm2, %v16464_v13  ;;  %v7437_v27 = vrot.slane %v15259_v50, 2  ;;  %v7426_v61 = vsel %vm7405_vm7, %v7413_v45, %v7425_v56 }
 0x342   :  { %v5464_v37 = vadd.f32 %v11246_v51, %v15781_v23  ;;  %7805 = vmatprep.mubr.bf16.mxu1 %v7417_v7  ;;  %v7452_v21 = vsel %vm7405_vm7, %v7441_v26, %v7451_v35 }
 0x343   :  { %v5528_v48 = vpop.f32.mrf.mxu0  ;;  %v11271_v43 = vpop.f32.mrf.mxu1  ;;  %v7438_v50 = vsel %vm7405_vm7, %v7427_v30, %v7437_v27  ;;  %v7448_v6 = vsel %vm7405_vm7, %v7437_v27, %v7447_v33 }
 0x344   :  { %v11272_v57 = vadd.f32 %v11271_v43, %v11270_v18  ;;  %v15862_v46 = vadd.f32 %v5528_v48, %v5456_v32 }
 0x345   :  { %v11871_v40 = vpop.f32.mrf.mxu0  ;;  %v11273_v17 = vpop.f32.mrf.mxu1 }
 0x346   :  { %v5809_v12 = vadd.f32 %v11272_v57, %v15807_v29 }
 0x347   :  { %v5533_v23 = vpop.f32.mrf.mxu0  ;;  %7757 = vmatmul.mubr.bf16.gmra.mxu0 %v7442_v0  ;;  %v11274_v36 = vpop.f32.mrf.mxu1 }
 0x348   :  { %7764 = vmatprep.mubr.bf16.mxu0 %v7454_v20  ;;  %v11275_v19 = vadd.f32 %v11274_v36, %v11273_v17  ;;  %v15869_v10 = vadd.f32 %v5533_v23, %v5461_v55  ;;  %v10856_v55 = vcombine.low %v7322_v25, %v12834_v63  ;;  %v12836_v23 = vld [vmem:[#allocation3 + $0x60] ss:$20 sps:$4 sm:$0xff]  }
 0x349   :  { %v11874_v59 = vpop.f32.mrf.mxu0  ;;  %v11276_v3 = vpop.f32.mrf.mxu1  ;;  %7806 = vmatmul.mubr.bf16.vlgmr.msra.gmra.mxu1 %v7414_v44 }
 0x34a   :  { %v5812_v29 = vadd.f32 %v11275_v19, %v15816_v54  ;;  %7813 = vmatprep.mubr.bf16.mxu1 %v7428_v16  ;;  %v7418_v7 = vrot.slane %v10856_v55, 2  ;;  %v7445_v59 = vrot.slane %v15281_v31, 2 }
 0x34b   :  { %v5536_v32 = vpop.f32.mrf.mxu0  ;;  %v11277_v39 = vpop.f32.mrf.mxu1 }
 0x34c   :  { %v11278_v28 = vadd.f32 %v11277_v39, %v11276_v3  ;;  %v15875_v38 = vadd.f32 %v5536_v32, %v5464_v37  ;;  %v7435_v37 = vrot.slane %v15266_v22, 2 }
 0x34d   :  { %v11875_v60 = vpop.f32.mrf.mxu0  ;;  %v11279_v62 = vpop.f32.mrf.mxu1 }
 0x34e   :  { %v5817_v8 = vadd.f32 %v11278_v28, %v15821_v1  ;;  %v7419_v1 = vrot.slane %v12835_v58, 2  ;;  %v7436_v22 = vsel %vm7405_vm7, %v7425_v56, %v7435_v37  ;;  %v7446_v31 = vsel %vm7405_vm7, %v7435_v37, %v7445_v59  ;;  %v12838_v37 = vld [vmem:[#allocation3 + $0xb0] ss:$20 sps:$4 sm:$0xff]  }
 0x34f   :  { %v11316_v41 = vpop.f32.mrf.mxu0  ;;  %7765 = vmatmul.mubr.bf16.gmra.mxu0 %v7452_v21  ;;  %v11280_v54 = vpop.f32.mrf.mxu1 }
 0x350   :  { %11952 = vmatprep.mubr.msk.bf16.mxu0 %vm12930_vm5, %v16422_v34  ;;  %v11281_v15 = vadd.f32 %v11280_v54, %v11279_v62  ;;  %v7420_v14 = vsel %vm7405_vm7, %v7418_v7, %v7419_v1 }
 0x351   :  { %v11317_v24 = vpop.f32.mrf.mxu0  ;;  %v11282_v52 = vpop.f32.mrf.mxu1  ;;  %7814 = vmatmul.mubr.bf16.gmra.mxu1 %v7426_v61 }
 0x352   :  { %v11318_v51 = vadd.f32 %v11317_v24, %v11316_v41  ;;  %v5820_v4 = vadd.f32 %v11281_v15, %v15831_v5  ;;  %7821 = vmatprep.mubr.bf16.mxu1 %v7438_v50  ;;  %v12837_v41 = vld [vmem:[#allocation3 + $0x88] ss:$20 sps:$4 sm:$0xff]   ;;  %v7455_v15 = vrot.slane %v15778_v47, 2 }
 0x353   :  { %v11319_v18 = vpop.f32.mrf.mxu0  ;;  %v11283_v13 = vpop.f32.mrf.mxu1  ;;  %v7439_v25 = vrot.slane %v12837_v41, 2 }
 0x354   :  { %v11284_v26 = vadd.f32 %v11283_v13, %v11282_v52  ;;  %v15886_v48 = vadd.f32 %v11318_v51, %v5809_v12 }
 0x355   :  { %v11320_v9 = vpop.f32.mrf.mxu0  ;;  %v11285_v43 = vpop.f32.mrf.mxu1 }
 0x356   :  { %v11321_v57 = vadd.f32 %v11320_v9, %v11319_v18  ;;  %v5825_v45 = vadd.f32 %v11284_v26, %v15836_v2  ;;  %v7429_v2 = vrot.slane %v12836_v23, 2  ;;  %v7456_v18 = vsel %vm7405_vm7, %v7445_v59, %v7455_v15  ;;  %v12839_v23 = vld [vmem:[#allocation3 + $0xd8] ss:$0 sps:$4 sm:$0x33]  }
 0x357   :  { %v11322_v40 = vpop.f32.mrf.mxu0  ;;  %11953 = vmatmul.mubr.msk.bf16.vlgmr.msra.gmra.mxu0 %vm743_vm2, %v7420_v14  ;;  %v11286_v5 = vpop.f32.mrf.mxu1  ;;  %v7449_v9 = vrot.slane %v12838_v37, 2 }
 0x358   :  { %11956 = vmatprep.mubr.msk.bf16.mxu0 %vm12930_vm5, %v16422_v34  ;;  %v11287_v17 = vadd.f32 %v11286_v5, %v11285_v43  ;;  %v15895_v11 = vadd.f32 %v11321_v57, %v5812_v29  ;;  %v7457_v29 = vrot.slane %v15768_v53, 2  ;;  %v7430_v39 = vsel %vm7405_vm7, %v7419_v1, %v7429_v2 }
 0x359   :  { %v11323_v30 = vpop.f32.mrf.mxu0  ;;  %v11288_v0 = vpop.f32.mrf.mxu1  ;;  %7822 = vmatmul.mubr.bf16.gmra.mxu1 %v7436_v22  ;;  %v7440_v51 = vsel %vm7405_vm7, %v7429_v2, %v7439_v25  ;;  %v7459_v2 = vrot.slane %v12839_v23, 2 }
 0x35a   :  { %v11324_v12 = vadd.f32 %v11323_v30, %v11322_v40  ;;  %v5828_v20 = vadd.f32 %v11287_v17, %v15846_v42  ;;  %7829 = vmatprep.mubr.bf16.mxu1 %v7448_v6  ;;  %v7458_v53 = vsel %vm7405_vm7, %v7447_v33, %v7457_v29  ;;  %v7450_v17 = vsel %vm7405_vm7, %v7439_v25, %v7449_v9 }
 0x35b   :  { %v11325_v36 = vpop.f32.mrf.mxu0  ;;  %v11289_v19 = vpop.f32.mrf.mxu1 }
 0x35c   :  { %v11290_v44 = vadd.f32 %v11289_v19, %v11288_v0  ;;  %v15900_v3 = vadd.f32 %v11324_v12, %v5817_v8 }
 0x35d   :  { %v11326_v16 = vpop.f32.mrf.mxu0  ;;  %v11291_v35 = vpop.f32.mrf.mxu1 }
 0x35e   :  { %v11327_v32 = vadd.f32 %v11326_v16, %v11325_v36  ;;  %v5833_v28 = vadd.f32 %v11290_v44, %v15853_v49 }
 0x35f   :  { %v11328_v56 = vpop.f32.mrf.mxu0  ;;  %11957 = vmatmul.mubr.msk.bf16.gmra.mxu0 %vm743_vm2, %v7430_v39  ;;  %v11292_v42 = vpop.f32.mrf.mxu1 }
 0x360   :  { %11960 = vmatprep.mubr.msk.bf16.mxu0 %vm12930_vm5, %v16422_v34  ;;  %v11293_v60 = vadd.f32 %v11292_v42, %v11291_v35  ;;  %v5893_v62 = vadd.f32 %v11327_v32, %v5820_v4  ;;  %v7460_v35 = vsel %vm7405_vm7, %v7449_v9, %v7459_v2 }
 0x361   :  { %v11329_v27 = vpop.f32.mrf.mxu0  ;;  %v11294_v21 = vpop.f32.mrf.mxu1  ;;  %7830 = vmatmul.mubr.bf16.gmra.mxu1 %v7446_v31 }
 0x362   :  { %v11330_v8 = vadd.f32 %v11329_v27, %v11328_v56  ;;  %v5836_v49 = vadd.f32 %v11293_v60, %v15862_v46  ;;  %7837 = vmatprep.mubr.bf16.mxu1 %v7458_v53 }
 0x363   :  { %v11331_v54 = vpop.f32.mrf.mxu0  ;;  %v11295_v63 = vpop.f32.mrf.mxu1 }
 0x364   :  { %v11296_v55 = vadd.f32 %v11295_v63, %v11294_v21  ;;  %v5898_v61 = vadd.f32 %v11330_v8, %v5825_v45 }
 0x365   :  { %v11332_v24 = vpop.f32.mrf.mxu0  ;;  %v11297_v52 = vpop.f32.mrf.mxu1 }
 0x366   :  { %v11333_v50 = vadd.f32 %v11332_v24, %v11331_v54  ;;  %v5841_v58 = vadd.f32 %v11296_v55, %v15869_v10 }
 0x367   :  { %v11334_v1 = vpop.f32.mrf.mxu0  ;;  %11961 = vmatmul.mubr.msk.bf16.gmra.mxu0 %vm743_vm2, %v7440_v51  ;;  %v11298_v4 = vpop.f32.mrf.mxu1 }
 0x368   :  { %11964 = vmatprep.mubr.msk.bf16.mxu0 %vm12930_vm5, %v16422_v34  ;;  %v11299_v46 = vadd.f32 %v11298_v4, %v11297_v52  ;;  %v5901_v13 = vadd.f32 %v11333_v50, %v5828_v20 }
 0x369   :  { %v11335_v47 = vpop.f32.mrf.mxu0  ;;  %v5954_v7 = vpop.f32.mrf.mxu1  ;;  %7838 = vmatmul.mubr.bf16.gmra.mxu1 %v7456_v18 }
 0x36a   :  { %v11336_v26 = vadd.f32 %v11335_v47, %v11334_v1  ;;  %v5844_v43 = vadd.f32 %v11299_v46, %v15875_v38  ;;  %v15920_v10 = vadd.f32 %v5954_v7, %v15886_v48 }
 0x36b   :  { %v11337_v33 = vpop.f32.mrf.mxu0  ;;  %v11882_v57 = vpop.f32.mrf.mxu1 }
 0x36c   :  { %v5906_v14 = vadd.f32 %v11336_v26, %v5833_v28 }
 0x36d   :  { %v11338_v45 = vpop.f32.mrf.mxu0  ;;  %v5957_v40 = vpop.f32.mrf.mxu1 }
 0x36e   :  { %v11339_v5 = vadd.f32 %v11338_v45, %v11337_v33  ;;  %v15924_v22 = vadd.f32 %v5957_v40, %v15895_v11 }
 0x36f   :  { %v11340_v30 = vpop.f32.mrf.mxu0  ;;  %11965 = vmatmul.mubr.msk.bf16.gmra.mxu0 %vm743_vm2, %v7450_v17  ;;  %v11883_v0 = vpop.f32.mrf.mxu1 }
 0x370   :  { %11968 = vmatprep.mubr.msk.bf16.mxu0 %vm12930_vm5, %v16422_v34  ;;  %v5909_v38 = vadd.f32 %v11339_v5, %v5836_v49 }
 0x371   :  { %v11341_v48 = vpop.f32.mrf.mxu0  ;;  %v5962_v6 = vpop.f32.mrf.mxu1 }
 0x372   :  { %v11342_v12 = vadd.f32 %v11341_v48, %v11340_v30  ;;  %v15930_v20 = vadd.f32 %v5962_v6, %v15900_v3 }
 0x373   :  { %v11343_v36 = vpop.f32.mrf.mxu0  ;;  %v11886_v19 = vpop.f32.mrf.mxu1 }
 0x374   :  { %v5914_v11 = vadd.f32 %v11342_v12, %v5841_v58 }
 0x375   :  { %v11344_v44 = vpop.f32.mrf.mxu0  ;;  %v5965_v59 = vpop.f32.mrf.mxu1 }
 0x376   :  { %v11345_v16 = vadd.f32 %v11344_v44, %v11343_v36  ;;  %v15933_v29 = vadd.f32 %v5965_v59, %v5893_v62 }
 0x377   :  { %v11369_v32 = vpop.f32.mrf.mxu0  ;;  %11969 = vmatmul.mubr.msk.bf16.gmra.mxu0 %vm743_vm2, %v7460_v35  ;;  %v11887_v39 = vpop.f32.mrf.mxu1 }
 0x378   :  { %v5917_v28 = vadd.f32 %v11345_v16, %v5844_v43 }
 0x379   :  { %v11370_v56 = vpop.f32.mrf.mxu0  ;;  %v5970_v42 = vpop.f32.mrf.mxu1 }
 0x37a   :  { %v11371_v60 = vadd.f32 %v11370_v56, %v11369_v32  ;;  %v15936_v3 = vadd.f32 %v5970_v42, %v5898_v61 }
 0x37b   :  { %v11372_v31 = vpop.f32.mrf.mxu0  ;;  %v11890_v27 = vpop.f32.mrf.mxu1 }
 0x37d   :  { %v11373_v21 = vpop.f32.mrf.mxu0  ;;  %v5973_v53 = vpop.f32.mrf.mxu1 }
 0x37e   :  { %v15938_v8 = vadd.f32 %v5973_v53, %v5901_v13  ;;  %v11374_v12 = vadd.f32 %v11373_v21, %v11372_v31 }
 0x37f   :  { %v11375_v41 = vpop.f32.mrf.mxu0  ;;  %v11891_v25 = vpop.f32.mrf.mxu1 }
 0x381   :  { %v11376_v62 = vpop.f32.mrf.mxu0  ;;  %v5978_v49 = vpop.f32.mrf.mxu1 }
 0x382   :  { %v15940_v54 = vadd.f32 %v5978_v49, %v5906_v14  ;;  %v11377_v16 = vadd.f32 %v11376_v62, %v11375_v41 }
 0x383   :  { %v11378_v63 = vpop.f32.mrf.mxu0  ;;  %v11894_v55 = vpop.f32.mrf.mxu1 }
 0x385   :  { %v11379_v15 = vpop.f32.mrf.mxu0  ;;  %v5981_v24 = vpop.f32.mrf.mxu1 }
 0x386   :  { %v11380_v52 = vadd.f32 %v11379_v15, %v11378_v63  ;;  %v15942_v50 = vadd.f32 %v5981_v24, %v5909_v38 }
 0x387   :  { %v11381_v61 = vpop.f32.mrf.mxu0  ;;  %v11895_v51 = vpop.f32.mrf.mxu1 }
 0x389   :  { %v11382_v58 = vpop.f32.mrf.mxu0  ;;  %v5986_v1 = vpop.f32.mrf.mxu1 }
 0x38a   :  { %v11383_v4 = vadd.f32 %v11382_v58, %v11381_v61  ;;  %v15944_v46 = vadd.f32 %v5986_v1, %v5914_v11 }
 0x38b   :  { %v11384_v18 = vpop.f32.mrf.mxu0  ;;  %v11898_v13 = vpop.f32.mrf.mxu1 }
 0x38d   :  { %v11385_v47 = vpop.f32.mrf.mxu0  ;;  %v5989_v7 = vpop.f32.mrf.mxu1 }
 0x38e   :  { %v11386_v26 = vadd.f32 %v11385_v47, %v11384_v18  ;;  %v15946_v37 = vadd.f32 %v5989_v7, %v5917_v28 }
 0x38f   :  { %v11387_v9 = vpop.f32.mrf.mxu0  ;;  %v11899_v43 = vpop.f32.mrf.mxu1 }
 0x391   :  { %v11388_v33 = vpop.f32.mrf.mxu0  ;;  %v11415_v57 = vpop.f32.mrf.mxu1 }
 0x392   :  { %v11389_v14 = vadd.f32 %v11388_v33, %v11387_v9 }
 0x393   :  { %v11390_v45 = vpop.f32.mrf.mxu0  ;;  %v11416_v40 = vpop.f32.mrf.mxu1 }
 0x394   :  { %v11417_v5 = vadd.f32 %v11416_v40, %v11415_v57 }
 0x395   :  { %v11391_v17 = vpop.f32.mrf.mxu0  ;;  %v11418_v30 = vpop.f32.mrf.mxu1 }
 0x396   :  { %v11392_v0 = vadd.f32 %v11391_v17, %v11390_v45  ;;  %v6480_v38 = vadd.f32 %v11417_v5, %v11371_v60 }
 0x397   :  { %v11393_v48 = vpop.f32.mrf.mxu0  ;;  %v11419_v6 = vpop.f32.mrf.mxu1 }
 0x398   :  { %v11420_v23 = vadd.f32 %v11419_v6, %v11418_v30 }
 0x399   :  { %v11394_v2 = vpop.f32.mrf.mxu0  ;;  %v11421_v36 = vpop.f32.mrf.mxu1 }
 0x39a   :  { %v11395_v19 = vadd.f32 %v11394_v2, %v11393_v48  ;;  %v6483_v11 = vadd.f32 %v11420_v23, %v11374_v12 }
 0x39b   :  { %v11396_v44 = vpop.f32.mrf.mxu0  ;;  %v11422_v59 = vpop.f32.mrf.mxu1 }
 0x39c   :  { %v11423_v35 = vadd.f32 %v11422_v59, %v11421_v36 }
 0x39d   :  { %v11397_v32 = vpop.f32.mrf.mxu0  ;;  %v11424_v39 = vpop.f32.mrf.mxu1 }
 0x39e   :  { %v11398_v28 = vadd.f32 %v11397_v32, %v11396_v44  ;;  %v6488_v56 = vadd.f32 %v11423_v35, %v11377_v16  ;;  %v12668_v35 = vld [vmem:[#allocation9 + $0x78] sm:$0xff]  }
 0x39f   :  { %v6552_v42 = vpop.f32.mrf.mxu0  ;;  %v11425_v27 = vpop.f32.mrf.mxu1  ;;  %v12669_v32 = vld [vmem:[#allocation9 + $0x38] sm:$0xff]   ;;  %11650 = vmatprep.subr.bf16.mxu1 %v12668_v35  ;;  %v12683_v35 = vld [vmem:[#allocation9 + $0xe0] sm:$0xff]  }
 0x3a0   :  { %v6553_v53 = vadd.f32 %v6552_v42, %v6480_v38  ;;  %v11426_v60 = vadd.f32 %v11425_v27, %v11424_v39  ;;  %11651 = vmatpush3.bf16.msra.mxu1 %v12669_v32  ;;  %v12684_v32 = vld [vmem:[#allocation9 + $0x18] sm:$0xff]  }
 0x3a1   :  { %v11906_v25 = vpop.f32.mrf.mxu0  ;;  %v11427_v49 = vpop.f32.mrf.mxu1 }
 0x3a2   :  { %v6491_v31 = vadd.f32 %v11426_v60, %v11380_v52  ;;  %v15949_v21 = vadd.f32 %v6553_v53, %v15920_v10 }
 0x3a3   :  { %v6555_v63 = vpop.f32.mrf.mxu0  ;;  %v11428_v55 = vpop.f32.mrf.mxu1 }
 0x3a4   :  { %v6556_v15 = vadd.f32 %v6555_v63, %v6483_v11  ;;  %v11429_v24 = vadd.f32 %v11428_v55, %v11427_v49 }
 0x3a5   :  { %v11907_v41 = vpop.f32.mrf.mxu0  ;;  %v11430_v62 = vpop.f32.mrf.mxu1 }
 0x3a6   :  { %v6496_v61 = vadd.f32 %v11429_v24, %v11383_v4  ;;  %v15952_v51 = vadd.f32 %v6556_v15, %v15924_v22  ;;  %v12670_v15 = vld [vmem:[#allocation9 + $0x70] sm:$0xff]   ;;  %v12672_v41 = vld [vmem:[#allocation9 + $0xf8] sm:$0xff]  }
 0x3a7   :  { %v6560_v58 = vpop.f32.mrf.mxu0  ;;  %v11431_v1 = vpop.f32.mrf.mxu1  ;;  %v12671_v24 = vld [vmem:[#allocation9 + $0x30] sm:$0xff]   ;;  %11652 = vmatprep.subr.bf16.mxu1 %v12670_v15  ;;  %11672 = vmatprep.subr.bf16.mxu0 %v12672_v41 }
 0x3a8   :  { %v6561_v18 = vadd.f32 %v6560_v58, %v6488_v56  ;;  %v11432_v13 = vadd.f32 %v11431_v1, %v11430_v62  ;;  %11653 = vmatpush3.bf16.msra.mxu1 %v12671_v24 }
 0x3a9   :  { %v11910_v47 = vpop.f32.mrf.mxu0  ;;  %v11433_v7 = vpop.f32.mrf.mxu1 }
 0x3aa   :  { %v6499_v52 = vadd.f32 %v11432_v13, %v11386_v26  ;;  %v15955_v10 = vadd.f32 %v6561_v18, %v15930_v20 }
 0x3ab   :  { %v6563_v9 = vpop.f32.mrf.mxu0  ;;  %v11434_v43 = vpop.f32.mrf.mxu1 }
 0x3ac   :  { %v6564_v33 = vadd.f32 %v6563_v9, %v6491_v31  ;;  %v11435_v57 = vadd.f32 %v11434_v43, %v11433_v7 }
 0x3ad   :  { %v11911_v45 = vpop.f32.mrf.mxu0  ;;  %v11436_v40 = vpop.f32.mrf.mxu1 }
 0x3ae   :  { %v6504_v4 = vadd.f32 %v11435_v57, %v11389_v14  ;;  %v15958_v22 = vadd.f32 %v6564_v33, %v15933_v29 }
 0x3af   :  { %v6568_v5 = vpop.f32.mrf.mxu0  ;;  %v11437_v17 = vpop.f32.mrf.mxu1 }
 0x3b0   :  { %v6569_v30 = vadd.f32 %v6568_v5, %v6496_v61  ;;  %v11438_v38 = vadd.f32 %v11437_v17, %v11436_v40  ;;  %v12673_v61 = vld [vmem:[#allocation9 + $0xb8] sm:$0xff]   ;;  %v12676_v17 = vld [vmem:[#allocation9 + $0xf0] sm:$0xff]  }
 0x3b1   :  { %v11914_v48 = vpop.f32.mrf.mxu0  ;;  %v11439_v6 = vpop.f32.mrf.mxu1  ;;  %11673 = vmatpush3.bf16.msra.mxu0 %v12673_v61  ;;  %v12690_v61 = vld [vmem:[#allocation9 + $0xd0] sm:$0xff]  }
 0x3b2   :  { %v6507_v26 = vadd.f32 %v11438_v38, %v11392_v0  ;;  %v15961_v20 = vadd.f32 %v6569_v30, %v15936_v3  ;;  %v12677_v30 = vld [vmem:[#allocation9 + $0xb0] sm:$0xff]   ;;  %v12678_v38 = vld [vmem:[#allocation9 + $0x60] sm:$0xff]   ;;  %11674 = vmatprep.subr.bf16.mxu0 %v12676_v17 }
 0x3b3   :  { %v6571_v12 = vpop.f32.mrf.mxu0  ;;  %v11440_v23 = vpop.f32.mrf.mxu1 }
 0x3b4   :  { %v6572_v2 = vadd.f32 %v6571_v12, %v6499_v52  ;;  %v11441_v36 = vadd.f32 %v11440_v23, %v11439_v6  ;;  %v12680_v12 = vld [vmem:[#allocation9 + $0xe8] sm:$0xff]  }
 0x3b5   :  { %v11915_v11 = vpop.f32.mrf.mxu0  ;;  %v11442_v44 = vpop.f32.mrf.mxu1  ;;  %11675 = vmatpush3.bf16.msra.mxu0 %v12677_v30 }
 0x3b6   :  { %v6512_v14 = vadd.f32 %v11441_v36, %v11395_v19  ;;  %v15964_v29 = vadd.f32 %v6572_v2, %v15938_v8  ;;  %v12681_v11 = vld [vmem:[#allocation9 + $0xa8] sm:$0xff]   ;;  %11676 = vmatprep.subr.bf16.mxu0 %v12680_v12 }
 0x3b7   :  { %v6576_v59 = vpop.f32.mrf.mxu0  ;;  %v11443_v16 = vpop.f32.mrf.mxu1 }
 0x3b8   :  { %v6577_v39 = vadd.f32 %v6576_v59, %v6504_v4  ;;  %v11444_v56 = vadd.f32 %v11443_v16, %v11442_v44  ;;  %v12682_v16 = vld [vmem:[#allocation9 + $0x58] sm:$0xff]  }
 0x3b9   :  { %v11918_v0 = vpop.f32.mrf.mxu0  ;;  %v11468_v42 = vpop.f32.mrf.mxu1  ;;  %11677 = vmatpush3.bf16.msra.mxu0 %v12681_v11 }
 0x3ba   :  { %v6515_v3 = vadd.f32 %v11444_v56, %v11398_v28  ;;  %v15967_v27 = vadd.f32 %v6577_v39, %v15940_v54  ;;  %v12674_v54 = vld [vmem:[#allocation9 + $0x68] sm:$0xff]   ;;  %v12687_v0 = vld [vmem:[#allocation9 + $0x50] sm:$0xff]   ;;  %11678 = vmatprep.subr.bf16.mxu0 %v12683_v35  ;;  %v12705_v35 = vld [vmem:[#allocation9 + $0x1f8] sm:$0xff]  }
 0x3bb   :  { %v6579_v53 = vpop.f32.mrf.mxu0  ;;  %v11469_v60 = vpop.f32.mrf.mxu1  ;;  %11654 = vmatprep.subr.bf16.mxu1 %v12674_v54  ;;  %v12693_v54 = vld [vmem:[#allocation9 + $0x8] sm:$0xff]  }
 0x3bc   :  { %v6580_v19 = vadd.f32 %v6579_v53, %v6507_v26  ;;  %v11470_v25 = vadd.f32 %v11469_v60, %v11468_v42  ;;  %v12679_v26 = vld [vmem:[#allocation9 + $0x20] sm:$0xff]  }
 0x3bd   :  { %v11919_v8 = vpop.f32.mrf.mxu0  ;;  %v11471_v49 = vpop.f32.mrf.mxu1  ;;  %v12685_v53 = vld [vmem:[#allocation9 + $0xa0] sm:$0xff]  }
 0x3be   :  { %v15970_v31 = vadd.f32 %v6580_v19, %v15942_v50  ;;  %v12675_v50 = vld [vmem:[#allocation9 + $0x28] sm:$0xff]   ;;  %v12686_v19 = vld [vmem:[#allocation9 + $0xd8] sm:$0xff]   ;;  %11679 = vmatpush3.bf16.msra.mxu0 %v12685_v53 }
 0x3bf   :  { %v6584_v63 = vpop.f32.mrf.mxu0  ;;  %v11472_v55 = vpop.f32.mrf.mxu1  ;;  %11655 = vmatpush3.bf16.msra.mxu1 %v12675_v50  ;;  %11680 = vmatprep.subr.bf16.mxu0 %v12686_v19  ;;  %v12696_v50 = vld [vmem:[#allocation9 + $0x40] sm:$0xff]  }
 0x3c0   :  { %v6585_v62 = vadd.f32 %v6584_v63, %v6512_v14  ;;  %v11473_v28 = vadd.f32 %v11472_v55, %v11471_v49  ;;  %11656 = vmatprep.subr.bf16.mxu1 %v12678_v38  ;;  %v12692_v63 = vld [vmem:[#allocation9 + $0x48] sm:$0xff]  }
 0x3c1   :  { %v11922_v58 = vpop.f32.mrf.mxu0  ;;  %v11474_v1 = vpop.f32.mrf.mxu1 }
 0x3c2   :  { %v15973_v18 = vadd.f32 %v6585_v62, %v15944_v46  ;;  %v12688_v62 = vld [vmem:[#allocation9 + $0x98] sm:$0xff]  }
 0x3c3   :  { %v6587_v13 = vpop.f32.mrf.mxu0  ;;  %v11475_v47 = vpop.f32.mrf.mxu1  ;;  %11657 = vmatpush3.bf16.msra.mxu1 %v12679_v26  ;;  %11681 = vmatpush3.bf16.msra.mxu0 %v12688_v62  ;;  %v12698_v26 = vld [vmem:[#allocation9 + $0xc0] sm:$0xff]  }
 0x3c4   :  { %v6588_v7 = vadd.f32 %v6587_v13, %v6515_v3  ;;  %v11476_v52 = vadd.f32 %v11475_v47, %v11474_v1  ;;  %11658 = vmatprep.subr.bf16.mxu1 %v12682_v16  ;;  %11682 = vmatprep.subr.bf16.mxu0 %v12690_v61 }
 0x3c5   :  { %v11923_v9 = vpop.f32.mrf.mxu0  ;;  %v11477_v43 = vpop.f32.mrf.mxu1 }
 0x3c6   :  { %v15976_v33 = vadd.f32 %v6588_v7, %v15946_v37 }
 0x3c7   :  { %v11514_v57 = vpop.f32.mrf.mxu0  ;;  %v11478_v45 = vpop.f32.mrf.mxu1  ;;  %11659 = vmatpush3.bf16.msra.mxu1 %v12684_v32 }
 0x3c8   :  { %v11479_v40 = vadd.f32 %v11478_v45, %v11477_v43  ;;  %11660 = vmatprep.subr.bf16.mxu1 %v12687_v0  ;;  %v12697_v45 = vld [vmem:[#allocation9] sm:$0xff]  }
 0x3c9   :  { %v11515_v4 = vpop.f32.mrf.mxu0  ;;  %v11480_v46 = vpop.f32.mrf.mxu1 }
 0x3ca   :  { %v11516_v5 = vadd.f32 %v11515_v4, %v11514_v57  ;;  %v12694_v57 = vld [vmem:[#allocation9 + $0xc8] sm:$0xff]  }
 0x3cb   :  { %v11517_v48 = vpop.f32.mrf.mxu0  ;;  %v11481_v6 = vpop.f32.mrf.mxu1 }
 0x3cc   :  { %v15978_v23 = vadd.f32 %v11481_v6, %v11480_v46  ;;  %v15980_v2 = vadd.f32 %v11516_v5, %v11470_v25  ;;  %v12689_v25 = vld [vmem:[#allocation9 + $0x10] sm:$0xff]   ;;  %v12704_v5 = vld [vmem:[#allocation9 + $0x178] sm:$0xff]  }
 0x3cd   :  { %v11518_v37 = vpop.f32.mrf.mxu0  ;;  %v11483_v36 = vpop.f32.mrf.mxu1  ;;  %11661 = vmatpush3.bf16.msra.mxu1 %v12689_v25 }
 0x3ce   :  { %v11519_v44 = vadd.f32 %v11518_v37, %v11517_v48  ;;  %11662 = vmatprep.subr.bf16.mxu1 %v12692_v63 }
 0x3cf   :  { %v11520_v14 = vpop.f32.mrf.mxu0  ;;  %v11484_v59 = vpop.f32.mrf.mxu1 }
 0x3d0   :  { %v11485_v39 = vadd.f32 %v11484_v59, %v11483_v36  ;;  %v15982_v56 = vadd.f32 %v11519_v44, %v11473_v28  ;;  %v12699_v59 = vld [vmem:[#allocation9 + $0x80] sm:$0xff]  }
 0x3d1   :  { %v11521_v42 = vpop.f32.mrf.mxu0  ;;  %v11486_v3 = vpop.f32.mrf.mxu1  ;;  %11663 = vmatpush3.bf16.msra.mxu1 %v12693_v54 }
 0x3d2   :  { %v11522_v60 = vadd.f32 %v11521_v42, %v11520_v14  ;;  %11664 = vmatprep.subr.bf16.mxu1 %v12696_v50 }
 0x3d3   :  { %v11523_v8 = vpop.f32.mrf.mxu0  ;;  %v11487_v49 = vpop.f32.mrf.mxu1 }
 0x3d4   :  { %v11488_v55 = vadd.f32 %v11487_v49, %v11486_v3  ;;  %v15984_v15 = vadd.f32 %v11522_v60, %v11476_v52  ;;  %v12691_v52 = vld [vmem:[#allocation9 + $0x90] sm:$0xff]  }
 0x3d5   :  { %v11524_v24 = vpop.f32.mrf.mxu0  ;;  %v11489_v41 = vpop.f32.mrf.mxu1  ;;  %11683 = vmatpush3.bf16.msra.mxu0 %v12691_v52  ;;  %11665 = vmatpush3.bf16.msra.mxu1 %v12697_v45 }
 0x3d6   :  { %v11525_v28 = vadd.f32 %v11524_v24, %v11523_v8  ;;  %11684 = vmatprep.subr.bf16.mxu0 %v12694_v57  ;;  %11694 = vmatprep.subr.bf16.mxu1 %v12704_v5 }
 0x3d7   :  { %v11526_v58 = vpop.f32.mrf.mxu0  ;;  %v11490_v1 = vpop.f32.mrf.mxu1 }
 0x3d8   :  { %v11491_v13 = vadd.f32 %v11490_v1, %v11489_v41  ;;  %v7210_v47 = vadd.f32 %v11525_v28, %v11479_v40  ;;  %v12695_v40 = vld [vmem:[#allocation9 + $0x88] sm:$0xff]  }
 0x3d9   :  { %v11527_v7 = vpop.f32.mrf.mxu0  ;;  %v11492_v9 = vpop.f32.mrf.mxu1  ;;  %11685 = vmatpush3.bf16.msra.mxu0 %v12695_v40 }
 0x3da   :  { %v11528_v43 = vadd.f32 %v11527_v7, %v11526_v58  ;;  %11686 = vmatprep.subr.bf16.mxu0 %v12698_v26 }
 0x3db   :  { %v11529_v4 = vpop.f32.mrf.mxu0  ;;  %v11493_v46 = vpop.f32.mrf.mxu1 }
 0x3dc   :  { %v11494_v17 = vadd.f32 %v11493_v46, %v11492_v9  ;;  %v7215_v30 = vadd.f32 %v11528_v43, %v15978_v23 }
 0x3dd   :  { %v11530_v38 = vpop.f32.mrf.mxu0  ;;  %v11495_v48 = vpop.f32.mrf.mxu1  ;;  %11687 = vmatpush3.bf16.msra.mxu0 %v12699_v59 }
 0x3de   :  { %v11531_v6 = vadd.f32 %v11530_v38, %v11529_v4  ;;  %11716 = vmatprep.subr.bf16.mxu0 %v12705_v35 }
 0x3df   :  { %v11532_v12 = vpop.f32.mrf.mxu0  ;;  %v11496_v37 = vpop.f32.mrf.mxu1 }
 0x3e0   :  { %v11497_v36 = vadd.f32 %v11496_v37, %v11495_v48  ;;  %v7218_v11 = vadd.f32 %v11531_v6, %v11485_v39 }
 0x3e1   :  { %v11533_v44 = vpop.f32.mrf.mxu0  ;;  %v7271_v14 = vpop.f32.mrf.mxu1 }
 0x3e2   :  { %v11534_v16 = vadd.f32 %v11533_v44, %v11532_v12  ;;  %v7272_v23 = vadd.f32 %v7271_v14, %v15980_v2 }
 0x3e3   :  { %v11535_v32 = vpop.f32.mrf.mxu0  ;;  %v11930_v0 = vpop.f32.mrf.mxu1 }
 0x3e4   :  { %v15989_v42 = vadd.f32 %v7272_v23, %v15949_v21  ;;  %v7223_v3 = vadd.f32 %v11534_v16, %v11488_v55 }
 0x3e5   :  { %v11536_v53 = vpop.f32.mrf.mxu0  ;;  %v7274_v60 = vpop.f32.mrf.mxu1 }
 0x3e6   :  { %v11537_v19 = vadd.f32 %v11536_v53, %v11535_v32  ;;  %v7275_v39 = vadd.f32 %v7274_v60, %v15982_v56 }
 0x3e7   :  { %v11538_v25 = vpop.f32.mrf.mxu0  ;;  %v11931_v8 = vpop.f32.mrf.mxu1 }
 0x3e8   :  { %v15993_v49 = vadd.f32 %v7275_v39, %v15952_v51  ;;  %v7226_v2 = vadd.f32 %v11537_v19, %v11491_v13 }
 0x3e9   :  { %v11539_v63 = vpop.f32.mrf.mxu0  ;;  %v7279_v24 = vpop.f32.mrf.mxu1 }
 0x3ea   :  { %v11540_v41 = vadd.f32 %v11539_v63, %v11538_v25  ;;  %v7280_v21 = vadd.f32 %v7279_v24, %v15984_v15 }
 0x3eb   :  { %v11541_v62 = vpop.f32.mrf.mxu0  ;;  %v11934_v55 = vpop.f32.mrf.mxu1 }
 0x3ec   :  { %v15997_v28 = vadd.f32 %v7280_v21, %v15955_v10  ;;  %v7231_v61 = vadd.f32 %v11540_v41, %v11494_v17 }
 0x3ed   :  { %v11542_v54 = vpop.f32.mrf.mxu0  ;;  %v7282_v56 = vpop.f32.mrf.mxu1 }
 0x3ee   :  { %v11543_v58 = vadd.f32 %v11542_v54, %v11541_v62  ;;  %v7283_v1 = vadd.f32 %v7282_v56, %v7210_v47 }
 0x3ef   :  { %v11567_v50 = vpop.f32.mrf.mxu0  ;;  %v11935_v7 = vpop.f32.mrf.mxu1 }
 0x3f0   :  { %v16000_v51 = vadd.f32 %v7283_v1, %v15958_v22  ;;  %v7234_v13 = vadd.f32 %v11543_v58, %v11497_v36 }
 0x3f1   :  { %v11568_v9 = vpop.f32.mrf.mxu0  ;;  %v7287_v52 = vpop.f32.mrf.mxu1 }
 0x3f2   :  { %v7288_v43 = vadd.f32 %v7287_v52, %v7215_v30  ;;  %v11569_v62 = vadd.f32 %v11568_v9, %v11567_v50  ;;  %v16046_v50 = vld [vmem:[%s16285_s4] ss:$0 sm:$0xff] }
 0x3f3   :  { %v11570_v15 = vpop.f32.mrf.mxu0  ;;  %v11938_v57 = vpop.f32.mrf.mxu1 }
 0x3f4   :  { %v16003_v45 = vadd.f32 %v7288_v43, %v15961_v20 }
 0x3f5   :  { %v11571_v10 = vpop.f32.mrf.mxu0  ;;  %v7290_v4 = vpop.f32.mrf.mxu1 }
 0x3f6   :  { %v7291_v46 = vadd.f32 %v7290_v4, %v7218_v11  ;;  %v11572_v7 = vadd.f32 %v11571_v10, %v11570_v15 }
 0x3f7   :  { %v11573_v5 = vpop.f32.mrf.mxu0  ;;  %v11939_v17 = vpop.f32.mrf.mxu1 }
 0x3f8   :  { %v16006_v47 = vadd.f32 %v7291_v46, %v15964_v29 }
 0x3f9   :  { %v11574_v38 = vpop.f32.mrf.mxu0  ;;  %v7295_v22 = vpop.f32.mrf.mxu1 }
 0x3fa   :  { %v7296_v48 = vadd.f32 %v7295_v22, %v7223_v3  ;;  %v11575_v22 = vadd.f32 %v11574_v38, %v11573_v5 }
 0x3fb   :  { %v11576_v40 = vpop.f32.mrf.mxu0  ;;  %v11942_v6 = vpop.f32.mrf.mxu1 }
 0x3fc   :  { %v16009_v30 = vadd.f32 %v7296_v48, %v15967_v27 }
 0x3fd   :  { %v11577_v26 = vpop.f32.mrf.mxu0  ;;  %v7298_v12 = vpop.f32.mrf.mxu1 }
 0x3fe   :  { %v7299_v20 = vadd.f32 %v7298_v12, %v7226_v2 }
 0x3ff   :  { %v16011_v37 = vpop.f32.mrf.mxu0  ;;  %v11943_v36 = vpop.f32.mrf.mxu1 }
 0x400   :  { %v16014_v11 = vadd.f32 %v7299_v20, %v15970_v31 }
 0x401   :  { %v11580_v44 = vpop.f32.mrf.mxu0  ;;  %v7303_v29 = vpop.f32.mrf.mxu1 }
 0x402   :  { %v7304_v14 = vadd.f32 %v7303_v29, %v7231_v61 }
 0x403   :  { %v16016_v59 = vpop.f32.mrf.mxu0  ;;  %v11946_v16 = vpop.f32.mrf.mxu1 }
 0x404   :  { %v16019_v23 = vadd.f32 %v7304_v14, %v15973_v18  ;;  %v11578_v14 = vadd.f32 %v11577_v26, %v11576_v40 }
 0x405   :  { %v16021_v27 = vpop.f32.mrf.mxu0  ;;  %v7306_v35 = vpop.f32.mrf.mxu1 }
 0x406   :  { %v7307_v32 = vadd.f32 %v7306_v35, %v7234_v13 }
 0x407   :  { %v16023_v0 = vpop.f32.mrf.mxu0  ;;  %v11947_v3 = vpop.f32.mrf.mxu1 }
 0x408   :  { %v16026_v53 = vadd.f32 %v7307_v32, %v15976_v33 }
 0x409   :  { %v16028_v31 = vpop.f32.mrf.mxu0  ;;  %v11613_v60 = vpop.f32.mrf.mxu1 }
 0x40b   :  { %v16030_v19 = vpop.f32.mrf.mxu0  ;;  %v11614_v39 = vpop.f32.mrf.mxu1 }
 0x40c   :  { %v11615_v41 = vadd.f32 %v11614_v39, %v11613_v60 }
 0x40d   :  { %v16032_v25 = vpop.f32.mrf.mxu0  ;;  %v11616_v18 = vpop.f32.mrf.mxu1 }
 0x40e   :  { %v7808_v54 = vadd.f32 %v11615_v41, %v11569_v62 }
 0x40f   :  { %v16034_v8 = vpop.f32.mrf.mxu0  ;;  %v11617_v2 = vpop.f32.mrf.mxu1 }
 0x410   :  { %v11618_v56 = vadd.f32 %v11617_v2, %v11616_v18  ;;  %v11581_v2 = vadd.f32 %v11580_v44, %v16011_v37 }
 0x411   :  { %v16036_v63 = vpop.f32.mrf.mxu0  ;;  %v11619_v24 = vpop.f32.mrf.mxu1 }
 0x412   :  { %v7811_v57 = vadd.f32 %v11618_v56, %v11572_v7 }
 0x413   :  { %v16038_v21 = vpop.f32.mrf.mxu0  ;;  %v11620_v33 = vpop.f32.mrf.mxu1 }
 0x414   :  { %v11621_v4 = vadd.f32 %v11620_v33, %v11619_v24 }
 0x415   :  { %v16040_v55 = vpop.f32.mrf.mxu0  ;;  %v11622_v61 = vpop.f32.mrf.mxu1 }
 0x416   :  { %v7816_v10 = vadd.f32 %v11621_v4, %v11575_v22  ;;  %v8024_v4 = vld [vmem:[#allocation5 + $0xc] sm:$0x1] }
 0x417   :  { %v7880_v58 = vpop.f32.mrf.mxu0  ;;  %v11623_v1 = vpop.f32.mrf.mxu1 }
 0x418   :  { %v7881_v13 = vadd.f32 %v7880_v58, %v7808_v54  ;;  %v11624_v20 = vadd.f32 %v11623_v1, %v11622_v61  ;;  %v11584_v61 = vadd.f32 %v16021_v27, %v16016_v59  ;;  %v11587_v59 = vadd.f32 %v16028_v31, %v16023_v0 }
 0x419   :  { %v11954_v52 = vpop.f32.mrf.mxu0  ;;  %v11625_v43 = vpop.f32.mrf.mxu1 }
 0x41a   :  { %v7919_v48 = vadd.f32 %v7881_v13, %v15989_v42  ;;  %v7819_v3 = vadd.f32 %v11624_v20, %v11578_v14  ;;  %v8008_v52 = vld [vmem:[#allocation5 + $0x4] sm:$0x1] }
 0x41b   :  { %v7883_v46 = vpop.f32.mrf.mxu0  ;;  %v11626_v17 = vpop.f32.mrf.mxu1 }
 0x41c   :  { %v7884_v6 = vadd.f32 %v7883_v46, %v7811_v57  ;;  %v7936_v16 = vadd.f32 %v16046_v50, %v7919_v48  ;;  %v11627_v60 = vadd.f32 %v11626_v17, %v11625_v43  ;;  %v8016_v57 = vld [vmem:[#allocation5 + $0x8] sm:$0x1]  ;;  %v8028_v46 = vld [vmem:[#allocation5 + $0x10] sm:$0x1]  ;;  %v11590_v17 = vadd.f32 %v16032_v25, %v16030_v19 }
 0x41d   :  { %v11955_v9 = vpop.f32.mrf.mxu0  ;;  %v11628_v12 = vpop.f32.mrf.mxu1 }
 0x41e   :  { %v7920_v15 = vadd.f32 %v7884_v6, %v15993_v49  ;;  %v7824_v33 = vadd.f32 %v11627_v60, %v11581_v2 }
 0x41f   :  { %v7888_v36 = vpop.f32.mrf.mxu0  ;;  %v11629_v29 = vpop.f32.mrf.mxu1 }
 0x420   :  { %v7937_v5 = vadd.f32 %v16046_v50, %v7920_v15  ;;  %v7889_v42 = vadd.f32 %v7888_v36, %v7816_v10  ;;  %v11630_v62 = vadd.f32 %v11629_v29, %v11628_v12  ;;  %v8036_v10 = vld [vmem:[#allocation5 + $0x14] sm:$0x1] }
 0x421   :  { %v11958_v38 = vpop.f32.mrf.mxu0  ;;  %v11631_v35 = vpop.f32.mrf.mxu1 }
 0x422   :  { %v11129_v32 = vpack.c.bf16 %v7937_v5, %v7936_v16  ;;  %v7921_v49 = vadd.f32 %v7889_v42, %v15997_v28  ;;  %v7827_v43 = vadd.f32 %v11630_v62, %v11584_v61  ;;  %v8044_v16 = vld [vmem:[#allocation5 + $0x18] sm:$0x1] }
 0x423   :  { %v7891_v39 = vpop.f32.mrf.mxu0  ;;  %v11632_v18 = vpop.f32.mrf.mxu1 }
 0x424   :  { %11130 = vst [vmem:[#allocation4] sm:$0xff] %v11129_v32   ;;  %v7892_v24 = vadd.f32 %v7891_v39, %v7819_v3  ;;  %v7938_v58 = vadd.f32 %v16046_v50, %v7921_v49  ;;  %v11633_v28 = vadd.f32 %v11632_v18, %v11631_v35  ;;  %v8052_v49 = vld [vmem:[#allocation5 + $0x1c] sm:$0x1] }
 0x425   :  { %v11959_v41 = vpop.f32.mrf.mxu0  ;;  %v11634_v40 = vpop.f32.mrf.mxu1 }
 0x426   :  { %v7922_v26 = vadd.f32 %v7892_v24, %v16000_v51  ;;  %v8000_v51 = vld [vmem:[#allocation5] sm:$0x1]  ;;  %v7832_v14 = vadd.f32 %v11633_v28, %v11587_v59  ;;  %v8064_v28 = vld [vmem:[#allocation5 + $0x24] sm:$0x1]  ;;  %v8072_v59 = vld [vmem:[#allocation5 + $0x28] sm:$0x1] }
 0x427   :  { %v7896_v54 = vpop.f32.mrf.mxu0  ;;  %v11635_v56 = vpop.f32.mrf.mxu1 }
 0x428   :  { %v7939_v37 = vadd.f32 %v16046_v50, %v7922_v26  ;;  %v7897_v44 = vadd.f32 %v7896_v54, %v7824_v33  ;;  %v11636_v25 = vadd.f32 %v11635_v56, %v11634_v40 }
 0x429   :  { %v11962_v1 = vpop.f32.mrf.mxu0  ;;  %v11637_v7 = vpop.f32.mrf.mxu1 }
 0x42a   :  { %v11134_v27 = vpack.c.bf16 %v7939_v37, %v7938_v58  ;;  %v7923_v9 = vadd.f32 %v7897_v44, %v16003_v45  ;;  %v8056_v44 = vld [vmem:[#allocation5 + $0x20] sm:$0x1]  ;;  %v11593_v1 = vadd.f32 %v16036_v63, %v16034_v8 }
 0x42b   :  { %v7996_v22 = vld [vmem:[#allocation4] sm:$0x1]  ;;  %v8003_v48 = vld [vmem:[#allocation4] sm:$0x2]  ;;  %v8011_v6 = vld [vmem:[#allocation4] sm:$0x4]  ;;  %v7899_v12 = vpop.f32.mrf.mxu0  ;;  %v11638_v15 = vpop.f32.mrf.mxu1 }
 0x42c   :  { %v10907_v20 = vrot.slane %v8003_v48, 9  ;;  %v10908_v36 = vrot.slane %v8011_v6, 10  ;;  %v8019_v29 = vld [vmem:[#allocation4] sm:$0x8]  ;;  %v8027_v0 = vld [vmem:[#allocation4 + $0x4] sm:$0x1]  ;;  %v7900_v31 = vadd.f32 %v7899_v12, %v7827_v43  ;;  %v8001_v35 = vsel %vm16059_vm10, %v7996_v22, %v8000_v51 }
 0x42d   :  { %11151 = vst [vmem:[#allocation4 + $0x8] sm:$0xff] %v11134_v27   ;;  %v10909_v5 = vrot.slane %v8019_v29, 11  ;;  %v8031_v42 = vld [vmem:[#allocation4 + $0x4] sm:$0x2]  ;;  %v8039_v38 = vld [vmem:[#allocation4 + $0x4] sm:$0x4]  ;;  %v11963_v19 = vpop.f32.mrf.mxu0  ;;  %v8029_v45 = vsel %vm16059_vm10, %v8027_v0, %v8028_v46  ;;  %v11640_v18 = vpop.f32.mrf.mxu1  ;;  %v7940_v41 = vadd.f32 %v16046_v50, %v7923_v9  ;;  %v11639_v61 = vadd.f32 %v11638_v15, %v11637_v7 }
 0x42e   :  { %v10910_v32 = vrot.slane %v8031_v42, 9  ;;  %v10911_v3 = vrot.slane %v8039_v38, 10  ;;  %v8047_v60 = vld [vmem:[#allocation4 + $0x4] sm:$0x8]  ;;  %v7924_v39 = vadd.f32 %v7900_v31, %v16006_v47  ;;  %8002 = vst [vmem:[#allocation5] sm:$0x1] %v8001_v35  ;;  %v8009_v2 = vsel %vm16059_vm10, %v10907_v20, %v8008_v52 }
 0x42f   :  { %8030 = vst [vmem:[#allocation5 + $0x10] sm:$0x1] %v8029_v45  ;;  %v10912_v24 = vrot.slane %v8047_v60, 11  ;;  %v7904_v40 = vpop.f32.mrf.mxu0  ;;  %8010 = vst [vmem:[#allocation5 + $0x4] sm:$0x1] %v8009_v2  ;;  %v8017_v26 = vsel %vm16059_vm10, %v10908_v36, %v8016_v57  ;;  %v8025_v33 = vsel %vm16059_vm10, %v10909_v5, %v8024_v4  ;;  %v7835_v51 = vadd.f32 %v11636_v25, %v11590_v17  ;;  %v11641_v52 = vpop.f32.mrf.mxu1 }
 0x430   :  { %v7941_v47 = vadd.f32 %v16046_v50, %v7924_v39  ;;  %v7905_v62 = vadd.f32 %v7904_v40, %v7832_v14  ;;  %8018 = vst [vmem:[#allocation5 + $0x8] sm:$0x1] %v8017_v26  ;;  %8026 = vst [vmem:[#allocation5 + $0xc] sm:$0x1] %v8025_v33  ;;  %v8037_v54 = vsel %vm16059_vm10, %v10910_v32, %v8036_v10  ;;  %v8080_v27 = vld [vmem:[#allocation5 + $0x2c] sm:$0x1] }
 0x431   :  { %v11966_v56 = vpop.f32.mrf.mxu0  ;;  %8038 = vst [vmem:[#allocation5 + $0x14] sm:$0x1] %v8037_v54  ;;  %v8045_v58 = vsel %vm16059_vm10, %v10911_v3, %v8044_v16  ;;  %v8053_v37 = vsel %vm16059_vm10, %v10912_v24, %v8052_v49  ;;  %v8084_v43 = vld [vmem:[#allocation5 + $0x30] sm:$0x1]  ;;  %v11596_v57 = vadd.f32 %v16040_v55, %v16038_v21  ;;  %v8092_v9 = vld [vmem:[#allocation5 + $0x34] sm:$0x1]  ;;  %v7840_v20 = vadd.f32 %v11639_v61, %v11593_v1 }
 0x432   :  { %v11139_v7 = vpack.c.bf16 %v7941_v47, %v7940_v41  ;;  %8046 = vst [vmem:[#allocation5 + $0x18] sm:$0x1] %v8045_v58  ;;  %8054 = vst [vmem:[#allocation5 + $0x1c] sm:$0x1] %v8053_v37  ;;  %v7925_v48 = vadd.f32 %v7905_v62, %v16009_v30  ;;  %v8100_v12 = vld [vmem:[#allocation5 + $0x38] sm:$0x1]  ;;  %v11642_v21 = vadd.f32 %v11641_v52, %v11640_v18 }
 0x433   :  { %v7907_v6 = vpop.f32.mrf.mxu0  ;;  %v8108_v19 = vld [vmem:[#allocation5 + $0x3c] sm:$0x1]  ;;  %v8112_v26 = vld [vmem:[#allocation5 + $0x40] sm:$0x1]  ;;  %v12724_v40 = vld [vmem:[#allocation9 + $0x158] sm:$0xff]  }
 0x434   :  { %v8055_v4 = vld [vmem:[#allocation4 + $0x8] sm:$0x1]  ;;  %v8059_v46 = vld [vmem:[#allocation4 + $0x8] sm:$0x2]  ;;  %v8067_v22 = vld [vmem:[#allocation4 + $0x8] sm:$0x4]  ;;  %v7908_v10 = vadd.f32 %v7907_v6, %v7835_v51  ;;  %v7942_v35 = vadd.f32 %v16046_v50, %v7925_v48  ;;  %v7843_v41 = vadd.f32 %v11642_v21, %v11596_v57 }
 0x435   :  { %v10913_v8 = vrot.slane %v8059_v46, 9  ;;  %v10914_v63 = vrot.slane %v8067_v22, 10  ;;  %v8075_v17 = vld [vmem:[#allocation4 + $0x8] sm:$0x8]  ;;  %v8083_v15 = vld [vmem:[#allocation4 + $0xc] sm:$0x1]  ;;  %v11967_v31 = vpop.f32.mrf.mxu0  ;;  %v8057_v55 = vsel %vm16059_vm10, %v8055_v4, %v8056_v44 }
 0x436   :  { %11152 = vst [vmem:[#allocation4 + $0x10] sm:$0xff] %v11139_v7   ;;  %v10915_v36 = vrot.slane %v8075_v17, 11  ;;  %v8087_v29 = vld [vmem:[#allocation4 + $0xc] sm:$0x2]  ;;  %v8095_v0 = vld [vmem:[#allocation4 + $0xc] sm:$0x4]  ;;  %v8085_v30 = vsel %vm16059_vm10, %v8083_v15, %v8084_v43  ;;  %v7926_v42 = vadd.f32 %v7908_v10, %v16014_v11 }
 0x437   :  { %v10916_v14 = vrot.slane %v8087_v29, 9  ;;  %v10917_v16 = vrot.slane %v8095_v0, 10  ;;  %v8103_v5 = vld [vmem:[#allocation4 + $0xc] sm:$0x8]  ;;  %8058 = vst [vmem:[#allocation5 + $0x20] sm:$0x1] %v8057_v55  ;;  %v8065_v38 = vsel %vm16059_vm10, %v10913_v8, %v8064_v28  ;;  %v7912_v45 = vpop.f32.mrf.mxu0  ;;  %v8073_v32 = vsel %vm16059_vm10, %v10914_v63, %v8072_v59 }
 0x438   :  { %8086 = vst [vmem:[#allocation5 + $0x30] sm:$0x1] %v8085_v30  ;;  %v10918_v25 = vrot.slane %v8103_v5, 11  ;;  %8066 = vst [vmem:[#allocation5 + $0x24] sm:$0x1] %v8065_v38  ;;  %v8081_v3 = vsel %vm16059_vm10, %v10915_v36, %v8080_v27  ;;  %v7943_v60 = vadd.f32 %v16046_v50, %v7926_v42  ;;  %v7913_v11 = vadd.f32 %v7912_v45, %v7840_v20 }
 0x439   :  { %8074 = vst [vmem:[#allocation5 + $0x28] sm:$0x1] %v8073_v32  ;;  %8082 = vst [vmem:[#allocation5 + $0x2c] sm:$0x1] %v8081_v3  ;;  %v8093_v39 = vsel %vm16059_vm10, %v10916_v14, %v8092_v9  ;;  %v8101_v18 = vsel %vm16059_vm10, %v10917_v16, %v8100_v12  ;;  %v11970_v2 = vpop.f32.mrf.mxu0  ;;  %v8122_v52 = vld [vmem:[#allocation5] sm:$0x1] }
 0x43a   :  { %8094 = vst [vmem:[#allocation5 + $0x34] sm:$0x1] %v8093_v39  ;;  %8102 = vst [vmem:[#allocation5 + $0x38] sm:$0x1] %v8101_v18  ;;  %v8109_v49 = vsel %vm16059_vm10, %v10918_v25, %v8108_v19  ;;  %v11144_v24 = vpack.c.bf16 %v7943_v60, %v7942_v35  ;;  %v7927_v44 = vadd.f32 %v7913_v11, %v16019_v23  ;;  %v8132_v22 = vld [vmem:[#allocation5 + $0x4] sm:$0x1] }
 0x43b   :  { %8110 = vst [vmem:[#allocation5 + $0x3c] sm:$0x1] %v8109_v49  ;;  %v7915_v61 = vpop.f32.mrf.mxu0  ;;  %v8142_v13 = vld [vmem:[#allocation5 + $0x8] sm:$0x1]  ;;  %v8152_v9 = vld [vmem:[#allocation5 + $0xc] sm:$0x1] }
 0x43c   :  { %11153 = vst [vmem:[#allocation4 + $0x18] sm:$0xff] %v11144_v24   ;;  %v7916_v28 = vadd.f32 %v7915_v61, %v7843_v41  ;;  %v7944_v23 = vadd.f32 %v16046_v50, %v7927_v44  ;;  %v8160_v29 = vld [vmem:[#allocation5 + $0x10] sm:$0x1]  ;;  %v8170_v55 = vld [vmem:[#allocation5 + $0x14] sm:$0x1]  ;;  %v12708_v18 = vld [vmem:[#allocation9 + $0x170] sm:$0xff]  }
 0x43d   :  { %v8111_v33 = vld [vmem:[#allocation4 + $0x10] sm:$0x1]  ;;  %v8115_v47 = vld [vmem:[#allocation4 + $0x14] sm:$0x1]  ;;  %v8125_v62 = vld [vmem:[#allocation4 + $0x14] sm:$0x2]  ;;  %v11971_v51 = vpop.f32.mrf.mxu0 }
 0x43e   :  { %v8117_v54 = vshll.u32 %v8115_v47, 16  ;;  %v8127_v56 = vshll.u32 %v8125_v62, 16  ;;  %v8135_v58 = vld [vmem:[#allocation4 + $0x14] sm:$0x4]  ;;  %v8145_v37 = vld [vmem:[#allocation4 + $0x14] sm:$0x8]  ;;  %v8113_v59 = vsel %vm16059_vm10, %v8111_v33, %v8112_v26  ;;  %v7928_v43 = vadd.f32 %v7916_v28, %v16026_v53 }
 0x43f   :  { %v8137_v1 = vshll.u32 %v8135_v58, 16  ;;  %v8147_v7 = vshll.u32 %v8145_v37, 16  ;;  %8114 = vst [vmem:[#allocation5 + $0x40] sm:$0x1] %v8113_v59  ;;  %v12706_v35 = vld [vmem:[#allocation9 + $0x138] sm:$0xff]   ;;  %v12709_v44 = vld [vmem:[#allocation9 + $0x1f0] sm:$0xff]  }
 0x440   :  { %v10919_v27 = vrot.slane %v8127_v56, 9  ;;  %v8123_v57 = vsel %vm16113_vm12, %v8117_v54, %v8122_v52  ;;  %v7945_v48 = vadd.f32 %v16046_v50, %v7928_v43  ;;  %v8180_v32 = vld [vmem:[#allocation5 + $0x18] sm:$0x1]  ;;  %v12707_v39 = vld [vmem:[#allocation9 + $0x1b8] sm:$0xff]   ;;  %v8190_v24 = vld [vmem:[#allocation5 + $0x1c] sm:$0x1] }
 0x441   :  { %v10920_v4 = vrot.slane %v8137_v1, 10  ;;  %v10921_v46 = vrot.slane %v8147_v7, 11  ;;  %8124 = vst [vmem:[#allocation5] sm:$0x1] %v8123_v57  ;;  %v8198_v61 = vld [vmem:[#allocation5 + $0x20] sm:$0x1] }
 0x442   :  { %v8133_v6 = vsel %vm16113_vm12, %v10919_v27, %v8132_v22  ;;  %v11149_v8 = vpack.c.bf16 %v7945_v48, %v7944_v23  ;;  %v8208_v54 = vld [vmem:[#allocation5 + $0x24] sm:$0x1]  ;;  %v8218_v1 = vld [vmem:[#allocation5 + $0x28] sm:$0x1]  ;;  %v8228_v7 = vld [vmem:[#allocation5 + $0x2c] sm:$0x1] }
 0x443   :  { %8134 = vst [vmem:[#allocation5 + $0x4] sm:$0x1] %v8133_v6  ;;  %v8143_v53 = vsel %vm16113_vm12, %v10920_v4, %v8142_v13  ;;  %v8153_v12 = vsel %vm16113_vm12, %v10921_v46, %v8152_v9  ;;  %v8155_v63 = vld [vmem:[#allocation4 + $0x18] sm:$0x1]  ;;  %v8163_v17 = vld [vmem:[#allocation4 + $0x18] sm:$0x2] }
 0x444   :  { %8144 = vst [vmem:[#allocation5 + $0x8] sm:$0x1] %v8143_v53  ;;  %8154 = vst [vmem:[#allocation5 + $0xc] sm:$0x1] %v8153_v12  ;;  %v8173_v15 = vld [vmem:[#allocation4 + $0x18] sm:$0x4] }
 0x445   :  { %v8157_v10 = vshll.u32 %v8155_v63, 16  ;;  %v8165_v50 = vshll.u32 %v8163_v17, 16  ;;  %v8175_v20 = vshll.u32 %v8173_v15, 16  ;;  %v8183_v36 = vld [vmem:[#allocation4 + $0x18] sm:$0x8]  ;;  %11154 = vst [vmem:[#allocation4 + $0x20] sm:$0xff] %v11149_v8  }
 0x446   :  { %v8185_v0 = vshll.u32 %v8183_v36, 16  ;;  %v8193_v31 = vld [vmem:[#allocation4 + $0x1c] sm:$0x1]  ;;  %v8201_v21 = vld [vmem:[#allocation4 + $0x1c] sm:$0x2]  ;;  %v12710_v23 = vld [vmem:[#allocation9 + $0x130] sm:$0xff]  }
 0x447   :  { %v10922_v30 = vrot.slane %v8165_v50, 9  ;;  %v10923_v14 = vrot.slane %v8175_v20, 10  ;;  %v8195_v16 = vshll.u32 %v8193_v31, 16  ;;  %v8203_v5 = vshll.u32 %v8201_v21, 16  ;;  %v8211_v42 = vld [vmem:[#allocation4 + $0x1c] sm:$0x4] }
 0x448   :  { %v10924_v38 = vrot.slane %v8185_v0, 11  ;;  %v8213_v19 = vshll.u32 %v8211_v42, 16  ;;  %v8221_v25 = vld [vmem:[#allocation4 + $0x1c] sm:$0x8]  ;;  %v8161_v45 = vsel %vm16113_vm12, %v8157_v10, %v8160_v29  ;;  %v12711_v9 = vld [vmem:[#allocation9 + $0x1b0] sm:$0xff]   ;;  %v12712_v17 = vld [vmem:[#allocation9 + $0x168] sm:$0xff]  }
 0x449   :  { %v10925_v3 = vrot.slane %v8203_v5, 9  ;;  %v8223_v60 = vshll.u32 %v8221_v25, 16  ;;  %8162 = vst [vmem:[#allocation5 + $0x10] sm:$0x1] %v8161_v45  ;;  %v8171_v2 = vsel %vm16113_vm12, %v10922_v30, %v8170_v55  ;;  %v8181_v49 = vsel %vm16113_vm12, %v10923_v14, %v8180_v32  ;;  %v8236_v53 = vld [vmem:[#allocation5 + $0x30] sm:$0x1] }
 0x44a   :  { %v8277_v11 = vld [vmem:[#allocation5] sm:$0xff]  ;;  %v10926_v41 = vrot.slane %v8213_v19, 10  ;;  %8172 = vst [vmem:[#allocation5 + $0x14] sm:$0x1] %v8171_v2  ;;  %8182 = vst [vmem:[#allocation5 + $0x18] sm:$0x1] %v8181_v49  ;;  %v8191_v62 = vsel %vm16113_vm12, %v10924_v38, %v8190_v24  ;;  %v8199_v28 = vsel %vm16113_vm12, %v8195_v16, %v8198_v61 }
 0x44b   :  { %v10932_v26 = vcombine.low %v8277_v11, %v8277_v11  ;;  %v10933_v33 = vcombine.high %v8277_v11, %v8277_v11  ;;  %v8278_v47 = vld [vmem:[#allocation5 + $0x8] sm:$0xff]  ;;  %v10927_v56 = vrot.slane %v8223_v60, 11  ;;  %8192 = vst [vmem:[#allocation5 + $0x1c] sm:$0x1] %v8191_v62  ;;  %8200 = vst [vmem:[#allocation5 + $0x20] sm:$0x1] %v8199_v28  ;;  %v8209_v27 = vsel %vm16113_vm12, %v10925_v3, %v8208_v54 }
 0x44c   :  { %v10934_v58 = vcombine.low %v8278_v47, %v8278_v47  ;;  %v10935_v37 = vcombine.high %v8278_v47, %v8278_v47  ;;  %v8231_v51 = vld [vmem:[#allocation4 + $0x20] sm:$0x1]  ;;  %v8239_v52 = vld [vmem:[#allocation4 + $0x20] sm:$0x2]  ;;  %v8249_v59 = vld [vmem:[#allocation4 + $0x20] sm:$0x4]  ;;  %v8219_v43 = vsel %vm16113_vm12, %v10926_v41, %v8218_v1 }
 0x44d   :  { %9473 = vmatprep.mubr.bf16.mxu1 %v10933_v33  ;;  %v8233_v57 = vshll.u32 %v8231_v51, 16  ;;  %v8241_v4 = vshll.u32 %v8239_v52, 16  ;;  %v8251_v46 = vshll.u32 %v8249_v59, 16  ;;  %v8259_v22 = vld [vmem:[#allocation4 + $0x20] sm:$0x8]  ;;  %v8229_v48 = vsel %vm16113_vm12, %v10927_v56, %v8228_v7  ;;  %v12715_v20 = vld [vmem:[#allocation9 + $0x1e8] sm:$0xff]  }
 0x44e   :  { %9513 = vmatprep.mubr.bf16.mxu0 %v10935_v37  ;;  %9474 = vmatmul.mubr.bf16.vlgmr.msra.gmra.mxu1 %v10932_v26  ;;  %8210 = vst [vmem:[#allocation5 + $0x24] sm:$0x1] %v8209_v27  ;;  %8220 = vst [vmem:[#allocation5 + $0x28] sm:$0x1] %v8219_v43  ;;  %v8261_v6 = vshll.u32 %v8259_v22, 16  ;;  %v12718_v5 = vld [vmem:[#allocation9 + $0x128] sm:$0xff]  }
 0x44f   :  { %v8269_v13 = vld [vmem:[#allocation4 + $0x24] sm:$0x1]  ;;  %9514 = vmatmul.mubr.bf16.vlgmr.msra.gmra.mxu0 %v10934_v58  ;;  %11695 = vmatpush3.bf16.msra.mxu1 %v12706_v35  ;;  %8230 = vst [vmem:[#allocation5 + $0x2c] sm:$0x1] %v8229_v48  ;;  %v10928_v12 = vrot.slane %v8241_v4, 9  ;;  %v10929_v8 = vrot.slane %v8251_v46, 10  ;;  %v8237_v15 = vsel %vm16113_vm12, %v8233_v57, %v8236_v53 }
 0x450   :  { %v8271_v63 = vshll.u32 %v8269_v13, 16  ;;  %11717 = vmatpush3.bf16.msra.mxu0 %v12707_v39  ;;  %11696 = vmatprep.subr.bf16.mxu1 %v12708_v18  ;;  %v8246_v10 = vld [vmem:[#allocation5 + $0x34] sm:$0x1]  ;;  %v10930_v50 = vrot.slane %v8261_v6, 11  ;;  %8238 = vst [vmem:[#allocation5 + $0x30] sm:$0x1] %v8237_v15 }
 0x451   :  { %11718 = vmatprep.subr.bf16.mxu0 %v12709_v44  ;;  %v8256_v36 = vld [vmem:[#allocation5 + $0x38] sm:$0x1]  ;;  %v8274_v29 = vld [vmem:[#allocation5 + $0x40] sm:$0x1]  ;;  %v16149_v0 = vld [vmem:[#allocation5 + $0x10] sm:$0xff]  ;;  %v8247_v31 = vsel %vm16113_vm12, %v10928_v12, %v8246_v10 }
 0x452   :  { %v8257_v21 = vsel %vm16113_vm12, %v10929_v8, %v8256_v36  ;;  %v8266_v55 = vld [vmem:[#allocation5 + $0x3c] sm:$0x1]  ;;  %v8275_v30 = vsel %vm16113_vm12, %v8271_v63, %v8274_v29  ;;  %v10937_v14 = vcombine.high %v16149_v0, %v16149_v0  ;;  %8248 = vst [vmem:[#allocation5 + $0x34] sm:$0x1] %v8247_v31  ;;  %v12720_v25 = vld [vmem:[#allocation9 + $0x160] sm:$0xff]   ;;  %v12725_v3 = vld [vmem:[#allocation9 + $0x1d8] sm:$0xff]   ;;  %v10936_v28 = vcombine.low %v16149_v0, %v16149_v0 }
 0x453   :  { %11697 = vmatpush3.bf16.msra.mxu1 %v12710_v23  ;;  %v16159_v16 = vld [vmem:[#allocation5 + $0x18] sm:$0xff]  ;;  %8258 = vst [vmem:[#allocation5 + $0x38] sm:$0x1] %v8257_v21  ;;  %v8267_v42 = vsel %vm16113_vm12, %v10930_v50, %v8266_v55  ;;  %8276 = vst [vmem:[#allocation5 + $0x40] sm:$0x1] %v8275_v30  ;;  %v12726_v60 = vld [vmem:[#allocation9 + $0x118] sm:$0xff]  }
 0x454   :  { %11719 = vmatpush3.bf16.msra.mxu0 %v12711_v9  ;;  %11698 = vmatprep.subr.bf16.mxu1 %v12712_v17  ;;  %v10939_v38 = vcombine.high %v16159_v16, %v16159_v16  ;;  %v12719_v19 = vld [vmem:[#allocation9 + $0x1a8] sm:$0xff]   ;;  %8268 = vst [vmem:[#allocation5 + $0x3c] sm:$0x1] %v8267_v42  ;;  %v12721_v35 = vld [vmem:[#allocation9 + $0x1e0] sm:$0xff]   ;;  %v12727_v11 = vld [vmem:[#allocation9 + $0x198] sm:$0xff]   ;;  %v10938_v51 = vcombine.low %v16159_v16, %v16159_v16 }
 0x455   :  { %9553 = vmatprep.mubr.bf16.mxu1 %v10937_v14  ;;  %11720 = vmatprep.subr.bf16.mxu0 %v12715_v20  ;;  %v12722_v45 = vld [vmem:[#allocation9 + $0x120] sm:$0xff]   ;;  %v12728_v39 = vld [vmem:[#allocation9 + $0x150] sm:$0xff]   ;;  %v12732_v24 = vld [vmem:[#allocation9 + $0x148] sm:$0xff]  }
 0x456   :  { %9593 = vmatprep.mubr.bf16.mxu0 %v10939_v38  ;;  %v12723_v32 = vld [vmem:[#allocation9 + $0x1a0] sm:$0xff]   ;;  %v12729_v18 = vld [vmem:[#allocation9 + $0x1d0] sm:$0xff]   ;;  %v12733_v41 = vld [vmem:[#allocation9 + $0x1c8] sm:$0xff]  }
 0x457   :  { %11699 = vmatpush3.bf16.msra.mxu1 %v12718_v5  ;;  %v12730_v2 = vld [vmem:[#allocation9 + $0x110] sm:$0xff]   ;;  %v12734_v26 = vld [vmem:[#allocation9 + $0x108] sm:$0xff]   ;;  %v12736_v47 = vld [vmem:[#allocation9 + $0x140] sm:$0xff]  }
 0x458   :  { %11721 = vmatpush3.bf16.msra.mxu0 %v12719_v19  ;;  %11700 = vmatprep.subr.bf16.mxu1 %v12720_v25  ;;  %v12731_v49 = vld [vmem:[#allocation9 + $0x190] sm:$0xff]   ;;  %v12735_v33 = vld [vmem:[#allocation9 + $0x188] sm:$0xff]   ;;  %v12737_v62 = vld [vmem:[#allocation9 + $0x1c0] sm:$0xff]  }
 0x459   :  { %11722 = vmatprep.subr.bf16.mxu0 %v12721_v35  ;;  %v12738_v61 = vld [vmem:[#allocation9 + $0x100] sm:$0xff]   ;;  %v12740_v56 = vld [vmem:[#allocation9 + $0x278] sm:$0xff]   ;;  %v16165_v44 = vld [vmem:[#allocation5 + $0x20] sm:$0xff] }
 0x45a   :  { %v12739_v54 = vld [vmem:[#allocation9 + $0x180] sm:$0xff]   ;;  %v12741_v58 = vld [vmem:[#allocation9 + $0x2f8] sm:$0xff]   ;;  %v12748_v52 = vld [vmem:[#allocation9 + $0x270] sm:$0xff]   ;;  %v10941_v59 = vcombine.high %v16165_v44, %v16165_v44  ;;  %v10940_v19 = vcombine.low %v16165_v44, %v16165_v44 }
 0x45b   :  { %11701 = vmatpush3.bf16.msra.mxu1 %v12722_v45  ;;  %v12742_v37 = vld [vmem:[#allocation9 + $0x238] sm:$0xff]   ;;  %v12749_v27 = vld [vmem:[#allocation9 + $0x2f0] sm:$0xff]   ;;  %v12752_v46 = vld [vmem:[#allocation9 + $0x268] sm:$0xff]  }
 0x45c   :  { %11723 = vmatpush3.bf16.msra.mxu0 %v12723_v32  ;;  %11702 = vmatprep.subr.bf16.mxu1 %v12724_v40  ;;  %v12745_v1 = vld [vmem:[#allocation9 + $0x2b8] sm:$0xff]   ;;  %v12750_v57 = vld [vmem:[#allocation9 + $0x230] sm:$0xff]   ;;  %v12753_v22 = vld [vmem:[#allocation9 + $0x2e8] sm:$0xff]  }
 0x45d   :  { %11724 = vmatprep.subr.bf16.mxu0 %v12725_v3  ;;  %v16169_v7 = vld [vmem:[#allocation5 + $0x28] sm:$0xff]  ;;  %v12754_v23 = vld [vmem:[#allocation9 + $0x228] sm:$0xff]   ;;  %v12756_v6 = vld [vmem:[#allocation9 + $0x260] sm:$0xff]  }
 0x45e   :  { %v10943_v43 = vcombine.high %v16169_v7, %v16169_v7  ;;  %v12751_v4 = vld [vmem:[#allocation9 + $0x2b0] sm:$0xff]   ;;  %v12755_v48 = vld [vmem:[#allocation9 + $0x2a8] sm:$0xff]   ;;  %v12757_v13 = vld [vmem:[#allocation9 + $0x2e0] sm:$0xff]   ;;  %v10942_v45 = vcombine.low %v16169_v7, %v16169_v7 }
 0x45f   :  { %11703 = vmatpush3.bf16.msra.mxu1 %v12726_v60  ;;  %v12758_v9 = vld [vmem:[#allocation9 + $0x220] sm:$0xff]   ;;  %v12760_v12 = vld [vmem:[#allocation9 + $0x258] sm:$0xff]   ;;  %v12764_v15 = vld [vmem:[#allocation9 + $0x250] sm:$0xff]  }
 0x460   :  { %11725 = vmatpush3.bf16.msra.mxu0 %v12727_v11  ;;  %11704 = vmatprep.subr.bf16.mxu1 %v12728_v39  ;;  %v12759_v53 = vld [vmem:[#allocation9 + $0x2a0] sm:$0xff]   ;;  %v12761_v8 = vld [vmem:[#allocation9 + $0x2d8] sm:$0xff]   ;;  %v12765_v10 = vld [vmem:[#allocation9 + $0x2d0] sm:$0xff]  }
 0x461   :  { %11726 = vmatprep.subr.bf16.mxu0 %v12729_v18  ;;  %v12762_v63 = vld [vmem:[#allocation9 + $0x218] sm:$0xff]   ;;  %v12766_v50 = vld [vmem:[#allocation9 + $0x210] sm:$0xff]   ;;  %v12768_v36 = vld [vmem:[#allocation9 + $0x248] sm:$0xff]  }
 0x462   :  { %v12763_v17 = vld [vmem:[#allocation9 + $0x298] sm:$0xff]   ;;  %v12767_v20 = vld [vmem:[#allocation9 + $0x290] sm:$0xff]   ;;  %v12769_v29 = vld [vmem:[#allocation9 + $0x2c8] sm:$0xff]  }
 0x463   :  { %11705 = vmatpush3.bf16.msra.mxu1 %v12730_v2  ;;  %v12770_v0 = vld [vmem:[#allocation9 + $0x208] sm:$0xff]   ;;  %v12772_v21 = vld [vmem:[#allocation9 + $0x240] sm:$0xff]   ;;  %v12776_v16 = vld [vmem:[#allocation9 + $0x378] sm:$0xff]  }
 0x464   :  { %11727 = vmatpush3.bf16.msra.mxu0 %v12731_v49  ;;  %11706 = vmatprep.subr.bf16.mxu1 %v12732_v24  ;;  %v12771_v31 = vld [vmem:[#allocation9 + $0x288] sm:$0xff]   ;;  %v12773_v55 = vld [vmem:[#allocation9 + $0x2c0] sm:$0xff]   ;;  %v12777_v5 = vld [vmem:[#allocation9 + $0x3f8] sm:$0xff]  }
 0x465   :  { %11728 = vmatprep.subr.bf16.mxu0 %v12733_v41  ;;  %v12774_v30 = vld [vmem:[#allocation9 + $0x200] sm:$0xff]   ;;  %v12778_v42 = vld [vmem:[#allocation9 + $0x338] sm:$0xff]   ;;  %v12784_v32 = vld [vmem:[#allocation9 + $0x370] sm:$0xff]  }
 0x466   :  { %v12775_v14 = vld [vmem:[#allocation9 + $0x280] sm:$0xff]   ;;  %v12781_v25 = vld [vmem:[#allocation9 + $0x3b8] sm:$0xff]   ;;  %v12785_v3 = vld [vmem:[#allocation9 + $0x3f0] sm:$0xff]  }
 0x467   :  { %11707 = vmatpush3.bf16.msra.mxu1 %v12734_v26  ;;  %v16177_v38 = vld [vmem:[#allocation5 + $0x30] sm:$0xff]  ;;  %v16181_v35 = vld [vmem:[#allocation5 + $0x38] sm:$0xff]  ;;  %v12786_v11 = vld [vmem:[#allocation9 + $0x330] sm:$0xff]  }
 0x468   :  { %11729 = vmatpush3.bf16.msra.mxu0 %v12735_v33  ;;  %11708 = vmatprep.subr.bf16.mxu1 %v12736_v47  ;;  %v10945_v40 = vcombine.high %v16177_v38, %v16177_v38  ;;  %v10947_v60 = vcombine.high %v16181_v35, %v16181_v35  ;;  %v12787_v39 = vld [vmem:[#allocation9 + $0x3b0] sm:$0xff]   ;;  %v12788_v18 = vld [vmem:[#allocation9 + $0x368] sm:$0xff]   ;;  %v12792_v41 = vld [vmem:[#allocation9 + $0x360] sm:$0xff]  }
 0x469   :  { %11730 = vmatprep.subr.bf16.mxu0 %v12737_v62  ;;  %v12789_v2 = vld [vmem:[#allocation9 + $0x3e8] sm:$0xff]   ;;  %v12793_v26 = vld [vmem:[#allocation9 + $0x3e0] sm:$0xff]   ;;  %v12796_v62 = vld [vmem:[#allocation9 + $0x358] sm:$0xff]  }
 0x46a   :  { %v12790_v49 = vld [vmem:[#allocation9 + $0x328] sm:$0xff]   ;;  %v12794_v33 = vld [vmem:[#allocation9 + $0x320] sm:$0xff]   ;;  %v12802_v44 = vld [vmem:[#allocation9 + $0x310] sm:$0xff]  }
 0x46b   :  { %11709 = vmatpush3.bf16.msra.mxu1 %v12738_v61  ;;  %v12791_v24 = vld [vmem:[#allocation9 + $0x3a8] sm:$0xff]   ;;  %v12795_v47 = vld [vmem:[#allocation9 + $0x3a0] sm:$0xff]   ;;  %v12797_v61 = vld [vmem:[#allocation9 + $0x3d8] sm:$0xff]  }
 0x46c   :  { %11731 = vmatpush3.bf16.msra.mxu0 %v12739_v54  ;;  %11738 = vmatprep.subr.bf16.mxu1 %v12740_v56  ;;  %v12798_v54 = vld [vmem:[#allocation9 + $0x318] sm:$0xff]   ;;  %v12805_v7 = vld [vmem:[#allocation9 + $0x3c8] sm:$0xff]  }
 0x46d   :  { %11760 = vmatprep.subr.bf16.mxu0 %v12741_v58  ;;  %v12799_v56 = vld [vmem:[#allocation9 + $0x398] sm:$0xff]   ;;  %v12800_v58 = vld [vmem:[#allocation9 + $0x350] sm:$0xff]  }
 0x46e   :  { %9554 = vmatmul.mubr.bf16.vlgmr.msra.gmra.mxu1 %v10936_v28  ;;  %v12803_v28 = vld [vmem:[#allocation9 + $0x390] sm:$0xff]  }
 0x46f   :  { %9594 = vmatmul.mubr.bf16.vlgmr.msra.gmra.mxu0 %v10938_v51  ;;  %11739 = vmatpush3.bf16.msra.mxu1 %v12742_v37  ;;  %v12801_v37 = vld [vmem:[#allocation9 + $0x3d0] sm:$0xff]   ;;  %v12806_v51 = vld [vmem:[#allocation9 + $0x308] sm:$0xff]  }
 0x470   :  { %9633 = vmatprep.mubr.bf16.mxu1 %v10941_v59  ;;  %11761 = vmatpush3.bf16.msra.mxu0 %v12745_v1  ;;  %v12804_v1 = vld [vmem:[#allocation9 + $0x348] sm:$0xff]   ;;  %v12808_v59 = vld [vmem:[#allocation9 + $0x340] sm:$0xff]  }
 0x471   :  { %9673 = vmatprep.mubr.bf16.mxu0 %v10943_v43  ;;  %11740 = vmatprep.subr.bf16.mxu1 %v12748_v52  ;;  %v12807_v52 = vld [vmem:[#allocation9 + $0x388] sm:$0xff]   ;;  %v12810_v43 = vld [vmem:[#allocation9 + $0x300] sm:$0xff]  }
 0x472   :  { %11762 = vmatprep.subr.bf16.mxu0 %v12749_v27  ;;  %v12809_v27 = vld [vmem:[#allocation9 + $0x3c0] sm:$0xff]  }
 0x473   :  { %11741 = vmatpush3.bf16.msra.mxu1 %v12750_v57  ;;  %v12811_v57 = vld [vmem:[#allocation9 + $0x380] sm:$0xff]  }
 0x474   :  { %11763 = vmatpush3.bf16.msra.mxu0 %v12751_v4  ;;  %11742 = vmatprep.subr.bf16.mxu1 %v12752_v46  ;;  %v12812_v4 = vld [vmem:[#allocation9 + $0x438] sm:$0xff]   ;;  %v10944_v46 = vcombine.low %v16177_v38, %v16177_v38 }
 0x475   :  { %11764 = vmatprep.subr.bf16.mxu0 %v12753_v22  ;;  %v10946_v22 = vcombine.low %v16181_v35, %v16181_v35  ;;  %v9803_v35 = vld [vmem:[%s16288_s7 + $0x8] sm:$0xff] }
 0x477   :  { %11743 = vmatpush3.bf16.msra.mxu1 %v12754_v23  ;;  %v12813_v23 = vld [vmem:[#allocation9 + $0x430] sm:$0xff]  }
 0x478   :  { %11765 = vmatpush3.bf16.msra.mxu0 %v12755_v48  ;;  %11744 = vmatprep.subr.bf16.mxu1 %v12756_v6  ;;  %v12814_v48 = vld [vmem:[#allocation9 + $0x428] sm:$0xff]   ;;  %v12815_v6 = vld [vmem:[#allocation9 + $0x420] sm:$0xff]  }
 0x479   :  { %11766 = vmatprep.subr.bf16.mxu0 %v12757_v13  ;;  %v12816_v13 = vld [vmem:[#allocation9 + $0x418] sm:$0xff]  }
 0x47b   :  { %11745 = vmatpush3.bf16.msra.mxu1 %v12758_v9  ;;  %v12817_v9 = vld [vmem:[#allocation9 + $0x410] sm:$0xff]  }
 0x47c   :  { %11767 = vmatpush3.bf16.msra.mxu0 %v12759_v53  ;;  %11746 = vmatprep.subr.bf16.mxu1 %v12760_v12  ;;  %v12818_v53 = vld [vmem:[#allocation9 + $0x408] sm:$0xff]   ;;  %v12819_v12 = vld [vmem:[#allocation9 + $0x400] sm:$0xff]  }
 0x47d   :  { %11768 = vmatprep.subr.bf16.mxu0 %v12761_v8  ;;  %v12820_v8 = vld [vmem:[#allocation5 + $0x40] ss:$0 sps:$4 sm:$0xff]  }
 0x47f   :  { %11747 = vmatpush3.bf16.msra.mxu1 %v12762_v63  ;;  %v9817_v63 = vld [vmem:[%s16288_s7 + $0x78] sm:$0xff] }
 0x480   :  { %11769 = vmatpush3.bf16.msra.mxu0 %v12763_v17  ;;  %11748 = vmatprep.subr.bf16.mxu1 %v12764_v15  ;;  %v9816_v17 = vld [vmem:[%s16288_s7 + $0x70] sm:$0xff]  ;;  %v9815_v15 = vld [vmem:[%s16288_s7 + $0x68] sm:$0xff] }
 0x481   :  { %11770 = vmatprep.subr.bf16.mxu0 %v12765_v10  ;;  %v9814_v10 = vld [vmem:[%s16288_s7 + $0x60] sm:$0xff] }
 0x483   :  { %11749 = vmatpush3.bf16.msra.mxu1 %v12766_v50  ;;  %v9813_v50 = vld [vmem:[%s16288_s7 + $0x58] sm:$0xff] }
 0x484   :  { %11771 = vmatpush3.bf16.msra.mxu0 %v12767_v20  ;;  %11750 = vmatprep.subr.bf16.mxu1 %v12768_v36  ;;  %v9812_v20 = vld [vmem:[%s16288_s7 + $0x50] sm:$0xff]  ;;  %v9811_v36 = vld [vmem:[%s16288_s7 + $0x48] sm:$0xff] }
 0x485   :  { %11772 = vmatprep.subr.bf16.mxu0 %v12769_v29  ;;  %v9810_v29 = vld [vmem:[%s16288_s7 + $0x40] sm:$0xff] }
 0x487   :  { %11751 = vmatpush3.bf16.msra.mxu1 %v12770_v0  ;;  %v9809_v0 = vld [vmem:[%s16288_s7 + $0x38] sm:$0xff] }
 0x488   :  { %11773 = vmatpush3.bf16.msra.mxu0 %v12771_v31  ;;  %11752 = vmatprep.subr.bf16.mxu1 %v12772_v21  ;;  %v9808_v31 = vld [vmem:[%s16288_s7 + $0x30] sm:$0xff]  ;;  %v9807_v21 = vld [vmem:[%s16288_s7 + $0x28] sm:$0xff] }
 0x489   :  { %11774 = vmatprep.subr.bf16.mxu0 %v12773_v55  ;;  %v9806_v55 = vld [vmem:[%s16288_s7 + $0x20] sm:$0xff] }
 0x48b   :  { %11753 = vmatpush3.bf16.msra.mxu1 %v12774_v30  ;;  %v9805_v30 = vld [vmem:[%s16288_s7 + $0x18] sm:$0xff] }
 0x48c   :  { %11775 = vmatpush3.bf16.msra.mxu0 %v12775_v14  ;;  %11782 = vmatprep.subr.bf16.mxu1 %v12776_v16 }
 0x48d   :  { %11804 = vmatprep.subr.bf16.mxu0 %v12777_v5  ;;  %v10931_v5 = vld [vmem:[%s16287_s6] ss:$0 sm:$0xff] }
 0x48e   :  { %9634 = vmatmul.mubr.bf16.vlgmr.msra.gmra.mxu1 %v10940_v19 }
 0x48f   :  { %9674 = vmatmul.mubr.bf16.vlgmr.msra.gmra.mxu0 %v10942_v45  ;;  %11783 = vmatpush3.bf16.msra.mxu1 %v12778_v42 }
 0x490   :  { %9713 = vmatprep.mubr.bf16.mxu1 %v10945_v40  ;;  %11805 = vmatpush3.bf16.msra.mxu0 %v12781_v25  ;;  %v9804_v25 = vld [vmem:[%s16288_s7 + $0x10] sm:$0xff] }
 0x491   :  { %9753 = vmatprep.mubr.bf16.mxu0 %v10947_v60  ;;  %11784 = vmatprep.subr.bf16.mxu1 %v12784_v32  ;;  %v9802_v60 = vld [vmem:[%s16288_s7] sm:$0xff] }
 0x492   :  { %11806 = vmatprep.subr.bf16.mxu0 %v12785_v3 }
 0x493   :  { %11785 = vmatpush3.bf16.msra.mxu1 %v12786_v11 }
 0x494   :  { %11807 = vmatpush3.bf16.msra.mxu0 %v12787_v39  ;;  %11786 = vmatprep.subr.bf16.mxu1 %v12788_v18 }
 0x495   :  { %11808 = vmatprep.subr.bf16.mxu0 %v12789_v2 }
 0x497   :  { %11787 = vmatpush3.bf16.msra.mxu1 %v12790_v49 }
 0x498   :  { %11809 = vmatpush3.bf16.msra.mxu0 %v12791_v24  ;;  %11788 = vmatprep.subr.bf16.mxu1 %v12792_v41 }
 0x499   :  { %11810 = vmatprep.subr.bf16.mxu0 %v12793_v26 }
 0x49b   :  { %11789 = vmatpush3.bf16.msra.mxu1 %v12794_v33 }
 0x49c   :  { %11811 = vmatpush3.bf16.msra.mxu0 %v12795_v47  ;;  %11790 = vmatprep.subr.bf16.mxu1 %v12796_v62 }
 0x49d   :  { %11812 = vmatprep.subr.bf16.mxu0 %v12797_v61 }
 0x49f   :  { %11791 = vmatpush3.bf16.msra.mxu1 %v12798_v54 }
 0x4a0   :  { %11813 = vmatpush3.bf16.msra.mxu0 %v12799_v56  ;;  %11792 = vmatprep.subr.bf16.mxu1 %v12800_v58 }
 0x4a1   :  { %11814 = vmatprep.subr.bf16.mxu0 %v12801_v37 }
 0x4a3   :  { %11793 = vmatpush3.bf16.msra.mxu1 %v12802_v44 }
 0x4a4   :  { %11815 = vmatpush3.bf16.msra.mxu0 %v12803_v28  ;;  %11794 = vmatprep.subr.bf16.mxu1 %v12804_v1 }
 0x4a5   :  { %11816 = vmatprep.subr.bf16.mxu0 %v12805_v7 }
 0x4a7   :  { %11795 = vmatpush3.bf16.msra.mxu1 %v12806_v51 }
 0x4a8   :  { %11817 = vmatpush3.bf16.msra.mxu0 %v12807_v52  ;;  %11796 = vmatprep.subr.bf16.mxu1 %v12808_v59 }
 0x4a9   :  { %11818 = vmatprep.subr.bf16.mxu0 %v12809_v27 }
 0x4ab   :  { %11797 = vmatpush3.bf16.msra.mxu1 %v12810_v43 }
 0x4ac   :  { %11819 = vmatpush3.bf16.msra.mxu0 %v12811_v57  ;;  %11972 = vmatprep.subr.bf16.mxu1 %v16422_v34 }
 0x4ad   :  { %11992 = vmatprep.subr.mxu0 %v16422_v34 }
 0x4ae   :  { %9714 = vmatmul.mubr.bf16.vlgmr.msra.gmra.mxu1 %v10944_v46 }
 0x4af   :  { %9754 = vmatmul.mubr.bf16.vlgmr.msra.gmra.mxu0 %v10946_v22  ;;  %11973 = vmatpush3.bf16.msra.mxu1 %v12812_v4 }
 0x4b0   :  { %11974 = vmatprep.subr.bf16.mxu1 %v16422_v34  ;;  %11988 = vmatprep.mubr.msk.bf16.mxu1 %vm12930_vm5, %v16422_v34 }
 0x4b1   :  { %12024 = vmatprep.mubr.msk.f32.mxu0 %vm12930_vm5, %v16422_v34  ;;  %11993 = vmatpush3.msra.mxu0 %v9817_v63 }
 0x4b2   :  { %11994 = vmatprep.subr.mxu0 %v16422_v34 }
 0x4b3   :  { %11975 = vmatpush3.bf16.msra.mxu1 %v12813_v23  ;;  %11995 = vmatpush3.msra.mxu0 %v9816_v17 }
 0x4b4   :  { %11976 = vmatprep.subr.bf16.mxu1 %v16422_v34  ;;  %11996 = vmatprep.subr.mxu0 %v16422_v34 }
 0x4b5   :  { %11997 = vmatpush3.msra.mxu0 %v9815_v15 }
 0x4b6   :  { %11998 = vmatprep.subr.mxu0 %v16422_v34 }
 0x4b7   :  { %11977 = vmatpush3.bf16.msra.mxu1 %v12814_v48  ;;  %11999 = vmatpush3.msra.mxu0 %v9814_v10 }
 0x4b8   :  { %11978 = vmatprep.subr.bf16.mxu1 %v16422_v34  ;;  %12000 = vmatprep.subr.mxu0 %v16422_v34 }
 0x4b9   :  { %12001 = vmatpush3.msra.mxu0 %v9813_v50 }
 0x4ba   :  { %12002 = vmatprep.subr.mxu0 %v16422_v34 }
 0x4bb   :  { %11979 = vmatpush3.bf16.msra.mxu1 %v12815_v6  ;;  %12003 = vmatpush3.msra.mxu0 %v9812_v20 }
 0x4bc   :  { %11980 = vmatprep.subr.bf16.mxu1 %v16422_v34  ;;  %12004 = vmatprep.subr.mxu0 %v16422_v34 }
 0x4bd   :  { %12005 = vmatpush3.msra.mxu0 %v9811_v36 }
 0x4be   :  { %12006 = vmatprep.subr.mxu0 %v16422_v34 }
 0x4bf   :  { %11981 = vmatpush3.bf16.msra.mxu1 %v12816_v13  ;;  %12007 = vmatpush3.msra.mxu0 %v9810_v29  ;;  %v11085_v29 = vld [vmem:[%s16289_s8] ss:$0 sm:$0xff]  ;;  %s12932_s8 = smov [#allocation11]  }
 0x4c0   :  { %11982 = vmatprep.subr.bf16.mxu1 %v16422_v34  ;;  %12008 = vmatprep.subr.mxu0 %v16422_v34  ;;  %s9921_s19 = sshll.u32 %s12932_s8, 4  ;;  %s9922_s19 = int_to_ptr.vmem [resolvable:$true] %s9921_s19 }
 0x4c1   :  { %12009 = vmatpush3.msra.mxu0 %v9809_v0  ;;  %s12898_s20 = scalar_lea.vmem %s9922_s19, 32  ;;  %p12903_p11 = scmp.lt.s32.totalorder %s9922_s19, %s9922_s19 }
 0x4c2   :  { %12010 = vmatprep.subr.mxu0 %v16422_v34  ;;  %p12899_p10 = scmp.ne.s32.totalorder %s9922_s19, %s12898_s20  ;;  %p12904_p12 = scmp.lt.s32.totalorder %s12898_s20, %s12898_s20 }
 0x4c3   :  { %11983 = vmatpush3.bf16.msra.mxu1 %v12817_v9  ;;  %12011 = vmatpush3.msra.mxu0 %v9808_v31 }
 0x4c4   :  { %11984 = vmatprep.subr.bf16.mxu1 %v16422_v34  ;;  %12012 = vmatprep.subr.mxu0 %v16422_v34  ;;  %p12905_p13 = por %p12904_p12, %p12903_p11 }
 0x4c5   :  { %12013 = vmatpush3.msra.mxu0 %v9807_v21 }
 0x4c6   :  { %12014 = vmatprep.subr.mxu0 %v16422_v34  ;;  %p12906_p0 = pnand %p12905_p13, %p12899_p10 }
 0x4c7   :  { %11985 = vmatpush3.bf16.msra.mxu1 %v12818_v53  ;;  %12015 = vmatpush3.msra.mxu0 %v9806_v55 }
 0x4c8   :  { %11986 = vmatprep.subr.bf16.mxu1 %v16422_v34  ;;  %12016 = vmatprep.subr.mxu0 %v16422_v34 }
 0x4c9   :  { %12017 = vmatpush3.msra.mxu0 %v9805_v30 }
 0x4ca   :  { %12018 = vmatprep.subr.mxu0 %v16422_v34 }
 0x4cb   :  { %11987 = vmatpush3.bf16.msra.mxu1 %v12819_v12  ;;  %12019 = vmatpush3.msra.mxu0 %v9804_v25 }
 0x4cc   :  { %12020 = vmatprep.subr.mxu0 %v16422_v34 }
 0x4cd   :  { %12021 = vmatpush3.msra.mxu0 %v9803_v35 }
 0x4ce   :  { %11989 = vmatmul.mubr.bf16.vlgmr.msra.gmra.mxu1 %v12820_v8  ;;  %12022 = vmatprep.subr.mxu0 %v16422_v34 }
 0x4cf   :  { %12023 = vmatpush3.msra.mxu0 %v9802_v60 }
 0x50e   :  { %v11666_v14 = vpop.f32.mrf.mxu1 }
 0x50f   :  { %v11688_v16 = vpop.f32.mrf.mxu0 }
 0x510   :  { %v11667_v42 = vpop.f32.mrf.mxu1 }
 0x511   :  { %v11668_v38 = vadd.f32 %v11667_v42, %v11666_v14  ;;  %v11689_v19 = vpop.f32.mrf.mxu0 }
 0x512   :  { %v11690_v45 = vadd.f32 %v11689_v19, %v11688_v16  ;;  %v11669_v32 = vpop.f32.mrf.mxu1 }
 0x513   :  { %v9476_v40 = vadd.f32 %v11668_v38, %v10931_v5  ;;  %v11691_v3 = vpop.f32.mrf.mxu0 }
 0x514   :  { %v11670_v11 = vpop.f32.mrf.mxu1 }
 0x515   :  { %v9516_v39 = vadd.f32 %v11690_v45, %v9476_v40  ;;  %v11692_v18 = vpop.f32.mrf.mxu0 }
 0x52e   :  { %v11710_v2 = vpop.f32.mrf.mxu1 }
 0x52f   :  { %v11732_v49 = vpop.f32.mrf.mxu0 }
 0x530   :  { %v11711_v24 = vpop.f32.mrf.mxu1 }
 0x531   :  { %v11712_v41 = vadd.f32 %v11711_v24, %v11710_v2  ;;  %v11733_v26 = vpop.f32.mrf.mxu0 }
 0x532   :  { %v11734_v33 = vadd.f32 %v11733_v26, %v11732_v49  ;;  %v11713_v47 = vpop.f32.mrf.mxu1 }
 0x533   :  { %v9556_v62 = vadd.f32 %v11712_v41, %v9516_v39  ;;  %v11735_v61 = vpop.f32.mrf.mxu0 }
 0x534   :  { %v11714_v54 = vpop.f32.mrf.mxu1 }
 0x535   :  { %v9596_v56 = vadd.f32 %v11734_v33, %v9556_v62  ;;  %v11736_v58 = vpop.f32.mrf.mxu0 }
 0x54e   :  { %v11754_v37 = vpop.f32.mrf.mxu1 }
 0x54f   :  { %v11776_v44 = vpop.f32.mrf.mxu0 }
 0x550   :  { %v11755_v28 = vpop.f32.mrf.mxu1 }
 0x551   :  { %v11777_v1 = vpop.f32.mrf.mxu0  ;;  %v11756_v48 = vadd.f32 %v11755_v28, %v11754_v37 }
 0x552   :  { %v11757_v7 = vpop.f32.mrf.mxu1  ;;  %v11778_v13 = vadd.f32 %v11777_v1, %v11776_v44 }
 0x553   :  { %v11779_v51 = vpop.f32.mrf.mxu0  ;;  %v9636_v6 = vadd.f32 %v11756_v48, %v9596_v56 }
 0x554   :  { %v11758_v34 = vpop.f32.mrf.mxu1 }
 0x555   :  { %v11780_v52 = vpop.f32.mrf.mxu0  ;;  %v9676_v53 = vadd.f32 %v11778_v13, %v9636_v6 }
 0x56e   :  { %v11798_v59 = vpop.f32.mrf.mxu1 }
 0x56f   :  { %v11820_v27 = vpop.f32.mrf.mxu0 }
 0x570   :  { %v11799_v43 = vpop.f32.mrf.mxu1 }
 0x571   :  { %v11821_v57 = vpop.f32.mrf.mxu0  ;;  %v11800_v9 = vadd.f32 %v11799_v43, %v11798_v59 }
 0x572   :  { %v11801_v4 = vpop.f32.mrf.mxu1  ;;  %v11822_v8 = vadd.f32 %v11821_v57, %v11820_v27 }
 0x573   :  { %v11823_v46 = vpop.f32.mrf.mxu0  ;;  %v9716_v12 = vadd.f32 %v11800_v9, %v9676_v53 }
 0x574   :  { %v11802_v22 = vpop.f32.mrf.mxu1 }
 0x575   :  { %v11824_v23 = vpop.f32.mrf.mxu0  ;;  %v9756_v63 = vadd.f32 %v11822_v8, %v9716_v12 }
 0x58e   :  { %v9795_v17 = vpop.f32.mrf.mxu1 }
 0x58f   :  { %v9796_v15 = vadd.f32 %v9795_v17, %v9756_v63 }
 0x590   :  { %v11990_v10 = vpop.f32.mrf.mxu1 }
 0x591   :  { %v9801_v50 = vmax.f32 %v9796_v15, 0.0 }
 0x592   :  { %v9798_v20 = vpop.f32.mrf.mxu1 }
 0x593   :  { %12025 = vmatmul.mubr.f32.vlgmr.msra.gmra.mxu0 %v9801_v50 }
 0x594   :  { %v11991_v36 = vpop.f32.mrf.mxu1 }
 0x653   :  { %v9891_v0 = vpop.f32.mrf.mxu0 }
 0x654   :  { %v9892_v31 = vadd.f32 %v11085_v29, %v9891_v0 }
 0x655   :  { %v12026_v21 = vpop.f32.mrf.mxu0 }
 0x656   :  { %9910 = vrot.lane.b32.xlu1 %v9892_v31, %s12931_s16  ;;  %v9896_v55 = vsel %vm9895_vm13, %v9892_v31, -inf }
 0x657   :  { %9897 = vmax.xlane.f32.xlu0 %v9896_v55 }
 0x6c8   :  { %v9911_v30 = vpop.permute.xlu1 %9910 }
 0x6c9   :  { %9914 = vst.msk [vmem:[%s16291_s10] sm:$0x3] %vm9913_vm14, %v9911_v30 }
 0x6e0   :  { %v9898_v14 = vpop.xlane.xlu0 %9897 }
 0x6e1   :  { %v9899_v16 = vsub.f32 %v9892_v31, %v9898_v14 }
 0x6e3   :  { %v9900_v5 = vmul.f32 1.442695, %v9899_v16 }
 0x6e5   :  { %12821 = vpow2.f32 %v9900_v5 }
 0x6f2   :  { %v12822_v42 = vpop.eup %12821 }
 0x6f3   :  { %v9902_v38 = vsel %vm9895_vm13, %v12822_v42, 0.0 }
 0x6f4   :  { %9903 = vadd.xlane.f32.xlu0 %v9902_v38 }
 0x77d   :  { %v9904_v19 = vpop.xlane.xlu0 %9903 }
 0x77e   :  { %12823 = vrcp.f32 %v9904_v19 }
 0x78b   :  { %v12824_v25 = vpop.eup %12823 }
 0x78c   :  { %v9906_v35 = vmul.f32 %v12824_v25, %v12822_v42 }
 0x78e   :  { %9908 = vst.msk [vmem:[#allocation11] sm:$0x3] %vm9907_vm15, %v9906_v35 }
 0x78f   :  { %12909 = shalt.err (!%p12906_p0)
}
 0x790   :  { %9924 = dma.vmem_to_hbm [thread:$0]  %s9922_s19, 32, %s16290_s9, [#allocation8]  }
 0x791   :  { %12922 = dma.done.wait [#allocation8], 32  }
 0x792   :  { %12923 = vsyncadd [#allocation8], 4294967264 }
 0x793   :  { %9932 = vsyncpa [#allocation7], 1 }
 0x794   :  { %9933 = vsyncpa [#allocation10], 1 }
 0x795   :  { %9934 = vsyncpa [#allocation8], 1 }

</bundles_post_ra>
